<compile_context>
chip_gen: v5e
topology: v5e:2x2
jax: 0.10.0
libtpu: 0.0.40
codegen_flags: <defaults>
</compile_context>

<pallas_src>
import jax
import jax.numpy as jnp
from jax import lax
import numpy as np
from jax.experimental import pallas as pl
from jax.experimental.pallas import tpu as pltpu

# ---- configuration (stands in for the module-level globals) ----
MLP_DIM = 32
EMBEDDING_DIM = 16
NUM_LAYERS = 1
DROPOUT = 0.0
MULTI_CONDITIONAL_MODEL = False
BATCH_NORM = False
ACTIVATION_RELU = "relu"

H_DIM = 32          # h_dim ctor arg
IN_DIM = 3          # mlp_dim ctor arg = traj_rel(2) + ped_speed(1)


def _discriminator_kernel(x_ref, wx_ref, bx_ref, whh_ref, w1_ref, b1_ref,
                          w2_ref, b2_ref, out_ref, gx_ref):
    """Fused input projection + LSTM recurrence + ReLU-MLP head, batch-on-lanes layout.

    Shapes (Bt = batch tile on the lane axis, G = 4*H):
      x_ref   (3, T, Bt)   packed [rel_x, rel_y, speed], lane-dense
      wx_ref  (3, G, 1)    folded (W_emb @ W_ih) feature columns, sublane-major
      bx_ref  (G, 1)       folded bias (b_emb @ W_ih + b_ih + b_hh)
      whh_ref (G, H)       W_hh^T
      w1_ref  (MLP, H)     classifier W1^T    b1_ref (MLP, 1)
      w2_ref  (MLP, 1)     classifier W2      b2_ref (1, 1)
      out_ref (1, Bt)      lane-dense scores
      gx_ref  (T, G, Bt)   VMEM scratch: precomputed input-projection gates
    """
    _, T, Bt = x_ref.shape
    G, H = whh_ref.shape

    # ---- batched input projection for ALL timesteps (VPU broadcast FMAs, no MXU) ----
    x0 = x_ref[0]            # (T, Bt)  rel_x
    x1 = x_ref[1]            # (T, Bt)  rel_y
    x2 = x_ref[2]            # (T, Bt)  speed
    wx0 = wx_ref[0]          # (G, 1)
    wx1 = wx_ref[1]
    wx2 = wx_ref[2]
    bx = bx_ref[...]         # (G, 1)
    for t in range(T):       # static, fully unrolled: 3 FMAs per (G, Bt) slab
        gx_ref[t] = (wx0 * x0[t][None, :]
                     + wx1 * x1[t][None, :]
                     + wx2 * x2[t][None, :]
                     + bx)

    # ---- hoisted recurrent weight (resident across the unrolled recurrence) ----
    w_hh = whh_ref[...]      # (G, H)

    def step(t, carry):
        h, c = carry                                                   # (H, Bt)
        gates = gx_ref[t] + jnp.dot(w_hh, h,
                                    preferred_element_type=jnp.float32)  # (G, Bt)
        # sublane slices at multiples of H=32 (multiples of 8) -> free; per-gate nonlinearity
        i = jax.nn.sigmoid(gates[0 * H:1 * H])
        f = jax.nn.sigmoid(gates[1 * H:2 * H])
        g = jnp.tanh(gates[2 * H:3 * H])
        o = jax.nn.sigmoid(gates[3 * H:4 * H])
        c = f * c + i * g
        h = o * jnp.tanh(c)
        return h, c

    h0 = jnp.zeros((H, Bt), jnp.float32)
    c0 = jnp.zeros((H, Bt), jnp.float32)
    h, _ = lax.fori_loop(0, T, step, (h0, c0), unroll=True)

    # ---- real_classifier: Linear(H, MLP_DIM) -> ReLU -> Linear(MLP_DIM, 1) ----
    h1 = jnp.maximum(jnp.dot(w1_ref[...], h, preferred_element_type=jnp.float32)
                     + b1_ref[...], 0.0)                               # (MLP, Bt)
    # final layer as elementwise mul + sublane reduce -> lane-dense (1, Bt) output
    out_ref[...] = (jnp.sum(w2_ref[...] * h1, axis=0, keepdims=True)
                    + b2_ref[...])


def trajectory_discriminator(traj, traj_rel, ped_speed, params, *, b_tile=None):
    # `traj` is unused by the PyTorch forward (only traj_rel & ped_speed feed the encoder).
    del traj
    traj_rel = traj_rel.astype(jnp.float32)     # (T, B, 2)
    ped_speed = ped_speed.astype(jnp.float32)   # (T, B, 1)
    T, B, _ = traj_rel.shape
    G = 4 * H_DIM

    # Fold spatial_embedding into the LSTM input projection (done once, outside the kernel).
    w_x = params["w_emb"] @ params["w_ih"]                        # (3, 4H)
    b_x = params["b_emb"] @ params["w_ih"] + params["b_lstm"]     # (1, 4H)

    # Batch-on-lanes weight layouts.
    wx = w_x[:, :, None]                                          # (3, 4H, 1)
    bx = b_x.reshape(G, 1)                                        # (4H, 1)
    whh_t = params["w_hh"].T                                      # (4H, H)
    w1_t = params["w1"].T                                         # (MLP, H)
    b1_t = params["b1"].T                                         # (MLP, 1)
    w2 = params["w2"]                                             # (MLP, 1)
    b2 = params["b2"]                                             # (1, 1)

    # Lane-aligned batch tile; pad B so the grid is even and >= 2 (both v7x TensorCores busy).
    if b_tile is None:
        b_tile = min(512, pl.cdiv(B, 128) * 128)
    assert b_tile % 128 == 0, "b_tile must be a multiple of 128 (lane width)"
    B_pad = pl.cdiv(B, 2 * b_tile) * (2 * b_tile)
    grid = (B_pad // b_tile,)

    # Lane-dense input packing: (3, T, B_pad), batch on the lane axis.
    x = jnp.concatenate([traj_rel, ped_speed], axis=2)            # (T, B, 3)
    x = jnp.transpose(x, (2, 0, 1))                               # (3, T, B)
    if B_pad != B:
        x = jnp.pad(x, ((0, 0), (0, 0), (0, B_pad - B)))

    def full_spec(a):
        n = a.ndim
        return pl.BlockSpec(a.shape, lambda i, _n=n: (0,) * _n)

    in_specs = [
        pl.BlockSpec((3, T, b_tile), lambda i: (0, 0, i)),        # packed inputs (lane-dense)
        full_spec(wx), full_spec(bx), full_spec(whh_t),
        full_spec(w1_t), full_spec(b1_t), full_spec(w2), full_spec(b2),
    ]
    out_spec = pl.BlockSpec((1, b_tile), lambda i: (0, i))        # lane-dense scores

    scores_1b = pl.pallas_call(
        _discriminator_kernel,
        out_shape=jax.ShapeDtypeStruct((1, B_pad), jnp.float32),
        grid=grid,
        in_specs=in_specs,
        out_specs=out_spec,
        scratch_shapes=[pltpu.VMEM((T, G, b_tile), jnp.float32)],  # staged gates_x
        compiler_params=pltpu.CompilerParams(
            dimension_semantics=("parallel",)),                    # batch tiles across TCs
    )(x, wx, bx, whh_t, w1_t, b1_t, w2, b2)

    # PyTorch returns (B, 1); drop the padded lanes.
    return scores_1b[0, :B].reshape(B, 1)


def init_params(key):
    """Deterministic synthetic parameters with the shapes the module implies."""
    ks = jax.random.split(key, 10)

    def u(k, shape, fan_in):
        s = 1.0 / np.sqrt(fan_in)
        return jax.random.uniform(k, shape, jnp.float32, -s, s)

    params = {
        # spatial_embedding: nn.Linear(IN_DIM, EMBEDDING_DIM)  (stored transposed)
        "w_emb": u(ks[0], (IN_DIM, EMBEDDING_DIM), IN_DIM),
        "b_emb": u(ks[1], (1, EMBEDDING_DIM), IN_DIM),
        # nn.LSTM(EMBEDDING_DIM, H_DIM, 1): weight_ih (4H,E), weight_hh (4H,H) -> transposed
        "w_ih": u(ks[2], (EMBEDDING_DIM, 4 * H_DIM), H_DIM),
        "w_hh": u(ks[3], (H_DIM, 4 * H_DIM), H_DIM),
        # fused b_ih + b_hh
        "b_lstm": u(ks[4], (1, 4 * H_DIM), H_DIM) + u(ks[5], (1, 4 * H_DIM), H_DIM),
        # real_classifier: Linear(H, MLP_DIM), Linear(MLP_DIM, 1)
        "w1": u(ks[6], (H_DIM, MLP_DIM), H_DIM),
        "b1": u(ks[7], (1, MLP_DIM), H_DIM),
        "w2": u(ks[8], (MLP_DIM, 1), MLP_DIM),
        "b2": u(ks[9], (1, 1), MLP_DIM),
    }
    return params


def reference_forward(traj_rel, ped_speed, p):
    """Pure-JAX reference mirroring the (unfused) PyTorch forward exactly."""
    x = jnp.concatenate([traj_rel, ped_speed], axis=2).astype(jnp.float32)  # (T, B, 3)
    T, B, _ = x.shape
    e = x @ p["w_emb"] + p["b_emb"]                                         # (T, B, E)
    h = jnp.zeros((B, H_DIM), jnp.float32)
    c = jnp.zeros((B, H_DIM), jnp.float32)
    for t in range(T):
        gates = e[t] @ p["w_ih"] + h @ p["w_hh"] + p["b_lstm"]
        i = jax.nn.sigmoid(gates[:, 0 * H_DIM:1 * H_DIM])
        f = jax.nn.sigmoid(gates[:, 1 * H_DIM:2 * H_DIM])
        g = jnp.tanh(gates[:, 2 * H_DIM:3 * H_DIM])
        o = jax.nn.sigmoid(gates[:, 3 * H_DIM:4 * H_DIM])
        c = f * c + i * g
        h = o * jnp.tanh(c)
    h1 = jnp.maximum(h @ p["w1"] + p["b1"], 0.0)
    return h1 @ p["w2"] + p["b2"]


if __name__ == "__main__":
    T, B = 8, 8
    key = jax.random.PRNGKey(0)
    k_traj, k_rel, k_speed, k_params = jax.random.split(key, 4)

    traj = jax.random.normal(k_traj, (T, B, 2), jnp.float32)
    traj_rel = jax.random.normal(k_rel, (T, B, 2), jnp.float32)
    ped_speed = jax.random.uniform(k_speed, (T, B, 1), jnp.float32)

    params = init_params(k_params)

    scores = trajectory_discriminator(traj, traj_rel, ped_speed, params)
    scores = jax.block_until_ready(scores)

    ref = reference_forward(traj_rel, ped_speed, params)
    np.testing.assert_allclose(np.asarray(scores), np.asarray(ref),
                               rtol=1e-4, atol=1e-5)
    assert scores.shape == (B, 1)

    print("KERNEL_OK")
</pallas_src>

<mosaic_0001>
module attributes {stable_mosaic.version = 11 : i64} {
  func.func @_discriminator_kernel(%arg0: i32, %arg1: memref<3x8x128xf32, #tpu.memory_space<vmem>>, %arg2: memref<3x128x1xf32, #tpu.memory_space<vmem>>, %arg3: memref<128x1xf32, #tpu.memory_space<vmem>>, %arg4: memref<128x32xf32, #tpu.memory_space<vmem>>, %arg5: memref<32x32xf32, #tpu.memory_space<vmem>>, %arg6: memref<32x1xf32, #tpu.memory_space<vmem>>, %arg7: memref<32x1xf32, #tpu.memory_space<vmem>>, %arg8: memref<1x1xf32, #tpu.memory_space<vmem>>, %arg9: memref<1x128xf32, #tpu.memory_space<vmem>>, %arg10: memref<8x128x128xf32, #tpu.memory_space<vmem>>) attributes {dimension_semantics = [#tpu.dimension_semantics<parallel>], iteration_bounds = array<i64: 2>, scalar_prefetch = 0 : i64, scratch_operands = 1 : i64, tpu.core_type = #tpu.core_type<tc>, window_params = [{transform_indices = @transform_0, window_bounds = array<i64: 3, 8, 128>}, {pipeline_mode = #tpu.pipeline_mode<synchronous>, transform_indices = @transform_1, window_bounds = array<i64: 3, 128, 1>}, {pipeline_mode = #tpu.pipeline_mode<synchronous>, transform_indices = @transform_2, window_bounds = array<i64: 128, 1>}, {pipeline_mode = #tpu.pipeline_mode<synchronous>, transform_indices = @transform_3, window_bounds = array<i64: 128, 32>}, {pipeline_mode = #tpu.pipeline_mode<synchronous>, transform_indices = @transform_4, window_bounds = array<i64: 32, 32>}, {pipeline_mode = #tpu.pipeline_mode<synchronous>, transform_indices = @transform_5, window_bounds = array<i64: 32, 1>}, {pipeline_mode = #tpu.pipeline_mode<synchronous>, transform_indices = @transform_6, window_bounds = array<i64: 32, 1>}, {pipeline_mode = #tpu.pipeline_mode<synchronous>, transform_indices = @transform_7, window_bounds = array<i64: 1, 1>}, {transform_indices = @transform_8, window_bounds = array<i64: 1, 128>}]} {
    %c0 = arith.constant 0 : index
    %c0_0 = arith.constant 0 : index
    %c0_1 = arith.constant 0 : index
    %0 = vector.load %arg1[%c0, %c0_0, %c0_1] : memref<3x8x128xf32, #tpu.memory_space<vmem>>, vector<1x8x128xf32>
    %1 = vector.shape_cast %0 : vector<1x8x128xf32> to vector<8x128xf32>
    %c1 = arith.constant 1 : index
    %c0_2 = arith.constant 0 : index
    %c0_3 = arith.constant 0 : index
    %2 = vector.load %arg1[%c1, %c0_2, %c0_3] : memref<3x8x128xf32, #tpu.memory_space<vmem>>, vector<1x8x128xf32>
    %3 = vector.shape_cast %2 : vector<1x8x128xf32> to vector<8x128xf32>
    %c2 = arith.constant 2 : index
    %c0_4 = arith.constant 0 : index
    %c0_5 = arith.constant 0 : index
    %4 = vector.load %arg1[%c2, %c0_4, %c0_5] : memref<3x8x128xf32, #tpu.memory_space<vmem>>, vector<1x8x128xf32>
    %5 = vector.shape_cast %4 : vector<1x8x128xf32> to vector<8x128xf32>
    %c0_6 = arith.constant 0 : index
    %c0_7 = arith.constant 0 : index
    %c0_8 = arith.constant 0 : index
    %6 = vector.load %arg2[%c0_6, %c0_7, %c0_8] : memref<3x128x1xf32, #tpu.memory_space<vmem>>, vector<1x128x1xf32>
    %7 = vector.shape_cast %6 : vector<1x128x1xf32> to vector<128x1xf32>
    %c1_9 = arith.constant 1 : index
    %c0_10 = arith.constant 0 : index
    %c0_11 = arith.constant 0 : index
    %8 = vector.load %arg2[%c1_9, %c0_10, %c0_11] : memref<3x128x1xf32, #tpu.memory_space<vmem>>, vector<1x128x1xf32>
    %9 = vector.shape_cast %8 : vector<1x128x1xf32> to vector<128x1xf32>
    %c2_12 = arith.constant 2 : index
    %c0_13 = arith.constant 0 : index
    %c0_14 = arith.constant 0 : index
    %10 = vector.load %arg2[%c2_12, %c0_13, %c0_14] : memref<3x128x1xf32, #tpu.memory_space<vmem>>, vector<1x128x1xf32>
    %11 = vector.shape_cast %10 : vector<1x128x1xf32> to vector<128x1xf32>
    %c0_15 = arith.constant 0 : index
    %c0_16 = arith.constant 0 : index
    %12 = vector.load %arg3[%c0_15, %c0_16] : memref<128x1xf32, #tpu.memory_space<vmem>>, vector<128x1xf32>
    %13 = vector.extract_strided_slice %1 {offsets = [0, 0], sizes = [1, 128], strides = [1, 1]} : vector<8x128xf32> to vector<1x128xf32>
    %14 = vector.shape_cast %13 : vector<1x128xf32> to vector<128xf32>
    %15 = vector.shape_cast %14 : vector<128xf32> to vector<1x128xf32>
    %16 = vector.broadcast %7 : vector<128x1xf32> to vector<128x128xf32>
    %17 = vector.broadcast %15 : vector<1x128xf32> to vector<128x128xf32>
    %18 = arith.mulf %16, %17 : vector<128x128xf32>
    %19 = vector.extract_strided_slice %3 {offsets = [0, 0], sizes = [1, 128], strides = [1, 1]} : vector<8x128xf32> to vector<1x128xf32>
    %20 = vector.shape_cast %19 : vector<1x128xf32> to vector<128xf32>
    %21 = vector.shape_cast %20 : vector<128xf32> to vector<1x128xf32>
    %22 = vector.broadcast %9 : vector<128x1xf32> to vector<128x128xf32>
    %23 = vector.broadcast %21 : vector<1x128xf32> to vector<128x128xf32>
    %24 = arith.mulf %22, %23 : vector<128x128xf32>
    %25 = arith.addf %18, %24 : vector<128x128xf32>
    %26 = vector.extract_strided_slice %5 {offsets = [0, 0], sizes = [1, 128], strides = [1, 1]} : vector<8x128xf32> to vector<1x128xf32>
    %27 = vector.shape_cast %26 : vector<1x128xf32> to vector<128xf32>
    %28 = vector.shape_cast %27 : vector<128xf32> to vector<1x128xf32>
    %29 = vector.broadcast %11 : vector<128x1xf32> to vector<128x128xf32>
    %30 = vector.broadcast %28 : vector<1x128xf32> to vector<128x128xf32>
    %31 = arith.mulf %29, %30 : vector<128x128xf32>
    %32 = arith.addf %25, %31 : vector<128x128xf32>
    %33 = vector.broadcast %12 : vector<128x1xf32> to vector<128x128xf32>
    %34 = arith.addf %32, %33 : vector<128x128xf32>
    %c0_17 = arith.constant 0 : index
    %c0_18 = arith.constant 0 : index
    %c0_19 = arith.constant 0 : index
    %35 = vector.load %arg10[%c0_17, %c0_18, %c0_19] : memref<8x128x128xf32, #tpu.memory_space<vmem>>, vector<1x128x128xf32>
    %36 = vector.shape_cast %35 : vector<1x128x128xf32> to vector<128x128xf32>
    %37 = vector.shape_cast %34 : vector<128x128xf32> to vector<1x128x128xf32>
    tpu.vector_store %arg10[%c0_17, %c0_18, %c0_19], %37 {strides = array<i32>} : memref<8x128x128xf32, #tpu.memory_space<vmem>>, vector<1x128x128xf32>,
    %38 = vector.extract_strided_slice %1 {offsets = [1, 0], sizes = [1, 128], strides = [1, 1]} : vector<8x128xf32> to vector<1x128xf32>
    %39 = vector.shape_cast %38 : vector<1x128xf32> to vector<128xf32>
    %40 = vector.shape_cast %39 : vector<128xf32> to vector<1x128xf32>
    %41 = vector.broadcast %7 : vector<128x1xf32> to vector<128x128xf32>
    %42 = vector.broadcast %40 : vector<1x128xf32> to vector<128x128xf32>
    %43 = arith.mulf %41, %42 : vector<128x128xf32>
    %44 = vector.extract_strided_slice %3 {offsets = [1, 0], sizes = [1, 128], strides = [1, 1]} : vector<8x128xf32> to vector<1x128xf32>
    %45 = vector.shape_cast %44 : vector<1x128xf32> to vector<128xf32>
    %46 = vector.shape_cast %45 : vector<128xf32> to vector<1x128xf32>
    %47 = vector.broadcast %9 : vector<128x1xf32> to vector<128x128xf32>
    %48 = vector.broadcast %46 : vector<1x128xf32> to vector<128x128xf32>
    %49 = arith.mulf %47, %48 : vector<128x128xf32>
    %50 = arith.addf %43, %49 : vector<128x128xf32>
    %51 = vector.extract_strided_slice %5 {offsets = [1, 0], sizes = [1, 128], strides = [1, 1]} : vector<8x128xf32> to vector<1x128xf32>
    %52 = vector.shape_cast %51 : vector<1x128xf32> to vector<128xf32>
    %53 = vector.shape_cast %52 : vector<128xf32> to vector<1x128xf32>
    %54 = vector.broadcast %11 : vector<128x1xf32> to vector<128x128xf32>
    %55 = vector.broadcast %53 : vector<1x128xf32> to vector<128x128xf32>
    %56 = arith.mulf %54, %55 : vector<128x128xf32>
    %57 = arith.addf %50, %56 : vector<128x128xf32>
    %58 = vector.broadcast %12 : vector<128x1xf32> to vector<128x128xf32>
    %59 = arith.addf %57, %58 : vector<128x128xf32>
    %c1_20 = arith.constant 1 : index
    %c0_21 = arith.constant 0 : index
    %c0_22 = arith.constant 0 : index
    %60 = vector.load %arg10[%c1_20, %c0_21, %c0_22] : memref<8x128x128xf32, #tpu.memory_space<vmem>>, vector<1x128x128xf32>
    %61 = vector.shape_cast %60 : vector<1x128x128xf32> to vector<128x128xf32>
    %62 = vector.shape_cast %59 : vector<128x128xf32> to vector<1x128x128xf32>
    tpu.vector_store %arg10[%c1_20, %c0_21, %c0_22], %62 {strides = array<i32>} : memref<8x128x128xf32, #tpu.memory_space<vmem>>, vector<1x128x128xf32>,
    %63 = vector.extract_strided_slice %1 {offsets = [2, 0], sizes = [1, 128], strides = [1, 1]} : vector<8x128xf32> to vector<1x128xf32>
    %64 = vector.shape_cast %63 : vector<1x128xf32> to vector<128xf32>
    %65 = vector.shape_cast %64 : vector<128xf32> to vector<1x128xf32>
    %66 = vector.broadcast %7 : vector<128x1xf32> to vector<128x128xf32>
    %67 = vector.broadcast %65 : vector<1x128xf32> to vector<128x128xf32>
    %68 = arith.mulf %66, %67 : vector<128x128xf32>
    %69 = vector.extract_strided_slice %3 {offsets = [2, 0], sizes = [1, 128], strides = [1, 1]} : vector<8x128xf32> to vector<1x128xf32>
    %70 = vector.shape_cast %69 : vector<1x128xf32> to vector<128xf32>
    %71 = vector.shape_cast %70 : vector<128xf32> to vector<1x128xf32>
    %72 = vector.broadcast %9 : vector<128x1xf32> to vector<128x128xf32>
    %73 = vector.broadcast %71 : vector<1x128xf32> to vector<128x128xf32>
    %74 = arith.mulf %72, %73 : vector<128x128xf32>
    %75 = arith.addf %68, %74 : vector<128x128xf32>
    %76 = vector.extract_strided_slice %5 {offsets = [2, 0], sizes = [1, 128], strides = [1, 1]} : vector<8x128xf32> to vector<1x128xf32>
    %77 = vector.shape_cast %76 : vector<1x128xf32> to vector<128xf32>
    %78 = vector.shape_cast %77 : vector<128xf32> to vector<1x128xf32>
    %79 = vector.broadcast %11 : vector<128x1xf32> to vector<128x128xf32>
    %80 = vector.broadcast %78 : vector<1x128xf32> to vector<128x128xf32>
    %81 = arith.mulf %79, %80 : vector<128x128xf32>
    %82 = arith.addf %75, %81 : vector<128x128xf32>
    %83 = vector.broadcast %12 : vector<128x1xf32> to vector<128x128xf32>
    %84 = arith.addf %82, %83 : vector<128x128xf32>
    %c2_23 = arith.constant 2 : index
    %c0_24 = arith.constant 0 : index
    %c0_25 = arith.constant 0 : index
    %85 = vector.load %arg10[%c2_23, %c0_24, %c0_25] : memref<8x128x128xf32, #tpu.memory_space<vmem>>, vector<1x128x128xf32>
    %86 = vector.shape_cast %85 : vector<1x128x128xf32> to vector<128x128xf32>
    %87 = vector.shape_cast %84 : vector<128x128xf32> to vector<1x128x128xf32>
    tpu.vector_store %arg10[%c2_23, %c0_24, %c0_25], %87 {strides = array<i32>} : memref<8x128x128xf32, #tpu.memory_space<vmem>>, vector<1x128x128xf32>,
    %88 = vector.extract_strided_slice %1 {offsets = [3, 0], sizes = [1, 128], strides = [1, 1]} : vector<8x128xf32> to vector<1x128xf32>
    %89 = vector.shape_cast %88 : vector<1x128xf32> to vector<128xf32>
    %90 = vector.shape_cast %89 : vector<128xf32> to vector<1x128xf32>
    %91 = vector.broadcast %7 : vector<128x1xf32> to vector<128x128xf32>
    %92 = vector.broadcast %90 : vector<1x128xf32> to vector<128x128xf32>
    %93 = arith.mulf %91, %92 : vector<128x128xf32>
    %94 = vector.extract_strided_slice %3 {offsets = [3, 0], sizes = [1, 128], strides = [1, 1]} : vector<8x128xf32> to vector<1x128xf32>
    %95 = vector.shape_cast %94 : vector<1x128xf32> to vector<128xf32>
    %96 = vector.shape_cast %95 : vector<128xf32> to vector<1x128xf32>
    %97 = vector.broadcast %9 : vector<128x1xf32> to vector<128x128xf32>
    %98 = vector.broadcast %96 : vector<1x128xf32> to vector<128x128xf32>
    %99 = arith.mulf %97, %98 : vector<128x128xf32>
    %100 = arith.addf %93, %99 : vector<128x128xf32>
    %101 = vector.extract_strided_slice %5 {offsets = [3, 0], sizes = [1, 128], strides = [1, 1]} : vector<8x128xf32> to vector<1x128xf32>
    %102 = vector.shape_cast %101 : vector<1x128xf32> to vector<128xf32>
    %103 = vector.shape_cast %102 : vector<128xf32> to vector<1x128xf32>
    %104 = vector.broadcast %11 : vector<128x1xf32> to vector<128x128xf32>
    %105 = vector.broadcast %103 : vector<1x128xf32> to vector<128x128xf32>
    %106 = arith.mulf %104, %105 : vector<128x128xf32>
    %107 = arith.addf %100, %106 : vector<128x128xf32>
    %108 = vector.broadcast %12 : vector<128x1xf32> to vector<128x128xf32>
    %109 = arith.addf %107, %108 : vector<128x128xf32>
    %c3 = arith.constant 3 : index
    %c0_26 = arith.constant 0 : index
    %c0_27 = arith.constant 0 : index
    %110 = vector.load %arg10[%c3, %c0_26, %c0_27] : memref<8x128x128xf32, #tpu.memory_space<vmem>>, vector<1x128x128xf32>
    %111 = vector.shape_cast %110 : vector<1x128x128xf32> to vector<128x128xf32>
    %112 = vector.shape_cast %109 : vector<128x128xf32> to vector<1x128x128xf32>
    tpu.vector_store %arg10[%c3, %c0_26, %c0_27], %112 {strides = array<i32>} : memref<8x128x128xf32, #tpu.memory_space<vmem>>, vector<1x128x128xf32>,
    %113 = vector.extract_strided_slice %1 {offsets = [4, 0], sizes = [1, 128], strides = [1, 1]} : vector<8x128xf32> to vector<1x128xf32>
    %114 = vector.shape_cast %113 : vector<1x128xf32> to vector<128xf32>
    %115 = vector.shape_cast %114 : vector<128xf32> to vector<1x128xf32>
    %116 = vector.broadcast %7 : vector<128x1xf32> to vector<128x128xf32>
    %117 = vector.broadcast %115 : vector<1x128xf32> to vector<128x128xf32>
    %118 = arith.mulf %116, %117 : vector<128x128xf32>
    %119 = vector.extract_strided_slice %3 {offsets = [4, 0], sizes = [1, 128], strides = [1, 1]} : vector<8x128xf32> to vector<1x128xf32>
    %120 = vector.shape_cast %119 : vector<1x128xf32> to vector<128xf32>
    %121 = vector.shape_cast %120 : vector<128xf32> to vector<1x128xf32>
    %122 = vector.broadcast %9 : vector<128x1xf32> to vector<128x128xf32>
    %123 = vector.broadcast %121 : vector<1x128xf32> to vector<128x128xf32>
    %124 = arith.mulf %122, %123 : vector<128x128xf32>
    %125 = arith.addf %118, %124 : vector<128x128xf32>
    %126 = vector.extract_strided_slice %5 {offsets = [4, 0], sizes = [1, 128], strides = [1, 1]} : vector<8x128xf32> to vector<1x128xf32>
    %127 = vector.shape_cast %126 : vector<1x128xf32> to vector<128xf32>
    %128 = vector.shape_cast %127 : vector<128xf32> to vector<1x128xf32>
    %129 = vector.broadcast %11 : vector<128x1xf32> to vector<128x128xf32>
    %130 = vector.broadcast %128 : vector<1x128xf32> to vector<128x128xf32>
    %131 = arith.mulf %129, %130 : vector<128x128xf32>
    %132 = arith.addf %125, %131 : vector<128x128xf32>
    %133 = vector.broadcast %12 : vector<128x1xf32> to vector<128x128xf32>
    %134 = arith.addf %132, %133 : vector<128x128xf32>
    %c4 = arith.constant 4 : index
    %c0_28 = arith.constant 0 : index
    %c0_29 = arith.constant 0 : index
    %135 = vector.load %arg10[%c4, %c0_28, %c0_29] : memref<8x128x128xf32, #tpu.memory_space<vmem>>, vector<1x128x128xf32>
    %136 = vector.shape_cast %135 : vector<1x128x128xf32> to vector<128x128xf32>
    %137 = vector.shape_cast %134 : vector<128x128xf32> to vector<1x128x128xf32>
    tpu.vector_store %arg10[%c4, %c0_28, %c0_29], %137 {strides = array<i32>} : memref<8x128x128xf32, #tpu.memory_space<vmem>>, vector<1x128x128xf32>,
    %138 = vector.extract_strided_slice %1 {offsets = [5, 0], sizes = [1, 128], strides = [1, 1]} : vector<8x128xf32> to vector<1x128xf32>
    %139 = vector.shape_cast %138 : vector<1x128xf32> to vector<128xf32>
    %140 = vector.shape_cast %139 : vector<128xf32> to vector<1x128xf32>
    %141 = vector.broadcast %7 : vector<128x1xf32> to vector<128x128xf32>
    %142 = vector.broadcast %140 : vector<1x128xf32> to vector<128x128xf32>
    %143 = arith.mulf %141, %142 : vector<128x128xf32>
    %144 = vector.extract_strided_slice %3 {offsets = [5, 0], sizes = [1, 128], strides = [1, 1]} : vector<8x128xf32> to vector<1x128xf32>
    %145 = vector.shape_cast %144 : vector<1x128xf32> to vector<128xf32>
    %146 = vector.shape_cast %145 : vector<128xf32> to vector<1x128xf32>
    %147 = vector.broadcast %9 : vector<128x1xf32> to vector<128x128xf32>
    %148 = vector.broadcast %146 : vector<1x128xf32> to vector<128x128xf32>
    %149 = arith.mulf %147, %148 : vector<128x128xf32>
    %150 = arith.addf %143, %149 : vector<128x128xf32>
    %151 = vector.extract_strided_slice %5 {offsets = [5, 0], sizes = [1, 128], strides = [1, 1]} : vector<8x128xf32> to vector<1x128xf32>
    %152 = vector.shape_cast %151 : vector<1x128xf32> to vector<128xf32>
    %153 = vector.shape_cast %152 : vector<128xf32> to vector<1x128xf32>
    %154 = vector.broadcast %11 : vector<128x1xf32> to vector<128x128xf32>
    %155 = vector.broadcast %153 : vector<1x128xf32> to vector<128x128xf32>
    %156 = arith.mulf %154, %155 : vector<128x128xf32>
    %157 = arith.addf %150, %156 : vector<128x128xf32>
    %158 = vector.broadcast %12 : vector<128x1xf32> to vector<128x128xf32>
    %159 = arith.addf %157, %158 : vector<128x128xf32>
    %c5 = arith.constant 5 : index
    %c0_30 = arith.constant 0 : index
    %c0_31 = arith.constant 0 : index
    %160 = vector.load %arg10[%c5, %c0_30, %c0_31] : memref<8x128x128xf32, #tpu.memory_space<vmem>>, vector<1x128x128xf32>
    %161 = vector.shape_cast %160 : vector<1x128x128xf32> to vector<128x128xf32>
    %162 = vector.shape_cast %159 : vector<128x128xf32> to vector<1x128x128xf32>
    tpu.vector_store %arg10[%c5, %c0_30, %c0_31], %162 {strides = array<i32>} : memref<8x128x128xf32, #tpu.memory_space<vmem>>, vector<1x128x128xf32>,
    %163 = vector.extract_strided_slice %1 {offsets = [6, 0], sizes = [1, 128], strides = [1, 1]} : vector<8x128xf32> to vector<1x128xf32>
    %164 = vector.shape_cast %163 : vector<1x128xf32> to vector<128xf32>
    %165 = vector.shape_cast %164 : vector<128xf32> to vector<1x128xf32>
    %166 = vector.broadcast %7 : vector<128x1xf32> to vector<128x128xf32>
    %167 = vector.broadcast %165 : vector<1x128xf32> to vector<128x128xf32>
    %168 = arith.mulf %166, %167 : vector<128x128xf32>
    %169 = vector.extract_strided_slice %3 {offsets = [6, 0], sizes = [1, 128], strides = [1, 1]} : vector<8x128xf32> to vector<1x128xf32>
    %170 = vector.shape_cast %169 : vector<1x128xf32> to vector<128xf32>
    %171 = vector.shape_cast %170 : vector<128xf32> to vector<1x128xf32>
    %172 = vector.broadcast %9 : vector<128x1xf32> to vector<128x128xf32>
    %173 = vector.broadcast %171 : vector<1x128xf32> to vector<128x128xf32>
    %174 = arith.mulf %172, %173 : vector<128x128xf32>
    %175 = arith.addf %168, %174 : vector<128x128xf32>
    %176 = vector.extract_strided_slice %5 {offsets = [6, 0], sizes = [1, 128], strides = [1, 1]} : vector<8x128xf32> to vector<1x128xf32>
    %177 = vector.shape_cast %176 : vector<1x128xf32> to vector<128xf32>
    %178 = vector.shape_cast %177 : vector<128xf32> to vector<1x128xf32>
    %179 = vector.broadcast %11 : vector<128x1xf32> to vector<128x128xf32>
    %180 = vector.broadcast %178 : vector<1x128xf32> to vector<128x128xf32>
    %181 = arith.mulf %179, %180 : vector<128x128xf32>
    %182 = arith.addf %175, %181 : vector<128x128xf32>
    %183 = vector.broadcast %12 : vector<128x1xf32> to vector<128x128xf32>
    %184 = arith.addf %182, %183 : vector<128x128xf32>
    %c6 = arith.constant 6 : index
    %c0_32 = arith.constant 0 : index
    %c0_33 = arith.constant 0 : index
    %185 = vector.load %arg10[%c6, %c0_32, %c0_33] : memref<8x128x128xf32, #tpu.memory_space<vmem>>, vector<1x128x128xf32>
    %186 = vector.shape_cast %185 : vector<1x128x128xf32> to vector<128x128xf32>
    %187 = vector.shape_cast %184 : vector<128x128xf32> to vector<1x128x128xf32>
    tpu.vector_store %arg10[%c6, %c0_32, %c0_33], %187 {strides = array<i32>} : memref<8x128x128xf32, #tpu.memory_space<vmem>>, vector<1x128x128xf32>,
    %188 = vector.extract_strided_slice %1 {offsets = [7, 0], sizes = [1, 128], strides = [1, 1]} : vector<8x128xf32> to vector<1x128xf32>
    %189 = vector.shape_cast %188 : vector<1x128xf32> to vector<128xf32>
    %190 = vector.shape_cast %189 : vector<128xf32> to vector<1x128xf32>
    %191 = vector.broadcast %7 : vector<128x1xf32> to vector<128x128xf32>
    %192 = vector.broadcast %190 : vector<1x128xf32> to vector<128x128xf32>
    %193 = arith.mulf %191, %192 : vector<128x128xf32>
    %194 = vector.extract_strided_slice %3 {offsets = [7, 0], sizes = [1, 128], strides = [1, 1]} : vector<8x128xf32> to vector<1x128xf32>
    %195 = vector.shape_cast %194 : vector<1x128xf32> to vector<128xf32>
    %196 = vector.shape_cast %195 : vector<128xf32> to vector<1x128xf32>
    %197 = vector.broadcast %9 : vector<128x1xf32> to vector<128x128xf32>
    %198 = vector.broadcast %196 : vector<1x128xf32> to vector<128x128xf32>
    %199 = arith.mulf %197, %198 : vector<128x128xf32>
    %200 = arith.addf %193, %199 : vector<128x128xf32>
    %201 = vector.extract_strided_slice %5 {offsets = [7, 0], sizes = [1, 128], strides = [1, 1]} : vector<8x128xf32> to vector<1x128xf32>
    %202 = vector.shape_cast %201 : vector<1x128xf32> to vector<128xf32>
    %203 = vector.shape_cast %202 : vector<128xf32> to vector<1x128xf32>
    %204 = vector.broadcast %11 : vector<128x1xf32> to vector<128x128xf32>
    %205 = vector.broadcast %203 : vector<1x128xf32> to vector<128x128xf32>
    %206 = arith.mulf %204, %205 : vector<128x128xf32>
    %207 = arith.addf %200, %206 : vector<128x128xf32>
    %208 = vector.broadcast %12 : vector<128x1xf32> to vector<128x128xf32>
    %209 = arith.addf %207, %208 : vector<128x128xf32>
    %c7 = arith.constant 7 : index
    %c0_34 = arith.constant 0 : index
    %c0_35 = arith.constant 0 : index
    %210 = vector.load %arg10[%c7, %c0_34, %c0_35] : memref<8x128x128xf32, #tpu.memory_space<vmem>>, vector<1x128x128xf32>
    %211 = vector.shape_cast %210 : vector<1x128x128xf32> to vector<128x128xf32>
    %212 = vector.shape_cast %209 : vector<128x128xf32> to vector<1x128x128xf32>
    tpu.vector_store %arg10[%c7, %c0_34, %c0_35], %212 {strides = array<i32>} : memref<8x128x128xf32, #tpu.memory_space<vmem>>, vector<1x128x128xf32>,
    %c0_36 = arith.constant 0 : index
    %c0_37 = arith.constant 0 : index
    %213 = vector.load %arg4[%c0_36, %c0_37] : memref<128x32xf32, #tpu.memory_space<vmem>>, vector<128x32xf32>
    %cst = arith.constant 0.000000e+00 : f32
    %214 = vector.broadcast %cst : f32 to vector<32x128xf32>
    %cst_38 = arith.constant 0.000000e+00 : f32
    %215 = vector.broadcast %cst_38 : f32 to vector<32x128xf32>
    %c0_i32 = arith.constant 0 : i32
    %216 = arith.index_cast %c0_i32 : i32 to index
    %c0_39 = arith.constant 0 : index
    %c0_40 = arith.constant 0 : index
    %217 = vector.load %arg10[%216, %c0_39, %c0_40] : memref<8x128x128xf32, #tpu.memory_space<vmem>>, vector<1x128x128xf32>
    %218 = vector.shape_cast %217 : vector<1x128x128xf32> to vector<128x128xf32>
    %cst_41 = arith.constant dense<0.000000e+00> : vector<128x128xf32>
    %219 = tpu.matmul %213, %214, %cst_41 {dimension_numbers = #tpu.dot_dimension_numbers<[1], [0], [0], [1], [0, 0, 1, 1], [], []>} : vector<128x32xf32>, vector<32x128xf32>, vector<128x128xf32> -> vector<128x128xf32>
    %220 = arith.addf %218, %219 : vector<128x128xf32>
    %221 = vector.extract_strided_slice %220 {offsets = [0, 0], sizes = [32, 128], strides = [1, 1]} : vector<128x128xf32> to vector<32x128xf32>
    %222 = arith.negf %221 : vector<32x128xf32>
    %223 = math.exp %222 : vector<32x128xf32>
    %cst_42 = arith.constant 1.000000e+00 : f32
    %224 = vector.broadcast %cst_42 : f32 to vector<32x128xf32>
    %225 = arith.addf %224, %223 : vector<32x128xf32>
    %226 = arith.divf %224, %225 : vector<32x128xf32>
    %227 = vector.extract_strided_slice %220 {offsets = [32, 0], sizes = [32, 128], strides = [1, 1]} : vector<128x128xf32> to vector<32x128xf32>
    %228 = arith.negf %227 : vector<32x128xf32>
    %229 = math.exp %228 : vector<32x128xf32>
    %cst_43 = arith.constant 1.000000e+00 : f32
    %230 = vector.broadcast %cst_43 : f32 to vector<32x128xf32>
    %231 = arith.addf %230, %229 : vector<32x128xf32>
    %232 = arith.divf %230, %231 : vector<32x128xf32>
    %233 = vector.extract_strided_slice %220 {offsets = [64, 0], sizes = [32, 128], strides = [1, 1]} : vector<128x128xf32> to vector<32x128xf32>
    %234 = math.tanh %233 : vector<32x128xf32>
    %235 = vector.extract_strided_slice %220 {offsets = [96, 0], sizes = [32, 128], strides = [1, 1]} : vector<128x128xf32> to vector<32x128xf32>
    %236 = arith.negf %235 : vector<32x128xf32>
    %237 = math.exp %236 : vector<32x128xf32>
    %cst_44 = arith.constant 1.000000e+00 : f32
    %238 = vector.broadcast %cst_44 : f32 to vector<32x128xf32>
    %239 = arith.addf %238, %237 : vector<32x128xf32>
    %240 = arith.divf %238, %239 : vector<32x128xf32>
    %241 = arith.mulf %232, %215 : vector<32x128xf32>
    %242 = arith.mulf %226, %234 : vector<32x128xf32>
    %243 = arith.addf %241, %242 : vector<32x128xf32>
    %244 = math.tanh %243 : vector<32x128xf32>
    %245 = arith.mulf %240, %244 : vector<32x128xf32>
    %c1_i32 = arith.constant 1 : i32
    %246 = arith.index_cast %c1_i32 : i32 to index
    %c0_45 = arith.constant 0 : index
    %c0_46 = arith.constant 0 : index
    %247 = vector.load %arg10[%246, %c0_45, %c0_46] : memref<8x128x128xf32, #tpu.memory_space<vmem>>, vector<1x128x128xf32>
    %248 = vector.shape_cast %247 : vector<1x128x128xf32> to vector<128x128xf32>
    %cst_47 = arith.constant dense<0.000000e+00> : vector<128x128xf32>
    %249 = tpu.matmul %213, %245, %cst_47 {dimension_numbers = #tpu.dot_dimension_numbers<[1], [0], [0], [1], [0, 0, 1, 1], [], []>} : vector<128x32xf32>, vector<32x128xf32>, vector<128x128xf32> -> vector<128x128xf32>
    %250 = arith.addf %248, %249 : vector<128x128xf32>
    %251 = vector.extract_strided_slice %250 {offsets = [0, 0], sizes = [32, 128], strides = [1, 1]} : vector<128x128xf32> to vector<32x128xf32>
    %252 = arith.negf %251 : vector<32x128xf32>
    %253 = math.exp %252 : vector<32x128xf32>
    %cst_48 = arith.constant 1.000000e+00 : f32
    %254 = vector.broadcast %cst_48 : f32 to vector<32x128xf32>
    %255 = arith.addf %254, %253 : vector<32x128xf32>
    %256 = arith.divf %254, %255 : vector<32x128xf32>
    %257 = vector.extract_strided_slice %250 {offsets = [32, 0], sizes = [32, 128], strides = [1, 1]} : vector<128x128xf32> to vector<32x128xf32>
    %258 = arith.negf %257 : vector<32x128xf32>
    %259 = math.exp %258 : vector<32x128xf32>
    %cst_49 = arith.constant 1.000000e+00 : f32
    %260 = vector.broadcast %cst_49 : f32 to vector<32x128xf32>
    %261 = arith.addf %260, %259 : vector<32x128xf32>
    %262 = arith.divf %260, %261 : vector<32x128xf32>
    %263 = vector.extract_strided_slice %250 {offsets = [64, 0], sizes = [32, 128], strides = [1, 1]} : vector<128x128xf32> to vector<32x128xf32>
    %264 = math.tanh %263 : vector<32x128xf32>
    %265 = vector.extract_strided_slice %250 {offsets = [96, 0], sizes = [32, 128], strides = [1, 1]} : vector<128x128xf32> to vector<32x128xf32>
    %266 = arith.negf %265 : vector<32x128xf32>
    %267 = math.exp %266 : vector<32x128xf32>
    %cst_50 = arith.constant 1.000000e+00 : f32
    %268 = vector.broadcast %cst_50 : f32 to vector<32x128xf32>
    %269 = arith.addf %268, %267 : vector<32x128xf32>
    %270 = arith.divf %268, %269 : vector<32x128xf32>
    %271 = arith.mulf %262, %243 : vector<32x128xf32>
    %272 = arith.mulf %256, %264 : vector<32x128xf32>
    %273 = arith.addf %271, %272 : vector<32x128xf32>
    %274 = math.tanh %273 : vector<32x128xf32>
    %275 = arith.mulf %270, %274 : vector<32x128xf32>
    %c2_i32 = arith.constant 2 : i32
    %276 = arith.index_cast %c2_i32 : i32 to index
    %c0_51 = arith.constant 0 : index
    %c0_52 = arith.constant 0 : index
    %277 = vector.load %arg10[%276, %c0_51, %c0_52] : memref<8x128x128xf32, #tpu.memory_space<vmem>>, vector<1x128x128xf32>
    %278 = vector.shape_cast %277 : vector<1x128x128xf32> to vector<128x128xf32>
    %cst_53 = arith.constant dense<0.000000e+00> : vector<128x128xf32>
    %279 = tpu.matmul %213, %275, %cst_53 {dimension_numbers = #tpu.dot_dimension_numbers<[1], [0], [0], [1], [0, 0, 1, 1], [], []>} : vector<128x32xf32>, vector<32x128xf32>, vector<128x128xf32> -> vector<128x128xf32>
    %280 = arith.addf %278, %279 : vector<128x128xf32>
    %281 = vector.extract_strided_slice %280 {offsets = [0, 0], sizes = [32, 128], strides = [1, 1]} : vector<128x128xf32> to vector<32x128xf32>
    %282 = arith.negf %281 : vector<32x128xf32>
    %283 = math.exp %282 : vector<32x128xf32>
    %cst_54 = arith.constant 1.000000e+00 : f32
    %284 = vector.broadcast %cst_54 : f32 to vector<32x128xf32>
    %285 = arith.addf %284, %283 : vector<32x128xf32>
    %286 = arith.divf %284, %285 : vector<32x128xf32>
    %287 = vector.extract_strided_slice %280 {offsets = [32, 0], sizes = [32, 128], strides = [1, 1]} : vector<128x128xf32> to vector<32x128xf32>
    %288 = arith.negf %287 : vector<32x128xf32>
    %289 = math.exp %288 : vector<32x128xf32>
    %cst_55 = arith.constant 1.000000e+00 : f32
    %290 = vector.broadcast %cst_55 : f32 to vector<32x128xf32>
    %291 = arith.addf %290, %289 : vector<32x128xf32>
    %292 = arith.divf %290, %291 : vector<32x128xf32>
    %293 = vector.extract_strided_slice %280 {offsets = [64, 0], sizes = [32, 128], strides = [1, 1]} : vector<128x128xf32> to vector<32x128xf32>
    %294 = math.tanh %293 : vector<32x128xf32>
    %295 = vector.extract_strided_slice %280 {offsets = [96, 0], sizes = [32, 128], strides = [1, 1]} : vector<128x128xf32> to vector<32x128xf32>
    %296 = arith.negf %295 : vector<32x128xf32>
    %297 = math.exp %296 : vector<32x128xf32>
    %cst_56 = arith.constant 1.000000e+00 : f32
    %298 = vector.broadcast %cst_56 : f32 to vector<32x128xf32>
    %299 = arith.addf %298, %297 : vector<32x128xf32>
    %300 = arith.divf %298, %299 : vector<32x128xf32>
    %301 = arith.mulf %292, %273 : vector<32x128xf32>
    %302 = arith.mulf %286, %294 : vector<32x128xf32>
    %303 = arith.addf %301, %302 : vector<32x128xf32>
    %304 = math.tanh %303 : vector<32x128xf32>
    %305 = arith.mulf %300, %304 : vector<32x128xf32>
    %c3_i32 = arith.constant 3 : i32
    %306 = arith.index_cast %c3_i32 : i32 to index
    %c0_57 = arith.constant 0 : index
    %c0_58 = arith.constant 0 : index
    %307 = vector.load %arg10[%306, %c0_57, %c0_58] : memref<8x128x128xf32, #tpu.memory_space<vmem>>, vector<1x128x128xf32>
    %308 = vector.shape_cast %307 : vector<1x128x128xf32> to vector<128x128xf32>
    %cst_59 = arith.constant dense<0.000000e+00> : vector<128x128xf32>
    %309 = tpu.matmul %213, %305, %cst_59 {dimension_numbers = #tpu.dot_dimension_numbers<[1], [0], [0], [1], [0, 0, 1, 1], [], []>} : vector<128x32xf32>, vector<32x128xf32>, vector<128x128xf32> -> vector<128x128xf32>
    %310 = arith.addf %308, %309 : vector<128x128xf32>
    %311 = vector.extract_strided_slice %310 {offsets = [0, 0], sizes = [32, 128], strides = [1, 1]} : vector<128x128xf32> to vector<32x128xf32>
    %312 = arith.negf %311 : vector<32x128xf32>
    %313 = math.exp %312 : vector<32x128xf32>
    %cst_60 = arith.constant 1.000000e+00 : f32
    %314 = vector.broadcast %cst_60 : f32 to vector<32x128xf32>
    %315 = arith.addf %314, %313 : vector<32x128xf32>
    %316 = arith.divf %314, %315 : vector<32x128xf32>
    %317 = vector.extract_strided_slice %310 {offsets = [32, 0], sizes = [32, 128], strides = [1, 1]} : vector<128x128xf32> to vector<32x128xf32>
    %318 = arith.negf %317 : vector<32x128xf32>
    %319 = math.exp %318 : vector<32x128xf32>
    %cst_61 = arith.constant 1.000000e+00 : f32
    %320 = vector.broadcast %cst_61 : f32 to vector<32x128xf32>
    %321 = arith.addf %320, %319 : vector<32x128xf32>
    %322 = arith.divf %320, %321 : vector<32x128xf32>
    %323 = vector.extract_strided_slice %310 {offsets = [64, 0], sizes = [32, 128], strides = [1, 1]} : vector<128x128xf32> to vector<32x128xf32>
    %324 = math.tanh %323 : vector<32x128xf32>
    %325 = vector.extract_strided_slice %310 {offsets = [96, 0], sizes = [32, 128], strides = [1, 1]} : vector<128x128xf32> to vector<32x128xf32>
    %326 = arith.negf %325 : vector<32x128xf32>
    %327 = math.exp %326 : vector<32x128xf32>
    %cst_62 = arith.constant 1.000000e+00 : f32
    %328 = vector.broadcast %cst_62 : f32 to vector<32x128xf32>
    %329 = arith.addf %328, %327 : vector<32x128xf32>
    %330 = arith.divf %328, %329 : vector<32x128xf32>
    %331 = arith.mulf %322, %303 : vector<32x128xf32>
    %332 = arith.mulf %316, %324 : vector<32x128xf32>
    %333 = arith.addf %331, %332 : vector<32x128xf32>
    %334 = math.tanh %333 : vector<32x128xf32>
    %335 = arith.mulf %330, %334 : vector<32x128xf32>
    %c4_i32 = arith.constant 4 : i32
    %336 = arith.index_cast %c4_i32 : i32 to index
    %c0_63 = arith.constant 0 : index
    %c0_64 = arith.constant 0 : index
    %337 = vector.load %arg10[%336, %c0_63, %c0_64] : memref<8x128x128xf32, #tpu.memory_space<vmem>>, vector<1x128x128xf32>
    %338 = vector.shape_cast %337 : vector<1x128x128xf32> to vector<128x128xf32>
    %cst_65 = arith.constant dense<0.000000e+00> : vector<128x128xf32>
    %339 = tpu.matmul %213, %335, %cst_65 {dimension_numbers = #tpu.dot_dimension_numbers<[1], [0], [0], [1], [0, 0, 1, 1], [], []>} : vector<128x32xf32>, vector<32x128xf32>, vector<128x128xf32> -> vector<128x128xf32>
    %340 = arith.addf %338, %339 : vector<128x128xf32>
    %341 = vector.extract_strided_slice %340 {offsets = [0, 0], sizes = [32, 128], strides = [1, 1]} : vector<128x128xf32> to vector<32x128xf32>
    %342 = arith.negf %341 : vector<32x128xf32>
    %343 = math.exp %342 : vector<32x128xf32>
    %cst_66 = arith.constant 1.000000e+00 : f32
    %344 = vector.broadcast %cst_66 : f32 to vector<32x128xf32>
    %345 = arith.addf %344, %343 : vector<32x128xf32>
    %346 = arith.divf %344, %345 : vector<32x128xf32>
    %347 = vector.extract_strided_slice %340 {offsets = [32, 0], sizes = [32, 128], strides = [1, 1]} : vector<128x128xf32> to vector<32x128xf32>
    %348 = arith.negf %347 : vector<32x128xf32>
    %349 = math.exp %348 : vector<32x128xf32>
    %cst_67 = arith.constant 1.000000e+00 : f32
    %350 = vector.broadcast %cst_67 : f32 to vector<32x128xf32>
    %351 = arith.addf %350, %349 : vector<32x128xf32>
    %352 = arith.divf %350, %351 : vector<32x128xf32>
    %353 = vector.extract_strided_slice %340 {offsets = [64, 0], sizes = [32, 128], strides = [1, 1]} : vector<128x128xf32> to vector<32x128xf32>
    %354 = math.tanh %353 : vector<32x128xf32>
    %355 = vector.extract_strided_slice %340 {offsets = [96, 0], sizes = [32, 128], strides = [1, 1]} : vector<128x128xf32> to vector<32x128xf32>
    %356 = arith.negf %355 : vector<32x128xf32>
    %357 = math.exp %356 : vector<32x128xf32>
    %cst_68 = arith.constant 1.000000e+00 : f32
    %358 = vector.broadcast %cst_68 : f32 to vector<32x128xf32>
    %359 = arith.addf %358, %357 : vector<32x128xf32>
    %360 = arith.divf %358, %359 : vector<32x128xf32>
    %361 = arith.mulf %352, %333 : vector<32x128xf32>
    %362 = arith.mulf %346, %354 : vector<32x128xf32>
    %363 = arith.addf %361, %362 : vector<32x128xf32>
    %364 = math.tanh %363 : vector<32x128xf32>
    %365 = arith.mulf %360, %364 : vector<32x128xf32>
    %c5_i32 = arith.constant 5 : i32
    %366 = arith.index_cast %c5_i32 : i32 to index
    %c0_69 = arith.constant 0 : index
    %c0_70 = arith.constant 0 : index
    %367 = vector.load %arg10[%366, %c0_69, %c0_70] : memref<8x128x128xf32, #tpu.memory_space<vmem>>, vector<1x128x128xf32>
    %368 = vector.shape_cast %367 : vector<1x128x128xf32> to vector<128x128xf32>
    %cst_71 = arith.constant dense<0.000000e+00> : vector<128x128xf32>
    %369 = tpu.matmul %213, %365, %cst_71 {dimension_numbers = #tpu.dot_dimension_numbers<[1], [0], [0], [1], [0, 0, 1, 1], [], []>} : vector<128x32xf32>, vector<32x128xf32>, vector<128x128xf32> -> vector<128x128xf32>
    %370 = arith.addf %368, %369 : vector<128x128xf32>
    %371 = vector.extract_strided_slice %370 {offsets = [0, 0], sizes = [32, 128], strides = [1, 1]} : vector<128x128xf32> to vector<32x128xf32>
    %372 = arith.negf %371 : vector<32x128xf32>
    %373 = math.exp %372 : vector<32x128xf32>
    %cst_72 = arith.constant 1.000000e+00 : f32
    %374 = vector.broadcast %cst_72 : f32 to vector<32x128xf32>
    %375 = arith.addf %374, %373 : vector<32x128xf32>
    %376 = arith.divf %374, %375 : vector<32x128xf32>
    %377 = vector.extract_strided_slice %370 {offsets = [32, 0], sizes = [32, 128], strides = [1, 1]} : vector<128x128xf32> to vector<32x128xf32>
    %378 = arith.negf %377 : vector<32x128xf32>
    %379 = math.exp %378 : vector<32x128xf32>
    %cst_73 = arith.constant 1.000000e+00 : f32
    %380 = vector.broadcast %cst_73 : f32 to vector<32x128xf32>
    %381 = arith.addf %380, %379 : vector<32x128xf32>
    %382 = arith.divf %380, %381 : vector<32x128xf32>
    %383 = vector.extract_strided_slice %370 {offsets = [64, 0], sizes = [32, 128], strides = [1, 1]} : vector<128x128xf32> to vector<32x128xf32>
    %384 = math.tanh %383 : vector<32x128xf32>
    %385 = vector.extract_strided_slice %370 {offsets = [96, 0], sizes = [32, 128], strides = [1, 1]} : vector<128x128xf32> to vector<32x128xf32>
    %386 = arith.negf %385 : vector<32x128xf32>
    %387 = math.exp %386 : vector<32x128xf32>
    %cst_74 = arith.constant 1.000000e+00 : f32
    %388 = vector.broadcast %cst_74 : f32 to vector<32x128xf32>
    %389 = arith.addf %388, %387 : vector<32x128xf32>
    %390 = arith.divf %388, %389 : vector<32x128xf32>
    %391 = arith.mulf %382, %363 : vector<32x128xf32>
    %392 = arith.mulf %376, %384 : vector<32x128xf32>
    %393 = arith.addf %391, %392 : vector<32x128xf32>
    %394 = math.tanh %393 : vector<32x128xf32>
    %395 = arith.mulf %390, %394 : vector<32x128xf32>
    %c6_i32 = arith.constant 6 : i32
    %396 = arith.index_cast %c6_i32 : i32 to index
    %c0_75 = arith.constant 0 : index
    %c0_76 = arith.constant 0 : index
    %397 = vector.load %arg10[%396, %c0_75, %c0_76] : memref<8x128x128xf32, #tpu.memory_space<vmem>>, vector<1x128x128xf32>
    %398 = vector.shape_cast %397 : vector<1x128x128xf32> to vector<128x128xf32>
    %cst_77 = arith.constant dense<0.000000e+00> : vector<128x128xf32>
    %399 = tpu.matmul %213, %395, %cst_77 {dimension_numbers = #tpu.dot_dimension_numbers<[1], [0], [0], [1], [0, 0, 1, 1], [], []>} : vector<128x32xf32>, vector<32x128xf32>, vector<128x128xf32> -> vector<128x128xf32>
    %400 = arith.addf %398, %399 : vector<128x128xf32>
    %401 = vector.extract_strided_slice %400 {offsets = [0, 0], sizes = [32, 128], strides = [1, 1]} : vector<128x128xf32> to vector<32x128xf32>
    %402 = arith.negf %401 : vector<32x128xf32>
    %403 = math.exp %402 : vector<32x128xf32>
    %cst_78 = arith.constant 1.000000e+00 : f32
    %404 = vector.broadcast %cst_78 : f32 to vector<32x128xf32>
    %405 = arith.addf %404, %403 : vector<32x128xf32>
    %406 = arith.divf %404, %405 : vector<32x128xf32>
    %407 = vector.extract_strided_slice %400 {offsets = [32, 0], sizes = [32, 128], strides = [1, 1]} : vector<128x128xf32> to vector<32x128xf32>
    %408 = arith.negf %407 : vector<32x128xf32>
    %409 = math.exp %408 : vector<32x128xf32>
    %cst_79 = arith.constant 1.000000e+00 : f32
    %410 = vector.broadcast %cst_79 : f32 to vector<32x128xf32>
    %411 = arith.addf %410, %409 : vector<32x128xf32>
    %412 = arith.divf %410, %411 : vector<32x128xf32>
    %413 = vector.extract_strided_slice %400 {offsets = [64, 0], sizes = [32, 128], strides = [1, 1]} : vector<128x128xf32> to vector<32x128xf32>
    %414 = math.tanh %413 : vector<32x128xf32>
    %415 = vector.extract_strided_slice %400 {offsets = [96, 0], sizes = [32, 128], strides = [1, 1]} : vector<128x128xf32> to vector<32x128xf32>
    %416 = arith.negf %415 : vector<32x128xf32>
    %417 = math.exp %416 : vector<32x128xf32>
    %cst_80 = arith.constant 1.000000e+00 : f32
    %418 = vector.broadcast %cst_80 : f32 to vector<32x128xf32>
    %419 = arith.addf %418, %417 : vector<32x128xf32>
    %420 = arith.divf %418, %419 : vector<32x128xf32>
    %421 = arith.mulf %412, %393 : vector<32x128xf32>
    %422 = arith.mulf %406, %414 : vector<32x128xf32>
    %423 = arith.addf %421, %422 : vector<32x128xf32>
    %424 = math.tanh %423 : vector<32x128xf32>
    %425 = arith.mulf %420, %424 : vector<32x128xf32>
    %c7_i32 = arith.constant 7 : i32
    %426 = arith.index_cast %c7_i32 : i32 to index
    %c0_81 = arith.constant 0 : index
    %c0_82 = arith.constant 0 : index
    %427 = vector.load %arg10[%426, %c0_81, %c0_82] : memref<8x128x128xf32, #tpu.memory_space<vmem>>, vector<1x128x128xf32>
    %428 = vector.shape_cast %427 : vector<1x128x128xf32> to vector<128x128xf32>
    %cst_83 = arith.constant dense<0.000000e+00> : vector<128x128xf32>
    %429 = tpu.matmul %213, %425, %cst_83 {dimension_numbers = #tpu.dot_dimension_numbers<[1], [0], [0], [1], [0, 0, 1, 1], [], []>} : vector<128x32xf32>, vector<32x128xf32>, vector<128x128xf32> -> vector<128x128xf32>
    %430 = arith.addf %428, %429 : vector<128x128xf32>
    %431 = vector.extract_strided_slice %430 {offsets = [0, 0], sizes = [32, 128], strides = [1, 1]} : vector<128x128xf32> to vector<32x128xf32>
    %432 = arith.negf %431 : vector<32x128xf32>
    %433 = math.exp %432 : vector<32x128xf32>
    %cst_84 = arith.constant 1.000000e+00 : f32
    %434 = vector.broadcast %cst_84 : f32 to vector<32x128xf32>
    %435 = arith.addf %434, %433 : vector<32x128xf32>
    %436 = arith.divf %434, %435 : vector<32x128xf32>
    %437 = vector.extract_strided_slice %430 {offsets = [32, 0], sizes = [32, 128], strides = [1, 1]} : vector<128x128xf32> to vector<32x128xf32>
    %438 = arith.negf %437 : vector<32x128xf32>
    %439 = math.exp %438 : vector<32x128xf32>
    %cst_85 = arith.constant 1.000000e+00 : f32
    %440 = vector.broadcast %cst_85 : f32 to vector<32x128xf32>
    %441 = arith.addf %440, %439 : vector<32x128xf32>
    %442 = arith.divf %440, %441 : vector<32x128xf32>
    %443 = vector.extract_strided_slice %430 {offsets = [64, 0], sizes = [32, 128], strides = [1, 1]} : vector<128x128xf32> to vector<32x128xf32>
    %444 = math.tanh %443 : vector<32x128xf32>
    %445 = vector.extract_strided_slice %430 {offsets = [96, 0], sizes = [32, 128], strides = [1, 1]} : vector<128x128xf32> to vector<32x128xf32>
    %446 = arith.negf %445 : vector<32x128xf32>
    %447 = math.exp %446 : vector<32x128xf32>
    %cst_86 = arith.constant 1.000000e+00 : f32
    %448 = vector.broadcast %cst_86 : f32 to vector<32x128xf32>
    %449 = arith.addf %448, %447 : vector<32x128xf32>
    %450 = arith.divf %448, %449 : vector<32x128xf32>
    %451 = arith.mulf %442, %423 : vector<32x128xf32>
    %452 = arith.mulf %436, %444 : vector<32x128xf32>
    %453 = arith.addf %451, %452 : vector<32x128xf32>
    %454 = math.tanh %453 : vector<32x128xf32>
    %455 = arith.mulf %450, %454 : vector<32x128xf32>
    %c8_i32 = arith.constant 8 : i32
    %c0_87 = arith.constant 0 : index
    %c0_88 = arith.constant 0 : index
    %456 = vector.load %arg5[%c0_87, %c0_88] : memref<32x32xf32, #tpu.memory_space<vmem>>, vector<32x32xf32>
    %cst_89 = arith.constant dense<0.000000e+00> : vector<32x128xf32>
    %457 = tpu.matmul %456, %455, %cst_89 {dimension_numbers = #tpu.dot_dimension_numbers<[1], [0], [0], [1], [0, 0, 1, 1], [], []>} : vector<32x32xf32>, vector<32x128xf32>, vector<32x128xf32> -> vector<32x128xf32>
    %c0_90 = arith.constant 0 : index
    %c0_91 = arith.constant 0 : index
    %458 = vector.load %arg6[%c0_90, %c0_91] : memref<32x1xf32, #tpu.memory_space<vmem>>, vector<32x1xf32>
    %459 = vector.broadcast %458 : vector<32x1xf32> to vector<32x128xf32>
    %460 = arith.addf %457, %459 : vector<32x128xf32>
    %cst_92 = arith.constant 0.000000e+00 : f32
    %461 = vector.broadcast %cst_92 : f32 to vector<32x128xf32>
    %462 = arith.maximumf %460, %461 : vector<32x128xf32>
    %c0_93 = arith.constant 0 : index
    %c0_94 = arith.constant 0 : index
    %463 = vector.load %arg7[%c0_93, %c0_94] : memref<32x1xf32, #tpu.memory_space<vmem>>, vector<32x1xf32>
    %464 = vector.broadcast %463 : vector<32x1xf32> to vector<32x128xf32>
    %465 = arith.mulf %464, %462 : vector<32x128xf32>
    %cst_95 = arith.constant dense<0.000000e+00> : vector<128xf32>
    %466 = vector.multi_reduction <add>, %465, %cst_95 [0] : vector<32x128xf32> to vector<128xf32>
    %467 = vector.shape_cast %466 : vector<128xf32> to vector<1x128xf32>
    %c0_96 = arith.constant 0 : index
    %c0_97 = arith.constant 0 : index
    %468 = vector.load %arg8[%c0_96, %c0_97] : memref<1x1xf32, #tpu.memory_space<vmem>>, vector<1x1xf32>
    %469 = vector.broadcast %468 : vector<1x1xf32> to vector<1x128xf32>
    %470 = arith.addf %467, %469 : vector<1x128xf32>
    %c0_98 = arith.constant 0 : index
    %c0_99 = arith.constant 0 : index
    %471 = vector.load %arg9[%c0_98, %c0_99] : memref<1x128xf32, #tpu.memory_space<vmem>>, vector<1x128xf32>
    tpu.vector_store %arg9[%c0_98, %c0_99], %470 {strides = array<i32>} : memref<1x128xf32, #tpu.memory_space<vmem>>, vector<1x128xf32>,
    return
  }
  func.func @transform_0(%arg0: i32) -> (i32, i32, i32) {
    %c0_i32 = arith.constant 0 : i32
    %c0_i32_0 = arith.constant 0 : i32
    %c0_i32_1 = arith.constant 0 : i32
    return %c0_i32, %c0_i32_0, %arg0 : i32, i32, i32
  }
  func.func @transform_1(%arg0: i32) -> (i32, i32, i32) {
    %c0_i32 = arith.constant 0 : i32
    %c0_i32_0 = arith.constant 0 : i32
    %c0_i32_1 = arith.constant 0 : i32
    %c0_i32_2 = arith.constant 0 : i32
    return %c0_i32, %c0_i32_0, %c0_i32_1 : i32, i32, i32
  }
  func.func @transform_2(%arg0: i32) -> (i32, i32) {
    %c0_i32 = arith.constant 0 : i32
    %c0_i32_0 = arith.constant 0 : i32
    %c0_i32_1 = arith.constant 0 : i32
    return %c0_i32, %c0_i32_0 : i32, i32
  }
  func.func @transform_3(%arg0: i32) -> (i32, i32) {
    %c0_i32 = arith.constant 0 : i32
    %c0_i32_0 = arith.constant 0 : i32
    %c0_i32_1 = arith.constant 0 : i32
    return %c0_i32, %c0_i32_0 : i32, i32
  }
  func.func @transform_4(%arg0: i32) -> (i32, i32) {
    %c0_i32 = arith.constant 0 : i32
    %c0_i32_0 = arith.constant 0 : i32
    %c0_i32_1 = arith.constant 0 : i32
    return %c0_i32, %c0_i32_0 : i32, i32
  }
  func.func @transform_5(%arg0: i32) -> (i32, i32) {
    %c0_i32 = arith.constant 0 : i32
    %c0_i32_0 = arith.constant 0 : i32
    %c0_i32_1 = arith.constant 0 : i32
    return %c0_i32, %c0_i32_0 : i32, i32
  }
  func.func @transform_6(%arg0: i32) -> (i32, i32) {
    %c0_i32 = arith.constant 0 : i32
    %c0_i32_0 = arith.constant 0 : i32
    %c0_i32_1 = arith.constant 0 : i32
    return %c0_i32, %c0_i32_0 : i32, i32
  }
  func.func @transform_7(%arg0: i32) -> (i32, i32) {
    %c0_i32 = arith.constant 0 : i32
    %c0_i32_0 = arith.constant 0 : i32
    %c0_i32_1 = arith.constant 0 : i32
    return %c0_i32, %c0_i32_0 : i32, i32
  }
  func.func @transform_8(%arg0: i32) -> (i32, i32) {
    %c0_i32 = arith.constant 0 : i32
    %c0_i32_0 = arith.constant 0 : i32
    return %c0_i32, %arg0 : i32, i32
  }
}

</mosaic_0001>

<bundles_post_ra>
// kernel: tpu_custom_call.1
= control target key start
LH: loop header
LB: loop body
LE: loop exit
PB: predicated region body
PF: predicated region fallthrough
CT: control target
= control target key end

     0   :  { %s10240_s0 = inlined_call_operand.vmem [shape: f32[3,8,256], index: 0, kind: input, shape index: {}]   ;;  %s10241_s1 = inlined_call_operand.vmem [shape: f32[3,128,1], index: 1, kind: input, shape index: {}]   ;;  %s10242_s2 = inlined_call_operand.vmem [shape: f32[128,1], index: 2, kind: input, shape index: {}]   ;;  %s10243_s3 = inlined_call_operand.vmem [shape: f32[128,32], index: 3, kind: input, shape index: {}]   ;;  %s10244_s4 = inlined_call_operand.vmem [shape: f32[32,32], index: 4, kind: input, shape index: {}]   ;;  %s10245_s5 = inlined_call_operand.vmem [shape: f32[32,1], index: 5, kind: input, shape index: {}]   ;;  %s10246_s6 = inlined_call_operand.vmem [shape: f32[32,1], index: 6, kind: input, shape index: {}]   ;;  %s10247_s7 = inlined_call_operand.<no memory space> [shape: f32[1,1], index: 7, kind: input, shape index: {}]   ;;  %s10248_s8 = inlined_call_operand.hbm [shape: f32[1,256], index: 8, kind: output, shape index: {}]  }
   0x1   :  { %v13_v0 = vstv %s10247_s7 }
   0x2   :  { %14 = vst [vmem:[#allocation3] sm:$0x1] %v13_v0 }
   0x3   :  { %15 = vsyncpa [#allocation6], 0 }
   0x4   :  { %17 = vsyncpa [#allocation6 + $0x1], 0  ;;  %s5731_s29 = smov 0   ;;  %s5733_s30 = smov 0  }
   0x5   :  { %s5735_s9 = smov 0   ;;  %s5737_s10 = smov 0  }
   0x6 LB: > { %s4715_s7 = sadd.s32 4294967295, %s5679_s10   ;;  %s4716_s11 = sadd.s32 4294967294, %s5679_s10   ;;  %s5679_s10 = sphi %s5737_s10, %s11076_s10   ;;  %s5675_s9 = sphi %s5735_s9, %s11075_s9   ;;  %s5671_s30 = sphi %s5733_s30, %s11074_s30   ;;  %s5667_s29 = sphi %s5731_s29, %s11073_s29  }
   0x7   : > { %s5754_s12 = sadd.s32 1, %s5679_s10   ;;  %s30_s13 = sadd.s32 1, %s5675_s9 }
   0x8   : > { %s27_s14 = ssub.s32 %s5679_s10, %s5754_s12  ;;  %p37_p0 = scmp.ne.s32.totalorder %s5675_s9, %s5671_s30 }
   0x9   : > { %p28_p1 = scmp.eq.s32.totalorder %s27_s14, 0  ;;  %p38_p2 = scmp.eq.s32.totalorder %s5679_s10, 0 }
   0xa   : > { %p214_p3 = scmp.eq.s32.totalorder %s4715_s7, 1  ;;  %p219_p4 = scmp.ne.s32.totalorder %s5671_s30, %s5667_s29 }
   0xb   : > { %s5767_s15 = scalar_select %p28_p1, %s5675_s9, %s30_s13  }
   0xc   : > { %p39_p5 = por %p38_p2, %p37_p0  ;;  %p5769_p6 = por %p214_p3, %p37_p0 }
   0xd   : > { %p220_p7 = scmp.eq.s32.totalorder %s4716_s11, 1  ;;  %p4718_p9 = scmp.ge.s32.totalorder %s5679_s10, 2 }
   0xf   : > { %p5773_p8 = por %p220_p7, %p219_p4  ;;  %257 = sbr.rel (%p4718_p9) target bundleno = 27 (0x1b), region = 44 }
  0x14   : > { %260 = sbr.rel (!%p39_p5) target bundleno = 27 (0x1b), region = 48  ;;  %s262_s18 = sand.u32 (%p39_p5), 1, %s5675_s9  }
  0x15   : > { %s4719_s19 = sshll.u32 (%p39_p5), %s5679_s10, 3  ;;  %s4986_s20 = smul.u32 (%p39_p5), 24, %s262_s18 }
  0x16   : > { %s266_s23 = scalar_lea.vmem (%p39_p5), %s10240_s0, %s4719_s19 }
  0x17   : > { %v299_v1 = vld [vmem:[%s266_s23] sm:$0xff] (%p39_p5)  ;;  %v301_v2 = vld [vmem:[%s266_s23 + $0x10] sm:$0xff] (%p39_p5)  ;;  %s264_s24 = scalar_lea.vmem (%p39_p5), [#allocation4], %s4986_s20 }
  0x18   : > { %v303_v3 = vld [vmem:[%s266_s23 + $0x20] sm:$0xff] (%p39_p5)  ;;  %300 = vst [vmem:[%s264_s24] sm:$0xff] (%p39_p5), %v299_v1 }
  0x19   : > { %302 = vst [vmem:[%s264_s24 + $0x8] sm:$0xff] %v301_v2 }
  0x1a   : > { %304 = vst [vmem:[%s264_s24 + $0x10] sm:$0xff] %v303_v3 }
  0x1b PF: > { %p4720_p10 = scmp.ge.s32.totalorder %s5679_s10, 1  ;;  %p309_p11 = scmp.lt.s32.totalorder %s5679_s10, 3 }
  0x1d   : > { %p310_p12 = pnand %p4720_p10, %p309_p11 }
  0x1f   : > { %313 = sbr.rel (%p310_p12) target bundleno = 2542 (0x9ee), region = 86 }
  0x24   : > { %v1666_v4 = vld [vmem:[%s10243_s3] sm:$0xff]  ;;  %vm1698_vm0 = vcmask 261120   ;;  %v4726_v5 = vld [vmem:[%s10241_s1 + $0x98] sm:$0xff]  ;;  %v5681_v6 = vmov 0.0   ;;  %v5682_v7 = vmov 0   ;;  %v355_v9 = vld [vmem:[%s10241_s1 + $0x10] sm:$0xff]  ;;  %s4651_s24 = scalar_lea.hbm %s10248_s8, %s4715_s7 }
  0x25   : > { %1762 = vmatpush.msra.mxu0 %v5681_v6  ;;  %5031 = vset.pattern.permute.xlu2 %v5682_v7  ;;  %v356_v8 = vld [vmem:[%s10241_s1 + $0x18] sm:$0xff]  ;;  %v1667_v10 = vld [vmem:[%s10243_s3 + $0x8] sm:$0xff]  ;;  %v359_v13 = vld [vmem:[%s10241_s1 + $0x30] sm:$0xff]  ;;  %s6136_s11 = sand.u32 1, %s5671_s30   ;;  %s4655_s27 = sshll.u32 %s4651_s24, 4  ;;  %s4656_s27 = int_to_ptr.hbm [resolvable:$true] %s4655_s27 }
  0x26   : > { %5030 = vset.pattern.permute.xlu1 %v5682_v7  ;;  %5029 = vset.pattern.permute.xlu0 %v5682_v7  ;;  %v4730_v11 = vld [vmem:[%s10241_s1 + $0xb8] sm:$0xff]  ;;  %v1668_v14 = vld [vmem:[%s10243_s3 + $0x10] sm:$0xff]  ;;  %v354_v19 = vld [vmem:[%s10241_s1 + $0x8] sm:$0xff]  ;;  %s4987_s20 = smul.u32 24, %s6136_s11  ;;  %s347_s25 = scalar_lea.vmem [#allocation5], %s6136_s11 }
  0x27   : > { %4755 = vmatmul.msk.f32.vlgmr.msra.gmra.mxu0 %vm1698_vm0, %v1666_v4  ;;  %533 = vperm.xlu1 %5030, %v4726_v5   ;;  %v360_v12 = vld [vmem:[%s10241_s1 + $0x38] sm:$0xff]  ;;  %v4729_v15 = vld [vmem:[%s10241_s1 + $0xb0] sm:$0xff]  ;;  %v358_v21 = vld [vmem:[%s10241_s1 + $0x28] sm:$0xff]  ;;  %s4653_s26 = sshll.u32 %s347_s25, 4  ;;  %s4643_s28 = scalar_lea.sflag [#allocation6], %s6136_s11  ;;  %s4654_s26 = int_to_ptr.vmem [resolvable:$true] %s4653_s26 }
  0x28   : > { %436 = vperm.xlu0 %5029, %v356_v8   ;;  %431 = vperm.xlu2 %5031, %v355_v9   ;;  %v4725_v16 = vld [vmem:[%s10241_s1 + $0x90] sm:$0xff]  ;;  %v4742_v17 = vld [vmem:[%s10241_s1 + $0x118] sm:$0xff]  ;;  %v1670_v22 = vld [vmem:[%s10243_s3 + $0x20] sm:$0xff]  ;;  %s6151_s21 = scalar_lea.vmem [#allocation4], %s4987_s20  ;;  %s5631_s13 = sshra.s32 %s4656_s27, 4  ;;  %s5632_s13 = int_to_ptr.hbm [resolvable:$true] %s5631_s13 }
  0x29   : > { %4985 = vmatpush.msra.mxu1 %v5681_v6  ;;  %v1669_v18 = vld [vmem:[%s10243_s3 + $0x18] sm:$0xff]  ;;  %v4728_v23 = vld [vmem:[%s10241_s1 + $0xa8] sm:$0xff]  ;;  %v4741_v25 = vld [vmem:[%s10241_s1 + $0x110] sm:$0xff]  ;;  %s5633_s14 = scalar_lea.hbm %s5632_s13, 1  ;;  %s5637_s19 = scalar_lea.hbm %s10248_s8, 2 }
  0x2a   : > { %v4746_v20 = vld [vmem:[%s10241_s1 + $0x138] sm:$0xff]  ;;  %v4724_v24 = vld [vmem:[%s10241_s1 + $0x88] sm:$0xff]  ;;  %v353_v27 = vld [vmem:[%s10241_s1] sm:$0xff]  ;;  %p5634_p13 = scmp.ne.s32.totalorder %s5632_s13, %s5633_s14  ;;  %p5638_p2 = scmp.lt.s32.totalorder %s5632_s13, %s10248_s8 }
  0x2b   : > { %v1671_v26 = vld [vmem:[%s10243_s3 + $0x28] sm:$0xff]  ;;  %v4745_v28 = vld [vmem:[%s10241_s1 + $0x130] sm:$0xff]  ;;  %v357_v29 = vld [vmem:[%s10241_s1 + $0x20] sm:$0xff]  ;;  %p5639_p3 = scmp.lt.s32.totalorder %s5637_s19, %s5633_s14 }
  0x2c   : > { %v1672_v30 = vld [vmem:[%s10243_s3 + $0x30] sm:$0xff]  ;;  %v4727_v31 = vld [vmem:[%s10241_s1 + $0xa0] sm:$0xff]  ;;  %v4740_v33 = vld [vmem:[%s10241_s1 + $0x108] sm:$0xff]  ;;  %p5635_p0 = pnand %p5634_p13, %p5769_p6 }
  0x2d   : > { %v4723_v32 = vld [vmem:[%s10241_s1 + $0x80] sm:$0xff]  ;;  %v1673_v34 = vld [vmem:[%s10243_s3 + $0x38] sm:$0xff]  ;;  %v4744_v36 = vld [vmem:[%s10241_s1 + $0x128] sm:$0xff]  ;;  %p5640_p4 = por %p5639_p3, %p5638_p2 }
  0x2e   : > { %v406_v35 = vld [vmem:[%s10242_s2 + $0x18] sm:$0xff]  ;;  %v1680_v38 = vld [vmem:[%s10243_s3 + $0x70] sm:$0xff]  ;;  %v4743_v39 = vld [vmem:[%s10241_s1 + $0x120] sm:$0xff]  ;;  %p5636_p1 = pneg %p5635_p0 }
  0x2f   : > { %4756 = vmatmul.msk.f32.gmra.mxu0 %vm1698_vm0, %v1667_v10  ;;  %553 = vperm.xlu1 %5030, %v4730_v11   ;;  %v410_v37 = vld [vmem:[%s10242_s2 + $0x38] sm:$0xff]  ;;  %v1674_v40 = vld [vmem:[%s10243_s3 + $0x40] sm:$0xff]  ;;  %v405_v42 = vld [vmem:[%s10242_s2 + $0x10] sm:$0xff] }
  0x30   : > { %456 = vperm.xlu0 %5029, %v360_v12   ;;  %451 = vperm.xlu2 %5031, %v359_v13   ;;  %v4739_v41 = vld [vmem:[%s10241_s1 + $0x100] sm:$0xff]  ;;  %v1681_v43 = vld [vmem:[%s10243_s3 + $0x78] sm:$0xff]  ;;  %v404_v44 = vld [vmem:[%s10242_s2 + $0x8] sm:$0xff]  ;;  %p5641_p5 = pnand %p5640_p4, %p5636_p1 }
  0x31   : > { %4769 = vmatmul.msk.f32.vlgmr.msra.gmra.mxu1 %vm1698_vm0, %v1680_v38  ;;  %v1675_v45 = vld [vmem:[%s10243_s3 + $0x48] sm:$0xff]  ;;  %v409_v46 = vld [vmem:[%s10242_s2 + $0x30] sm:$0xff]  ;;  %v4738_v48 = vld [vmem:[%s10241_s1 + $0xf8] sm:$0xff] }
  0x32   : > { %v408_v47 = vld [vmem:[%s10242_s2 + $0x28] sm:$0xff]  ;;  %v1676_v49 = vld [vmem:[%s10243_s3 + $0x50] sm:$0xff]  ;;  %v368_v50 = vld [vmem:[%s10241_s1 + $0x78] sm:$0xff] }
  0x33   : > { %v403_v51 = vld [vmem:[%s10242_s2] sm:$0xff]  ;;  %v367_v52 = vld [vmem:[%s10241_s1 + $0x70] sm:$0xff]  ;;  %v1677_v53 = vld [vmem:[%s10243_s3 + $0x58] sm:$0xff] }
  0x34   : > { %v407_v54 = vld [vmem:[%s10242_s2 + $0x20] sm:$0xff]  ;;  %v4737_v55 = vld [vmem:[%s10241_s1 + $0xf0] sm:$0xff]  ;;  %v366_v57 = vld [vmem:[%s10241_s1 + $0x68] sm:$0xff] }
  0x35   : > { %v1678_v58 = vld [vmem:[%s10243_s3 + $0x60] sm:$0xff]  ;;  %v4754_v59 = vld [vmem:[%s10241_s1 + $0x178] sm:$0xff]  ;;  %v4736_v60 = vld [vmem:[%s10241_s1 + $0xe8] sm:$0xff] }
  0x36   : > { %v365_v62 = vld [vmem:[%s10241_s1 + $0x60] sm:$0xff]  ;;  %v1679_v63 = vld [vmem:[%s10243_s3 + $0x68] sm:$0xff]  ;;  %v4753_v0 = vld [vmem:[%s10241_s1 + $0x170] sm:$0xff] }
  0x37   : > { %4757 = vmatmul.msk.f32.gmra.mxu0 %vm1698_vm0, %v1668_v14  ;;  %548 = vperm.xlu1 %5030, %v4729_v15   ;;  %v4735_v1 = vld [vmem:[%s10241_s1 + $0xe0] sm:$0xff]  ;;  %v418_v3 = vld [vmem:[%s10242_s2 + $0x78] sm:$0xff]  ;;  %v4752_v4 = vld [vmem:[%s10241_s1 + $0x168] sm:$0xff] }
  0x38   : > { %528 = vperm.xlu0 %5029, %v4725_v16   ;;  %646 = vperm.xlu2 %5031, %v4742_v17   ;;  %v4751_v5 = vld [vmem:[%s10241_s1 + $0x160] sm:$0xff]  ;;  %v364_v9 = vld [vmem:[%s10241_s1 + $0x58] sm:$0xff]  ;;  %v417_v10 = vld [vmem:[%s10242_s2 + $0x70] sm:$0xff] }
  0x39   : > { %4770 = vmatmul.msk.f32.gmra.mxu1 %vm1698_vm0, %v1681_v43  ;;  %v4734_v11 = vld [vmem:[%s10241_s1 + $0xd8] sm:$0xff]  ;;  %v363_v16 = vld [vmem:[%s10241_s1 + $0x50] sm:$0xff]  ;;  %v416_v17 = vld [vmem:[%s10242_s2 + $0x68] sm:$0xff] }
  0x3a   : > { %v4731_v38 = vld [vmem:[%s10241_s1 + $0xc0] sm:$0xff]  ;;  %v413_v43 = vld [vmem:[%s10242_s2 + $0x50] sm:$0xff] }
  0x3f   : > { %4758 = vmatmul.msk.f32.gmra.mxu0 %vm1698_vm0, %v1669_v18  ;;  %426 = vperm.xlu1 %5030, %v354_v19   ;;  %v4733_v18 = vld [vmem:[%s10241_s1 + $0xd0] sm:$0xff] }
  0x40   : > { %666 = vperm.xlu0 %5029, %v4746_v20   ;;  %446 = vperm.xlu2 %5031, %v358_v21  }
  0x47   : > { %4759 = vmatmul.msk.f32.gmra.mxu0 %vm1698_vm0, %v1670_v22  ;;  %543 = vperm.xlu1 %5030, %v4728_v23   ;;  %v415_v23 = vld [vmem:[%s10242_s2 + $0x60] sm:$0xff] }
  0x48   : > { %523 = vperm.xlu0 %5029, %v4724_v24   ;;  %641 = vperm.xlu2 %5031, %v4741_v25   ;;  %v4750_v24 = vld [vmem:[%s10241_s1 + $0x158] sm:$0xff]  ;;  %v362_v25 = vld [vmem:[%s10241_s1 + $0x48] sm:$0xff] }
  0x4f   : > { %4760 = vmatmul.msk.f32.gmra.mxu0 %vm1698_vm0, %v1671_v26  ;;  %421 = vperm.xlu1 %5030, %v353_v27  }
  0x50   : > { %661 = vperm.xlu0 %5029, %v4745_v28   ;;  %441 = vperm.xlu2 %5031, %v357_v29  }
  0x57   : > { %4761 = vmatmul.msk.f32.gmra.mxu0 %vm1698_vm0, %v1672_v30  ;;  %538 = vperm.xlu1 %5030, %v4727_v31   ;;  %v4749_v30 = vld [vmem:[%s10241_s1 + $0x150] sm:$0xff]  ;;  %v4732_v31 = vld [vmem:[%s10241_s1 + $0xc8] sm:$0xff] }
  0x58   : > { %518 = vperm.xlu0 %5029, %v4723_v32   ;;  %636 = vperm.xlu2 %5031, %v4740_v33   ;;  %v361_v32 = vld [vmem:[%s10241_s1 + $0x40] sm:$0xff] }
  0x5f   : > { %4762 = vmatmul.msk.f32.gmra.mxu0 %vm1698_vm0, %v1673_v34  ;;  %759 = vperm.xlu1 %5030, %v406_v35  }
  0x60   : > { %656 = vperm.xlu0 %5029, %v4744_v36   ;;  %779 = vperm.xlu2 %5031, %v410_v37   ;;  %v4748_v37 = vld [vmem:[%s10241_s1 + $0x148] sm:$0xff] }
  0x67   : > { %651 = vperm.xlu1 %5030, %v4743_v39   ;;  %4763 = vmatmul.msk.f32.gmra.mxu0 %vm1698_vm0, %v1674_v40  ;;  %v414_v39 = vld [vmem:[%s10242_s2 + $0x58] sm:$0xff] }
  0x68   : > { %631 = vperm.xlu0 %5029, %v4739_v41   ;;  %754 = vperm.xlu2 %5031, %v405_v42  }
  0x6f   : > { %749 = vperm.xlu1 %5030, %v404_v44   ;;  %4764 = vmatmul.msk.f32.gmra.mxu0 %vm1698_vm0, %v1675_v45  ;;  %v4747_v45 = vld [vmem:[%s10241_s1 + $0x140] sm:$0xff] }
  0x70   : > { %774 = vperm.xlu0 %5029, %v409_v46   ;;  %769 = vperm.xlu2 %5031, %v408_v47   ;;  %v412_v46 = vld [vmem:[%s10242_s2 + $0x48] sm:$0xff] }
  0x77   : > { %593 = vperm.xlu1 %5030, %v4738_v48   ;;  %4765 = vmatmul.msk.f32.gmra.mxu0 %vm1698_vm0, %v1676_v49 }
  0x78   : > { %496 = vperm.xlu0 %5029, %v368_v50   ;;  %744 = vperm.xlu2 %5031, %v403_v51   ;;  %v4527_v50 = vld [vmem:[%s10245_s5] sm:$0xff] }
  0x79   : > { %v411_v51 = vld [vmem:[%s10242_s2 + $0x40] sm:$0xff] }
  0x7f   : > { %491 = vperm.xlu1 %5030, %v367_v52   ;;  %4766 = vmatmul.msk.f32.gmra.mxu0 %vm1698_vm0, %v1677_v53  ;;  %v4528_v52 = vld [vmem:[%s10245_s5 + $0x8] sm:$0xff] }
  0x80   : > { %764 = vperm.xlu0 %5029, %v407_v54   ;;  %588 = vperm.xlu2 %5031, %v4737_v55  }
  0x82   : > { %v5951_v56 = vpop.permute.xlu2 %431 }
  0x83   : > { %10419 = vst [vmem:[#allocation8_spill] sm:$0xff] %v5951_v56 }
  0x87   : > { %486 = vperm.xlu1 %5030, %v366_v57   ;;  %4767 = vmatmul.msk.f32.gmra.mxu0 %vm1698_vm0, %v1678_v58  ;;  %v4530_v58 = vld [vmem:[%s10245_s5 + $0x18] sm:$0xff] }
  0x88   : > { %706 = vperm.xlu0 %5029, %v4754_v59   ;;  %583 = vperm.xlu2 %5031, %v4736_v60   ;;  %v4529_v59 = vld [vmem:[%s10245_s5 + $0x10] sm:$0xff]  ;;  %v4596_v60 = vld [vmem:[%s10246_s6] sm:$0xff] }
  0x8a   : > { %v5966_v61 = vpop.permute.xlu2 %451 }
  0x8b   : > { %10420 = vst [vmem:[#allocation9_spill] sm:$0xff] %v5966_v61 }
  0x8f   : > { %481 = vperm.xlu1 %5030, %v365_v62   ;;  %4768 = vmatmul.msk.f32.gmra.mxu0 %vm1698_vm0, %v1679_v63 }
  0x90   : > { %701 = vperm.xlu0 %5029, %v4753_v0   ;;  %578 = vperm.xlu2 %5031, %v4735_v1  }
  0x92   : > { %v5981_v2 = vpop.permute.xlu2 %646 }
  0x93   : > { %10421 = vst [vmem:[#allocation10_spill] sm:$0xff] %v5981_v2 }
  0x97   : > { %819 = vperm.xlu1 %5030, %v418_v3   ;;  %v4598_v3 = vld [vmem:[%s10246_s6 + $0x10] sm:$0xff] }
  0x98   : > { %696 = vperm.xlu0 %5029, %v4752_v4   ;;  %691 = vperm.xlu2 %5031, %v4751_v5   ;;  %v4597_v4 = vld [vmem:[%s10246_s6 + $0x8] sm:$0xff]  ;;  %v4599_v5 = vld [vmem:[%s10246_s6 + $0x18] sm:$0xff] }
  0x99   : > { %v5992_v6 = vpop.permute.xlu1 %533 }
  0x9a   : > { %10422 = vst [vmem:[#allocation11_spill] sm:$0xff] %v5992_v6  ;;  %v5994_v7 = vpop.permute.xlu0 %436  ;;  %v5996_v8 = vpop.permute.xlu2 %446 }
  0x9b   : > { %10423 = vst [vmem:[#allocation12_spill] sm:$0xff] %v5994_v7 }
  0x9c   : > { %10424 = vst [vmem:[#allocation13_spill] sm:$0xff] %v5996_v8 }
  0x9f   : > { %476 = vperm.xlu1 %5030, %v364_v9  }
  0xa0   : > { %814 = vperm.xlu0 %5029, %v417_v10   ;;  %573 = vperm.xlu2 %5031, %v4734_v11  }
  0xa1   : > { %v6007_v12 = vpop.permute.xlu1 %553 }
  0xa2   : > { %10425 = vst [vmem:[#allocation14_spill] sm:$0xff] %v6007_v12  ;;  %v6009_v13 = vpop.permute.xlu0 %456  ;;  %v6011_v14 = vpop.permute.xlu2 %641 }
  0xa3   : > { %10426 = vst [vmem:[#allocation15_spill] sm:$0xff] %v6009_v13 }
  0xa4   : > { %10427 = vst [vmem:[#allocation16_spill] sm:$0xff] %v6011_v14  ;;  %v6013_v15 = vpop.f32.mrf.mxu0 }
  0xa7   : > { %471 = vperm.xlu1 %5030, %v363_v16  }
  0xa8   : > { %809 = vperm.xlu0 %5029, %v416_v17   ;;  %568 = vperm.xlu2 %5031, %v4733_v18   ;;  %v4633_v17 = vld [vmem:[#allocation3] sm:$0x1] }
  0xa9   : > { %v6024_v19 = vpop.permute.xlu1 %548  ;;  %v6154_v18 = vld [vmem:[%s6151_s21] sm:$0xff] }
  0xaa   : > { %10428 = vst [vmem:[#allocation17_spill] sm:$0xff] %v6024_v19  ;;  %v6026_v20 = vpop.permute.xlu0 %528  ;;  %v6028_v21 = vpop.permute.xlu2 %441 }
  0xab   : > { %10429 = vst [vmem:[#allocation18_spill] sm:$0xff] %v6026_v20 }
  0xac   : > { %10430 = vst [vmem:[#allocation19_spill] sm:$0xff] %v6028_v21  ;;  %v6030_v22 = vpop.f32.mrf.mxu0 }
  0xaf   : > { %804 = vperm.xlu1 %5030, %v415_v23   ;;  %v6157_v23 = vld [vmem:[%s6151_s21 + $0x8] sm:$0xff] }
  0xb0   : > { %686 = vperm.xlu0 %5029, %v4750_v24   ;;  %466 = vperm.xlu2 %5031, %v362_v25   ;;  %v6162_v25 = vperm.slane %v6154_v18, 0 }
  0xb1   : > { %v6041_v26 = vpop.permute.xlu1 %426 }
  0xb2   : > { %10431 = vst [vmem:[#allocation20_spill] sm:$0xff] %v6041_v26  ;;  %v6043_v27 = vpop.permute.xlu0 %666  ;;  %v6045_v28 = vpop.permute.xlu2 %636 }
  0xb3   : > { %10432 = vst [vmem:[#allocation21_spill] sm:$0xff] %v6043_v27 }
  0xb4   : > { %10433 = vst [vmem:[#allocation22_spill] sm:$0xff] %v6045_v28  ;;  %v6047_v29 = vpop.f32.mrf.mxu0 }
  0xb7   : > { %681 = vperm.xlu1 %5030, %v4749_v30   ;;  %v6165_v30 = vperm.slane %v6157_v23, 0 }
  0xb8   : > { %563 = vperm.xlu0 %5029, %v4732_v31   ;;  %461 = vperm.xlu2 %5031, %v361_v32  }
  0xb9   : > { %v6058_v33 = vpop.permute.xlu1 %543 }
  0xba   : > { %10434 = vst [vmem:[#allocation23_spill] sm:$0xff] %v6058_v33  ;;  %v6060_v34 = vpop.permute.xlu0 %523  ;;  %v6062_v35 = vpop.permute.xlu2 %779 }
  0xbb   : > { %10435 = vst [vmem:[#allocation24_spill] sm:$0xff] %v6060_v34 }
  0xbc   : > { %10436 = vst [vmem:[#allocation25_spill] sm:$0xff] %v6062_v35  ;;  %v6064_v36 = vpop.f32.mrf.mxu0 }
  0xbf   : > { %676 = vperm.xlu1 %5030, %v4748_v37   ;;  %v6172_v37 = vld [vmem:[%s6151_s21 + $0x10] sm:$0xff] }
  0xc0   : > { %558 = vperm.xlu0 %5029, %v4731_v38   ;;  %799 = vperm.xlu2 %5031, %v414_v39   ;;  %v599_v39 = vmul.f32 %v6165_v30, %v6026_v20 }
  0xc1   : > { %v6075_v40 = vpop.permute.xlu1 %421 }
  0xc2   : > { %10437 = vst [vmem:[#allocation26_spill] sm:$0xff] %v6075_v40  ;;  %v6077_v41 = vpop.permute.xlu0 %661  ;;  %v6079_v42 = vpop.permute.xlu2 %754 }
  0xc3   : > { %10438 = vst [vmem:[#allocation27_spill] sm:$0xff] %v6077_v41 }
  0xc4   : > { %10439 = vst [vmem:[#allocation28_spill] sm:$0xff] %v6079_v42  ;;  %v6084_v44 = vpop.f32.mrf.mxu0 }
  0xc7   : > { %794 = vperm.xlu1 %5030, %v413_v43   ;;  %v502_v43 = vmul.f32 %v6162_v25, %v5951_v56 }
  0xc8   : > { %671 = vperm.xlu0 %5029, %v4747_v45   ;;  %789 = vperm.xlu2 %5031, %v412_v46   ;;  %v6181_v45 = vperm.slane %v6172_v37, 0  ;;  %v600_v46 = vmul.f32 %v6165_v30, %v5992_v6 }
  0xc9   : > { %v6092_v47 = vpop.permute.xlu1 %538 }
  0xca   : > { %10440 = vst [vmem:[#allocation29_spill] sm:$0xff] %v6092_v47  ;;  %v6094_v48 = vpop.permute.xlu0 %518  ;;  %v6096_v49 = vpop.permute.xlu2 %769 }
  0xcb   : > { %10441 = vst [vmem:[#allocation30_spill] sm:$0xff] %v6094_v48 }
  0xcc   : > { %10442 = vst [vmem:[#allocation31_spill] sm:$0xff] %v6096_v49  ;;  %v6107_v53 = vpop.f32.mrf.mxu0 }
  0xcf   : > { %4533 = vperm.xlu1 %5030, %v4527_v50   ;;  %v503_v50 = vmul.f32 %v6162_v25, %v5994_v7 }
  0xd0   : > { %784 = vperm.xlu0 %5029, %v411_v51   ;;  %4538 = vperm.xlu2 %5031, %v4528_v52   ;;  %v615_v51 = vadd.f32 %v599_v39, %v502_v43  ;;  %v717_v39 = vmul.f32 %v6181_v45, %v6043_v27 }
  0xd1   : > { %v6109_v54 = vpop.permute.xlu1 %759 }
  0xd2   : > { %10443 = vst [vmem:[#allocation32_spill] sm:$0xff] %v6109_v54  ;;  %v6111_v55 = vpop.permute.xlu0 %656  ;;  %v6113_v57 = vpop.permute.xlu2 %744 }
  0xd3   : > { %10444 = vst [vmem:[#allocation33_spill] sm:$0xff] %v6111_v55 }
  0xd4   : > { %10445 = vst [vmem:[#allocation34_spill] sm:$0xff] %v6113_v57  ;;  %v6124_v62 = vpop.f32.mrf.mxu0 }
  0xd7   : > { %4548 = vperm.xlu1 %5030, %v4530_v58   ;;  %v713_v58 = vmul.f32 %v6181_v45, %v5981_v2 }
  0xd8   : > { %4543 = vperm.xlu0 %5029, %v4529_v59   ;;  %4602 = vperm.xlu2 %5031, %v4596_v60   ;;  %v616_v59 = vadd.f32 %v600_v46, %v503_v50  ;;  %v712_v60 = vmul.f32 %v6181_v45, %v6011_v14 }
  0xd9   : > { %v6126_v63 = vpop.permute.xlu1 %651 }
  0xda   : > { %10446 = vst [vmem:[#allocation35_spill] sm:$0xff] %v6126_v63  ;;  %v6128_v0 = vpop.permute.xlu0 %631  ;;  %v6130_v1 = vpop.permute.xlu2 %588  ;;  %v729_v50 = vadd.f32 %v713_v58, %v616_v59  ;;  %v715_v58 = vmul.f32 %v6181_v45, %v6111_v55 }
  0xdb   : > { %10447 = vst [vmem:[#allocation36_spill] sm:$0xff] %v6128_v0 }
  0xdc   : > { %10448 = vst [vmem:[#allocation37_spill] sm:$0xff] %v6130_v1  ;;  %v1785_v16 = vpop.f32.mrf.mxu0  ;;  %v825_v14 = vadd.f32 %v6109_v54, %v729_v50 }
  0xde   : > { %v1815_v59 = vadd.f32 %v6064_v36, %v825_v14  ;;  %v603_v36 = vmul.f32 %v6165_v30, %v6024_v19 }
  0xdf   : > { %4612 = vperm.xlu1 %5030, %v4598_v3  }
  0xe0   : > { %4607 = vperm.xlu0 %5029, %v4597_v4   ;;  %4617 = vperm.xlu2 %5031, %v4599_v5   ;;  %v507_v4 = vmul.f32 %v6162_v25, %v6009_v13  ;;  %v604_v5 = vmul.f32 %v6165_v30, %v6007_v12  ;;  %v602_v12 = vmul.f32 %v6165_v30, %v6058_v33  ;;  %v4774_v50 = vmul.f32 -1.442695, %v1815_v59 }
  0xe1   : > { %v6145_v9 = vpop.permute.xlu1 %749  ;;  %v505_v13 = vmul.f32 %v6162_v25, %v5996_v8  ;;  %v710_v59 = vmul.f32 %v6181_v45, %v6128_v0 }
  0xe2   : > { %10449 = vst [vmem:[#allocation38_spill] sm:$0xff] %v6145_v9  ;;  %v6147_v10 = vpop.permute.xlu0 %774  ;;  %v6149_v11 = vpop.permute.xlu2 %583  ;;  %v620_v2 = vadd.f32 %v604_v5, %v507_v4 }
  0xe3   : > { %10450 = vst [vmem:[#allocation39_spill] sm:$0xff] %v6147_v10  ;;  %v618_v4 = vadd.f32 %v602_v12, %v505_v13  ;;  %v597_v12 = vmul.f32 %v6165_v30, %v6094_v48 }
  0xe4   : > { %10451 = vst [vmem:[#allocation40_spill] sm:$0xff] %v6149_v11  ;;  %v6174_v38 = vpop.f32.mrf.mxu0  ;;  %v733_v7 = vadd.f32 %v717_v39, %v620_v2  ;;  %v6222_v39 = vpop.f32.mrf.mxu1 }
  0xe6   : > { %v829_v27 = vadd.f32 %v6062_v35, %v733_v7  ;;  %v731_v7 = vadd.f32 %v715_v58, %v618_v4  ;;  %v501_v35 = vmul.f32 %v6162_v25, %v6041_v26  ;;  %v506_v4 = vmul.f32 %v6162_v25, %v5966_v61 }
  0xe8   : > { %4636 = vperm.xlu0 %5029, %v4633_v17   ;;  %v728_v17 = vadd.f32 %v712_v60, %v615_v51  ;;  %v1819_v2 = vadd.f32 %v1785_v16, %v829_v27  ;;  %v827_v58 = vadd.f32 %v6096_v49, %v731_v7  ;;  %v619_v7 = vadd.f32 %v603_v36, %v506_v4 }
  0xe9   : > { %v6159_v24 = vpop.permute.xlu1 %593  ;;  %v504_v4 = vmul.f32 %v6162_v25, %v6028_v21 }
  0xea   : > { %10452 = vst [vmem:[#allocation41_spill] sm:$0xff] %v6159_v24  ;;  %v6167_v31 = vpop.permute.xlu0 %496  ;;  %v6169_v32 = vpop.permute.xlu2 %578  ;;  %v824_v46 = vadd.f32 %v6079_v42, %v728_v17  ;;  %v4778_v54 = vmul.f32 -1.442695, %v1819_v2  ;;  %v612_v27 = vmul.f32 %v6165_v30, %v6159_v24  ;;  %v1817_v49 = vadd.f32 %v6107_v53, %v827_v58 }
  0xeb   : > { %10453 = vst [vmem:[#allocation42_spill] sm:$0xff] %v6167_v31  ;;  %v515_v14 = vmul.f32 %v6162_v25, %v6167_v31  ;;  %v601_v58 = vmul.f32 %v6165_v30, %v6092_v47 }
  0xec   : > { %10454 = vst [vmem:[#allocation43_spill] sm:$0xff] %v6169_v32  ;;  %v6203_v43 = vpop.f32.mrf.mxu0  ;;  %v1814_v51 = vadd.f32 %v6047_v29, %v824_v46  ;;  %v598_v29 = vmul.f32 %v6165_v30, %v6060_v34  ;;  %v1809_v42 = vpop.f32.mrf.mxu1 }
  0xed   : > { %v628_v24 = vadd.f32 %v612_v27, %v515_v14 }
  0xee   : > { %v4773_v5 = vmul.f32 -1.442695, %v1814_v51  ;;  %v614_v16 = vadd.f32 %v598_v29, %v501_v35  ;;  %v500_v51 = vmul.f32 %v6162_v25, %v6075_v40  ;;  %v716_v35 = vmul.f32 %v6181_v45, %v6077_v41 }
  0xf0   : > { %5032 = vpow2.f32 %v4773_v5  ;;  %v711_v5 = vmul.f32 %v6181_v45, %v6045_v28  ;;  %v613_v29 = vadd.f32 %v597_v12, %v500_v51  ;;  %v732_v61 = vadd.f32 %v716_v35, %v619_v7 }
  0xf1   : > { %v6187_v52 = vpop.permute.xlu1 %491  ;;  %5034 = vpow2.f32 %v4774_v50 }
  0xf2   : > { %10455 = vst [vmem:[#allocation44_spill] sm:$0xff] %v6187_v52  ;;  %v6193_v3 = vpop.permute.xlu0 %764  ;;  %v6199_v6 = vpop.permute.xlu2 %691  ;;  %5036 = vpow2.f32 %v4778_v54  ;;  %v727_v50 = vadd.f32 %v711_v5, %v614_v16  ;;  %v726_v19 = vadd.f32 %v710_v59, %v613_v29  ;;  %v828_v53 = vadd.f32 %v6147_v10, %v732_v61 }
  0xf3   : > { %10456 = vst [vmem:[#allocation45_spill] sm:$0xff] %v6193_v3  ;;  %v4776_v16 = vmul.f32 -1.442695, %v1817_v49  ;;  %v714_v61 = vmul.f32 %v6181_v45, %v6126_v63  ;;  %v514_v5 = vmul.f32 %v6162_v25, %v6187_v52 }
  0xf4   : > { %10457 = vst [vmem:[#allocation46_spill] sm:$0xff] %v6199_v6  ;;  %v6226_v46 = vpop.f32.mrf.mxu0  ;;  %v823_v33 = vadd.f32 %v6145_v9, %v727_v50 }
  0xf6   : > { %v5033_v31 = vpop.eup %5032 }
  0xf7   : > { %v5035_v54 = vpop.eup %5034  ;;  %v6266_v36 = vadd.f32 1.0, %v5033_v31  ;;  %v617_v31 = vadd.f32 %v601_v58, %v504_v4  ;;  %v610_v58 = vmul.f32 %v6165_v30, %v6149_v11 }
  0xf8   : > { %v5037_v27 = vpop.eup %5036  ;;  %v6272_v59 = vadd.f32 1.0, %v5035_v54  ;;  %v611_v54 = vmul.f32 %v6165_v30, %v6130_v1 }
  0xf9   : > { %v6207_v56 = vpop.permute.xlu1 %486  ;;  %5038 = vrcp.f32 %v6266_v36  ;;  %v730_v7 = vadd.f32 %v714_v61, %v617_v31  ;;  %vm1879_vm1 = vweird.f32 %v6266_v36 }
  0xfa   : > { %10458 = vst [vmem:[#allocation47_spill] sm:$0xff] %v6207_v56  ;;  %v6212_v60 = vpop.permute.xlu0 %706  ;;  %v6220_v17 = vpop.permute.xlu2 %573  ;;  %5040 = vpow2.f32 %v4776_v16  ;;  %vm1894_vm3 = vweird.f32 %v6272_v59 }
  0xfb   : > { %10459 = vst [vmem:[#allocation48_spill] sm:$0xff] %v6212_v60  ;;  %v725_v2 = vmul.f32 %v6181_v45, %v6212_v60  ;;  %5042 = vrcp.f32 %v6272_v59  ;;  %v826_v16 = vadd.f32 %v6193_v3, %v730_v7 }
  0xfc   : > { %10460 = vst [vmem:[#allocation49_spill] sm:$0xff] %v6220_v17  ;;  %v6261_v28 = vpop.f32.mrf.mxu0 }
  0xfd   : > { %v741_v60 = vadd.f32 %v725_v2, %v628_v24  ;;  %v822_v24 = vadd.f32 %v6113_v57, %v726_v19  ;;  %v1813_v2 = vadd.f32 %v6030_v22, %v823_v33  ;;  %v1818_v19 = vadd.f32 %v6124_v62, %v828_v53 }
  0xff   : > { %v1812_v49 = vadd.f32 %v6013_v15, %v822_v24  ;;  %v4772_v22 = vmul.f32 -1.442695, %v1813_v2  ;;  %v4777_v62 = vmul.f32 -1.442695, %v1818_v19  ;;  %v6302_v53 = vpop.eup %5038 }
 0x100   : > { %v5041_v24 = vpop.eup %5040  ;;  %vm1880_vm2 = vweird.f32 %v6302_v53 }
 0x101   : > { %v6230_v55 = vpop.permute.xlu1 %481  ;;  %v4771_v15 = vmul.f32 -1.442695, %v1812_v49  ;;  %v6309_v4 = vpop.eup %5042  ;;  %v1875_v49 = vmul.f32 %v6302_v53, %v6266_v36  ;;  %vm6393_vm6 = vmor %vm1879_vm1, %vm1880_vm2 }
 0x102   : > { %10461 = vst [vmem:[#allocation50_spill] sm:$0xff] %v6230_v55  ;;  %v6234_v13 = vpop.permute.xlu0 %701  ;;  %v6256_v8 = vpop.permute.xlu2 %568  ;;  %vm1895_vm4 = vweird.f32 %v6309_v4 }
 0x103   : > { %10462 = vst [vmem:[#allocation51_spill] sm:$0xff] %v6234_v13  ;;  %vm6414_vm8 = vmor %vm1894_vm3, %vm1895_vm4 }
 0x104   : > { %10463 = vst [vmem:[#allocation52_spill] sm:$0xff] %v6256_v8  ;;  %v6294_v50 = vpop.f32.mrf.mxu0 }
 0x109   : > { %v6259_v20 = vpop.permute.xlu1 %819 }
 0x10a   : > { %10464 = vst [vmem:[#allocation53_spill] sm:$0xff] %v6259_v20  ;;  %v6263_v12 = vpop.permute.xlu0 %696  ;;  %v837_v14 = vadd.f32 %v6259_v20, %v741_v60  ;;  %v6277_v60 = vadd.f32 1.0, %v5037_v27  ;;  %v6290_v35 = vpop.permute.xlu2 %466  ;;  %v513_v27 = vmul.f32 %v6162_v25, %v6207_v56 }
 0x10b   : > { %10465 = vst [vmem:[#allocation54_spill] sm:$0xff] %v6263_v12  ;;  %v723_v2 = vmul.f32 %v6181_v45, %v6263_v12 }
 0x10c   : > { %v1827_v51 = vadd.f32 %v1809_v42, %v837_v14  ;;  %5044 = vrcp.f32 %v6277_v60  ;;  %10467 = vst [vmem:[#allocation56_spill] sm:$0xff] %v6290_v35  ;;  %v724_v14 = vmul.f32 %v6181_v45, %v6234_v13  ;;  %v1803_v13 = vpop.f32.mrf.mxu0  ;;  %vm1970_vm7 = vweird.f32 %v6277_v60 }
 0x10e   : > { %v4782_v42 = vmul.f32 -1.442695, %v1827_v51  ;;  %v627_v51 = vadd.f32 %v611_v54, %v514_v5  ;;  %v512_v5 = vmul.f32 %v6162_v25, %v6230_v55  ;;  %v6320_v54 = vadd.f32 1.0, %v5041_v24 }
 0x110   : > { %5046 = vpow2.f32 %v4782_v42  ;;  %v740_v19 = vadd.f32 %v724_v14, %v627_v51  ;;  %v626_v42 = vadd.f32 %v610_v58, %v513_v27  ;;  %v1890_v14 = vmul.f32 %v6309_v4, %v6272_v59 }
 0x111   : > { %v6285_v33 = vpop.permute.xlu1 %476  ;;  %5048 = vpow2.f32 %v4772_v22  ;;  %v1816_v22 = vadd.f32 %v6084_v44, %v826_v16  ;;  %v609_v44 = vmul.f32 %v6165_v30, %v6169_v32  ;;  %v1885_v16 = vand.u32 2147483648, %v6266_v36 }
 0x112   : > { %10466 = vst [vmem:[#allocation55_spill] sm:$0xff] %v6285_v33  ;;  %v6292_v29 = vpop.permute.xlu0 %814  ;;  %5050 = vpow2.f32 %v4777_v62  ;;  %v6311_v61 = vpop.eup %5044  ;;  %v1891_v1 = vsub.f32 1.0, %v1890_v14  ;;  %vm1940_vm13 = vweird.f32 %v6320_v54 }
 0x113   : > { %10468 = vst [vmem:[#allocation57_spill] sm:$0xff] %v6292_v29  ;;  %5052 = vpow2.f32 %v4771_v15  ;;  %v836_v62 = vadd.f32 %v6292_v29, %v740_v19  ;;  %v739_v15 = vadd.f32 %v723_v2, %v626_v42  ;;  %v1966_v51 = vmul.f32 %v6311_v61, %v6277_v60  ;;  %v6334_v24 = vpop.permute.xlu2 %461 }
 0x114   : > { %10471 = vst [vmem:[#allocation60_spill] sm:$0xff] %v6334_v24  ;;  %v1876_v29 = vsub.f32 1.0, %v1875_v49  ;;  %v4775_v42 = vmul.f32 -1.442695, %v1816_v22  ;;  %v625_v12 = vadd.f32 %v609_v44, %v512_v5  ;;  %5054 = vrcp.f32 %v6320_v54 }
 0x115   : > { %v1826_v32 = vadd.f32 %v6222_v39, %v836_v62  ;;  %v1967_v11 = vsub.f32 1.0, %v1966_v51  ;;  %v722_v49 = vmul.f32 %v6181_v45, %v6199_v6  ;;  %v511_v22 = vmul.f32 %v6162_v25, %v6285_v33 }
 0x116   : > { %v5047_v31 = vpop.eup %5046  ;;  %v6347_v5 = vor.u32 1.1754944e-38, %v1885_v16  ;;  %v1877_v39 = vmul.f32 %v6302_v53, %v1876_v29  ;;  %vm1971_vm5 = vweird.f32 %v6311_v61 }
 0x117   : > { %v5049_v27 = vpop.eup %5048  ;;  %v6332_v58 = vadd.f32 1.0, %v5047_v31  ;;  %v738_v44 = vadd.f32 %v722_v49, %v625_v12  ;;  %v1898_v49 = vand.u32 2147483647, %v6272_v59  ;;  %vm6432_vm9 = vmor %vm1970_vm7, %vm1971_vm5 }
 0x118   : > { %v5051_v2 = vpop.eup %5050  ;;  %v6338_v52 = vadd.f32 1.0, %v5049_v27  ;;  %v608_v27 = vmul.f32 %v6165_v30, %v6220_v17 }
 0x119   : > { %v6318_v7 = vpop.permute.xlu1 %471  ;;  %v5053_v56 = vpop.eup %5052  ;;  %5056 = vrcp.f32 %v6332_v58  ;;  %vm1899_vm10 = vcmp.eq.f32.partialorder %v1898_v49, 8.507059e+37  ;;  %vm2050_vm4 = vweird.f32 %v6332_v58 }
 0x11a   : > { %10469 = vst [vmem:[#allocation58_spill] sm:$0xff] %v6318_v7  ;;  %v6323_v20 = vpop.permute.xlu0 %809  ;;  %v6353_v62 = vadd.f32 1.0, %v5053_v56  ;;  %5058 = vpow2.f32 %v4775_v42  ;;  %v1968_v56 = vmul.f32 %v6311_v61, %v1967_v11  ;;  %v624_v29 = vadd.f32 %v608_v27, %v511_v22 }
 0x11b   : > { %10470 = vst [vmem:[#allocation59_spill] sm:$0xff] %v6323_v20  ;;  %v835_v19 = vadd.f32 %v6323_v20, %v739_v15  ;;  %v6349_v15 = vadd.f32 1.0, %v5051_v2  ;;  %5060 = vrcp.f32 %v6338_v52  ;;  %v1892_v2 = vmul.f32 %v6309_v4, %v1891_v1  ;;  %v6380_v27 = vpop.permute.xlu2 %799 }
 0x11c   : > { %v6373_v1 = vadd.f32 %v6302_v53, %v1877_v39  ;;  %v1900_v11 = vand.u32 2147483648, %v6272_v59  ;;  %10474 = vst [vmem:[#allocation63_spill] sm:$0xff] %v6380_v27  ;;  %v1868_v49 = vand.u32 2147483647, %v6338_v52  ;;  %vm1864_vm14 = vweird.f32 %v6338_v52 }
 0x11d   : > { %v1825_v14 = vadd.f32 %v1803_v13, %v835_v19  ;;  %v4781_v13 = vmul.f32 -1.442695, %v1826_v32  ;;  %v6364_v19 = vpop.eup %5054  ;;  %5062 = vrcp.f32 %v6349_v15  ;;  %vm1955_vm15 = vweird.f32 %v6349_v15 }
 0x11e   : > { %5064 = vrcp.f32 %v6353_v62  ;;  %vm1941_vm12 = vweird.f32 %v6364_v19  ;;  %vm6508_vm5 = vcmp.eq.f32.partialorder %v1868_v49, 8.507059e+37  ;;  %v1870_v49 = vand.u32 2147483648, %v6338_v52 }
 0x11f   : > { %v4780_v12 = vmul.f32 -1.442695, %v1825_v14  ;;  %v6378_v22 = vpop.eup %5056  ;;  %5066 = vpow2.f32 %v4781_v13  ;;  %v1936_v14 = vmul.f32 %v6364_v19, %v6320_v54 }
 0x120   : > { %v5059_v39 = vpop.eup %5058  ;;  %vm2051_vm2 = vweird.f32 %v6378_v22 }
 0x121   : > { %v6357_v51 = vpop.permute.xlu1 %804  ;;  %v6398_v13 = vpop.eup %5060  ;;  %5068 = vpow2.f32 %v4780_v12  ;;  %v2046_v12 = vmul.f32 %v6378_v22, %v6332_v58  ;;  %v6423_v33 = vadd.f32 1.0, %v5059_v39  ;;  %vm6514_vm7 = vmor %vm2050_vm4, %vm2051_vm2 }
 0x122   : > { %10472 = vst [vmem:[#allocation61_spill] sm:$0xff] %v6357_v51  ;;  %v6360_v16 = vpop.permute.xlu0 %686  ;;  %v834_v31 = vadd.f32 %v6357_v51, %v738_v44  ;;  %v1893_v44 = vadd.f32 %v6309_v4, %v1892_v2  ;;  %v1976_v51 = vand.u32 2147483648, %v6277_v60  ;;  %v1860_v55 = vmul.f32 %v6398_v13, %v6338_v52 }
 0x123   : > { %10473 = vst [vmem:[#allocation62_spill] sm:$0xff] %v6360_v16  ;;  %v721_v42 = vmul.f32 %v6181_v45, %v6360_v16  ;;  %vm1865_vm1 = vweird.f32 %v6398_v13 }
 0x124   : > { %v1824_v2 = vadd.f32 %v6294_v50, %v834_v31  ;;  %v1974_v31 = vand.u32 2147483647, %v6277_v60  ;;  %v1937_v60 = vsub.f32 1.0, %v1936_v14  ;;  %v2047_v14 = vsub.f32 1.0, %v2046_v12 }
 0x125   : > { %v737_v32 = vadd.f32 %v721_v42, %v624_v29  ;;  %v1969_v29 = vadd.f32 %v6311_v61, %v1968_v56  ;;  %v6421_v56 = vpop.eup %5062 }
 0x126   : > { %v6436_v17 = vpop.eup %5064  ;;  %v4779_v50 = vmul.f32 -1.442695, %v1824_v2  ;;  %vm1975_vm11 = vcmp.eq.f32.partialorder %v1974_v31, 8.507059e+37  ;;  %v1951_v63 = vmul.f32 %v6421_v56, %v6349_v15  ;;  %v1938_v2 = vmul.f32 %v6364_v19, %v1937_v60 }
 0x127   : > { %v833_v20 = vadd.f32 %v6380_v27, %v737_v32  ;;  %v1946_v32 = vand.u32 2147483648, %v6320_v54  ;;  %v1973_v39 = vsel %vm6432_vm9, %v6311_v61, %v1969_v29  ;;  %v1861_v29 = vsub.f32 1.0, %v1860_v55 }
 0x128   : > { %v2048_v60 = vmul.f32 %v6378_v22, %v2047_v14  ;;  %vm1956_vm9 = vweird.f32 %v6421_v56 }
 0x129   : > { %v6407_v27 = vpop.permute.xlu1 %681  ;;  %v1823_v16 = vadd.f32 %v6261_v28, %v833_v20  ;;  %v1897_v20 = vsel %vm6414_vm8, %v6309_v4, %v1893_v44  ;;  %v1901_v28 = vor.u32 1.1754944e-38, %v1900_v11  ;;  %v5067_v4 = vpop.eup %5066  ;;  %v1977_v11 = vor.u32 1.1754944e-38, %v1976_v51 }
 0x12a   : > { %10477 = vst [vmem:[#allocation64_spill] sm:$0xff] %v6407_v27  ;;  %v6425_v6 = vpop.permute.xlu0 %563  ;;  %v1944_v44 = vand.u32 2147483647, %v6320_v54  ;;  %v6444_v3 = vor.u32 1.1754944e-38, %v1946_v32  ;;  %v5069_v59 = vpop.eup %5068  ;;  %v6453_v51 = vadd.f32 1.0, %v5067_v4  ;;  %v509_v32 = vmul.f32 %v6162_v25, %v6290_v35 }
 0x12b   : > { %10480 = vst [vmem:[#allocation65_spill] sm:$0xff] %v6425_v6  ;;  %5070 = vtanh.f32 %v1823_v16  ;;  %v1902_v10 = vsel %vm1899_vm10, %v1901_v28, %v1897_v20  ;;  %v606_v61 = vmul.f32 %v6165_v30, %v6425_v6  ;;  %v1978_v16 = vsel %vm1975_vm11, %v1977_v11, %v1973_v39  ;;  %vm6541_vm10 = vmor %vm1940_vm13, %vm1941_vm12 }
 0x12c   : > { %5072 = vrcp.f32 %v6423_v33  ;;  %v6463_v20 = vmul.f32 %v6436_v17, %v6353_v62  ;;  %v6465_v39 = vadd.f32 1.0, %v5069_v59  ;;  %v1952_v4 = vsub.f32 1.0, %v1951_v63  ;;  %vm6553_vm11 = vmor %vm1864_vm14, %vm1865_vm1 }
 0x12d   : > { %5074 = vpow2.f32 %v4779_v50  ;;  %v2063_v50 = vmul.f32 0.0, %v1978_v16  ;;  %v510_v11 = vmul.f32 %v6162_v25, %v6318_v7  ;;  %v622_v31 = vadd.f32 %v606_v61, %v509_v32  ;;  %vm6573_vm13 = vmor %vm1955_vm15, %vm1956_vm9 }
 0x12e   : > { %5076 = vrcp.f32 %v6453_v51  ;;  %v1862_v14 = vmul.f32 %v6398_v13, %v1861_v29  ;;  %v6482_v63 = vadd.f32 %v6364_v19, %v1938_v2  ;;  %v607_v61 = vmul.f32 %v6165_v30, %v6256_v8  ;;  %v6493_v29 = vpop.permute.xlu2 %789 }
 0x12f   : > { %v720_v16 = vmul.f32 %v6181_v45, %v6407_v27  ;;  %5078 = vrcp.f32 %v6465_v39  ;;  %10486 = vst [vmem:[#allocation69_spill] sm:$0xff] %v6493_v29  ;;  %v2049_v7 = vadd.f32 %v6378_v22, %v2048_v60  ;;  %v1953_v2 = vmul.f32 %v6421_v56, %v1952_v4 }
 0x130   : > { %v2056_v8 = vand.u32 2147483648, %v6332_v58  ;;  %vm6501_vm3 = vcmp.eq.f32.partialorder %v1944_v44, 8.507059e+37  ;;  %v1863_v60 = vadd.f32 %v6398_v13, %v1862_v14  ;;  %v10493_v44 = vand.u32 2147483647, %v6266_v36 }
 0x131   : > { %v5071_v28 = vpop.eup %5070  ;;  %v6467_v55 = vpop.permute.xlu1 %676  ;;  %v1954_v36 = vadd.f32 %v6421_v56, %v1953_v2  ;;  %v1943_v54 = vsel %vm6541_vm10, %v6364_v19, %v6482_v63  ;;  %vm1849_vm15 = vweird.f32 %v6353_v62  ;;  %vm1850_vm1 = vweird.f32 %v6436_v17 }
 0x132   : > { %10483 = vst [vmem:[#allocation66_spill] sm:$0xff] %v6467_v55  ;;  %v6473_v12 = vpop.permute.xlu0 %558  ;;  %v719_v35 = vmul.f32 %v6181_v45, %v6467_v55  ;;  %v2067_v6 = vmul.f32 %v5071_v28, %v1902_v10  ;;  %v6484_v59 = vpop.eup %5072  ;;  %v623_v55 = vadd.f32 %v607_v61, %v510_v11  ;;  %vm6520_vm8 = vcmp.eq.f32.partialorder %v10493_v44, 8.507059e+37  ;;  %vm6631_vm2 = vmor %vm1849_vm15, %vm1850_vm1 }
 0x133   : > { %10484 = vst [vmem:[#allocation67_spill] sm:$0xff] %v6473_v12  ;;  %v5075_v28 = vpop.eup %5074  ;;  %v1921_v4 = vmul.f32 %v6484_v59, %v6423_v33  ;;  %v2057_v61 = vor.u32 1.1754944e-38, %v2056_v8  ;;  %v1867_v8 = vsel %vm6553_vm11, %v6398_v13, %v1863_v60  ;;  %v508_v13 = vmul.f32 %v6162_v25, %v6334_v24 }
 0x134   : > { %v735_v10 = vadd.f32 %v719_v35, %v622_v31  ;;  %v6490_v32 = vadd.f32 %v2067_v6, %v2063_v50  ;;  %v2054_v31 = vand.u32 2147483647, %v6332_v58  ;;  %v736_v11 = vadd.f32 %v720_v16, %v623_v55 }
 0x135   : > { %v6526_v14 = vadd.f32 1.0, %v5075_v28  ;;  %v2053_v55 = vsel %vm6514_vm7, %v6378_v22, %v2049_v7  ;;  %v1846_v16 = vsub.f32 1.0, %v6463_v20  ;;  %v605_v20 = vmul.f32 %v6165_v30, %v6473_v12 }
 0x136   : > { %10485 = vst [vmem:[#allocation68_spill] sm:$0xff] %v6490_v32  ;;  %5080 = vtanh.f32 %v6490_v32  ;;  %v831_v35 = vadd.f32 %v6493_v29, %v735_v10  ;;  %v6528_v32 = vpop.eup %5076  ;;  %vm2055_vm12 = vcmp.eq.f32.partialorder %v2054_v31, 8.507059e+37  ;;  %v1922_v52 = vsub.f32 1.0, %v1921_v4 }
 0x137   : > { %v6561_v22 = vpop.eup %5078  ;;  %v2031_v30 = vmul.f32 %v6528_v32, %v6453_v51  ;;  %v1958_v31 = vsel %vm6573_vm13, %v6421_v56, %v1954_v36  ;;  %v10504_v60 = vand.u32 2147483648, %v6349_v15  ;;  %v10505_v25 = vand.u32 2147483647, %v6349_v15 }
 0x138   : > { %v1821_v58 = vadd.f32 %v6203_v43, %v831_v35  ;;  %v621_v43 = vadd.f32 %v605_v20, %v508_v13  ;;  %v1923_v7 = vmul.f32 %v6484_v59, %v1922_v52  ;;  %v10506_v15 = vsel %vm6393_vm6, %v6302_v53, %v6373_v1 }
 0x139   : > { %v6530_v29 = vpop.permute.xlu1 %794  ;;  %v1962_v4 = vor.u32 1.1754944e-38, %v10504_v60  ;;  %vm1960_vm14 = vcmp.eq.f32.partialorder %v10505_v25, 8.507059e+37  ;;  %v1929_v1 = vand.u32 2147483647, %v6423_v33  ;;  %vm1926_vm6 = vweird.f32 %v6484_v59 }
 0x13a   : > { %10496 = vst [vmem:[#allocation70_spill] sm:$0xff] %v6530_v29  ;;  %v6546_v28 = vpop.permute.xlu0 %671  ;;  %v832_v35 = vadd.f32 %v6530_v29, %v736_v11  ;;  %5082 = vtanh.f32 %v1821_v58  ;;  %v2058_v11 = vsel %vm2055_vm12, %v2057_v61, %v2053_v55  ;;  %v1871_v58 = vor.u32 1.1754944e-38, %v1870_v49 }
 0x13b   : > { %10499 = vst [vmem:[#allocation71_spill] sm:$0xff] %v6546_v28  ;;  %5084 = vrcp.f32 %v6526_v14  ;;  %v718_v63 = vmul.f32 %v6181_v45, %v6546_v28  ;;  %v2016_v55 = vmul.f32 %v6561_v22, %v6465_v39  ;;  %v1948_v45 = vsel %vm6501_vm3, %v6444_v3, %v1943_v54 }
 0x13c   : > { %v5081_v2 = vpop.eup %5080  ;;  %v1822_v44 = vadd.f32 %v6226_v46, %v832_v35  ;;  %v1847_v35 = vmul.f32 %v6436_v17, %v1846_v16  ;;  %v1963_v36 = vsel %vm1960_vm14, %v1962_v4, %v1958_v31  ;;  %v2032_v61 = vsub.f32 1.0, %v2031_v30 }
 0x13d   : > { %v2079_v46 = vmul.f32 %v5081_v2, %v2058_v11  ;;  %v1872_v49 = vsel %vm6508_vm5, %v1871_v58, %v1867_v8  ;;  %v734_v2 = vadd.f32 %v718_v63, %v621_v43  ;;  %v1887_v3 = vsel %vm6520_vm8, %v6347_v5, %v10506_v15  ;;  %v6724_v58 = vld [vmem:[%s10243_s3 + $0x28] sm:$0xff] }
 0x13e   : > { %5086 = vtanh.f32 %v1822_v44  ;;  %v2017_v20 = vsub.f32 1.0, %v2016_v55  ;;  %v2061_v50 = vmul.f32 0.0, %v1948_v45  ;;  %v2062_v8 = vmul.f32 0.0, %v1963_v36  ;;  %v6731_v55 = vld [vmem:[%s10243_s3 + $0x30] sm:$0xff] }
 0x13f   : > { %2108 = vmatpush.msrb.mxu1 %v2079_v46  ;;  %v1848_v53 = vadd.f32 %v6436_v17, %v1847_v35  ;;  %v2033_v5 = vmul.f32 %v6528_v32, %v2032_v61  ;;  %v1924_v11 = vadd.f32 %v6484_v59, %v1923_v7  ;;  %v1931_v30 = vand.u32 2147483648, %v6423_v33 }
 0x140   : > { %v5083_v56 = vpop.eup %5082  ;;  %v2018_v63 = vmul.f32 %v6561_v22, %v2017_v20  ;;  %v1853_v31 = vand.u32 2147483647, %v6353_v62  ;;  %v1855_v60 = vand.u32 2147483648, %v6353_v62  ;;  %vm1925_vm3 = vweird.f32 %v6423_v33 }
 0x141   : > { %v2065_v6 = vmul.f32 %v5083_v56, %v1872_v49  ;;  %v6608_v16 = vpop.eup %5084  ;;  %v1852_v4 = vsel %vm6631_vm2, %v6436_v17, %v1848_v53  ;;  %vm6643_vm4 = vmor %vm1925_vm3, %vm1926_vm6  ;;  %vm6647_vm5 = vcmp.eq.f32.partialorder %v1929_v1, 8.507059e+37  ;;  %v2034_v43 = vadd.f32 %v6528_v32, %v2033_v5  ;;  %v6787_v56 = vld [vmem:[%s10243_s3 + $0x70] sm:$0xff] }
 0x142   : > { %v6610_v54 = vpop.permute.xlu0 %784  ;;  %v2001_v13 = vmul.f32 %v6608_v16, %v6526_v14  ;;  %vm2036_vm7 = vweird.f32 %v6528_v32  ;;  %v1928_v33 = vsel %vm6643_vm4, %v6484_v59, %v1924_v11  ;;  %v2041_v17 = vand.u32 2147483648, %v6453_v51  ;;  %10521 = vst [vmem:[#allocation78_spill] sm:$0xff] %v6787_v56 }
 0x143   : > { %10507 = vst [vmem:[#allocation72_spill] sm:$0xff] %v6610_v54  ;;  %v830_v42 = vadd.f32 %v6610_v54, %v734_v2  ;;  %v6618_v52 = vadd.f32 %v2065_v6, %v2061_v50  ;;  %v1932_v62 = vor.u32 1.1754944e-38, %v1931_v30  ;;  %vm2035_vm8 = vweird.f32 %v6453_v51 }
 0x144   : > { %v5087_v10 = vpop.eup %5086  ;;  %v2002_v25 = vsub.f32 1.0, %v2001_v13  ;;  %v2039_v45 = vand.u32 2147483647, %v6453_v51  ;;  %v2019_v35 = vadd.f32 %v6561_v22, %v2018_v63  ;;  %vm2021_vm9 = vweird.f32 %v6561_v22  ;;  %vm6663_vm10 = vmor %vm2035_vm8, %vm2036_vm7 }
 0x145   : > { %v2066_v44 = vmul.f32 %v5087_v10, %v1887_v3  ;;  %v1820_v19 = vadd.f32 %v6174_v38, %v830_v42  ;;  %v2026_v59 = vand.u32 2147483648, %v6465_v39  ;;  %v1856_v36 = vor.u32 1.1754944e-38, %v1855_v60  ;;  %v6710_v60 = vld [vmem:[%s10243_s3 + $0x18] sm:$0xff] }
 0x146   : > { %v1933_v61 = vsel %vm6647_vm5, %v1932_v62, %v1928_v33  ;;  %v2038_v49 = vsel %vm6663_vm10, %v6528_v32, %v2034_v43  ;;  %vm2020_vm11 = vweird.f32 %v6465_v39  ;;  %v2024_v51 = vand.u32 2147483647, %v6465_v39  ;;  %v6738_v43 = vld [vmem:[%s10243_s3 + $0x38] sm:$0xff]  ;;  %v6745_v33 = vld [vmem:[%s10243_s3 + $0x40] sm:$0xff]  ;;  %v6759_v62 = vld [vmem:[%s10243_s3 + $0x50] sm:$0xff] }
 0x147   : > { %v6638_v38 = vadd.f32 %v2066_v44, %v2062_v8  ;;  %5088 = vtanh.f32 %v1820_v19  ;;  %vm1854_vm12 = vcmp.eq.f32.partialorder %v1853_v31, 8.507059e+37  ;;  %v2042_v2 = vor.u32 1.1754944e-38, %v2041_v17  ;;  %vm2022_vm13 = vmor %vm2020_vm11, %vm2021_vm9  ;;  %v6689_v31 = vld [vmem:[%s10243_s3] sm:$0xff]  ;;  %v6752_v17 = vld [vmem:[%s10243_s3 + $0x48] sm:$0xff]  ;;  %10517 = vst [vmem:[#allocation74_spill] sm:$0xff] %v6759_v62 }
 0x148   : > { %5090 = vtanh.f32 %v6618_v52  ;;  %v1857_v15 = vsel %vm1854_vm12, %v1856_v36, %v1852_v4  ;;  %v2003_v3 = vmul.f32 %v6608_v16, %v2002_v25  ;;  %vm2040_vm14 = vcmp.eq.f32.partialorder %v2039_v45, 8.507059e+37  ;;  %v6717_v4 = vld [vmem:[%s10243_s3 + $0x20] sm:$0xff]  ;;  %10516 = vst [vmem:[#allocation73_spill] sm:$0xff] %v6752_v17  ;;  %v6766_v25 = vld [vmem:[%s10243_s3 + $0x58] sm:$0xff] }
 0x149   : > { %5092 = vtanh.f32 %v6638_v38  ;;  %v2023_v20 = vsel %vm2022_vm13, %v6561_v22, %v2019_v35  ;;  %v2060_v50 = vmul.f32 0.0, %v1933_v61  ;;  %v2043_v53 = vsel %vm2040_vm14, %v2042_v2, %v2038_v49  ;;  %10518 = vst [vmem:[#allocation75_spill] sm:$0xff] %v6766_v25  ;;  %v6773_v45 = vld [vmem:[%s10243_s3 + $0x60] sm:$0xff]  ;;  %v6780_v35 = vld [vmem:[%s10243_s3 + $0x68] sm:$0xff] }
 0x14a   : > { %v2027_v32 = vor.u32 1.1754944e-38, %v2026_v59  ;;  %vm2025_vm15 = vcmp.eq.f32.partialorder %v2024_v51, 8.507059e+37  ;;  %v2004_v5 = vadd.f32 %v6608_v16, %v2003_v3  ;;  %vm2006_vm1 = vweird.f32 %v6608_v16  ;;  %10519 = vst [vmem:[#allocation76_spill] sm:$0xff] %v6773_v45  ;;  %v6794_v59 = vld [vmem:[%s10243_s3 + $0x78] sm:$0xff] }
 0x14b   : > { %v2011_v44 = vand.u32 2147483648, %v6526_v14  ;;  %vm2005_vm6 = vweird.f32 %v6526_v14  ;;  %v2009_v22 = vand.u32 2147483647, %v6526_v14  ;;  %v6696_v14 = vld [vmem:[%s10243_s3 + $0x8] sm:$0xff]  ;;  %10520 = vst [vmem:[#allocation77_spill] sm:$0xff] %v6780_v35  ;;  %v6805_v3 = vperm.slane %v6157_v23, 1 }
 0x14c   : > { %v2028_v39 = vsel %vm2025_vm15, %v2027_v32, %v2023_v20  ;;  %vm2007_vm2 = vmor %vm2005_vm6, %vm2006_vm1  ;;  %10522 = vst [vmem:[#allocation79_spill] sm:$0xff] %v6794_v59 }
 0x14d   : > { %v5089_v7 = vpop.eup %5088  ;;  %v2008_v19 = vsel %vm2007_vm2, %v6608_v16, %v2004_v5  ;;  %v2012_v30 = vor.u32 1.1754944e-38, %v2011_v44  ;;  %vm2010_vm3 = vcmp.eq.f32.partialorder %v2009_v22, 8.507059e+37  ;;  %v6703_v16 = vld [vmem:[%s10243_s3 + $0x10] sm:$0xff]  ;;  %v872_v20 = vmul.f32 %v6805_v3, %v6094_v48  ;;  %v10523_v5 = vld [vmem:[#allocation22_spill] sm:$0xff] }
 0x14e   : > { %v5091_v6 = vpop.eup %5090  ;;  %v2064_v42 = vmul.f32 %v5089_v7, %v1857_v15 }
 0x14f   : > { %v5093_v8 = vpop.eup %5092  ;;  %v2077_v11 = vmul.f32 %v5091_v6, %v2028_v39  ;;  %v2013_v63 = vsel %vm2010_vm3, %v2012_v30, %v2008_v19  ;;  %v6808_v6 = vperm.slane %v6154_v18, 1  ;;  %v10525_v30 = vld [vmem:[#allocation8_spill] sm:$0xff] }
 0x150   : > { %v2078_v1 = vmul.f32 %v5093_v8, %v2043_v53  ;;  %v6677_v10 = vadd.f32 %v2064_v42, %v2060_v50  ;;  %v6813_v50 = vperm.slane %v6172_v37, 1  ;;  %v873_v42 = vmul.f32 %v6805_v3, %v6060_v34  ;;  %v10530_v34 = vld [vmem:[#allocation23_spill] sm:$0xff] }
 0x151   : > { %v855_v8 = vmul.f32 %v6808_v6, %v6075_v40  ;;  %v856_v23 = vmul.f32 %v6808_v6, %v6041_v26  ;;  %v10527_v26 = vld [vmem:[#allocation11_spill] sm:$0xff]  ;;  %v10532_v40 = vld [vmem:[#allocation13_spill] sm:$0xff] }
 0x152   : > { %2109 = vmatpush.msrb.mxu1 %v2078_v1  ;;  %5094 = vtanh.f32 %v6677_v10  ;;  %v905_v53 = vmul.f32 %v6813_v50, %v6128_v0  ;;  %v906_v37 = vmul.f32 %v6813_v50, %v10523_v5  ;;  %v10528_v5 = vld [vmem:[#allocation16_spill] sm:$0xff] }
 0x153   : > { %v888_v32 = vadd.f32 %v872_v20, %v855_v8  ;;  %v889_v1 = vadd.f32 %v873_v42, %v856_v23  ;;  %v875_v20 = vmul.f32 %v6805_v3, %v10527_v26  ;;  %v877_v26 = vmul.f32 %v6805_v3, %v10530_v34  ;;  %v10531_v0 = vld [vmem:[#allocation28_spill] sm:$0xff]  ;;  %v10541_v34 = vld [vmem:[#allocation31_spill] sm:$0xff] }
 0x154   : > { %2110 = vmatpush.msrb.mxu1 %v2077_v11  ;;  %v10524_v11 = vld [vmem:[#allocation18_spill] sm:$0xff] }
 0x155   : > { %v921_v39 = vadd.f32 %v905_v53, %v888_v32  ;;  %v874_v44 = vmul.f32 %v6805_v3, %v10524_v11  ;;  %v922_v22 = vadd.f32 %v906_v37, %v889_v1  ;;  %v907_v1 = vmul.f32 %v6813_v50, %v10528_v5  ;;  %v10529_v37 = vld [vmem:[#allocation10_spill] sm:$0xff] }
 0x157   : > { %v937_v19 = vadd.f32 %v921_v39, %v6113_v57  ;;  %v938_v42 = vadd.f32 %v922_v22, %v6145_v9  ;;  %v908_v57 = vmul.f32 %v6813_v50, %v10529_v37 }
 0x158   : > { %v5095_v13 = vpop.eup %5094 }
 0x159   : > { %v2076_v46 = vmul.f32 %v5095_v13, %v2013_v63  ;;  %v857_v13 = vmul.f32 %v6808_v6, %v10525_v30  ;;  %v10526_v63 = vld [vmem:[#allocation12_spill] sm:$0xff] }
 0x15b   : > { %2111 = vmatpush.msrb.mxu1 %v2076_v46  ;;  %v858_v46 = vmul.f32 %v6808_v6, %v10526_v63  ;;  %v890_v23 = vadd.f32 %v874_v44, %v857_v13 }
 0x15c   : > { %4783 = vmatmul.msk.f32.vlgmr.msrb.gmra.mxu1 %vm1698_vm0, %v6689_v31 }
 0x15d   : > { %v891_v39 = vadd.f32 %v875_v20, %v858_v46  ;;  %v923_v11 = vadd.f32 %v907_v1, %v890_v23  ;;  %v10534_v46 = vld [vmem:[#allocation32_spill] sm:$0xff] }
 0x15f   : > { %v939_v22 = vadd.f32 %v923_v11, %v10531_v0  ;;  %v924_v9 = vadd.f32 %v908_v57, %v891_v39  ;;  %v10537_v11 = vld [vmem:[#allocation14_spill] sm:$0xff] }
 0x160   : > { %v879_v1 = vmul.f32 %v6805_v3, %v10537_v11 }
 0x161   : > { %v940_v20 = vadd.f32 %v924_v9, %v10534_v46  ;;  %v911_v9 = vmul.f32 %v6813_v50, %v6077_v41  ;;  %v10540_v46 = vld [vmem:[#allocation35_spill] sm:$0xff] }
 0x164   : > { %4784 = vmatmul.msk.f32.gmra.mxu1 %vm1698_vm0, %v6696_v14 }
 0x16c   : > { %4785 = vmatmul.msk.f32.gmra.mxu1 %vm1698_vm0, %v6703_v16 }
 0x174   : > { %4786 = vmatmul.msk.f32.gmra.mxu1 %vm1698_vm0, %v6710_v60 }
 0x17c   : > { %4787 = vmatmul.msk.f32.gmra.mxu1 %vm1698_vm0, %v6717_v4 }
 0x184   : > { %4788 = vmatmul.msk.f32.gmra.mxu1 %vm1698_vm0, %v6724_v58 }
 0x18c   : > { %4789 = vmatmul.msk.f32.gmra.mxu1 %vm1698_vm0, %v6731_v55 }
 0x194   : > { %4790 = vmatmul.msk.f32.gmra.mxu1 %vm1698_vm0, %v6738_v43 }
 0x19c   : > { %4791 = vmatmul.msk.f32.gmra.mxu1 %vm1698_vm0, %v6745_v33 }
 0x1a4   : > { %4792 = vmatmul.msk.f32.gmra.mxu1 %vm1698_vm0, %v6752_v17 }
 0x1ac   : > { %4793 = vmatmul.msk.f32.gmra.mxu1 %vm1698_vm0, %v6759_v62 }
 0x1b4   : > { %4794 = vmatmul.msk.f32.gmra.mxu1 %vm1698_vm0, %v6766_v25 }
 0x1bc   : > { %4795 = vmatmul.msk.f32.gmra.mxu1 %vm1698_vm0, %v6773_v45 }
 0x1c4   : > { %4796 = vmatmul.msk.f32.gmra.mxu1 %vm1698_vm0, %v6780_v35 }
 0x1cc   : > { %4797 = vmatmul.msk.f32.gmra.mxu1 %vm1698_vm0, %v6787_v56 }
 0x1d4   : > { %4798 = vmatmul.msk.f32.gmra.mxu1 %vm1698_vm0, %v6794_v59  ;;  %v10565_v59 = vld [vmem:[#allocation61_spill] sm:$0xff] }
 0x1d9   : > { %v2113_v36 = vpop.f32.mrf.mxu1 }
 0x1da   : > { %v2161_v53 = vadd.f32 %v2113_v36, %v937_v19  ;;  %v860_v36 = vmul.f32 %v6808_v6, %v10532_v40  ;;  %v10538_v40 = vld [vmem:[#allocation9_spill] sm:$0xff] }
 0x1dc   : > { %v4799_v30 = vmul.f32 -1.442695, %v2161_v53  ;;  %v893_v23 = vadd.f32 %v877_v26, %v860_v36  ;;  %v859_v36 = vmul.f32 %v6808_v6, %v6028_v21 }
 0x1de   : > { %5096 = vpow2.f32 %v4799_v30 }
 0x1e1   : > { %v2116_v61 = vpop.f32.mrf.mxu1 }
 0x1e2   : > { %v2162_v32 = vadd.f32 %v2116_v61, %v938_v42  ;;  %v10533_v61 = vld [vmem:[#allocation33_spill] sm:$0xff] }
 0x1e3   : > { %v910_v44 = vmul.f32 %v6813_v50, %v10533_v61  ;;  %v10535_v42 = vld [vmem:[#allocation17_spill] sm:$0xff]  ;;  %v876_v61 = vmul.f32 %v6805_v3, %v6092_v47 }
 0x1e4   : > { %v4800_v63 = vmul.f32 -1.442695, %v2162_v32  ;;  %v878_v53 = vmul.f32 %v6805_v3, %v10535_v42  ;;  %v10536_v32 = vld [vmem:[#allocation15_spill] sm:$0xff]  ;;  %v5097_v47 = vpop.eup %5096 }
 0x1e5   : > { %v862_v57 = vmul.f32 %v6808_v6, %v10536_v32  ;;  %v926_v30 = vadd.f32 %v910_v44, %v893_v23  ;;  %v892_v42 = vadd.f32 %v876_v61, %v859_v36  ;;  %v6875_v21 = vadd.f32 1.0, %v5097_v47  ;;  %v10544_v61 = vld [vmem:[#allocation45_spill] sm:$0xff]  ;;  %v10549_v36 = vld [vmem:[#allocation42_spill] sm:$0xff] }
 0x1e6   : > { %5098 = vpow2.f32 %v4800_v63 }
 0x1e7   : > { %v895_v11 = vadd.f32 %v879_v1, %v862_v57  ;;  %v942_v41 = vadd.f32 %v926_v30, %v10541_v34  ;;  %v10546_v30 = vld [vmem:[#allocation40_spill] sm:$0xff]  ;;  %v10559_v34 = vld [vmem:[#allocation54_spill] sm:$0xff]  ;;  %vm2198_vm7 = vweird.f32 %v6875_v21 }
 0x1e9   : > { %v2119_v49 = vpop.f32.mrf.mxu1 }
 0x1ea   : > { %v2163_v13 = vadd.f32 %v2119_v49, %v939_v22  ;;  %v861_v49 = vmul.f32 %v6808_v6, %v10538_v40  ;;  %v10539_v22 = vld [vmem:[#allocation21_spill] sm:$0xff] }
 0x1eb   : > { %v912_v26 = vmul.f32 %v6813_v50, %v10539_v22  ;;  %v10542_v22 = vld [vmem:[#allocation39_spill] sm:$0xff] }
 0x1ec   : > { %v4801_v63 = vmul.f32 -1.442695, %v2163_v13  ;;  %v5099_v37 = vpop.eup %5098 }
 0x1ed   : > { %v928_v44 = vadd.f32 %v912_v26, %v895_v11  ;;  %v6879_v1 = vadd.f32 1.0, %v5099_v37  ;;  %v10545_v37 = vld [vmem:[#allocation50_spill] sm:$0xff] }
 0x1ee   : > { %5100 = vpow2.f32 %v4801_v63  ;;  %v10548_v63 = vld [vmem:[#allocation44_spill] sm:$0xff] }
 0x1ef   : > { %vm2213_vm9 = vweird.f32 %v6879_v1 }
 0x1f1   : > { %v2122_v51 = vpop.f32.mrf.mxu1 }
 0x1f2   : > { %v2164_v39 = vadd.f32 %v2122_v51, %v940_v20  ;;  %v909_v51 = vmul.f32 %v6813_v50, %v10540_v46  ;;  %v894_v20 = vadd.f32 %v878_v53, %v861_v49  ;;  %v10543_v53 = vld [vmem:[#allocation25_spill] sm:$0xff] }
 0x1f3   : > { %v944_v57 = vadd.f32 %v928_v44, %v10543_v53 }
 0x1f4   : > { %v4802_v32 = vmul.f32 -1.442695, %v2164_v39  ;;  %v927_v40 = vadd.f32 %v911_v9, %v894_v20  ;;  %v925_v13 = vadd.f32 %v909_v51, %v892_v42  ;;  %v5101_v47 = vpop.eup %5100  ;;  %v870_v51 = vmul.f32 %v6808_v6, %v10549_v36  ;;  %v10550_v20 = vld [vmem:[#allocation41_spill] sm:$0xff]  ;;  %v10555_v36 = vld [vmem:[#allocation48_spill] sm:$0xff] }
 0x1f5   : > { %v887_v44 = vmul.f32 %v6805_v3, %v10550_v20 }
 0x1f6   : > { %v943_v0 = vadd.f32 %v927_v40, %v10542_v22  ;;  %5102 = vpow2.f32 %v4802_v32  ;;  %v941_v39 = vadd.f32 %v925_v13, %v10544_v61  ;;  %v867_v32 = vmul.f32 %v6808_v6, %v10545_v37 }
 0x1f7   : > { %5104 = vrcp.f32 %v6875_v21  ;;  %v6901_v13 = vadd.f32 1.0, %v5101_v47  ;;  %v920_v37 = vmul.f32 %v6813_v50, %v10555_v36  ;;  %v10558_v36 = vld [vmem:[#allocation52_spill] sm:$0xff] }
 0x1f8   : > { %5106 = vrcp.f32 %v6879_v1  ;;  %v882_v22 = vmul.f32 %v6805_v3, %v10558_v36  ;;  %v863_v36 = vmul.f32 %v6808_v6, %v6334_v24 }
 0x1f9   : > { %v6798_v7 = vpop.f32.mrf.mxu1  ;;  %vm2228_vm12 = vweird.f32 %v6901_v13 }
 0x1fa   : > { %v2165_v9 = vadd.f32 %v6798_v7, %v941_v39 }
 0x1fc   : > { %v5103_v7 = vpop.eup %5102  ;;  %v4803_v26 = vmul.f32 -1.442695, %v2165_v9  ;;  %v10553_v9 = vld [vmem:[#allocation49_spill] sm:$0xff] }
 0x1fd   : > { %v6913_v20 = vpop.eup %5104  ;;  %v6915_v47 = vadd.f32 1.0, %v5103_v7 }
 0x1fe   : > { %vm2199_vm4 = vweird.f32 %v6913_v20 }
 0x1ff   : > { %vm7003_vm8 = vmor %vm2198_vm7, %vm2199_vm4  ;;  %vm2243_vm1 = vweird.f32 %v6915_v47 }
 0x201   : > { %v6800_v2 = vpop.f32.mrf.mxu1 }
 0x202   : > { %v2166_v46 = vadd.f32 %v6800_v2, %v942_v41 }
 0x204   : > { %v4804_v40 = vmul.f32 -1.442695, %v2166_v46  ;;  %v869_v46 = vmul.f32 %v6808_v6, %v10548_v63 }
 0x206   : > { %5108 = vpow2.f32 %v4804_v40 }
 0x209   : > { %v6802_v15 = vpop.f32.mrf.mxu1 }
 0x20a   : > { %v2167_v49 = vadd.f32 %v6802_v15, %v943_v0  ;;  %v885_v0 = vmul.f32 %v6805_v3, %v10546_v30  ;;  %v10547_v15 = vld [vmem:[#allocation37_spill] sm:$0xff]  ;;  %v10554_v30 = vld [vmem:[#allocation51_spill] sm:$0xff] }
 0x20b   : > { %v919_v63 = vmul.f32 %v6813_v50, %v10554_v30  ;;  %v903_v30 = vadd.f32 %v887_v44, %v870_v51 }
 0x20c   : > { %v4805_v41 = vmul.f32 -1.442695, %v2167_v49  ;;  %v10552_v49 = vld [vmem:[#allocation47_spill] sm:$0xff] }
 0x20d   : > { %v936_v48 = vadd.f32 %v920_v37, %v903_v30 }
 0x20e   : > { %5110 = vpow2.f32 %v4805_v41  ;;  %v10557_v41 = vld [vmem:[#allocation55_spill] sm:$0xff] }
 0x211   : > { %v6823_v18 = vpop.f32.mrf.mxu1 }
 0x212   : > { %v2168_v11 = vadd.f32 %v6823_v18, %v944_v57  ;;  %v886_v18 = vmul.f32 %v6805_v3, %v10547_v15  ;;  %v10551_v57 = vld [vmem:[#allocation43_spill] sm:$0xff]  ;;  %v883_v15 = vmul.f32 %v6805_v3, %v10553_v9  ;;  %v866_v9 = vmul.f32 %v6808_v6, %v10557_v41 }
 0x213   : > { %v884_v39 = vmul.f32 %v6805_v3, %v10551_v57  ;;  %v10556_v57 = vld [vmem:[#allocation46_spill] sm:$0xff] }
 0x214   : > { %v4806_v2 = vmul.f32 -1.442695, %v2168_v11  ;;  %v868_v11 = vmul.f32 %v6808_v6, %v10552_v49  ;;  %v917_v61 = vmul.f32 %v6813_v50, %v10556_v57  ;;  %v6919_v49 = vpop.eup %5106  ;;  %v902_v53 = vadd.f32 %v886_v18, %v869_v46  ;;  %v10561_v57 = vld [vmem:[#allocation62_spill] sm:$0xff] }
 0x215   : > { %v900_v40 = vadd.f32 %v884_v39, %v867_v32  ;;  %v10560_v32 = vld [vmem:[#allocation65_spill] sm:$0xff]  ;;  %v5109_v41 = vpop.eup %5108  ;;  %v2194_v18 = vmul.f32 %v6913_v20, %v6875_v21  ;;  %v2209_v46 = vmul.f32 %v6919_v49, %v6879_v1  ;;  %v899_v30 = vadd.f32 %v883_v15, %v866_v9 }
 0x216   : > { %5112 = vpow2.f32 %v4806_v2  ;;  %v901_v7 = vadd.f32 %v885_v0, %v868_v11  ;;  %v918_v2 = vmul.f32 %v6813_v50, %v10559_v34  ;;  %v881_v39 = vmul.f32 %v6805_v3, %v10560_v32  ;;  %v5111_v44 = vpop.eup %5110  ;;  %v10562_v11 = vld [vmem:[#allocation56_spill] sm:$0xff]  ;;  %v10563_v34 = vld [vmem:[#allocation66_spill] sm:$0xff] }
 0x217   : > { %5114 = vpow2.f32 %v4803_v26  ;;  %v916_v26 = vmul.f32 %v6813_v50, %v10561_v57  ;;  %v935_v5 = vadd.f32 %v919_v63, %v902_v53  ;;  %v933_v0 = vadd.f32 %v917_v61, %v900_v40  ;;  %v10564_v53 = vld [vmem:[#allocation58_spill] sm:$0xff]  ;;  %v10566_v61 = vld [vmem:[#allocation53_spill] sm:$0xff] }
 0x218   : > { %5116 = vrcp.f32 %v6901_v13  ;;  %v864_v32 = vmul.f32 %v6808_v6, %v10562_v11  ;;  %v914_v57 = vmul.f32 %v6813_v50, %v10563_v34  ;;  %v865_v37 = vmul.f32 %v6808_v6, %v10564_v53 }
 0x219   : > { %v6837_v8 = vpop.f32.mrf.mxu1  ;;  %5118 = vrcp.f32 %v6915_v47  ;;  %v949_v56 = vadd.f32 %v933_v0, %v10565_v59  ;;  %v934_v35 = vadd.f32 %v918_v2, %v901_v7  ;;  %v6947_v40 = vadd.f32 %v936_v48, %v10566_v61 }
 0x21a   : > { %v6949_v25 = vadd.f32 1.0, %v5109_v41  ;;  %v897_v11 = vadd.f32 %v881_v39, %v864_v32  ;;  %v915_v34 = vmul.f32 %v6813_v50, %v6407_v27  ;;  %v932_v62 = vadd.f32 %v916_v26, %v899_v30  ;;  %v10567_v41 = vld [vmem:[#allocation57_spill] sm:$0xff] }
 0x21b   : > { %v2195_v15 = vsub.f32 1.0, %v2194_v18  ;;  %v2210_v9 = vsub.f32 1.0, %v2209_v46  ;;  %v6955_v17 = vadd.f32 1.0, %v5111_v44  ;;  %v880_v6 = vmul.f32 %v6805_v3, %v6473_v12  ;;  %v10568_v46 = vld [vmem:[#allocation59_spill] sm:$0xff] }
 0x21c   : > { %v5113_v63 = vpop.eup %5112  ;;  %v930_v48 = vadd.f32 %v914_v57, %v897_v11  ;;  %v898_v2 = vadd.f32 %v882_v22, %v865_v37  ;;  %v951_v0 = vadd.f32 %v935_v5, %v10567_v41  ;;  %v913_v26 = vmul.f32 %v6813_v50, %v6546_v28  ;;  %v10569_v57 = vld [vmem:[#allocation63_spill] sm:$0xff] }
 0x21d   : > { %v5115_v45 = vpop.eup %5114  ;;  %v6959_v7 = vadd.f32 1.0, %v5113_v63  ;;  %v950_v44 = vadd.f32 %v934_v35, %v10568_v46  ;;  %5120 = vrcp.f32 %v6949_v25  ;;  %v6973_v22 = vadd.f32 %v932_v62, %v10569_v57 }
 0x21e   : > { %v6953_v53 = vpop.eup %5116  ;;  %v6964_v39 = vadd.f32 1.0, %v5115_v45  ;;  %v931_v3 = vadd.f32 %v915_v34, %v898_v2  ;;  %5122 = vrcp.f32 %v6955_v17  ;;  %v896_v5 = vadd.f32 %v880_v6, %v863_v36 }
 0x21f   : > { %v6962_v32 = vpop.eup %5118  ;;  %v2224_v30 = vmul.f32 %v6953_v53, %v6901_v13  ;;  %v2196_v45 = vmul.f32 %v6913_v20, %v2195_v15  ;;  %v2211_v11 = vmul.f32 %v6919_v49, %v2210_v9  ;;  %5124 = vrcp.f32 %v6959_v7 }
 0x220   : > { %v2239_v35 = vmul.f32 %v6962_v32, %v6915_v47  ;;  %5126 = vrcp.f32 %v6964_v39  ;;  %v929_v34 = vadd.f32 %v913_v26, %v896_v5  ;;  %v2217_v63 = vand.u32 2147483647, %v6879_v1 }
 0x221   : > { %v6850_v19 = vpop.f32.mrf.mxu1  ;;  %v2225_v36 = vsub.f32 1.0, %v2224_v30  ;;  %v2219_v15 = vand.u32 2147483648, %v6879_v1  ;;  %v6987_v6 = vadd.f32 %v6913_v20, %v2196_v45  ;;  %v2212_v2 = vadd.f32 %v6919_v49, %v2211_v11 }
 0x222   : > { %vm2214_vm5 = vweird.f32 %v6919_v49  ;;  %v2240_v26 = vsub.f32 1.0, %v2239_v35  ;;  %v2234_v11 = vand.u32 2147483648, %v6901_v13  ;;  %vm7016_vm11 = vcmp.eq.f32.partialorder %v2217_v63, 8.507059e+37 }
 0x223   : > { %vm7012_vm10 = vmor %vm2213_vm9, %vm2214_vm5  ;;  %v2226_v30 = vmul.f32 %v6953_v53, %v2225_v36  ;;  %vm2229_vm13 = vweird.f32 %v6953_v53  ;;  %vm2244_vm14 = vweird.f32 %v6962_v32  ;;  %vm2274_vm4 = vweird.f32 %v6964_v39 }
 0x224   : > { %v2216_v63 = vsel %vm7012_vm10, %v6919_v49, %v2212_v2  ;;  %v2249_v49 = vand.u32 2147483648, %v6915_v47  ;;  %vm7063_vm15 = vmor %vm2228_vm12, %vm2229_vm13  ;;  %vm2289_vm7 = vweird.f32 %v6949_v25  ;;  %vm2304_vm12 = vweird.f32 %v6955_v17 }
 0x225   : > { %v7050_v57 = vadd.f32 %v6953_v53, %v2226_v30  ;;  %vm7087_vm3 = vmor %vm2243_vm1, %vm2244_vm14  ;;  %vm2319_vm14 = vweird.f32 %v6959_v7 }
 0x229   : > { %v6872_v23 = vpop.f32.mrf.mxu1 }
 0x231   : > { %v6887_v42 = vpop.f32.mrf.mxu1 }
 0x239   : > { %v2149_v51 = vpop.f32.mrf.mxu1 }
 0x23a   : > { %v2173_v18 = vadd.f32 %v2149_v51, %v949_v56  ;;  %v10570_v56 = vld [vmem:[#allocation69_spill] sm:$0xff] }
 0x23b   : > { %v946_v51 = vadd.f32 %v930_v48, %v10570_v56  ;;  %v947_v48 = vadd.f32 %v931_v3, %v6530_v29 }
 0x23c   : > { %v4807_v62 = vmul.f32 -1.442695, %v2173_v18  ;;  %v6995_v18 = vadd.f32 %v929_v34, %v6610_v54  ;;  %v2220_v34 = vor.u32 1.1754944e-38, %v2219_v15  ;;  %v2241_v54 = vmul.f32 %v6962_v32, %v2240_v26 }
 0x23d   : > { %v2170_v41 = vadd.f32 %v6850_v19, %v946_v51  ;;  %v2171_v27 = vadd.f32 %v6872_v23, %v947_v48  ;;  %v2172_v19 = vadd.f32 %v6887_v42, %v6973_v22  ;;  %v7070_v51 = vor.u32 1.1754944e-38, %v2249_v49 }
 0x23e   : > { %5128 = vpow2.f32 %v4807_v62  ;;  %v7040_v62 = vor.u32 1.1754944e-38, %v2234_v11  ;;  %v7047_v35 = vsel %vm7016_vm11, %v2220_v34, %v2216_v63  ;;  %v2247_v11 = vand.u32 2147483647, %v6915_v47 }
 0x23f   : > { %v2169_v49 = vadd.f32 %v6837_v8, %v6995_v18  ;;  %v2308_v18 = vand.u32 2147483647, %v6955_v17  ;;  %v10594_v8 = vand.u32 2147483647, %v6875_v21 }
 0x240   : > { %vm7099_vm5 = vcmp.eq.f32.partialorder %v2247_v11, 8.507059e+37 }
 0x241   : > { %v2152_v50 = vpop.f32.mrf.mxu1 }
 0x242   : > { %v2174_v37 = vadd.f32 %v2152_v50, %v950_v44  ;;  %v6992_v44 = vpop.eup %5120 }
 0x243   : > { %v6999_v5 = vpop.eup %5122  ;;  %v2285_v1 = vmul.f32 %v6992_v44, %v6949_v25  ;;  %vm2290_vm9 = vweird.f32 %v6992_v44 }
 0x244   : > { %v4808_v9 = vmul.f32 -1.442695, %v2174_v37  ;;  %v7010_v50 = vpop.eup %5124  ;;  %v2300_v36 = vmul.f32 %v6999_v5, %v6955_v17  ;;  %v7057_v37 = vadd.f32 %v6962_v32, %v2241_v54  ;;  %v2280_v54 = vand.u32 2147483648, %v6964_v39  ;;  %vm7129_vm13 = vmor %vm2289_vm7, %vm2290_vm9 }
 0x245   : > { %v7021_v3 = vpop.eup %5126  ;;  %v2315_v56 = vmul.f32 %v7010_v50, %v6959_v7  ;;  %vm2305_vm10 = vweird.f32 %v6999_v5  ;;  %vm2320_vm11 = vweird.f32 %v7010_v50 }
 0x246   : > { %5130 = vpow2.f32 %v4808_v9  ;;  %v2232_v9 = vand.u32 2147483647, %v6901_v13  ;;  %v2270_v2 = vmul.f32 %v7021_v3, %v6964_v39  ;;  %v5129_v26 = vpop.eup %5128  ;;  %v2301_v28 = vsub.f32 1.0, %v2300_v36  ;;  %vm7157_vm1 = vmor %vm2319_vm14, %vm2320_vm11 }
 0x247   : > { %v2316_v34 = vsub.f32 1.0, %v2315_v56  ;;  %v2231_v56 = vsel %vm7063_vm15, %v6953_v53, %v7050_v57  ;;  %v7077_v13 = vadd.f32 1.0, %v5129_v26  ;;  %vm2275_vm6 = vweird.f32 %v7021_v3  ;;  %vm7142_vm15 = vmor %vm2304_vm12, %vm2305_vm10 }
 0x248   : > { %v2271_v23 = vsub.f32 1.0, %v2270_v2  ;;  %vm7081_vm2 = vcmp.eq.f32.partialorder %v2232_v9, 8.507059e+37  ;;  %v2302_v57 = vmul.f32 %v6999_v5, %v2301_v28  ;;  %v2293_v36 = vand.u32 2147483647, %v6949_v25 }
 0x249   : > { %v2155_v15 = vpop.f32.mrf.mxu1  ;;  %v2317_v63 = vmul.f32 %v7010_v50, %v2316_v34  ;;  %v2310_v26 = vand.u32 2147483648, %v6955_v17  ;;  %v2325_v34 = vand.u32 2147483648, %v6959_v7 }
 0x24a   : > { %v2175_v29 = vadd.f32 %v2155_v15, %v951_v0  ;;  %v2286_v15 = vsub.f32 1.0, %v2285_v1  ;;  %v2303_v2 = vadd.f32 %v6999_v5, %v2302_v57 }
 0x24c   : > { %v4809_v0 = vmul.f32 -1.442695, %v2175_v29  ;;  %v5131_v46 = vpop.eup %5130  ;;  %v2287_v48 = vmul.f32 %v6992_v44, %v2286_v15  ;;  %v2318_v15 = vadd.f32 %v7010_v50, %v2317_v63 }
 0x24d   : > { %v7091_v22 = vadd.f32 1.0, %v5131_v46  ;;  %v2295_v46 = vand.u32 2147483648, %v6949_v25 }
 0x24e   : > { %5132 = vpow2.f32 %v4809_v0  ;;  %v2288_v9 = vadd.f32 %v6992_v44, %v2287_v48  ;;  %v2323_v48 = vand.u32 2147483647, %v6959_v7 }
 0x24f   : > { %5134 = vtanh.f32 %v2170_v41  ;;  %v2246_v41 = vsel %vm7087_vm3, %v6962_v32, %v7057_v37  ;;  %v2296_v47 = vor.u32 1.1754944e-38, %v2295_v46  ;;  %vm7167_vm3 = vmor %vm2274_vm4, %vm2275_vm6  ;;  %vm2309_vm6 = vcmp.eq.f32.partialorder %v2308_v18, 8.507059e+37  ;;  %v10595_v18 = vld [vmem:[#allocation68_spill] sm:$0xff] }
 0x250   : > { %5136 = vtanh.f32 %v2171_v27  ;;  %v2272_v27 = vmul.f32 %v7021_v3, %v2271_v23  ;;  %v2292_v23 = vsel %vm7129_vm13, %v6992_v44, %v2288_v9  ;;  %v2307_v44 = vsel %vm7142_vm15, %v6999_v5, %v2303_v2 }
 0x251   : > { %v2158_v53 = vpop.f32.mrf.mxu1  ;;  %5138 = vtanh.f32 %v2172_v19  ;;  %v2278_v19 = vand.u32 2147483647, %v6964_v39  ;;  %v2251_v5 = vsel %vm7099_vm5, %v7070_v51, %v2246_v41  ;;  %vm2324_vm4 = vcmp.eq.f32.partialorder %v2323_v48, 8.507059e+37 }
 0x252   : > { %v2176_v1 = vadd.f32 %v2158_v53, %v6947_v40  ;;  %5140 = vrcp.f32 %v7077_v13  ;;  %v2273_v37 = vadd.f32 %v7021_v3, %v2272_v27  ;;  %v2236_v53 = vsel %vm7081_vm2, %v7040_v62, %v2231_v56 }
 0x253   : > { %5142 = vrcp.f32 %v7091_v22  ;;  %vm2294_vm2 = vcmp.eq.f32.partialorder %v2293_v36, 8.507059e+37  ;;  %v2311_v62 = vor.u32 1.1754944e-38, %v2310_v26  ;;  %v2322_v56 = vsel %vm7157_vm1, %v7010_v50, %v2318_v15 }
 0x254   : > { %v5133_v28 = vpop.eup %5132  ;;  %v4810_v32 = vmul.f32 -1.442695, %v2176_v1  ;;  %v2277_v46 = vsel %vm7167_vm3, %v7021_v3, %v2273_v37  ;;  %v2297_v63 = vsel %vm2294_vm2, %v2296_v47, %v2292_v23  ;;  %v2281_v15 = vor.u32 1.1754944e-38, %v2280_v54 }
 0x255   : > { %v7113_v40 = vadd.f32 1.0, %v5133_v28  ;;  %v5135_v0 = vpop.eup %5134  ;;  %v2326_v28 = vor.u32 1.1754944e-38, %v2325_v34  ;;  %v2410_v3 = vmul.f32 %v2297_v63, %v6618_v52  ;;  %vm2203_vm5 = vcmp.eq.f32.partialorder %v10594_v8, 8.507059e+37 }
 0x256   : > { %5144 = vpow2.f32 %v4810_v32  ;;  %v5137_v11 = vpop.eup %5136  ;;  %v2414_v36 = vmul.f32 %v5135_v0, %v7047_v35  ;;  %v2312_v32 = vsel %vm2309_vm6, %v2311_v62, %v2307_v44  ;;  %v10593_v0 = vand.u32 2147483648, %v6875_v21 }
 0x257   : > { %5146 = vrcp.f32 %v7113_v40  ;;  %v5139_v29 = vpop.eup %5138  ;;  %v2415_v51 = vmul.f32 %v5137_v11, %v2236_v53  ;;  %v2327_v41 = vsel %vm2324_vm4, %v2326_v28, %v2322_v56  ;;  %v2411_v11 = vmul.f32 %v2312_v32, %v6638_v38 }
 0x258   : > { %v7147_v17 = vpop.eup %5140  ;;  %5148 = vtanh.f32 %v2169_v49  ;;  %v2416_v49 = vmul.f32 %v5139_v29, %v2251_v5  ;;  %v2205_v26 = vor.u32 1.1754944e-38, %v10593_v0  ;;  %vm2279_vm7 = vcmp.eq.f32.partialorder %v2278_v19, 8.507059e+37 }
 0x259   : > { %v7161_v1 = vpop.eup %5142  ;;  %v2350_v35 = vmul.f32 %v7147_v17, %v7077_v13  ;;  %v7200_v52 = vadd.f32 %v2414_v36, %v2410_v3  ;;  %v2412_v34 = vmul.f32 %v2327_v41, %v10595_v18  ;;  %v10596_v29 = vsel %vm7003_vm8, %v6913_v20, %v6987_v6 }
 0x25a   : > { %v2365_v30 = vmul.f32 %v7161_v1, %v7091_v22  ;;  %v2206_v23 = vsel %vm2203_vm5, %v2205_v26, %v10596_v29  ;;  %v2282_v25 = vsel %vm2279_vm7, %v2281_v15, %v2277_v46  ;;  %v7208_v39 = vadd.f32 %v2415_v51, %v2411_v11 }
 0x25b   : > { %v7210_v48 = vadd.f32 %v2416_v49, %v2412_v34  ;;  %v2351_v21 = vsub.f32 1.0, %v2350_v35  ;;  %v2409_v53 = vmul.f32 %v2282_v25, %v6677_v10  ;;  %vm2354_vm8 = vweird.f32 %v7077_v13 }
 0x25c   : > { %v5145_v42 = vpop.eup %5144  ;;  %v2366_v54 = vsub.f32 1.0, %v2365_v30  ;;  %vm2370_vm10 = vweird.f32 %v7161_v1  ;;  %vm2384_vm11 = vweird.f32 %v7113_v40  ;;  %v2388_v62 = vand.u32 2147483647, %v7113_v40 }
 0x25d   : > { %v7180_v27 = vpop.eup %5146  ;;  %v7183_v9 = vadd.f32 1.0, %v5145_v42  ;;  %v2352_v44 = vmul.f32 %v7147_v17, %v2351_v21  ;;  %v2390_v5 = vand.u32 2147483648, %v7113_v40  ;;  %vm2369_vm14 = vweird.f32 %v7091_v22 }
 0x25e   : > { %v2380_v50 = vmul.f32 %v7180_v27, %v7113_v40  ;;  %v5149_v2 = vpop.eup %5148  ;;  %v2367_v20 = vmul.f32 %v7161_v1, %v2366_v54  ;;  %vm2385_vm9 = vweird.f32 %v7180_v27  ;;  %v2373_v36 = vand.u32 2147483647, %v7091_v22  ;;  %vm7246_vm3 = vmor %vm2369_vm14, %vm2370_vm10 }
 0x25f   : > { %5150 = vrcp.f32 %v7183_v9  ;;  %v2413_v38 = vmul.f32 %v5149_v2, %v2206_v23  ;;  %v2405_v10 = vand.u32 2147483648, %v7183_v9  ;;  %v2403_v42 = vand.u32 2147483647, %v7183_v9  ;;  %vm7232_vm13 = vmor %vm2384_vm11, %vm2385_vm9 }
 0x260   : > { %v2381_v37 = vsub.f32 1.0, %v2380_v50  ;;  %5152 = vtanh.f32 %v7200_v52  ;;  %v2368_v46 = vadd.f32 %v7161_v1, %v2367_v20  ;;  %v2375_v32 = vand.u32 2147483648, %v7091_v22  ;;  %v10608_v20 = vld [vmem:[#allocation30_spill] sm:$0xff] }
 0x261   : > { %5154 = vtanh.f32 %v7208_v39  ;;  %v7218_v6 = vadd.f32 %v2413_v38, %v2409_v53  ;;  %vm2355_vm15 = vweird.f32 %v7147_v17  ;;  %vm2399_vm1 = vweird.f32 %v7183_v9  ;;  %v7310_v53 = vld [vmem:[%s6151_s21] sm:$0xff] }
 0x262   : > { %v2382_v19 = vmul.f32 %v7180_v27, %v2381_v37  ;;  %5156 = vtanh.f32 %v7210_v48  ;;  %v2353_v30 = vadd.f32 %v7147_v17, %v2352_v44  ;;  %v2406_v22 = vor.u32 1.1754944e-38, %v2405_v10  ;;  %vm2356_vm5 = vmor %vm2354_vm8, %vm2355_vm15  ;;  %v10609_v10 = vld [vmem:[#allocation26_spill] sm:$0xff] }
 0x263   : > { %v2391_v49 = vor.u32 1.1754944e-38, %v2390_v5  ;;  %v2358_v35 = vand.u32 2147483647, %v7077_v13  ;;  %vm2404_vm6 = vcmp.eq.f32.partialorder %v2403_v42, 8.507059e+37  ;;  %vm2389_vm4 = vcmp.eq.f32.partialorder %v2388_v62, 8.507059e+37  ;;  %v10610_v5 = vld [vmem:[#allocation36_spill] sm:$0xff] }
 0x264   : > { %v2383_v7 = vadd.f32 %v7180_v27, %v2382_v19  ;;  %v2376_v15 = vor.u32 1.1754944e-38, %v2375_v32  ;;  %5158 = vtanh.f32 %v7218_v6  ;;  %vm2374_vm7 = vcmp.eq.f32.partialorder %v2373_v36, 8.507059e+37  ;;  %v7304_v19 = vld [vmem:[%s6151_s21 + $0x8] sm:$0xff]  ;;  %v10611_v42 = vld [vmem:[#allocation24_spill] sm:$0xff] }
 0x265   : > { %v5151_v47 = vpop.eup %5150  ;;  %v2357_v37 = vsel %vm2356_vm5, %v7147_v17, %v2353_v30  ;;  %vm2359_vm9 = vcmp.eq.f32.partialorder %v2358_v35, 8.507059e+37 }
 0x266   : > { %v2395_v45 = vmul.f32 %v5151_v47, %v7183_v9  ;;  %vm2400_vm12 = vweird.f32 %v5151_v47  ;;  %v5153_v63 = vpop.eup %5152  ;;  %v2387_v41 = vsel %vm7232_vm13, %v7180_v27, %v2383_v7  ;;  %v2360_v9 = vand.u32 2147483648, %v7077_v13 }
 0x267   : > { %v5155_v40 = vpop.eup %5154  ;;  %vm2401_vm2 = vmor %vm2399_vm1, %vm2400_vm12  ;;  %v2372_v27 = vsel %vm7246_vm3, %v7161_v1, %v2368_v46  ;;  %v2392_v26 = vsel %vm2389_vm4, %v2391_v49, %v2387_v41  ;;  %v10614_v41 = vld [vmem:[#allocation8_spill] sm:$0xff]  ;;  %v10615_v49 = vld [vmem:[#allocation22_spill] sm:$0xff] }
 0x268   : > { %v2396_v57 = vsub.f32 1.0, %v2395_v45  ;;  %v5157_v3 = vpop.eup %5156  ;;  %v2377_v8 = vsel %vm2374_vm7, %v2376_v15, %v2372_v27  ;;  %v2361_v18 = vor.u32 1.1754944e-38, %v2360_v9  ;;  %v2427_v34 = vmul.f32 %v5155_v40, %v2392_v26  ;;  %v10613_v40 = vld [vmem:[#allocation20_spill] sm:$0xff]  ;;  %v10617_v27 = vld [vmem:[#allocation34_spill] sm:$0xff] }
 0x269   : > { %v2426_v29 = vmul.f32 %v5153_v63, %v2377_v8  ;;  %v7313_v45 = vperm.slane %v7310_v53, 2  ;;  %v10612_v63 = vld [vmem:[#allocation18_spill] sm:$0xff]  ;;  %v10616_v9 = vld [vmem:[#allocation16_spill] sm:$0xff] }
 0x26a   : > { %v2397_v56 = vmul.f32 %v5151_v47, %v2396_v57  ;;  %v2362_v1 = vsel %vm2359_vm9, %v2361_v18, %v2357_v37  ;;  %v5159_v23 = vpop.eup %5158  ;;  %v7318_v57 = vld [vmem:[%s6151_s21 + $0x10] sm:$0xff] }
 0x26b   : > { %v2425_v25 = vmul.f32 %v5159_v23, %v2362_v1  ;;  %v7321_v7 = vperm.slane %v7318_v57, 2  ;;  %v971_v62 = vmul.f32 %v7313_v45, %v10609_v10  ;;  %v973_v50 = vmul.f32 %v7313_v45, %v10614_v41  ;;  %v10618_v8 = vld [vmem:[#allocation38_spill] sm:$0xff]  ;;  %v10620_v23 = vld [vmem:[#allocation12_spill] sm:$0xff] }
 0x26c   : > { %v2398_v51 = vadd.f32 %v5151_v47, %v2397_v56 }
 0x26d   : > { %v1021_v56 = vmul.f32 %v7321_v7, %v10610_v5  ;;  %v1022_v35 = vmul.f32 %v7321_v7, %v10615_v49 }
 0x26e   : > { %v2402_v2 = vsel %vm2401_vm2, %v5151_v47, %v2398_v51  ;;  %v7307_v47 = vperm.slane %v7304_v19, 2  ;;  %v972_v51 = vmul.f32 %v7313_v45, %v10613_v40 }
 0x26f   : > { %v2407_v0 = vsel %vm2404_vm6, %v2406_v22, %v2402_v2  ;;  %v1023_v2 = vmul.f32 %v7321_v7, %v10616_v9 }
 0x270   : > { %v2428_v11 = vmul.f32 %v5157_v3, %v2407_v0  ;;  %v988_v44 = vmul.f32 %v7307_v47, %v10608_v20  ;;  %v989_v46 = vmul.f32 %v7307_v47, %v10611_v42  ;;  %v990_v28 = vmul.f32 %v7307_v47, %v10612_v63 }
 0x272   : > { %2457 = vmatpush.msra.mxu2 %v2428_v11  ;;  %v1004_v32 = vadd.f32 %v988_v44, %v971_v62  ;;  %v1005_v3 = vadd.f32 %v989_v46, %v972_v51  ;;  %v1006_v22 = vadd.f32 %v990_v28, %v973_v50  ;;  %v10623_v62 = vld [vmem:[#allocation10_spill] sm:$0xff]  ;;  %v10624_v46 = vld [vmem:[#allocation13_spill] sm:$0xff] }
 0x273   : > { %v10625_v28 = vld [vmem:[#allocation33_spill] sm:$0xff] }
 0x274   : > { %2458 = vmatpush.msra.mxu2 %v2427_v34  ;;  %v1037_v30 = vadd.f32 %v1021_v56, %v1004_v32  ;;  %v1038_v26 = vadd.f32 %v1022_v35, %v1005_v3  ;;  %v1039_v15 = vadd.f32 %v1023_v2, %v1006_v22  ;;  %v10619_v34 = vld [vmem:[#allocation28_spill] sm:$0xff]  ;;  %v1026_v32 = vmul.f32 %v7321_v7, %v10625_v28  ;;  %v10627_v3 = vld [vmem:[#allocation9_spill] sm:$0xff]  ;;  %v10628_v35 = vld [vmem:[#allocation15_spill] sm:$0xff] }
 0x275   : > { %v977_v22 = vmul.f32 %v7313_v45, %v10627_v3  ;;  %v978_v2 = vmul.f32 %v7313_v45, %v10628_v35 }
 0x276   : > { %2459 = vmatpush.msra.mxu2 %v2426_v29  ;;  %v1053_v0 = vadd.f32 %v1037_v30, %v10617_v27  ;;  %v1054_v18 = vadd.f32 %v1038_v26, %v10618_v8  ;;  %v1055_v1 = vadd.f32 %v1039_v15, %v10619_v34 }
 0x278   : > { %2460 = vmatpush.msra.mxu2 %v2425_v25  ;;  %v974_v25 = vmul.f32 %v7313_v45, %v10620_v23 }
 0x279   : > { %4811 = vmatmul.msk.f32.vlgmr.msra.gmra.mxu2 %vm1698_vm0, %v6689_v31  ;;  %v10601_v31 = vld [vmem:[#allocation73_spill] sm:$0xff] }
 0x281   : > { %4812 = vmatmul.msk.f32.gmra.mxu2 %vm1698_vm0, %v6696_v14  ;;  %v10602_v14 = vld [vmem:[#allocation74_spill] sm:$0xff] }
 0x289   : > { %4813 = vmatmul.msk.f32.gmra.mxu2 %vm1698_vm0, %v6703_v16  ;;  %v10603_v16 = vld [vmem:[#allocation75_spill] sm:$0xff] }
 0x291   : > { %4814 = vmatmul.msk.f32.gmra.mxu2 %vm1698_vm0, %v6710_v60  ;;  %v10604_v60 = vld [vmem:[#allocation76_spill] sm:$0xff] }
 0x299   : > { %4815 = vmatmul.msk.f32.gmra.mxu2 %vm1698_vm0, %v6717_v4  ;;  %v10605_v4 = vld [vmem:[#allocation77_spill] sm:$0xff] }
 0x2a1   : > { %4816 = vmatmul.msk.f32.gmra.mxu2 %vm1698_vm0, %v6724_v58  ;;  %v10606_v58 = vld [vmem:[#allocation78_spill] sm:$0xff] }
 0x2a9   : > { %4817 = vmatmul.msk.f32.gmra.mxu2 %vm1698_vm0, %v6731_v55  ;;  %v10607_v55 = vld [vmem:[#allocation79_spill] sm:$0xff] }
 0x2b1   : > { %4818 = vmatmul.msk.f32.gmra.mxu2 %vm1698_vm0, %v6738_v43 }
 0x2b9   : > { %4819 = vmatmul.msk.f32.gmra.mxu2 %vm1698_vm0, %v6745_v33 }
 0x2c1   : > { %4820 = vmatmul.msk.f32.gmra.mxu2 %vm1698_vm0, %v10601_v31  ;;  %v10621_v31 = vld [vmem:[#allocation11_spill] sm:$0xff] }
 0x2c9   : > { %4821 = vmatmul.msk.f32.gmra.mxu2 %vm1698_vm0, %v10602_v14  ;;  %v991_v14 = vmul.f32 %v7307_v47, %v10621_v31  ;;  %v10658_v31 = vld [vmem:[#allocation65_spill] sm:$0xff] }
 0x2cb   : > { %v1007_v44 = vadd.f32 %v991_v14, %v974_v25  ;;  %v10632_v14 = vld [vmem:[#allocation21_spill] sm:$0xff] }
 0x2d1   : > { %4822 = vmatmul.msk.f32.gmra.mxu2 %vm1698_vm0, %v10603_v16 }
 0x2d9   : > { %4823 = vmatmul.msk.f32.gmra.mxu2 %vm1698_vm0, %v10604_v60 }
 0x2e1   : > { %4824 = vmatmul.msk.f32.gmra.mxu2 %vm1698_vm0, %v10605_v4  ;;  %v10622_v4 = vld [vmem:[#allocation23_spill] sm:$0xff] }
 0x2e9   : > { %4825 = vmatmul.msk.f32.gmra.mxu2 %vm1698_vm0, %v10606_v58  ;;  %v993_v58 = vmul.f32 %v7307_v47, %v10622_v4 }
 0x2f1   : > { %4826 = vmatmul.msk.f32.gmra.mxu2 %vm1698_vm0, %v10607_v55 }
 0x2fc   : > { %v2462_v43 = vpop.f32.mrf.mxu2 }
 0x2fd   : > { %v2510_v37 = vadd.f32 %v2462_v43, %v1053_v0  ;;  %v1024_v43 = vmul.f32 %v7321_v7, %v10623_v62  ;;  %v10629_v0 = vld [vmem:[#allocation14_spill] sm:$0xff] }
 0x2fe   : > { %v995_v26 = vmul.f32 %v7307_v47, %v10629_v0 }
 0x2ff   : > { %v4827_v60 = vmul.f32 -1.442695, %v2510_v37  ;;  %v1040_v15 = vadd.f32 %v1024_v43, %v1007_v44  ;;  %v10630_v37 = vld [vmem:[#allocation29_spill] sm:$0xff] }
 0x300   : > { %v1011_v43 = vadd.f32 %v995_v26, %v978_v2 }
 0x301   : > { %5160 = vpow2.f32 %v4827_v60  ;;  %v10633_v60 = vld [vmem:[#allocation32_spill] sm:$0xff] }
 0x304   : > { %v2465_v33 = vpop.f32.mrf.mxu2 }
 0x305   : > { %v2511_v29 = vadd.f32 %v2465_v33, %v1054_v18  ;;  %v976_v33 = vmul.f32 %v7313_v45, %v10624_v46  ;;  %v992_v18 = vmul.f32 %v7307_v47, %v10630_v37 }
 0x307   : > { %v4828_v55 = vmul.f32 -1.442695, %v2511_v29  ;;  %v1009_v30 = vadd.f32 %v993_v58, %v976_v33  ;;  %v1056_v58 = vadd.f32 %v1040_v15, %v10633_v60  ;;  %v10634_v33 = vld [vmem:[#allocation19_spill] sm:$0xff]  ;;  %v5161_v0 = vpop.eup %5160 }
 0x308   : > { %v975_v3 = vmul.f32 %v7313_v45, %v10634_v33  ;;  %v10637_v60 = vld [vmem:[#allocation39_spill] sm:$0xff]  ;;  %v7384_v62 = vadd.f32 1.0, %v5161_v0 }
 0x309   : > { %5162 = vpow2.f32 %v4828_v55  ;;  %v1042_v25 = vadd.f32 %v1026_v32, %v1009_v30 }
 0x30a   : > { %v1008_v28 = vadd.f32 %v992_v18, %v975_v3  ;;  %vm2547_vm10 = vweird.f32 %v7384_v62 }
 0x30c   : > { %v2468_v13 = vpop.f32.mrf.mxu2 }
 0x30d   : > { %v2512_v16 = vadd.f32 %v2468_v13, %v1055_v1  ;;  %v10626_v13 = vld [vmem:[#allocation17_spill] sm:$0xff]  ;;  %v10631_v1 = vld [vmem:[#allocation27_spill] sm:$0xff] }
 0x30e   : > { %v994_v50 = vmul.f32 %v7307_v47, %v10626_v13  ;;  %v1027_v29 = vmul.f32 %v7321_v7, %v10631_v1  ;;  %v10635_v13 = vld [vmem:[#allocation35_spill] sm:$0xff] }
 0x30f   : > { %v4829_v56 = vmul.f32 -1.442695, %v2512_v16  ;;  %v1028_v16 = vmul.f32 %v7321_v7, %v10632_v14  ;;  %v1025_v55 = vmul.f32 %v7321_v7, %v10635_v13  ;;  %v5163_v14 = vpop.eup %5162 }
 0x310   : > { %v1010_v44 = vadd.f32 %v994_v50, %v977_v22  ;;  %v10638_v22 = vld [vmem:[#allocation25_spill] sm:$0xff] }
 0x311   : > { %5164 = vpow2.f32 %v4829_v56  ;;  %v10636_v56 = vld [vmem:[#allocation31_spill] sm:$0xff]  ;;  %v1044_v30 = vadd.f32 %v1028_v16, %v1011_v43  ;;  %v1041_v15 = vadd.f32 %v1025_v55, %v1008_v28  ;;  %v10643_v55 = vld [vmem:[#allocation49_spill] sm:$0xff]  ;;  %v10644_v43 = vld [vmem:[#allocation42_spill] sm:$0xff] }
 0x312   : > { %v1043_v1 = vadd.f32 %v1027_v29, %v1010_v44  ;;  %v1058_v32 = vadd.f32 %v1042_v25, %v10636_v56  ;;  %v7390_v29 = vadd.f32 1.0, %v5163_v14  ;;  %5166 = vrcp.f32 %v7384_v62 }
 0x313   : > { %v1060_v2 = vadd.f32 %v1044_v30, %v10638_v22  ;;  %v999_v44 = vmul.f32 %v7307_v47, %v10643_v55  ;;  %v10645_v30 = vld [vmem:[#allocation41_spill] sm:$0xff] }
 0x314   : > { %v7295_v17 = vpop.f32.mrf.mxu2  ;;  %v1059_v34 = vadd.f32 %v1043_v1, %v10637_v60  ;;  %v10640_v1 = vld [vmem:[#allocation50_spill] sm:$0xff]  ;;  %vm2562_vm13 = vweird.f32 %v7390_v29 }
 0x315   : > { %v2513_v35 = vadd.f32 %v7295_v17, %v1056_v58  ;;  %v10639_v17 = vld [vmem:[#allocation45_spill] sm:$0xff] }
 0x316   : > { %v1057_v3 = vadd.f32 %v1041_v15, %v10639_v17  ;;  %v1003_v15 = vmul.f32 %v7307_v47, %v10645_v30  ;;  %v10653_v30 = vld [vmem:[#allocation37_spill] sm:$0xff] }
 0x317   : > { %v5165_v4 = vpop.eup %5164  ;;  %v4830_v26 = vmul.f32 -1.442695, %v2513_v35  ;;  %v983_v35 = vmul.f32 %v7313_v45, %v10640_v1 }
 0x318   : > { %v7393_v16 = vadd.f32 1.0, %v5165_v4 }
 0x319   : > { %5168 = vpow2.f32 %v4830_v26 }
 0x31a   : > { %5170 = vrcp.f32 %v7390_v29  ;;  %vm2577_vm3 = vweird.f32 %v7393_v16 }
 0x31b   : > { %5172 = vrcp.f32 %v7393_v16 }
 0x31c   : > { %v7297_v54 = vpop.f32.mrf.mxu2 }
 0x31d   : > { %v2514_v28 = vadd.f32 %v7297_v54, %v1057_v3  ;;  %v10642_v54 = vld [vmem:[#allocation43_spill] sm:$0xff]  ;;  %v10647_v3 = vld [vmem:[#allocation44_spill] sm:$0xff] }
 0x31e   : > { %v1000_v14 = vmul.f32 %v7307_v47, %v10642_v54  ;;  %v10650_v54 = vld [vmem:[#allocation48_spill] sm:$0xff] }
 0x31f   : > { %v1036_v1 = vmul.f32 %v7321_v7, %v10650_v54  ;;  %v10656_v54 = vld [vmem:[#allocation51_spill] sm:$0xff] }
 0x324   : > { %v7299_v38 = vpop.f32.mrf.mxu2 }
 0x325   : > { %v2515_v50 = vadd.f32 %v7299_v38, %v1058_v32  ;;  %v986_v32 = vmul.f32 %v7313_v45, %v10644_v43 }
 0x327   : > { %v4832_v0 = vmul.f32 -1.442695, %v2515_v50  ;;  %v1016_v50 = vadd.f32 %v1000_v14, %v983_v35  ;;  %v10651_v35 = vld [vmem:[#allocation55_spill] sm:$0xff]  ;;  %v1019_v56 = vadd.f32 %v1003_v15, %v986_v32 }
 0x328   : > { %v982_v14 = vmul.f32 %v7313_v45, %v10651_v35  ;;  %v10657_v35 = vld [vmem:[#allocation62_spill] sm:$0xff] }
 0x329   : > { %5174 = vpow2.f32 %v4832_v0 }
 0x32c   : > { %v7301_v21 = vpop.f32.mrf.mxu2 }
 0x32d   : > { %v2516_v18 = vadd.f32 %v7301_v21, %v1059_v34  ;;  %v10641_v34 = vld [vmem:[#allocation52_spill] sm:$0xff] }
 0x32e   : > { %v998_v4 = vmul.f32 %v7307_v47, %v10641_v34  ;;  %v10649_v34 = vld [vmem:[#allocation40_spill] sm:$0xff] }
 0x32f   : > { %v4833_v38 = vmul.f32 -1.442695, %v2516_v18  ;;  %v985_v18 = vmul.f32 %v7313_v45, %v10647_v3  ;;  %v1001_v55 = vmul.f32 %v7307_v47, %v10649_v34  ;;  %v10655_v34 = vld [vmem:[#allocation58_spill] sm:$0xff] }
 0x330   : > { %v981_v22 = vmul.f32 %v7313_v45, %v10655_v34  ;;  %v979_v34 = vmul.f32 %v7313_v45, %v6334_v24 }
 0x331   : > { %5176 = vpow2.f32 %v4833_v38 }
 0x334   : > { %v7331_v36 = vpop.f32.mrf.mxu2 }
 0x335   : > { %v2517_v25 = vadd.f32 %v7331_v36, %v1060_v2  ;;  %v4831_v36 = vmul.f32 -1.442695, %v2514_v28  ;;  %v10646_v2 = vld [vmem:[#allocation47_spill] sm:$0xff]  ;;  %v10648_v28 = vld [vmem:[#allocation46_spill] sm:$0xff] }
 0x336   : > { %v984_v26 = vmul.f32 %v7313_v45, %v10646_v2  ;;  %v1033_v0 = vmul.f32 %v7321_v7, %v10648_v28  ;;  %v10652_v2 = vld [vmem:[#allocation54_spill] sm:$0xff]  ;;  %v10654_v28 = vld [vmem:[#allocation56_spill] sm:$0xff] }
 0x337   : > { %v4834_v58 = vmul.f32 -1.442695, %v2517_v25  ;;  %v7417_v25 = vpop.eup %5166  ;;  %v1034_v3 = vmul.f32 %v7321_v7, %v10652_v2  ;;  %v980_v60 = vmul.f32 %v7313_v45, %v10654_v28  ;;  %v1032_v2 = vmul.f32 %v7321_v7, %v10657_v35 }
 0x338   : > { %v5169_v38 = vpop.eup %5168  ;;  %v1049_v9 = vadd.f32 %v1033_v0, %v1016_v50  ;;  %v1017_v13 = vadd.f32 %v1001_v55, %v984_v26  ;;  %v2543_v8 = vmul.f32 %v7417_v25, %v7384_v62  ;;  %v997_v50 = vmul.f32 %v7307_v47, %v10658_v31 }
 0x339   : > { %5178 = vpow2.f32 %v4834_v58  ;;  %v1002_v58 = vmul.f32 %v7307_v47, %v10653_v30  ;;  %v7431_v43 = vpop.eup %5170  ;;  %v7445_v28 = vadd.f32 1.0, %v5169_v38  ;;  %v1015_v55 = vadd.f32 %v999_v44, %v982_v14 }
 0x33a   : > { %5180 = vpow2.f32 %v4831_v36  ;;  %v1035_v36 = vmul.f32 %v7321_v7, %v10656_v54  ;;  %v7439_v17 = vpop.eup %5172  ;;  %v1052_v54 = vadd.f32 %v1036_v1, %v1019_v56  ;;  %v2558_v15 = vmul.f32 %v7431_v43, %v7390_v29  ;;  %v10659_v1 = vld [vmem:[#allocation66_spill] sm:$0xff] }
 0x33b   : > { %v1018_v30 = vadd.f32 %v1002_v58, %v985_v18  ;;  %v5175_v33 = vpop.eup %5174  ;;  %v1050_v26 = vadd.f32 %v1034_v3, %v1017_v13  ;;  %v1014_v0 = vadd.f32 %v998_v4, %v981_v22  ;;  %v1065_v58 = vadd.f32 %v1049_v9, %v10565_v59  ;;  %v10660_v9 = vld [vmem:[#allocation64_spill] sm:$0xff] }
 0x33c   : > { %v7342_v11 = vpop.f32.mrf.mxu2  ;;  %v5177_v32 = vpop.eup %5176  ;;  %v7455_v35 = vadd.f32 %v1052_v54, %v10566_v61  ;;  %v7457_v24 = vadd.f32 1.0, %v5175_v33  ;;  %v996_v56 = vmul.f32 %v7307_v47, %v6473_v12  ;;  %v1030_v23 = vmul.f32 %v7321_v7, %v10659_v1  ;;  %v10661_v33 = vld [vmem:[#allocation71_spill] sm:$0xff] }
 0x33d   : > { %v1051_v38 = vadd.f32 %v1035_v36, %v1018_v30  ;;  %v1048_v31 = vadd.f32 %v1032_v2, %v1015_v55  ;;  %v2544_v44 = vsub.f32 1.0, %v2543_v8  ;;  %5182 = vrcp.f32 %v7445_v28  ;;  %v10662_v2 = vld [vmem:[#allocation59_spill] sm:$0xff] }
 0x33e   : > { %v7464_v13 = vadd.f32 1.0, %v5177_v32  ;;  %v1031_v22 = vmul.f32 %v7321_v7, %v10660_v9  ;;  %v2559_v4 = vsub.f32 1.0, %v2558_v15  ;;  %v1029_v30 = vmul.f32 %v7321_v7, %v10661_v33  ;;  %v10663_v9 = vld [vmem:[#allocation57_spill] sm:$0xff] }
 0x33f   : > { %v5179_v18 = vpop.eup %5178  ;;  %v1013_v3 = vadd.f32 %v997_v50, %v980_v60  ;;  %v2573_v47 = vmul.f32 %v7439_v17, %v7393_v16  ;;  %v1066_v36 = vadd.f32 %v1050_v26, %v10662_v2  ;;  %5184 = vrcp.f32 %v7457_v24  ;;  %v10664_v60 = vld [vmem:[#allocation63_spill] sm:$0xff] }
 0x340   : > { %v5181_v45 = vpop.eup %5180  ;;  %v7468_v54 = vadd.f32 1.0, %v5179_v18  ;;  %v1012_v32 = vadd.f32 %v996_v56, %v979_v34  ;;  %v1067_v15 = vadd.f32 %v1051_v38, %v10663_v9  ;;  %5186 = vrcp.f32 %v7464_v13  ;;  %v10665_v56 = vld [vmem:[#allocation69_spill] sm:$0xff] }
 0x341   : > { %v7474_v14 = vadd.f32 1.0, %v5181_v45  ;;  %v1046_v55 = vadd.f32 %v1030_v23, %v1013_v3  ;;  %v2545_v18 = vmul.f32 %v7417_v25, %v2544_v44  ;;  %v1047_v7 = vadd.f32 %v1031_v22, %v1014_v0  ;;  %v10666_v44 = vld [vmem:[#allocation70_spill] sm:$0xff] }
 0x342   : > { %v7482_v50 = vadd.f32 %v1048_v31, %v10664_v60  ;;  %5188 = vrcp.f32 %v7468_v54  ;;  %v2560_v26 = vmul.f32 %v7431_v43, %v2559_v4  ;;  %v2574_v23 = vsub.f32 1.0, %v2573_v47  ;;  %v10667_v60 = vld [vmem:[#allocation72_spill] sm:$0xff] }
 0x343   : > { %v7486_v45 = vpop.eup %5182  ;;  %5190 = vrcp.f32 %v7474_v14  ;;  %v2553_v34 = vand.u32 2147483648, %v7384_v62  ;;  %v1062_v0 = vadd.f32 %v1046_v55, %v10665_v56  ;;  %v2566_v31 = vand.u32 2147483647, %v7390_v29 }
 0x344   : > { %v7358_v51 = vpop.f32.mrf.mxu2  ;;  %v1063_v22 = vadd.f32 %v1047_v7, %v10666_v44  ;;  %v7497_v4 = vadd.f32 %v7417_v25, %v2545_v18  ;;  %vm2548_vm8 = vweird.f32 %v7417_v25  ;;  %vm2563_vm11 = vweird.f32 %v7431_v43 }
 0x345   : > { %v7501_v47 = vpop.eup %5184  ;;  %v7511_v18 = vor.u32 1.1754944e-38, %v2553_v34  ;;  %v2575_v7 = vmul.f32 %v7439_v17, %v2574_v23  ;;  %vm7516_vm12 = vmor %vm2547_vm10, %vm2548_vm8  ;;  %vm7521_vm14 = vcmp.eq.f32.partialorder %v2566_v31, 8.507059e+37  ;;  %v2581_v55 = vand.u32 2147483647, %v7393_v16 }
 0x346   : > { %v2634_v23 = vmul.f32 %v7501_v47, %v7457_v24  ;;  %vm7536_vm15 = vmor %vm2562_vm13, %vm2563_vm11  ;;  %vm2578_vm1 = vweird.f32 %v7439_v17  ;;  %vm2592_vm6 = vweird.f32 %v7445_v28  ;;  %vm2593_vm5 = vweird.f32 %v7486_v45 }
 0x347   : > { %v7549_v12 = vadd.f32 %v7439_v17, %v2575_v7  ;;  %v2596_v7 = vand.u32 2147483647, %v7445_v28  ;;  %vm7563_vm2 = vmor %vm2577_vm3, %vm2578_vm1  ;;  %vm7573_vm4 = vcmp.eq.f32.partialorder %v2581_v55, 8.507059e+37  ;;  %vm2638_vm7 = vweird.f32 %v7457_v24 }
 0x348   : > { %v2644_v55 = vand.u32 2147483648, %v7457_v24  ;;  %vm2623_vm8 = vweird.f32 %v7474_v14  ;;  %vm2639_vm10 = vweird.f32 %v7501_v47  ;;  %vm7617_vm13 = vmor %vm2592_vm6, %vm2593_vm5  ;;  %vm2668_vm3 = vweird.f32 %v7468_v54 }
 0x349   : > { %vm7595_vm9 = vcmp.eq.f32.partialorder %v2596_v7, 8.507059e+37  ;;  %vm7629_vm1 = vmor %vm2638_vm7, %vm2639_vm10 }
 0x34c   : > { %v7381_v46 = vpop.f32.mrf.mxu2 }
 0x34d   : > { %v2520_v41 = vadd.f32 %v7381_v46, %v1063_v22 }
 0x354   : > { %v7400_v21 = vpop.f32.mrf.mxu2 }
 0x355   : > { %v2521_v46 = vadd.f32 %v7400_v21, %v7482_v50 }
 0x35c   : > { %v2498_v37 = vpop.f32.mrf.mxu2 }
 0x35d   : > { %v2522_v8 = vadd.f32 %v2498_v37, %v1065_v58  ;;  %v1045_v37 = vadd.f32 %v1029_v30, %v1012_v32  ;;  %v7508_v32 = vpop.eup %5186 }
 0x35e   : > { %v2649_v56 = vmul.f32 %v7508_v32, %v7464_v13  ;;  %vm2654_vm11 = vweird.f32 %v7508_v32 }
 0x35f   : > { %v4835_v38 = vmul.f32 -1.442695, %v2522_v8  ;;  %v7494_v30 = vadd.f32 %v1045_v37, %v10667_v60  ;;  %v2588_v8 = vmul.f32 %v7486_v45, %v7445_v28  ;;  %v7514_v37 = vpop.eup %5188  ;;  %v2583_v60 = vand.u32 2147483648, %v7393_v16 }
 0x360   : > { %v7526_v34 = vpop.eup %5190  ;;  %v2650_v1 = vsub.f32 1.0, %v2649_v56 }
 0x361   : > { %5192 = vpow2.f32 %v4835_v38  ;;  %v2589_v44 = vsub.f32 1.0, %v2588_v8  ;;  %v2664_v38 = vmul.f32 %v7514_v37, %v7468_v54  ;;  %v2619_v8 = vmul.f32 %v7526_v34, %v7474_v14 }
 0x362   : > { %v2584_v59 = vor.u32 1.1754944e-38, %v2583_v60  ;;  %v2651_v22 = vmul.f32 %v7508_v32, %v2650_v1  ;;  %vm2624_vm6 = vweird.f32 %v7526_v34 }
 0x363   : > { %v2590_v16 = vmul.f32 %v7486_v45, %v2589_v44  ;;  %v2620_v56 = vsub.f32 1.0, %v2619_v8  ;;  %v2518_v8 = vadd.f32 %v7342_v11, %v7494_v30 }
 0x364   : > { %v2501_v33 = vpop.f32.mrf.mxu2 }
 0x365   : > { %v2523_v58 = vadd.f32 %v2501_v33, %v1066_v36  ;;  %v2568_v33 = vand.u32 2147483648, %v7390_v29  ;;  %v2561_v36 = vadd.f32 %v7431_v43, %v2560_v26  ;;  %v2591_v21 = vadd.f32 %v7486_v45, %v2590_v16 }
 0x366   : > { %v2657_v16 = vand.u32 2147483647, %v7464_v13 }
 0x367   : > { %v4836_v3 = vmul.f32 -1.442695, %v2523_v58  ;;  %v2569_v31 = vor.u32 1.1754944e-38, %v2568_v33  ;;  %v2565_v2 = vsel %vm7536_vm15, %v7431_v43, %v2561_v36  ;;  %v2598_v33 = vand.u32 2147483648, %v7445_v28  ;;  %v5193_v29 = vpop.eup %5192 }
 0x368   : > { %v2635_v43 = vsub.f32 1.0, %v2634_v23  ;;  %vm2653_vm15 = vweird.f32 %v7464_v13  ;;  %vm2658_vm7 = vcmp.eq.f32.partialorder %v2657_v16, 8.507059e+37 }
 0x369   : > { %5194 = vpow2.f32 %v4836_v3  ;;  %v7559_v36 = vsel %vm7521_vm14, %v2569_v31, %v2565_v2  ;;  %v7579_v60 = vor.u32 1.1754944e-38, %v2598_v33  ;;  %v2621_v31 = vmul.f32 %v7526_v34, %v2620_v56 }
 0x36a   : > { %v2636_v44 = vmul.f32 %v7501_v47, %v2635_v43  ;;  %vm2669_vm14 = vweird.f32 %v7514_v37  ;;  %v2645_v2 = vor.u32 1.1754944e-38, %v2644_v55 }
 0x36c   : > { %v2504_v3 = vpop.f32.mrf.mxu2 }
 0x36d   : > { %v2524_v9 = vadd.f32 %v2504_v3, %v1067_v15  ;;  %v2519_v15 = vadd.f32 %v7358_v51, %v1062_v0  ;;  %v2665_v51 = vsub.f32 1.0, %v2664_v38  ;;  %v2629_v0 = vand.u32 2147483648, %v7474_v14 }
 0x36f   : > { %v4837_v61 = vmul.f32 -1.442695, %v2524_v9  ;;  %v5195_v3 = vpop.eup %5194  ;;  %v2580_v9 = vsel %vm7563_vm2, %v7439_v17, %v7549_v12  ;;  %v2627_v12 = vand.u32 2147483647, %v7474_v14  ;;  %v2666_v26 = vmul.f32 %v7514_v37, %v2665_v51  ;;  %vm7643_vm2 = vmor %vm2653_vm15, %vm2654_vm11 }
 0x370   : > { %v7587_v27 = vadd.f32 1.0, %v5195_v3  ;;  %v2585_v28 = vsel %vm7573_vm4, %v2584_v59, %v2580_v9  ;;  %v2674_v51 = vand.u32 2147483648, %v7468_v54  ;;  %v2595_v59 = vsel %vm7617_vm13, %v7486_v45, %v2591_v21  ;;  %vm7659_vm4 = vmor %vm2668_vm3, %vm2669_vm14 }
 0x371   : > { %5196 = vpow2.f32 %v4837_v61  ;;  %v7583_v61 = vadd.f32 1.0, %v5193_v29  ;;  %v2652_v29 = vadd.f32 %v7508_v32, %v2651_v22  ;;  %v2667_v11 = vadd.f32 %v7514_v37, %v2666_v26  ;;  %vm7681_vm11 = vmor %vm2623_vm8, %vm2624_vm6 }
 0x372   : > { %5198 = vtanh.f32 %v2519_v15  ;;  %v2659_v15 = vand.u32 2147483648, %v7464_v13  ;;  %v2672_v13 = vand.u32 2147483647, %v7468_v54  ;;  %v2622_v54 = vadd.f32 %v7526_v34, %v2621_v31 }
 0x373   : > { %5200 = vtanh.f32 %v2520_v41  ;;  %v2642_v41 = vand.u32 2147483647, %v7457_v24  ;;  %v2671_v22 = vsel %vm7659_vm4, %v7514_v37, %v2667_v11  ;;  %v2675_v55 = vor.u32 1.1754944e-38, %v2674_v51 }
 0x374   : > { %v2507_v17 = vpop.f32.mrf.mxu2  ;;  %5202 = vtanh.f32 %v2521_v46  ;;  %v2660_v45 = vor.u32 1.1754944e-38, %v2659_v15  ;;  %vm2673_vm10 = vcmp.eq.f32.partialorder %v2672_v13, 8.507059e+37  ;;  %v2630_v15 = vor.u32 1.1754944e-38, %v2629_v0 }
 0x375   : > { %v2525_v50 = vadd.f32 %v2507_v17, %v7455_v35  ;;  %5204 = vrcp.f32 %v7583_v61  ;;  %v2637_v35 = vadd.f32 %v7501_v47, %v2636_v44  ;;  %vm2643_vm5 = vcmp.eq.f32.partialorder %v2642_v41, 8.507059e+37 }
 0x376   : > { %5206 = vrcp.f32 %v7587_v27  ;;  %v2676_v23 = vsel %vm2673_vm10, %v2675_v55, %v2671_v22  ;;  %v10690_v3 = vand.u32 2147483647, %v7384_v62  ;;  %vm2628_vm8 = vcmp.eq.f32.partialorder %v2627_v12, 8.507059e+37 }
 0x377   : > { %v5197_v38 = vpop.eup %5196  ;;  %v4838_v1 = vmul.f32 -1.442695, %v2525_v50  ;;  %v2641_v56 = vsel %vm7629_vm1, %v7501_v47, %v2637_v35  ;;  %v2656_v47 = vsel %vm7643_vm2, %v7508_v32, %v2652_v29  ;;  %v2600_v32 = vsel %vm7595_vm9, %v7579_v60, %v2595_v59 }
 0x378   : > { %v7606_v33 = vadd.f32 1.0, %v5197_v38  ;;  %v5199_v43 = vpop.eup %5198  ;;  %v2646_v50 = vsel %vm2643_vm5, %v2645_v2, %v2641_v56  ;;  %v2626_v35 = vsel %vm7681_vm11, %v7526_v34, %v2622_v54  ;;  %vm2552_vm9 = vcmp.eq.f32.partialorder %v10690_v3, 8.507059e+37 }
 0x379   : > { %5208 = vpow2.f32 %v4838_v1  ;;  %v5201_v30 = vpop.eup %5200  ;;  %v2763_v38 = vmul.f32 %v5199_v43, %v7559_v36  ;;  %v2661_v1 = vsel %vm2658_vm7, %v2660_v45, %v2656_v47  ;;  %v2761_v34 = vmul.f32 %v2676_v23, %v7210_v48 }
 0x37a   : > { %5210 = vrcp.f32 %v7606_v33  ;;  %v5203_v46 = vpop.eup %5202  ;;  %v2764_v41 = vmul.f32 %v5201_v30, %v2585_v28  ;;  %v2760_v7 = vmul.f32 %v2661_v1, %v7208_v39  ;;  %v10691_v0 = vsel %vm7516_vm12, %v7417_v25, %v7497_v4 }
 0x37b   : > { %v7651_v9 = vpop.eup %5204  ;;  %5212 = vtanh.f32 %v2518_v8  ;;  %v2759_v8 = vmul.f32 %v2646_v50, %v7200_v52  ;;  %v2765_v29 = vmul.f32 %v5203_v46, %v2600_v32  ;;  %v2555_v39 = vsel %vm2552_vm9, %v7511_v18, %v10691_v0  ;;  %v7786_v0 = vld [vmem:[%s10243_s3 + $0x10] sm:$0xff] }
 0x37c   : > { %v7663_v17 = vpop.eup %5206  ;;  %v2699_v30 = vmul.f32 %v7651_v9, %v7583_v61  ;;  %v2631_v28 = vsel %vm2628_vm8, %v2630_v15, %v2626_v35  ;;  %v7712_v16 = vadd.f32 %v2764_v41, %v2760_v7  ;;  %vm2718_vm12 = vweird.f32 %v7587_v27 }
 0x37d   : > { %v2714_v36 = vmul.f32 %v7663_v17, %v7587_v27  ;;  %v7703_v52 = vadd.f32 %v2763_v38, %v2759_v8  ;;  %v7714_v46 = vadd.f32 %v2765_v29, %v2761_v34  ;;  %v2758_v48 = vmul.f32 %v2631_v28, %v7218_v6  ;;  %v7800_v28 = vld [vmem:[%s10243_s3 + $0x20] sm:$0xff] }
 0x37e   : > { %v2700_v12 = vsub.f32 1.0, %v2699_v30  ;;  %vm2719_vm13 = vweird.f32 %v7663_v17  ;;  %vm2733_vm15 = vweird.f32 %v7606_v33  ;;  %v2737_v13 = vand.u32 2147483647, %v7606_v33 }
 0x37f   : > { %v5209_v21 = vpop.eup %5208  ;;  %v2715_v51 = vsub.f32 1.0, %v2714_v36  ;;  %v2739_v2 = vand.u32 2147483648, %v7606_v33  ;;  %v2724_v50 = vand.u32 2147483648, %v7587_v27  ;;  %vm2703_vm2 = vweird.f32 %v7583_v61  ;;  %vm7752_vm5 = vmor %vm2718_vm12, %vm2719_vm13 }
 0x380   : > { %v7672_v26 = vpop.eup %5210  ;;  %v7675_v31 = vadd.f32 1.0, %v5209_v21  ;;  %v2701_v6 = vmul.f32 %v7651_v9, %v2700_v12  ;;  %v2722_v21 = vand.u32 2147483647, %v7587_v27  ;;  %vm2704_vm6 = vweird.f32 %v7651_v9  ;;  %v7828_v12 = vld [vmem:[%s10243_s3 + $0x40] sm:$0xff] }
 0x381   : > { %v2729_v60 = vmul.f32 %v7672_v26, %v7606_v33  ;;  %v5213_v43 = vpop.eup %5212  ;;  %v2716_v25 = vmul.f32 %v7663_v17, %v2715_v51  ;;  %vm2734_vm14 = vweird.f32 %v7672_v26  ;;  %vm2738_vm10 = vcmp.eq.f32.partialorder %v2737_v13, 8.507059e+37  ;;  %vm2705_vm9 = vmor %vm2703_vm2, %vm2704_vm6  ;;  %v7807_v51 = vld [vmem:[%s10243_s3 + $0x28] sm:$0xff] }
 0x382   : > { %5214 = vrcp.f32 %v7675_v31  ;;  %v2762_v62 = vmul.f32 %v5213_v43, %v2555_v39  ;;  %v2754_v59 = vand.u32 2147483648, %v7675_v31  ;;  %v2752_v44 = vand.u32 2147483647, %v7675_v31  ;;  %vm7736_vm3 = vmor %vm2733_vm15, %vm2734_vm14  ;;  %v7793_v39 = vld [vmem:[%s10243_s3 + $0x18] sm:$0xff] }
 0x383   : > { %v2730_v11 = vsub.f32 1.0, %v2729_v60  ;;  %5216 = vtanh.f32 %v7703_v52  ;;  %v2717_v54 = vadd.f32 %v7663_v17, %v2716_v25  ;;  %vm2748_vm4 = vweird.f32 %v7675_v31  ;;  %v7856_v25 = vld [vmem:[%s10243_s3 + $0x60] sm:$0xff] }
 0x384   : > { %5218 = vtanh.f32 %v7712_v16  ;;  %v7722_v4 = vadd.f32 %v2762_v62, %v2758_v48  ;;  %v2702_v1 = vadd.f32 %v7651_v9, %v2701_v6  ;;  %v2755_v41 = vor.u32 1.1754944e-38, %v2754_v59  ;;  %v7814_v62 = vld [vmem:[%s10243_s3 + $0x30] sm:$0xff]  ;;  %10696 = vst [vmem:[#allocation68_spill] sm:$0xff] %v7856_v25  ;;  %v7877_v6 = vld [vmem:[%s10243_s3 + $0x78] sm:$0xff] }
 0x385   : > { %v2731_v14 = vmul.f32 %v7672_v26, %v2730_v11  ;;  %5220 = vtanh.f32 %v7714_v46  ;;  %v2709_v23 = vand.u32 2147483648, %v7583_v61  ;;  %vm2753_vm11 = vcmp.eq.f32.partialorder %v2752_v44, 8.507059e+37  ;;  %v7842_v48 = vld [vmem:[%s10243_s3 + $0x50] sm:$0xff]  ;;  %10699 = vst [vmem:[#allocation75_spill] sm:$0xff] %v7877_v6 }
 0x386   : > { %v2721_v27 = vsel %vm7752_vm5, %v7663_v17, %v2717_v54  ;;  %v2725_v8 = vor.u32 1.1754944e-38, %v2724_v50  ;;  %5222 = vtanh.f32 %v7722_v4  ;;  %vm2723_vm8 = vcmp.eq.f32.partialorder %v2722_v21, 8.507059e+37 }
 0x387   : > { %v2732_v24 = vadd.f32 %v7672_v26, %v2731_v14  ;;  %v2706_v43 = vsel %vm2705_vm9, %v7651_v9, %v2702_v1  ;;  %v2710_v7 = vor.u32 1.1754944e-38, %v2709_v23  ;;  %v7779_v9 = vld [vmem:[%s10243_s3 + $0x8] sm:$0xff]  ;;  %v7821_v14 = vld [vmem:[%s10243_s3 + $0x38] sm:$0xff]  ;;  %v7886_v22 = vperm.slane %v7304_v19, 3 }
 0x388   : > { %v5215_v56 = vpop.eup %5214  ;;  %v2726_v15 = vsel %vm2723_vm8, %v2725_v8, %v2721_v27  ;;  %v7889_v21 = vperm.slane %v7310_v53, 3  ;;  %v10700_v23 = vld [vmem:[#allocation34_spill] sm:$0xff]  ;;  %v10701_v27 = vld [vmem:[#allocation8_spill] sm:$0xff]  ;;  %v10703_v8 = vld [vmem:[#allocation11_spill] sm:$0xff] }
 0x389   : > { %v2744_v58 = vmul.f32 %v5215_v56, %v7675_v31  ;;  %vm2749_vm1 = vweird.f32 %v5215_v56  ;;  %v5217_v45 = vpop.eup %5216  ;;  %v2736_v55 = vsel %vm7736_vm3, %v7672_v26, %v2732_v24  ;;  %v2740_v31 = vor.u32 1.1754944e-38, %v2739_v2  ;;  %v7870_v24 = vld [vmem:[%s10243_s3 + $0x70] sm:$0xff] }
 0x38a   : > { %v5219_v33 = vpop.eup %5218  ;;  %vm2750_vm7 = vmor %vm2748_vm4, %vm2749_vm1  ;;  %v2707_v26 = vand.u32 2147483647, %v7583_v61  ;;  %v2775_v30 = vmul.f32 %v5217_v45, %v2726_v15  ;;  %v7772_v61 = vld [vmem:[%s10243_s3] sm:$0xff]  ;;  %10698 = vst [vmem:[#allocation74_spill] sm:$0xff] %v7870_v24  ;;  %v1104_v50 = vmul.f32 %v7886_v22, %v10608_v20  ;;  %v1105_v38 = vmul.f32 %v7886_v22, %v10611_v42 }
 0x38b   : > { %v2745_v18 = vsub.f32 1.0, %v2744_v58  ;;  %v5221_v37 = vpop.eup %5220  ;;  %v2741_v35 = vsel %vm2738_vm10, %v2740_v31, %v2736_v55  ;;  %v7849_v58 = vld [vmem:[%s10243_s3 + $0x58] sm:$0xff]  ;;  %v1088_v53 = vmul.f32 %v7889_v21, %v10613_v40 }
 0x38c   : > { %v2776_v17 = vmul.f32 %v5219_v33, %v2741_v35  ;;  %vm2708_vm12 = vcmp.eq.f32.partialorder %v2707_v26, 8.507059e+37  ;;  %v5223_v3 = vpop.eup %5222  ;;  %v7894_v33 = vperm.slane %v7318_v57, 3  ;;  %v1106_v57 = vmul.f32 %v7886_v22, %v10612_v63  ;;  %v10704_v15 = vld [vmem:[#allocation29_spill] sm:$0xff]  ;;  %v10742_v40 = vld [vmem:[#allocation56_spill] sm:$0xff] }
 0x38d   : > { %v2746_v47 = vmul.f32 %v5215_v56, %v2745_v18  ;;  %v2711_v11 = vsel %vm2708_vm12, %v2710_v7, %v2706_v43  ;;  %v7863_v18 = vld [vmem:[%s10243_s3 + $0x68] sm:$0xff]  ;;  %v1089_v26 = vmul.f32 %v7889_v21, %v10701_v27  ;;  %v1108_v7 = vmul.f32 %v7886_v22, %v10704_v15  ;;  %v10713_v15 = vld [vmem:[#allocation13_spill] sm:$0xff] }
 0x38e   : > { %v2774_v34 = vmul.f32 %v5223_v3, %v2711_v11  ;;  %10697 = vst [vmem:[#allocation73_spill] sm:$0xff] %v7863_v18  ;;  %v1137_v55 = vmul.f32 %v7894_v33, %v10610_v5  ;;  %v1138_v31 = vmul.f32 %v7894_v33, %v10615_v49  ;;  %v10705_v3 = vld [vmem:[#allocation38_spill] sm:$0xff] }
 0x38f   : > { %v2747_v32 = vadd.f32 %v5215_v56, %v2746_v47 }
 0x391   : > { %v2751_v60 = vsel %vm2750_vm7, %v5215_v56, %v2747_v32  ;;  %v7835_v56 = vld [vmem:[%s10243_s3 + $0x48] sm:$0xff]  ;;  %v1087_v32 = vmul.f32 %v7889_v21, %v10609_v10 }
 0x392   : > { %v2756_v36 = vsel %vm2753_vm11, %v2755_v41, %v2751_v60  ;;  %v1121_v41 = vadd.f32 %v1105_v38, %v1088_v53  ;;  %v10744_v10 = vld [vmem:[#allocation58_spill] sm:$0xff] }
 0x393   : > { %v2777_v29 = vmul.f32 %v5221_v37, %v2756_v36  ;;  %v1120_v1 = vadd.f32 %v1104_v50, %v1087_v32  ;;  %v10702_v36 = vld [vmem:[#allocation12_spill] sm:$0xff]  ;;  %v10706_v50 = vld [vmem:[#allocation19_spill] sm:$0xff] }
 0x394   : > { %v1090_v35 = vmul.f32 %v7889_v21, %v10702_v36  ;;  %v1154_v43 = vadd.f32 %v1138_v31, %v1121_v41  ;;  %v1091_v32 = vmul.f32 %v7889_v21, %v10706_v50  ;;  %v10709_v41 = vld [vmem:[#allocation10_spill] sm:$0xff] }
 0x395   : > { %2806 = vmatpush.msra.mxu3 %v2777_v29  ;;  %v1153_v37 = vadd.f32 %v1137_v55, %v1120_v1  ;;  %v1107_v29 = vmul.f32 %v7886_v22, %v10703_v8  ;;  %v10707_v55 = vld [vmem:[#allocation35_spill] sm:$0xff]  ;;  %v10708_v1 = vld [vmem:[#allocation16_spill] sm:$0xff]  ;;  %v1140_v31 = vmul.f32 %v7894_v33, %v10709_v41 }
 0x396   : > { %v1141_v38 = vmul.f32 %v7894_v33, %v10707_v55  ;;  %v1139_v53 = vmul.f32 %v7894_v33, %v10708_v1  ;;  %v1124_v36 = vadd.f32 %v1108_v7, %v1091_v32  ;;  %v10712_v55 = vld [vmem:[#allocation45_spill] sm:$0xff]  ;;  %v10717_v32 = vld [vmem:[#allocation32_spill] sm:$0xff] }
 0x397   : > { %2807 = vmatpush.msra.mxu3 %v2776_v17  ;;  %v1169_v60 = vadd.f32 %v1153_v37, %v10700_v23  ;;  %v1123_v37 = vadd.f32 %v1107_v29, %v1090_v35  ;;  %v1092_v35 = vmul.f32 %v7889_v21, %v10713_v15  ;;  %v10714_v29 = vld [vmem:[#allocation33_spill] sm:$0xff]  ;;  %v1096_v23 = vmul.f32 %v7889_v21, %v10742_v40 }
 0x398   : > { %v1142_v41 = vmul.f32 %v7894_v33, %v10714_v29 }
 0x399   : > { %2808 = vmatpush.msra.mxu3 %v2775_v30  ;;  %v1122_v30 = vadd.f32 %v1106_v57, %v1089_v26  ;;  %v1157_v57 = vadd.f32 %v1141_v38, %v1124_v36  ;;  %v10715_v36 = vld [vmem:[#allocation15_spill] sm:$0xff] }
 0x39b   : > { %2809 = vmatpush.msra.mxu3 %v2774_v34  ;;  %v1170_v34 = vadd.f32 %v1154_v43, %v10705_v3  ;;  %v10711_v43 = vld [vmem:[#allocation28_spill] sm:$0xff]  ;;  %v1156_v3 = vadd.f32 %v1140_v31, %v1123_v37  ;;  %v1173_v49 = vadd.f32 %v1157_v57, %v10712_v55  ;;  %v10718_v37 = vld [vmem:[#allocation17_spill] sm:$0xff] }
 0x39c   : > { %4839 = vmatmul.msk.f32.vlgmr.msra.gmra.mxu3 %vm1698_vm0, %v7772_v61  ;;  %v1110_v31 = vmul.f32 %v7886_v22, %v10718_v37 }
 0x3a4   : > { %4840 = vmatmul.msk.f32.gmra.mxu3 %vm1698_vm0, %v7779_v9 }
 0x3ac   : > { %4841 = vmatmul.msk.f32.gmra.mxu3 %vm1698_vm0, %v7786_v0 }
 0x3b4   : > { %4842 = vmatmul.msk.f32.gmra.mxu3 %vm1698_vm0, %v7793_v39 }
 0x3bc   : > { %4843 = vmatmul.msk.f32.gmra.mxu3 %vm1698_vm0, %v7800_v28 }
 0x3c4   : > { %4844 = vmatmul.msk.f32.gmra.mxu3 %vm1698_vm0, %v7807_v51 }
 0x3cc   : > { %4845 = vmatmul.msk.f32.gmra.mxu3 %vm1698_vm0, %v7814_v62 }
 0x3d4   : > { %4846 = vmatmul.msk.f32.gmra.mxu3 %vm1698_vm0, %v7821_v14 }
 0x3dc   : > { %4847 = vmatmul.msk.f32.gmra.mxu3 %vm1698_vm0, %v7828_v12 }
 0x3e4   : > { %4848 = vmatmul.msk.f32.gmra.mxu3 %vm1698_vm0, %v7835_v56 }
 0x3ec   : > { %4849 = vmatmul.msk.f32.gmra.mxu3 %vm1698_vm0, %v7842_v48 }
 0x3f4   : > { %4850 = vmatmul.msk.f32.gmra.mxu3 %vm1698_vm0, %v7849_v58 }
 0x3fc   : > { %4851 = vmatmul.msk.f32.gmra.mxu3 %vm1698_vm0, %v7856_v25 }
 0x404   : > { %4852 = vmatmul.msk.f32.gmra.mxu3 %vm1698_vm0, %v7863_v18 }
 0x40c   : > { %4853 = vmatmul.msk.f32.gmra.mxu3 %vm1698_vm0, %v7870_v24 }
 0x414   : > { %4854 = vmatmul.msk.f32.gmra.mxu3 %vm1698_vm0, %v7877_v6 }
 0x41f   : > { %v2811_v59 = vpop.f32.mrf.mxu3 }
 0x420   : > { %v2859_v11 = vadd.f32 %v2811_v59, %v1169_v60  ;;  %v1155_v59 = vadd.f32 %v1139_v53, %v1122_v30  ;;  %v10710_v60 = vld [vmem:[#allocation23_spill] sm:$0xff]  ;;  %v10716_v30 = vld [vmem:[#allocation14_spill] sm:$0xff] }
 0x421   : > { %v1109_v26 = vmul.f32 %v7886_v22, %v10710_v60 }
 0x422   : > { %v4855_v27 = vmul.f32 -1.442695, %v2859_v11  ;;  %v1171_v63 = vadd.f32 %v1155_v59, %v10711_v43  ;;  %v1094_v11 = vmul.f32 %v7889_v21, %v10715_v36  ;;  %v10719_v59 = vld [vmem:[#allocation9_spill] sm:$0xff]  ;;  %v10721_v36 = vld [vmem:[#allocation27_spill] sm:$0xff] }
 0x423   : > { %v1125_v53 = vadd.f32 %v1109_v26, %v1092_v35  ;;  %v1093_v57 = vmul.f32 %v7889_v21, %v10719_v59  ;;  %v10720_v43 = vld [vmem:[#allocation21_spill] sm:$0xff]  ;;  %v1143_v1 = vmul.f32 %v7894_v33, %v10721_v36  ;;  %v10738_v36 = vld [vmem:[#allocation54_spill] sm:$0xff] }
 0x424   : > { %5224 = vpow2.f32 %v4855_v27  ;;  %v1144_v27 = vmul.f32 %v7894_v33, %v10720_v43  ;;  %v10723_v43 = vld [vmem:[#allocation25_spill] sm:$0xff] }
 0x427   : > { %v2814_v13 = vpop.f32.mrf.mxu3 }
 0x428   : > { %v2860_v8 = vadd.f32 %v2814_v13, %v1170_v34  ;;  %v1111_v34 = vmul.f32 %v7886_v22, %v10716_v30 }
 0x42a   : > { %v4856_v50 = vmul.f32 -1.442695, %v2860_v8  ;;  %v1172_v8 = vadd.f32 %v1156_v3, %v10717_v32  ;;  %v1127_v29 = vadd.f32 %v1111_v34, %v1094_v11  ;;  %v10722_v32 = vld [vmem:[#allocation31_spill] sm:$0xff] }
 0x42b   : > { %v10724_v11 = vld [vmem:[#allocation39_spill] sm:$0xff] }
 0x42c   : > { %5226 = vpow2.f32 %v4856_v50  ;;  %v1160_v26 = vadd.f32 %v1144_v27, %v1127_v29 }
 0x42e   : > { %v1176_v50 = vadd.f32 %v1160_v26, %v10723_v43  ;;  %v10729_v26 = vld [vmem:[#allocation40_spill] sm:$0xff] }
 0x42f   : > { %v2817_v2 = vpop.f32.mrf.mxu3 }
 0x430   : > { %v2861_v7 = vadd.f32 %v2817_v2, %v1171_v63  ;;  %v1158_v2 = vadd.f32 %v1142_v41, %v1125_v53 }
 0x432   : > { %v4857_v30 = vmul.f32 -1.442695, %v2861_v7  ;;  %v1174_v37 = vadd.f32 %v1158_v2, %v10722_v32  ;;  %v10728_v2 = vld [vmem:[#allocation37_spill] sm:$0xff] }
 0x434   : > { %5228 = vpow2.f32 %v4857_v30 }
 0x437   : > { %v2820_v47 = vpop.f32.mrf.mxu3 }
 0x438   : > { %v2862_v63 = vadd.f32 %v2820_v47, %v1172_v8 }
 0x43a   : > { %v4858_v35 = vmul.f32 -1.442695, %v2862_v63  ;;  %v10725_v63 = vld [vmem:[#allocation42_spill] sm:$0xff] }
 0x43f   : > { %v2823_v44 = vpop.f32.mrf.mxu3 }
 0x440   : > { %v2863_v38 = vadd.f32 %v2823_v44, %v1173_v49  ;;  %v1126_v49 = vadd.f32 %v1110_v31, %v1093_v57  ;;  %v5225_v44 = vpop.eup %5224 }
 0x441   : > { %v5227_v47 = vpop.eup %5226  ;;  %v7957_v41 = vadd.f32 1.0, %v5225_v44 }
 0x442   : > { %v4859_v3 = vmul.f32 -1.442695, %v2863_v38  ;;  %v1159_v55 = vadd.f32 %v1143_v1, %v1126_v49  ;;  %v7963_v38 = vadd.f32 1.0, %v5227_v47  ;;  %v5229_v30 = vpop.eup %5228 }
 0x443   : > { %v7977_v44 = vadd.f32 1.0, %v5229_v30  ;;  %v10733_v30 = vld [vmem:[#allocation51_spill] sm:$0xff]  ;;  %vm2896_vm14 = vweird.f32 %v7957_v41 }
 0x444   : > { %5230 = vpow2.f32 %v4859_v3  ;;  %v1175_v34 = vadd.f32 %v1159_v55, %v10724_v11  ;;  %v10726_v55 = vld [vmem:[#allocation41_spill] sm:$0xff]  ;;  %v1118_v3 = vmul.f32 %v7886_v22, %v10728_v2  ;;  %vm2911_vm3 = vweird.f32 %v7963_v38 }
 0x445   : > { %5232 = vpow2.f32 %v4858_v35  ;;  %v1117_v35 = vmul.f32 %v7886_v22, %v10729_v26  ;;  %v10734_v26 = vld [vmem:[#allocation48_spill] sm:$0xff]  ;;  %vm2926_vm7 = vweird.f32 %v7977_v44 }
 0x446   : > { %5234 = vrcp.f32 %v7957_v41 }
 0x447   : > { %v7881_v54 = vpop.f32.mrf.mxu3  ;;  %5236 = vrcp.f32 %v7963_v38 }
 0x448   : > { %v2864_v7 = vadd.f32 %v7881_v54, %v1174_v37  ;;  %v1102_v54 = vmul.f32 %v7889_v21, %v10725_v63 }
 0x44a   : > { %v4860_v1 = vmul.f32 -1.442695, %v2864_v7  ;;  %v5231_v31 = vpop.eup %5230 }
 0x44b   : > { %v5233_v49 = vpop.eup %5232  ;;  %v7983_v7 = vadd.f32 1.0, %v5231_v31  ;;  %v10735_v31 = vld [vmem:[#allocation55_spill] sm:$0xff] }
 0x44c   : > { %5238 = vpow2.f32 %v4860_v1  ;;  %v7989_v63 = vpop.eup %5234  ;;  %v1151_v1 = vmul.f32 %v7894_v33, %v10733_v30 }
 0x44d   : > { %v8006_v30 = vpop.eup %5236  ;;  %vm2897_vm13 = vweird.f32 %v7989_v63  ;;  %vm2972_vm15 = vweird.f32 %v7983_v7 }
 0x44e   : > { %vm8084_vm1 = vmor %vm2896_vm14, %vm2897_vm13  ;;  %vm2912_vm2 = vweird.f32 %v8006_v30 }
 0x44f   : > { %v7883_v45 = vpop.f32.mrf.mxu3  ;;  %vm8116_vm5 = vmor %vm2911_vm3, %vm2912_vm2 }
 0x450   : > { %v2865_v29 = vadd.f32 %v7883_v45, %v1175_v34  ;;  %v10727_v45 = vld [vmem:[#allocation50_spill] sm:$0xff]  ;;  %v10731_v34 = vld [vmem:[#allocation43_spill] sm:$0xff] }
 0x451   : > { %v1099_v37 = vmul.f32 %v7889_v21, %v10727_v45  ;;  %v1152_v45 = vmul.f32 %v7894_v33, %v10734_v26 }
 0x452   : > { %v4861_v57 = vmul.f32 -1.442695, %v2865_v29  ;;  %v10732_v29 = vld [vmem:[#allocation47_spill] sm:$0xff] }
 0x457   : > { %v7902_v19 = vpop.f32.mrf.mxu3 }
 0x458   : > { %v2866_v8 = vadd.f32 %v7902_v19, %v1176_v50  ;;  %v1119_v19 = vmul.f32 %v7886_v22, %v10726_v55  ;;  %v10730_v50 = vld [vmem:[#allocation44_spill] sm:$0xff]  ;;  %v1100_v55 = vmul.f32 %v7889_v21, %v10732_v29  ;;  %v10737_v29 = vld [vmem:[#allocation49_spill] sm:$0xff] }
 0x459   : > { %v1101_v47 = vmul.f32 %v7889_v21, %v10730_v50  ;;  %v7995_v50 = vadd.f32 1.0, %v5233_v49  ;;  %v2892_v49 = vmul.f32 %v7989_v63, %v7957_v41 }
 0x45a   : > { %v4862_v53 = vmul.f32 -1.442695, %v2866_v8  ;;  %v1116_v8 = vmul.f32 %v7886_v22, %v10731_v34  ;;  %v1135_v2 = vadd.f32 %v1119_v19, %v1102_v54  ;;  %v10736_v34 = vld [vmem:[#allocation46_spill] sm:$0xff]  ;;  %v1150_v54 = vmul.f32 %v7894_v33, %v10738_v36 }
 0x45b   : > { %v1149_v43 = vmul.f32 %v7894_v33, %v10736_v34  ;;  %v1134_v19 = vadd.f32 %v1118_v3, %v1101_v47  ;;  %v1133_v26 = vadd.f32 %v1117_v35, %v1100_v55  ;;  %v10740_v34 = vld [vmem:[#allocation65_spill] sm:$0xff]  ;;  %v10743_v55 = vld [vmem:[#allocation66_spill] sm:$0xff]  ;;  %vm2941_vm12 = vweird.f32 %v7995_v50 }
 0x45c   : > { %5240 = vpow2.f32 %v4862_v53  ;;  %v1098_v53 = vmul.f32 %v7889_v21, %v10735_v31  ;;  %v1132_v11 = vadd.f32 %v1116_v8, %v1099_v37  ;;  %v10739_v37 = vld [vmem:[#allocation62_spill] sm:$0xff]  ;;  %v5239_v31 = vpop.eup %5238  ;;  %v1113_v32 = vmul.f32 %v7886_v22, %v10740_v34 }
 0x45d   : > { %5242 = vpow2.f32 %v4861_v57  ;;  %v1115_v57 = vmul.f32 %v7886_v22, %v10737_v29  ;;  %v1148_v8 = vmul.f32 %v7894_v33, %v10739_v37  ;;  %v10741_v29 = vld [vmem:[#allocation52_spill] sm:$0xff]  ;;  %v1167_v3 = vadd.f32 %v1151_v1, %v1134_v19 }
 0x45e   : > { %5244 = vrcp.f32 %v7977_v44  ;;  %v1114_v15 = vmul.f32 %v7886_v22, %v10741_v29  ;;  %v1168_v47 = vadd.f32 %v1152_v45, %v1135_v2  ;;  %v1165_v5 = vadd.f32 %v1149_v43, %v1132_v11  ;;  %v10745_v29 = vld [vmem:[#allocation53_spill] sm:$0xff]  ;;  %v10746_v1 = vld [vmem:[#allocation60_spill] sm:$0xff] }
 0x45f   : > { %v7919_v17 = vpop.f32.mrf.mxu3  ;;  %5246 = vrcp.f32 %v7983_v7  ;;  %v1131_v42 = vadd.f32 %v1115_v57, %v1098_v53  ;;  %v1146_v35 = vmul.f32 %v7894_v33, %v10743_v55  ;;  %v1097_v34 = vmul.f32 %v7889_v21, %v10744_v10  ;;  %v10747_v10 = vld [vmem:[#allocation61_spill] sm:$0xff] }
 0x460   : > { %5248 = vrcp.f32 %v7995_v50  ;;  %v1166_v20 = vadd.f32 %v1150_v54, %v1133_v26  ;;  %v8025_v6 = vadd.f32 %v1168_v47, %v10745_v29  ;;  %v2893_v45 = vsub.f32 1.0, %v2892_v49  ;;  %v10749_v29 = vld [vmem:[#allocation64_spill] sm:$0xff] }
 0x461   : > { %v8027_v2 = vadd.f32 1.0, %v5239_v31  ;;  %v1095_v19 = vmul.f32 %v7889_v21, %v10746_v1  ;;  %v1164_v40 = vadd.f32 %v1148_v8, %v1131_v42  ;;  %v2907_v43 = vmul.f32 %v8006_v30, %v7963_v38  ;;  %v10748_v31 = vld [vmem:[#allocation67_spill] sm:$0xff]  ;;  %v10750_v21 = vld [vmem:[#allocation57_spill] sm:$0xff] }
 0x462   : > { %v5241_v60 = vpop.eup %5240  ;;  %v1129_v57 = vadd.f32 %v1113_v32, %v1096_v23  ;;  %v1181_v26 = vadd.f32 %v1165_v5, %v10747_v10  ;;  %v1112_v49 = vmul.f32 %v7886_v22, %v10748_v31  ;;  %v1147_v42 = vmul.f32 %v7894_v33, %v10749_v29  ;;  %v10752_v5 = vld [vmem:[#allocation71_spill] sm:$0xff] }
 0x463   : > { %v5243_v37 = vpop.eup %5242  ;;  %v8035_v11 = vadd.f32 1.0, %v5241_v60  ;;  %v1183_v8 = vadd.f32 %v1167_v3, %v10750_v21  ;;  %v1130_v1 = vadd.f32 %v1114_v15, %v1097_v34  ;;  %v10751_v60 = vld [vmem:[#allocation59_spill] sm:$0xff]  ;;  %5250 = vrcp.f32 %v8027_v2 }
 0x464   : > { %v8031_v53 = vpop.eup %5244  ;;  %v8040_v47 = vadd.f32 1.0, %v5243_v37  ;;  %v1162_v55 = vadd.f32 %v1146_v35, %v1129_v57  ;;  %v1182_v18 = vadd.f32 %v1166_v20, %v10751_v60  ;;  %v1145_v32 = vmul.f32 %v7894_v33, %v10752_v5  ;;  %v10753_v22 = vld [vmem:[#allocation63_spill] sm:$0xff] }
 0x465   : > { %v8038_v54 = vpop.eup %5246  ;;  %v2894_v37 = vmul.f32 %v7989_v63, %v2893_v45  ;;  %v8055_v10 = vadd.f32 %v1164_v40, %v10753_v22  ;;  %v2908_v29 = vsub.f32 1.0, %v2907_v43  ;;  %v2922_v3 = vmul.f32 %v8031_v53, %v7977_v44  ;;  %v10754_v45 = vld [vmem:[#allocation69_spill] sm:$0xff] }
 0x466   : > { %v8048_v23 = vpop.eup %5248  ;;  %v2968_v15 = vmul.f32 %v8038_v54, %v7983_v7  ;;  %5252 = vrcp.f32 %v8035_v11  ;;  %v1163_v34 = vadd.f32 %v1147_v42, %v1130_v1  ;;  %v2978_v40 = vand.u32 2147483648, %v7983_v7  ;;  %v10756_v42 = vld [vmem:[#allocation72_spill] sm:$0xff] }
 0x467   : > { %v7938_v13 = vpop.f32.mrf.mxu3  ;;  %5254 = vrcp.f32 %v8040_v47  ;;  %v2937_v35 = vmul.f32 %v8048_v23, %v7995_v50  ;;  %v8067_v43 = vadd.f32 %v1162_v55, %v10754_v45  ;;  %v2895_v22 = vadd.f32 %v7989_v63, %v2894_v37 }
 0x468   : > { %v2923_v60 = vsub.f32 1.0, %v2922_v3  ;;  %v2969_v5 = vsub.f32 1.0, %v2968_v15  ;;  %v2909_v1 = vmul.f32 %v8006_v30, %v2908_v29  ;;  %v2902_v55 = vand.u32 2147483648, %v7957_v41 }
 0x469   : > { %v2938_v37 = vsub.f32 1.0, %v2937_v35  ;;  %v8089_v15 = vor.u32 1.1754944e-38, %v2978_v40  ;;  %vm2973_vm4 = vweird.f32 %v8038_v54  ;;  %vm2927_vm11 = vweird.f32 %v8031_v53 }
 0x46a   : > { %v8100_v35 = vadd.f32 %v8006_v30, %v2909_v1  ;;  %v2924_v40 = vmul.f32 %v8031_v53, %v2923_v60  ;;  %v2903_v3 = vor.u32 1.1754944e-38, %v2902_v55  ;;  %vm8143_vm10 = vmor %vm2972_vm15, %vm2973_vm4  ;;  %vm2987_vm8 = vweird.f32 %v8027_v2 }
 0x46b   : > { %v2939_v31 = vmul.f32 %v8048_v23, %v2938_v37  ;;  %vm2942_vm13 = vweird.f32 %v8048_v23  ;;  %vm3017_vm2 = vweird.f32 %v8035_v11 }
 0x46c   : > { %vm8207_vm4 = vmor %vm2941_vm12, %vm2942_vm13 }
 0x46f   : > { %v7954_v59 = vpop.f32.mrf.mxu3 }
 0x477   : > { %v7966_v27 = vpop.f32.mrf.mxu3 }
 0x478   : > { %v2870_v1 = vadd.f32 %v7966_v27, %v8055_v10  ;;  %v3008_v10 = vand.u32 2147483648, %v8040_v47  ;;  %v2940_v27 = vadd.f32 %v8048_v23, %v2939_v31  ;;  %v2947_v31 = vand.u32 2147483648, %v7995_v50 }
 0x47f   : > { %v2847_v36 = vpop.f32.mrf.mxu3 }
 0x480   : > { %v2871_v24 = vadd.f32 %v2847_v36, %v1181_v26  ;;  %v1128_v36 = vadd.f32 %v1112_v49, %v1095_v19  ;;  %v8073_v49 = vpop.eup %5250 }
 0x481   : > { %vm2988_vm9 = vweird.f32 %v8073_v49 }
 0x482   : > { %v4863_v57 = vmul.f32 -1.442695, %v2871_v24  ;;  %v1161_v26 = vadd.f32 %v1145_v32, %v1128_v36  ;;  %v2900_v24 = vand.u32 2147483647, %v7957_v41  ;;  %v8081_v32 = vpop.eup %5252  ;;  %v2899_v41 = vsel %vm8084_vm1, %v7989_v63, %v2895_v22  ;;  %vm8191_vm1 = vmor %vm2926_vm7, %vm2927_vm11 }
 0x483   : > { %v8091_v36 = vpop.eup %5254  ;;  %v2983_v63 = vmul.f32 %v8073_v49, %v8027_v2  ;;  %vm3018_vm14 = vweird.f32 %v8081_v32  ;;  %vm3002_vm7 = vweird.f32 %v8040_v47 }
 0x484   : > { %5256 = vpow2.f32 %v4863_v57  ;;  %vm2901_vm6 = vcmp.eq.f32.partialorder %v2900_v24, 8.507059e+37  ;;  %vm3003_vm3 = vweird.f32 %v8091_v36  ;;  %vm8221_vm11 = vmor %vm3017_vm2, %vm3018_vm14 }
 0x485   : > { %v8112_v22 = vsel %vm2901_vm6, %v2903_v3, %v2899_v41  ;;  %vm8229_vm13 = vmor %vm3002_vm7, %vm3003_vm3 }
 0x486   : > { %vm8248_vm14 = vmor %vm2987_vm8, %vm2988_vm9 }
 0x487   : > { %v2850_v20 = vpop.f32.mrf.mxu3 }
 0x488   : > { %v2872_v33 = vadd.f32 %v2850_v20, %v1182_v18  ;;  %v10755_v18 = vld [vmem:[#allocation70_spill] sm:$0xff]  ;;  %v8076_v20 = vadd.f32 %v1161_v26, %v10756_v42  ;;  %v3013_v26 = vmul.f32 %v8081_v32, %v8035_v11 }
 0x489   : > { %v1179_v19 = vadd.f32 %v1163_v34, %v10755_v18  ;;  %v2993_v34 = vand.u32 2147483648, %v8027_v2  ;;  %v8132_v18 = vadd.f32 %v8031_v53, %v2924_v40 }
 0x48a   : > { %v4864_v21 = vmul.f32 -1.442695, %v2872_v33  ;;  %v2970_v33 = vmul.f32 %v8038_v54, %v2969_v5  ;;  %v2915_v5 = vand.u32 2147483647, %v7963_v38  ;;  %v5257_v55 = vpop.eup %5256  ;;  %v3014_v42 = vsub.f32 1.0, %v3013_v26 }
 0x48b   : > { %v8129_v41 = vor.u32 1.1754944e-38, %v2993_v34  ;;  %v8150_v40 = vadd.f32 1.0, %v5257_v55  ;;  %v10781_v34 = vsel %vm8116_vm5, %v8006_v30, %v8100_v35 }
 0x48c   : > { %5258 = vpow2.f32 %v4864_v21  ;;  %v2998_v21 = vmul.f32 %v8091_v36, %v8040_v47  ;;  %vm8199_vm6 = vcmp.eq.f32.partialorder %v2915_v5, 8.507059e+37 }
 0x48d   : > { %vm3052_vm7 = vweird.f32 %v8150_v40 }
 0x48f   : > { %v2853_v57 = vpop.f32.mrf.mxu3 }
 0x490   : > { %v2873_v29 = vadd.f32 %v2853_v57, %v1183_v8  ;;  %v8123_v57 = vadd.f32 %v8038_v54, %v2970_v33  ;;  %v2869_v8 = vadd.f32 %v7954_v59, %v1179_v19  ;;  %v2999_v33 = vsub.f32 1.0, %v2998_v21 }
 0x491   : > { %v2930_v59 = vand.u32 2147483647, %v7977_v44  ;;  %v2932_v19 = vand.u32 2147483648, %v7977_v44  ;;  %v3006_v21 = vand.u32 2147483647, %v8040_v47 }
 0x492   : > { %v4865_v24 = vmul.f32 -1.442695, %v2873_v29  ;;  %v5259_v45 = vpop.eup %5258  ;;  %v2984_v29 = vsub.f32 1.0, %v2983_v63  ;;  %v3015_v63 = vmul.f32 %v8081_v32, %v3014_v42  ;;  %v3000_v3 = vmul.f32 %v8091_v36, %v2999_v33 }
 0x493   : > { %v8158_v37 = vadd.f32 1.0, %v5259_v45  ;;  %v2867_v45 = vadd.f32 %v7919_v17, %v8076_v20  ;;  %v3023_v17 = vand.u32 2147483648, %v8035_v11  ;;  %v10763_v20 = vand.u32 2147483647, %v7983_v7 }
 0x494   : > { %5260 = vpow2.f32 %v4865_v24  ;;  %v2985_v55 = vmul.f32 %v8073_v49, %v2984_v29  ;;  %v3021_v33 = vand.u32 2147483647, %v8035_v11  ;;  %vm2931_vm12 = vcmp.eq.f32.partialorder %v2930_v59, 8.507059e+37 }
 0x495   : > { %5262 = vtanh.f32 %v2869_v8  ;;  %vm8183_vm15 = vcmp.eq.f32.partialorder %v10763_v20, 8.507059e+37  ;;  %v2933_v11 = vor.u32 1.1754944e-38, %v2932_v19  ;;  %v3009_v19 = vor.u32 1.1754944e-38, %v3008_v10 }
 0x496   : > { %5264 = vtanh.f32 %v2870_v1  ;;  %v3016_v1 = vadd.f32 %v8081_v32, %v3015_v63  ;;  %v2986_v5 = vadd.f32 %v8073_v49, %v2985_v55  ;;  %v2929_v63 = vsel %vm8191_vm1, %v8031_v53, %v8132_v18 }
 0x497   : > { %v2856_v26 = vpop.f32.mrf.mxu3  ;;  %5266 = vrcp.f32 %v8150_v40  ;;  %v2944_v53 = vsel %vm8207_vm4, %v8048_v23, %v2940_v27  ;;  %v2934_v27 = vsel %vm2931_vm12, %v2933_v11, %v2929_v63  ;;  %vm3007_vm1 = vcmp.eq.f32.partialorder %v3006_v21, 8.507059e+37 }
 0x498   : > { %v2874_v24 = vadd.f32 %v2856_v26, %v8025_v6  ;;  %v2868_v6 = vadd.f32 %v7938_v13, %v8067_v43  ;;  %5268 = vrcp.f32 %v8158_v37  ;;  %v3001_v13 = vadd.f32 %v8091_v36, %v3000_v3 }
 0x499   : > { %v2945_v3 = vand.u32 2147483647, %v7995_v50  ;;  %v3020_v18 = vsel %vm8221_vm11, %v8081_v32, %v3016_v1  ;;  %vm3022_vm2 = vcmp.eq.f32.partialorder %v3021_v33, 8.507059e+37  ;;  %v10779_v63 = vand.u32 2147483647, %v8027_v2 }
 0x49a   : > { %v5261_v25 = vpop.eup %5260  ;;  %v4866_v42 = vmul.f32 -1.442695, %v2874_v24  ;;  %v3005_v59 = vsel %vm8229_vm13, %v8091_v36, %v3001_v13  ;;  %v2990_v36 = vsel %vm8248_vm14, %v8073_v49, %v2986_v5  ;;  %vm3067_vm5 = vweird.f32 %v8158_v37 }
 0x49b   : > { %v8175_v8 = vadd.f32 1.0, %v5261_v25  ;;  %v5263_v43 = vpop.eup %5262  ;;  %vm2946_vm3 = vcmp.eq.f32.partialorder %v2945_v3, 8.507059e+37  ;;  %v3010_v20 = vsel %vm3007_vm1, %v3009_v19, %v3005_v59  ;;  %v10778_v3 = vand.u32 2147483648, %v7963_v38 }
 0x49c   : > { %5270 = vpow2.f32 %v4866_v42  ;;  %v5265_v26 = vpop.eup %5264  ;;  %v3024_v42 = vor.u32 1.1754944e-38, %v3023_v17  ;;  %vm2992_vm9 = vcmp.eq.f32.partialorder %v10779_v63, 8.507059e+37  ;;  %v3113_v49 = vmul.f32 %v5263_v43, %v2934_v27 }
 0x49d   : > { %5272 = vrcp.f32 %v8175_v8  ;;  %v8225_v50 = vpop.eup %5266  ;;  %v2918_v33 = vor.u32 1.1754944e-38, %v10778_v3  ;;  %v3058_v3 = vand.u32 2147483648, %v8150_v40 }
 0x49e   : > { %5274 = vtanh.f32 %v2867_v45  ;;  %v8239_v55 = vpop.eup %5268  ;;  %v2948_v45 = vor.u32 1.1754944e-38, %v2947_v31  ;;  %v3025_v31 = vsel %vm3022_vm2, %v3024_v42, %v3020_v18  ;;  %v3048_v38 = vmul.f32 %v8225_v50, %v8150_v40 }
 0x49f   : > { %5276 = vtanh.f32 %v2868_v6  ;;  %v3063_v21 = vmul.f32 %v8239_v55, %v8158_v37  ;;  %v3110_v24 = vmul.f32 %v3025_v31, %v7714_v46  ;;  %v3086_v42 = vand.u32 2147483647, %v8175_v8 }
 0x4a0   : > { %v2949_v10 = vsel %vm2946_vm3, %v2948_v45, %v2944_v53  ;;  %v3049_v30 = vsub.f32 1.0, %v3048_v38  ;;  %v3073_v31 = vand.u32 2147483648, %v8158_v37  ;;  %vm3053_vm11 = vweird.f32 %v8225_v50 }
 0x4a1   : > { %v3114_v25 = vmul.f32 %v5265_v26, %v2949_v10  ;;  %v10780_v26 = vsel %vm8143_vm10, %v8038_v54, %v8123_v57  ;;  %v2919_v54 = vsel %vm8199_vm6, %v2918_v33, %v10781_v34  ;;  %v2995_v57 = vsel %vm2992_vm9, %v8129_v41, %v2990_v36  ;;  %vm3054_vm2 = vmor %vm3052_vm7, %vm3053_vm11 }
 0x4a2   : > { %v5271_v6 = vpop.eup %5270  ;;  %v2980_v5 = vsel %vm8183_vm15, %v8089_v15, %v10780_v26  ;;  %v3109_v15 = vmul.f32 %v3010_v20, %v7712_v16  ;;  %v3064_v43 = vsub.f32 1.0, %v3063_v21  ;;  %vm3068_vm10 = vweird.f32 %v8239_v55 }
 0x4a3   : > { %v8252_v32 = vpop.eup %5272  ;;  %v8257_v1 = vadd.f32 1.0, %v5271_v6  ;;  %v8289_v46 = vadd.f32 %v3114_v25, %v3110_v24  ;;  %v3107_v47 = vmul.f32 %v2980_v5, %v7722_v4  ;;  %v3050_v19 = vmul.f32 %v8225_v50, %v3049_v30  ;;  %vm8332_vm13 = vmor %vm3067_vm5, %vm3068_vm10 }
 0x4a4   : > { %v5275_v17 = vpop.eup %5274  ;;  %v3078_v13 = vmul.f32 %v8252_v32, %v8175_v8  ;;  %v8292_v53 = vadd.f32 %v3113_v49, %v3109_v15  ;;  %v3065_v41 = vmul.f32 %v8239_v55, %v3064_v43  ;;  %vm3083_vm8 = vweird.f32 %v8252_v32 }
 0x4a5   : > { %v5277_v44 = vpop.eup %5276  ;;  %5278 = vrcp.f32 %v8257_v1  ;;  %v3111_v2 = vmul.f32 %v5275_v17, %v8112_v22  ;;  %v3108_v22 = vmul.f32 %v2995_v57, %v7703_v52  ;;  %v3071_v52 = vand.u32 2147483647, %v8158_v37 }
 0x4a6   : > { %v3079_v11 = vsub.f32 1.0, %v3078_v13  ;;  %v3112_v29 = vmul.f32 %v5277_v44, %v2919_v54  ;;  %5280 = vtanh.f32 %v8289_v46  ;;  %v3103_v45 = vand.u32 2147483648, %v8257_v1 }
 0x4a7   : > { %v8296_v7 = vadd.f32 %v3111_v2, %v3107_v47  ;;  %5282 = vtanh.f32 %v8292_v53  ;;  %vm3082_vm15 = vweird.f32 %v8175_v8  ;;  %v3088_v6 = vand.u32 2147483648, %v8175_v8  ;;  %v10792_v47 = vld [vmem:[#allocation36_spill] sm:$0xff] }
 0x4a8   : > { %v3080_v60 = vmul.f32 %v8252_v32, %v3079_v11  ;;  %v8298_v18 = vadd.f32 %v3112_v29, %v3108_v22  ;;  %v3101_v27 = vand.u32 2147483647, %v8257_v1  ;;  %v3066_v36 = vadd.f32 %v8239_v55, %v3065_v41  ;;  %vm8316_vm4 = vmor %vm3082_vm15, %vm3083_vm8  ;;  %v10791_v29 = vld [vmem:[#allocation26_spill] sm:$0xff] }
 0x4a9   : > { %vm3097_vm12 = vweird.f32 %v8257_v1  ;;  %v3051_v13 = vadd.f32 %v8225_v50, %v3050_v19  ;;  %v3104_v44 = vor.u32 1.1754944e-38, %v3103_v45  ;;  %vm3087_vm1 = vcmp.eq.f32.partialorder %v3086_v42, 8.507059e+37 }
 0x4aa   : > { %v3081_v59 = vadd.f32 %v8252_v32, %v3080_v60  ;;  %5284 = vtanh.f32 %v8298_v18  ;;  %vm3102_vm3 = vcmp.eq.f32.partialorder %v3101_v27, 8.507059e+37  ;;  %v3070_v37 = vsel %vm8332_vm13, %v8239_v55, %v3066_v36  ;;  %v10797_v36 = vld [vmem:[#allocation22_spill] sm:$0xff] }
 0x4ab   : > { %v5279_v35 = vpop.eup %5278  ;;  %v3074_v26 = vor.u32 1.1754944e-38, %v3073_v31  ;;  %5286 = vtanh.f32 %v8296_v7  ;;  %vm3072_vm9 = vcmp.eq.f32.partialorder %v3071_v52, 8.507059e+37  ;;  %v3055_v24 = vsel %vm3054_vm2, %v8225_v50, %v3051_v13  ;;  %v10794_v52 = vld [vmem:[#allocation34_spill] sm:$0xff]  ;;  %v10798_v31 = vld [vmem:[#allocation19_spill] sm:$0xff] }
 0x4ac   : > { %v3093_v16 = vmul.f32 %v5279_v35, %v8257_v1  ;;  %vm3098_vm6 = vweird.f32 %v5279_v35  ;;  %v5281_v17 = vpop.eup %5280  ;;  %v3085_v20 = vsel %vm8316_vm4, %v8252_v32, %v3081_v59  ;;  %v3089_v1 = vor.u32 1.1754944e-38, %v3088_v6  ;;  %v10795_v59 = vld [vmem:[#allocation20_spill] sm:$0xff]  ;;  %v10796_v6 = vld [vmem:[#allocation29_spill] sm:$0xff] }
 0x4ad   : > { %v5283_v21 = vpop.eup %5282  ;;  %vm3099_vm14 = vmor %vm3097_vm12, %vm3098_vm6  ;;  %v3056_v32 = vand.u32 2147483647, %v8150_v40  ;;  %v3075_v38 = vsel %vm3072_vm9, %v3074_v26, %v3070_v37  ;;  %v3059_v2 = vor.u32 1.1754944e-38, %v3058_v3  ;;  %v8396_v40 = vld [vmem:[%s6151_s21 + $0x10] sm:$0xff]  ;;  %v10803_v26 = vld [vmem:[#allocation45_spill] sm:$0xff] }
 0x4ae   : > { %v3094_v4 = vsub.f32 1.0, %v3093_v16  ;;  %v3090_v49 = vsel %vm3087_vm1, %v3089_v1, %v3085_v20  ;;  %v8399_v50 = vperm.slane %v8396_v40, 4  ;;  %v10793_v16 = vld [vmem:[#allocation24_spill] sm:$0xff] }
 0x4af   : > { %v3125_v55 = vmul.f32 %v5283_v21, %v3090_v49  ;;  %vm3057_vm5 = vcmp.eq.f32.partialorder %v3056_v32, 8.507059e+37  ;;  %v10802_v32 = vld [vmem:[#allocation13_spill] sm:$0xff] }
 0x4b0   : > { %v3095_v23 = vmul.f32 %v5279_v35, %v3094_v4  ;;  %v5285_v11 = vpop.eup %5284  ;;  %v3060_v34 = vsel %vm3057_vm5, %v3059_v2, %v3055_v24  ;;  %v1253_v22 = vmul.f32 %v8399_v50, %v10792_v47  ;;  %v1254_v10 = vmul.f32 %v8399_v50, %v10797_v36  ;;  %v10804_v24 = vld [vmem:[#allocation33_spill] sm:$0xff] }
 0x4b1   : > { %v3124_v54 = vmul.f32 %v5285_v11, %v3075_v38  ;;  %v5287_v57 = vpop.eup %5286  ;;  %v1258_v11 = vmul.f32 %v8399_v50, %v10804_v24 }
 0x4b2   : > { %v3096_v8 = vadd.f32 %v5279_v35, %v3095_v23  ;;  %v3123_v15 = vmul.f32 %v5287_v57, %v3060_v34 }
 0x4b4   : > { %v3100_v33 = vsel %vm3099_vm14, %v5279_v35, %v3096_v8  ;;  %v10799_v8 = vld [vmem:[#allocation35_spill] sm:$0xff] }
 0x4b5   : > { %v3105_v63 = vsel %vm3102_vm3, %v3104_v44, %v3100_v33  ;;  %v1257_v20 = vmul.f32 %v8399_v50, %v10799_v8  ;;  %v10800_v44 = vld [vmem:[#allocation38_spill] sm:$0xff]  ;;  %v10801_v33 = vld [vmem:[#allocation23_spill] sm:$0xff] }
 0x4b6   : > { %v3126_v5 = vmul.f32 %v5281_v17, %v3105_v63 }
 0x4b8   : > { %3155 = vmatpush.msrb.mxu0 %v3126_v5 }
 0x4ba   : > { %3156 = vmatpush.msrb.mxu0 %v3125_v55 }
 0x4bc   : > { %3157 = vmatpush.msrb.mxu0 %v3124_v54 }
 0x4be   : > { %3158 = vmatpush.msrb.mxu0 %v3123_v15 }
 0x4bf   : > { %4867 = vmatmul.msk.f32.vlgmr.msrb.gmra.mxu0 %vm1698_vm0, %v7772_v61  ;;  %v10786_v61 = vld [vmem:[#allocation68_spill] sm:$0xff] }
 0x4c7   : > { %4868 = vmatmul.msk.f32.gmra.mxu0 %vm1698_vm0, %v7779_v9  ;;  %v10787_v9 = vld [vmem:[#allocation73_spill] sm:$0xff] }
 0x4cf   : > { %4869 = vmatmul.msk.f32.gmra.mxu0 %vm1698_vm0, %v7786_v0  ;;  %v10788_v0 = vld [vmem:[#allocation74_spill] sm:$0xff] }
 0x4d7   : > { %4870 = vmatmul.msk.f32.gmra.mxu0 %vm1698_vm0, %v7793_v39  ;;  %v10789_v39 = vld [vmem:[#allocation75_spill] sm:$0xff] }
 0x4df   : > { %4871 = vmatmul.msk.f32.gmra.mxu0 %vm1698_vm0, %v7800_v28 }
 0x4e7   : > { %4872 = vmatmul.msk.f32.gmra.mxu0 %vm1698_vm0, %v7807_v51 }
 0x4ef   : > { %4873 = vmatmul.msk.f32.gmra.mxu0 %vm1698_vm0, %v7814_v62  ;;  %v8382_v62 = vld [vmem:[%s6151_s21 + $0x8] sm:$0xff] }
 0x4f7   : > { %4874 = vmatmul.msk.f32.gmra.mxu0 %vm1698_vm0, %v7821_v14  ;;  %v8385_v14 = vperm.slane %v8382_v62, 4 }
 0x4f9   : > { %v1221_v41 = vmul.f32 %v8385_v14, %v10793_v16  ;;  %v1224_v23 = vmul.f32 %v8385_v14, %v10796_v6  ;;  %v1225_v37 = vmul.f32 %v8385_v14, %v10801_v33 }
 0x4ff   : > { %4875 = vmatmul.msk.f32.gmra.mxu0 %vm1698_vm0, %v7828_v12  ;;  %v8388_v12 = vld [vmem:[%s6151_s21] sm:$0xff] }
 0x507   : > { %4876 = vmatmul.msk.f32.gmra.mxu0 %vm1698_vm0, %v7835_v56  ;;  %v8391_v56 = vperm.slane %v8388_v12, 4 }
 0x509   : > { %v1203_v43 = vmul.f32 %v8391_v56, %v10791_v29  ;;  %v1204_v19 = vmul.f32 %v8391_v56, %v10795_v59  ;;  %v1207_v17 = vmul.f32 %v8391_v56, %v10798_v31  ;;  %v1208_v63 = vmul.f32 %v8391_v56, %v10802_v32 }
 0x50b   : > { %v1237_v42 = vadd.f32 %v1221_v41, %v1204_v19  ;;  %v1240_v21 = vadd.f32 %v1224_v23, %v1207_v17  ;;  %v1241_v55 = vadd.f32 %v1225_v37, %v1208_v63  ;;  %v10809_v37 = vld [vmem:[#allocation71_spill] sm:$0xff] }
 0x50c   : > { %v1261_v63 = vmul.f32 %v8399_v50, %v10809_v37 }
 0x50d   : > { %v1270_v13 = vadd.f32 %v1254_v10, %v1237_v42  ;;  %v1273_v3 = vadd.f32 %v1257_v20, %v1240_v21  ;;  %v1274_v57 = vadd.f32 %v1258_v11, %v1241_v55  ;;  %v10806_v10 = vld [vmem:[#allocation67_spill] sm:$0xff]  ;;  %v10807_v20 = vld [vmem:[#allocation18_spill] sm:$0xff]  ;;  %v10810_v11 = vld [vmem:[#allocation8_spill] sm:$0xff] }
 0x50e   : > { %v1228_v17 = vmul.f32 %v8385_v14, %v10806_v10 }
 0x50f   : > { %4877 = vmatmul.msk.f32.gmra.mxu0 %vm1698_vm0, %v7842_v48  ;;  %v10790_v48 = vld [vmem:[#allocation30_spill] sm:$0xff]  ;;  %v1286_v1 = vadd.f32 %v1270_v13, %v10800_v44  ;;  %v1289_v5 = vadd.f32 %v1273_v3, %v10803_v26 }
 0x517   : > { %4878 = vmatmul.msk.f32.gmra.mxu0 %vm1698_vm0, %v7849_v58  ;;  %v1220_v58 = vmul.f32 %v8385_v14, %v10790_v48 }
 0x519   : > { %v1236_v60 = vadd.f32 %v1220_v58, %v1203_v43 }
 0x51b   : > { %v1269_v35 = vadd.f32 %v1253_v22, %v1236_v60 }
 0x51d   : > { %v1285_v4 = vadd.f32 %v1269_v35, %v10794_v52 }
 0x51f   : > { %4879 = vmatmul.msk.f32.gmra.mxu0 %vm1698_vm0, %v10786_v61  ;;  %v10805_v61 = vld [vmem:[#allocation31_spill] sm:$0xff] }
 0x527   : > { %4880 = vmatmul.msk.f32.gmra.mxu0 %vm1698_vm0, %v10787_v9  ;;  %v1290_v9 = vadd.f32 %v1274_v57, %v10805_v61 }
 0x52f   : > { %4881 = vmatmul.msk.f32.gmra.mxu0 %vm1698_vm0, %v10788_v0 }
 0x537   : > { %4882 = vmatmul.msk.f32.gmra.mxu0 %vm1698_vm0, %v10789_v39 }
 0x53c   : > { %v3160_v28 = vpop.f32.mrf.mxu0 }
 0x53d   : > { %v3208_v45 = vadd.f32 %v3160_v28, %v1285_v4 }
 0x53f   : > { %v4883_v25 = vmul.f32 -1.442695, %v3208_v45 }
 0x541   : > { %5288 = vpow2.f32 %v4883_v25  ;;  %v1222_v25 = vmul.f32 %v8385_v14, %v10807_v20 }
 0x544   : > { %v3163_v51 = vpop.f32.mrf.mxu0 }
 0x545   : > { %v3209_v49 = vadd.f32 %v3163_v51, %v1286_v1  ;;  %v10808_v1 = vld [vmem:[#allocation60_spill] sm:$0xff] }
 0x546   : > { %v1211_v3 = vmul.f32 %v8391_v56, %v10808_v1 }
 0x547   : > { %v4884_v34 = vmul.f32 -1.442695, %v3209_v49  ;;  %v5289_v15 = vpop.eup %5288 }
 0x548   : > { %v8431_v0 = vadd.f32 1.0, %v5289_v15 }
 0x54a   : > { %vm3245_vm4 = vweird.f32 %v8431_v0 }
 0x54c   : > { %v8405_v30 = vpop.f32.mrf.mxu0 }
 0x554   : > { %v8414_v27 = vpop.f32.mrf.mxu0 }
 0x55c   : > { %v3172_v38 = vpop.f32.mrf.mxu0 }
 0x55d   : > { %v3212_v2 = vadd.f32 %v3172_v38, %v1289_v5  ;;  %v1205_v38 = vmul.f32 %v8391_v56, %v10810_v11 }
 0x55f   : > { %v4887_v54 = vmul.f32 -1.442695, %v3212_v2  ;;  %v1244_v2 = vadd.f32 %v1228_v17, %v1211_v3  ;;  %v10816_v3 = vld [vmem:[#allocation72_spill] sm:$0xff] }
 0x561   : > { %5290 = vpow2.f32 %v4887_v54 }
 0x562   : > { %5292 = vpow2.f32 %v4884_v34  ;;  %v1238_v34 = vadd.f32 %v1222_v25, %v1205_v38  ;;  %v10815_v25 = vld [vmem:[#allocation10_spill] sm:$0xff]  ;;  %v10817_v38 = vld [vmem:[#allocation56_spill] sm:$0xff] }
 0x563   : > { %5294 = vrcp.f32 %v8431_v0 }
 0x564   : > { %v3175_v39 = vpop.f32.mrf.mxu0 }
 0x565   : > { %v3213_v28 = vadd.f32 %v3175_v39, %v1290_v9  ;;  %v1277_v9 = vadd.f32 %v1261_v63, %v1244_v2  ;;  %v10811_v39 = vld [vmem:[#allocation65_spill] sm:$0xff]  ;;  %v1212_v2 = vmul.f32 %v8391_v56, %v10817_v38 }
 0x567   : > { %v5291_v51 = vpop.eup %5290  ;;  %v4888_v58 = vmul.f32 -1.442695, %v3213_v28  ;;  %v1229_v28 = vmul.f32 %v8385_v14, %v10811_v39  ;;  %v1293_v63 = vadd.f32 %v1277_v9, %v10816_v3  ;;  %v10818_v39 = vld [vmem:[#allocation66_spill] sm:$0xff] }
 0x568   : > { %v8434_v43 = vadd.f32 1.0, %v5291_v51  ;;  %v5293_v22 = vpop.eup %5292  ;;  %v10812_v51 = vld [vmem:[#allocation16_spill] sm:$0xff] }
 0x569   : > { %5296 = vpow2.f32 %v4888_v58  ;;  %v8437_v60 = vadd.f32 1.0, %v5293_v22  ;;  %v8441_v41 = vpop.eup %5294  ;;  %v1255_v58 = vmul.f32 %v8399_v50, %v10812_v51  ;;  %v10813_v22 = vld [vmem:[#allocation12_spill] sm:$0xff]  ;;  %v1262_v51 = vmul.f32 %v8399_v50, %v10818_v39 }
 0x56a   : > { %5298 = vrcp.f32 %v8434_v43  ;;  %v3241_v23 = vmul.f32 %v8441_v41, %v8431_v0  ;;  %v3327_v1 = vand.u32 2147483648, %v8434_v43  ;;  %v1245_v20 = vadd.f32 %v1229_v28, %v1212_v2  ;;  %v10823_v2 = vld [vmem:[#allocation15_spill] sm:$0xff] }
 0x56b   : > { %5300 = vrcp.f32 %v8437_v60  ;;  %v1271_v11 = vadd.f32 %v1255_v58, %v1238_v34  ;;  %vm3321_vm8 = vweird.f32 %v8434_v43  ;;  %vm3246_vm15 = vweird.f32 %v8441_v41 }
 0x56c   : > { %v8439_v35 = vpop.f32.mrf.mxu0  ;;  %v3242_v5 = vsub.f32 1.0, %v3241_v23  ;;  %v3325_v39 = vand.u32 2147483647, %v8434_v43  ;;  %vm8518_vm7 = vmor %vm3245_vm4, %vm3246_vm15  ;;  %vm3260_vm2 = vweird.f32 %v8437_v60 }
 0x56e   : > { %v3243_v17 = vmul.f32 %v8441_v41, %v3242_v5  ;;  %vm3326_vm11 = vcmp.eq.f32.partialorder %v3325_v39, 8.507059e+37 }
 0x56f   : > { %v5297_v4 = vpop.eup %5296 }
 0x570   : > { %v8443_v19 = vpop.eup %5298  ;;  %v8446_v45 = vadd.f32 1.0, %v5297_v4  ;;  %v1206_v4 = vmul.f32 %v8391_v56, %v10813_v22  ;;  %v3244_v9 = vadd.f32 %v8441_v41, %v3243_v17  ;;  %v10822_v17 = vld [vmem:[#allocation17_spill] sm:$0xff] }
 0x571   : > { %v3317_v42 = vmul.f32 %v8443_v19, %v8434_v43  ;;  %v8463_v49 = vpop.eup %5300  ;;  %vm3322_vm10 = vweird.f32 %v8443_v19  ;;  %v3328_v43 = vor.u32 1.1754944e-38, %v3327_v1 }
 0x572   : > { %5302 = vrcp.f32 %v8446_v45  ;;  %v3256_v57 = vmul.f32 %v8463_v49, %v8437_v60  ;;  %vm8499_vm6 = vmor %vm3321_vm8, %vm3322_vm10  ;;  %vm3261_vm14 = vweird.f32 %v8463_v49  ;;  %vm3336_vm1 = vweird.f32 %v8446_v45 }
 0x573   : > { %v3318_v13 = vsub.f32 1.0, %v3317_v42  ;;  %v10814_v42 = vld [vmem:[#allocation11_spill] sm:$0xff]  ;;  %vm8557_vm9 = vmor %vm3260_vm2, %vm3261_vm14 }
 0x574   : > { %v8457_v21 = vpop.f32.mrf.mxu0  ;;  %v1223_v23 = vmul.f32 %v8385_v14, %v10814_v42  ;;  %v3257_v5 = vsub.f32 1.0, %v3256_v57  ;;  %v1278_v57 = vadd.f32 %v1262_v51, %v1245_v20  ;;  %v1210_v20 = vmul.f32 %v8391_v56, %v10823_v2 }
 0x575   : > { %v3319_v54 = vmul.f32 %v8443_v19, %v3318_v13  ;;  %v8485_v13 = vmul.f32 %v8399_v50, %v10815_v25 }
 0x576   : > { %v1239_v34 = vadd.f32 %v1223_v23, %v1206_v4  ;;  %v10821_v4 = vld [vmem:[#allocation9_spill] sm:$0xff]  ;;  %v3258_v1 = vmul.f32 %v8463_v49, %v3257_v5 }
 0x577   : > { %v3320_v42 = vadd.f32 %v8443_v19, %v3319_v54  ;;  %v3251_v54 = vand.u32 2147483648, %v8431_v0  ;;  %v1209_v23 = vmul.f32 %v8391_v56, %v10821_v4 }
 0x578   : > { %v8467_v55 = vpop.eup %5302 }
 0x579   : > { %v3332_v15 = vmul.f32 %v8467_v55, %v8446_v45  ;;  %v3324_v28 = vsel %vm8499_vm6, %v8443_v19, %v3320_v42  ;;  %v3248_v19 = vsel %vm8518_vm7, %v8441_v41, %v3244_v9  ;;  %v10827_v42 = vld [vmem:[#allocation21_spill] sm:$0xff]  ;;  %v3252_v58 = vor.u32 1.1754944e-38, %v3251_v54 }
 0x57a   : > { %v3329_v2 = vsel %vm3326_vm11, %v3328_v43, %v3324_v28  ;;  %vm3337_vm12 = vweird.f32 %v8467_v55  ;;  %v3342_v41 = vand.u32 2147483648, %v8446_v45  ;;  %v3340_v28 = vand.u32 2147483647, %v8446_v45  ;;  %v10831_v43 = vld [vmem:[#allocation27_spill] sm:$0xff] }
 0x57b   : > { %v3333_v22 = vsub.f32 1.0, %v3332_v15  ;;  %v3249_v15 = vand.u32 2147483647, %v8431_v0  ;;  %v10826_v0 = vld [vmem:[#allocation14_spill] sm:$0xff]  ;;  %v3456_v9 = vmul.f32 %v3329_v2, %v8296_v7  ;;  %vm8539_vm3 = vmor %vm3336_vm1, %vm3337_vm12  ;;  %v3264_v7 = vand.u32 2147483647, %v8437_v60 }
 0x57c   : > { %v3184_v37 = vpop.f32.mrf.mxu0  ;;  %v1272_v2 = vadd.f32 %v8485_v13, %v1239_v34  ;;  %vm3341_vm5 = vcmp.eq.f32.partialorder %v3340_v28, 8.507059e+37 }
 0x57d   : > { %v3216_v25 = vadd.f32 %v3184_v37, %v1293_v63  ;;  %v3334_v37 = vmul.f32 %v8467_v55, %v3333_v22  ;;  %v1226_v63 = vmul.f32 %v8385_v14, %v10822_v17  ;;  %v1227_v22 = vmul.f32 %v8385_v14, %v10826_v0  ;;  %v10828_v17 = vld [vmem:[#allocation69_spill] sm:$0xff] }
 0x57e   : > { %v1294_v4 = vadd.f32 %v1278_v57, %v10828_v17  ;;  %vm3250_vm13 = vcmp.eq.f32.partialorder %v3249_v15, 8.507059e+37  ;;  %v3259_v57 = vadd.f32 %v8463_v49, %v3258_v1  ;;  %v3343_v1 = vor.u32 1.1754944e-38, %v3342_v41 }
 0x57f   : > { %5304 = vtanh.f32 %v3216_v25  ;;  %v1260_v25 = vmul.f32 %v8399_v50, %v10827_v42  ;;  %v3335_v0 = vadd.f32 %v8467_v55, %v3334_v37  ;;  %v3253_v39 = vsel %vm3250_vm13, %v3252_v58, %v3248_v19 }
 0x580   : > { %v1259_v37 = vmul.f32 %v8399_v50, %v10831_v43  ;;  %v1243_v17 = vadd.f32 %v1227_v22, %v1210_v20  ;;  %v3266_v42 = vand.u32 2147483648, %v8437_v60  ;;  %v1242_v22 = vadd.f32 %v1226_v63, %v1209_v23  ;;  %v10836_v23 = vld [vmem:[#allocation25_spill] sm:$0xff]  ;;  %v10840_v20 = vld [vmem:[#allocation47_spill] sm:$0xff] }
 0x581   : > { %v3339_v45 = vsel %vm8539_vm3, %v8467_v55, %v3335_v0  ;;  %v3263_v60 = vsel %vm8557_vm9, %v8463_v49, %v3259_v57  ;;  %v10835_v0 = vld [vmem:[#allocation32_spill] sm:$0xff]  ;;  %vm3265_vm10 = vcmp.eq.f32.partialorder %v3264_v7, 8.507059e+37 }
 0x582   : > { %v1276_v58 = vadd.f32 %v1260_v25, %v1243_v17  ;;  %v3344_v13 = vsel %vm3341_vm5, %v3343_v1, %v3339_v45  ;;  %v1275_v34 = vadd.f32 %v1259_v37, %v1242_v22  ;;  %v10837_v25 = vld [vmem:[#allocation39_spill] sm:$0xff]  ;;  %v10838_v45 = vld [vmem:[#allocation50_spill] sm:$0xff]  ;;  %v1216_v22 = vmul.f32 %v8391_v56, %v10840_v20 }
 0x583   : > { %v3457_v49 = vmul.f32 %v3344_v13, %v8298_v18  ;;  %v10839_v18 = vld [vmem:[#allocation43_spill] sm:$0xff]  ;;  %v10842_v13 = vld [vmem:[#allocation40_spill] sm:$0xff] }
 0x584   : > { %v3187_v38 = vpop.f32.mrf.mxu0  ;;  %v1292_v17 = vadd.f32 %v1276_v58, %v10836_v23 }
 0x585   : > { %v5305_v51 = vpop.eup %5304  ;;  %v3217_v5 = vadd.f32 %v3187_v38, %v1294_v4  ;;  %v10832_v38 = vld [vmem:[#allocation28_spill] sm:$0xff] }
 0x586   : > { %v3460_v54 = vmul.f32 %v5305_v51, %v3253_v39  ;;  %v1287_v4 = vadd.f32 %v1271_v11, %v10832_v38  ;;  %v1288_v11 = vadd.f32 %v1272_v2, %v10835_v0  ;;  %v3267_v51 = vor.u32 1.1754944e-38, %v3266_v42 }
 0x587   : > { %5306 = vtanh.f32 %v3217_v5  ;;  %v3215_v57 = vadd.f32 %v8457_v21, %v1292_v17  ;;  %v1232_v2 = vmul.f32 %v8385_v14, %v10839_v18 }
 0x588   : > { %v8546_v19 = vadd.f32 %v3460_v54, %v3456_v9  ;;  %v3210_v55 = vadd.f32 %v8405_v30, %v1287_v4  ;;  %v3211_v5 = vadd.f32 %v8414_v27, %v1288_v11  ;;  %v3268_v63 = vsel %vm3265_vm10, %v3267_v51, %v3263_v60  ;;  %v10841_v60 = vld [vmem:[#allocation46_spill] sm:$0xff] }
 0x589   : > { %v1291_v9 = vadd.f32 %v1275_v34, %v10837_v25  ;;  %v4890_v37 = vmul.f32 -1.442695, %v3215_v57  ;;  %v1215_v4 = vmul.f32 %v8391_v56, %v10838_v45  ;;  %v1233_v34 = vmul.f32 %v8385_v14, %v10842_v13  ;;  %v10857_v45 = vld [vmem:[#allocation57_spill] sm:$0xff]  ;;  %v10858_v25 = vld [vmem:[#allocation48_spill] sm:$0xff] }
 0x58a   : > { %v4885_v30 = vmul.f32 -1.442695, %v3210_v55  ;;  %v4886_v15 = vmul.f32 -1.442695, %v3211_v5  ;;  %v1265_v55 = vmul.f32 %v8399_v50, %v10841_v60  ;;  %v10856_v60 = vld [vmem:[#allocation41_spill] sm:$0xff] }
 0x58b   : > { %v3214_v42 = vadd.f32 %v8439_v35, %v1291_v9  ;;  %v1248_v1 = vadd.f32 %v1232_v2, %v1215_v4  ;;  %v10846_v2 = vld [vmem:[#allocation44_spill] sm:$0xff] }
 0x58c   : > { %v8566_v41 = vpop.f32.mrf.mxu0  ;;  %5308 = vpow2.f32 %v4885_v30  ;;  %v10844_v30 = vld [vmem:[#allocation61_spill] sm:$0xff] }
 0x58d   : > { %v5307_v39 = vpop.eup %5306  ;;  %v4889_v7 = vmul.f32 -1.442695, %v3214_v42  ;;  %5310 = vpow2.f32 %v4886_v15  ;;  %v1281_v9 = vadd.f32 %v1265_v55, %v1248_v1 }
 0x58e   : > { %v3461_v54 = vmul.f32 %v5307_v39, %v3268_v63  ;;  %5312 = vpow2.f32 %v4890_v37  ;;  %v10843_v39 = vld [vmem:[#allocation54_spill] sm:$0xff] }
 0x58f   : > { %5314 = vpow2.f32 %v4889_v7  ;;  %v1266_v5 = vmul.f32 %v8399_v50, %v10843_v39  ;;  %v1297_v57 = vadd.f32 %v1281_v9, %v10844_v30  ;;  %v10845_v7 = vld [vmem:[#allocation59_spill] sm:$0xff]  ;;  %v10853_v39 = vld [vmem:[#allocation52_spill] sm:$0xff] }
 0x590   : > { %v8574_v28 = vadd.f32 %v3461_v54, %v3457_v49  ;;  %v1249_v49 = vadd.f32 %v1233_v34, %v1216_v22  ;;  %v10847_v22 = vld [vmem:[#allocation37_spill] sm:$0xff] }
 0x591   : > { %v1234_v55 = vmul.f32 %v8385_v14, %v10847_v22  ;;  %v10852_v22 = vld [vmem:[#allocation62_spill] sm:$0xff] }
 0x592   : > { %v5309_v21 = vpop.eup %5308  ;;  %v1282_v15 = vadd.f32 %v1266_v5, %v1249_v49  ;;  %v10850_v49 = vld [vmem:[#allocation58_spill] sm:$0xff]  ;;  %v1264_v30 = vmul.f32 %v8399_v50, %v10852_v22  ;;  %v1235_v22 = vmul.f32 %v8385_v14, %v10856_v60 }
 0x593   : > { %v5311_v35 = vpop.eup %5310  ;;  %v8584_v58 = vadd.f32 1.0, %v5309_v21  ;;  %v1217_v21 = vmul.f32 %v8391_v56, %v10846_v2 }
 0x594   : > { %v8576_v27 = vpop.f32.mrf.mxu0  ;;  %v5313_v51 = vpop.eup %5312  ;;  %v8592_v63 = vadd.f32 1.0, %v5311_v35  ;;  %v1298_v4 = vadd.f32 %v1282_v15, %v10845_v7 }
 0x595   : > { %v5315_v17 = vpop.eup %5314  ;;  %5316 = vrcp.f32 %v8584_v58  ;;  %v8595_v54 = vadd.f32 1.0, %v5313_v51  ;;  %v10848_v51 = vld [vmem:[#allocation51_spill] sm:$0xff]  ;;  %v1250_v2 = vadd.f32 %v1234_v55, %v1217_v21  ;;  %v10855_v55 = vld [vmem:[#allocation42_spill] sm:$0xff]  ;;  %vm3275_vm8 = vweird.f32 %v8584_v58 }
 0x596   : > { %v8598_v42 = vadd.f32 1.0, %v5315_v17  ;;  %5318 = vrcp.f32 %v8592_v63  ;;  %v1267_v34 = vmul.f32 %v8399_v50, %v10848_v51  ;;  %vm3290_vm6 = vweird.f32 %v8592_v63 }
 0x597   : > { %5320 = vrcp.f32 %v8595_v54  ;;  %vm3366_vm13 = vweird.f32 %v8595_v54 }
 0x598   : > { %5322 = vrcp.f32 %v8598_v42  ;;  %vm3351_vm1 = vweird.f32 %v8598_v42 }
 0x59b   : > { %v8610_v5 = vpop.eup %5316 }
 0x59c   : > { %v3196_v11 = vpop.f32.mrf.mxu0  ;;  %v8616_v7 = vpop.eup %5318  ;;  %v3271_v51 = vmul.f32 %v8610_v5, %v8584_v58  ;;  %vm3276_vm15 = vweird.f32 %v8610_v5 }
 0x59d   : > { %v3220_v37 = vadd.f32 %v3196_v11, %v1297_v57  ;;  %v10849_v11 = vld [vmem:[#allocation55_spill] sm:$0xff]  ;;  %v1213_v57 = vmul.f32 %v8391_v56, %v10850_v49  ;;  %v1283_v49 = vadd.f32 %v1267_v34, %v1250_v2  ;;  %v3286_v18 = vmul.f32 %v8616_v7, %v8592_v63  ;;  %vm8679_vm12 = vmor %vm3275_vm8, %vm3276_vm15 }
 0x59e   : > { %v1214_v17 = vmul.f32 %v8391_v56, %v10849_v11  ;;  %v1230_v11 = vmul.f32 %v8385_v14, %v10853_v39  ;;  %vm3291_vm4 = vweird.f32 %v8616_v7 }
 0x59f   : > { %v4891_v9 = vmul.f32 -1.442695, %v3220_v37  ;;  %v10854_v37 = vld [vmem:[#allocation64_spill] sm:$0xff]  ;;  %v3287_v23 = vsub.f32 1.0, %v3286_v18  ;;  %vm8691_vm14 = vmor %vm3290_vm6, %vm3291_vm4 }
 0x5a0   : > { %v1263_v13 = vmul.f32 %v8399_v50, %v10854_v37  ;;  %v1246_v39 = vadd.f32 %v1230_v11, %v1213_v57  ;;  %v1299_v37 = vadd.f32 %v1283_v49, %v10857_v45  ;;  %v10859_v11 = vld [vmem:[#allocation70_spill] sm:$0xff] }
 0x5a1   : > { %5324 = vpow2.f32 %v4891_v9  ;;  %v3272_v9 = vsub.f32 1.0, %v3271_v51 }
 0x5a4   : > { %v3199_v1 = vpop.f32.mrf.mxu0 }
 0x5a5   : > { %v3221_v35 = vadd.f32 %v3199_v1, %v1298_v4  ;;  %v10851_v4 = vld [vmem:[#allocation49_spill] sm:$0xff] }
 0x5a6   : > { %v1231_v1 = vmul.f32 %v8385_v14, %v10851_v4  ;;  %v1218_v4 = vmul.f32 %v8391_v56, %v10855_v55 }
 0x5a7   : > { %v4892_v15 = vmul.f32 -1.442695, %v3221_v35  ;;  %v8628_v35 = vpop.eup %5320 }
 0x5a8   : > { %v1247_v21 = vadd.f32 %v1231_v1, %v1214_v17  ;;  %v8634_v20 = vpop.eup %5322  ;;  %v1268_v17 = vmul.f32 %v8399_v50, %v10858_v25  ;;  %v3362_v56 = vmul.f32 %v8628_v35, %v8595_v54  ;;  %v1279_v1 = vadd.f32 %v1263_v13, %v1246_v39 }
 0x5a9   : > { %5326 = vpow2.f32 %v4892_v15  ;;  %v3347_v60 = vmul.f32 %v8634_v20, %v8598_v42  ;;  %v1251_v55 = vadd.f32 %v1235_v22, %v1218_v4  ;;  %v5325_v49 = vpop.eup %5324  ;;  %v3273_v25 = vmul.f32 %v8610_v5, %v3272_v9  ;;  %v10861_v4 = vld [vmem:[#allocation53_spill] sm:$0xff] }
 0x5aa   : > { %v1280_v2 = vadd.f32 %v1264_v30, %v1247_v21  ;;  %v1295_v57 = vadd.f32 %v1279_v1, %v10859_v11  ;;  %v10860_v30 = vld [vmem:[#allocation63_spill] sm:$0xff]  ;;  %v3363_v50 = vsub.f32 1.0, %v3362_v56  ;;  %v3288_v22 = vmul.f32 %v8616_v7, %v3287_v23 }
 0x5ab   : > { %v1284_v45 = vadd.f32 %v1268_v17, %v1251_v55  ;;  %v3348_v13 = vsub.f32 1.0, %v3347_v60  ;;  %v8651_v18 = vadd.f32 1.0, %v5325_v49  ;;  %v3279_v23 = vand.u32 2147483647, %v8584_v58 }
 0x5ac   : > { %v3202_v34 = vpop.f32.mrf.mxu0  ;;  %v1296_v21 = vadd.f32 %v1280_v2, %v10860_v30  ;;  %v3218_v51 = vadd.f32 %v8566_v41, %v1295_v57  ;;  %v3274_v41 = vadd.f32 %v8610_v5, %v3273_v25  ;;  %vm3367_vm7 = vweird.f32 %v8628_v35 }
 0x5ad   : > { %v3222_v14 = vadd.f32 %v3202_v34, %v1299_v37  ;;  %v1300_v37 = vadd.f32 %v1284_v45, %v10861_v4  ;;  %v3364_v34 = vmul.f32 %v8628_v35, %v3363_v50  ;;  %v3349_v60 = vmul.f32 %v8634_v20, %v3348_v13  ;;  %vm8700_vm3 = vmor %vm3366_vm13, %vm3367_vm7 }
 0x5ae   : > { %v3219_v39 = vadd.f32 %v8576_v27, %v1296_v21  ;;  %v3281_v45 = vand.u32 2147483648, %v8584_v58  ;;  %v3296_v56 = vand.u32 2147483648, %v8592_v63  ;;  %vm3352_vm11 = vweird.f32 %v8634_v20 }
 0x5af   : > { %v4893_v15 = vmul.f32 -1.442695, %v3222_v14  ;;  %v5327_v0 = vpop.eup %5326  ;;  %v3365_v1 = vadd.f32 %v8628_v35, %v3364_v34  ;;  %v3372_v14 = vand.u32 2147483648, %v8595_v54  ;;  %v3357_v21 = vand.u32 2147483648, %v8598_v42  ;;  %vm8712_vm2 = vmor %vm3351_vm1, %vm3352_vm11 }
 0x5b0   : > { %v8655_v2 = vadd.f32 1.0, %v5327_v0  ;;  %v3289_v0 = vadd.f32 %v8616_v7, %v3288_v22  ;;  %v3294_v58 = vand.u32 2147483647, %v8592_v63  ;;  %v3278_v22 = vsel %vm8679_vm12, %v8610_v5, %v3274_v41 }
 0x5b1   : > { %5328 = vpow2.f32 %v4893_v15  ;;  %v3350_v15 = vadd.f32 %v8634_v20, %v3349_v60  ;;  %vm3280_vm9 = vcmp.eq.f32.partialorder %v3279_v23, 8.507059e+37  ;;  %v3297_v60 = vor.u32 1.1754944e-38, %v3296_v56 }
 0x5b2   : > { %5330 = vtanh.f32 %v3218_v51  ;;  %v3370_v51 = vand.u32 2147483647, %v8595_v54  ;;  %v3282_v54 = vor.u32 1.1754944e-38, %v3281_v45  ;;  %v3293_v34 = vsel %vm8691_vm14, %v8616_v7, %v3289_v0 }
 0x5b3   : > { %5332 = vtanh.f32 %v3219_v39  ;;  %v3354_v41 = vsel %vm8712_vm2, %v8634_v20, %v3350_v15  ;;  %vm3295_vm5 = vcmp.eq.f32.partialorder %v3294_v58, 8.507059e+37  ;;  %vm3416_vm15 = vweird.f32 %v8655_v2 }
 0x5b4   : > { %v3205_v55 = vpop.f32.mrf.mxu0  ;;  %5334 = vrcp.f32 %v8651_v18  ;;  %v3283_v45 = vsel %vm3280_vm9, %v3282_v54, %v3278_v22  ;;  %vm3371_vm10 = vcmp.eq.f32.partialorder %v3370_v51, 8.507059e+37  ;;  %v3298_v7 = vsel %vm3295_vm5, %v3297_v60, %v3293_v34 }
 0x5b5   : > { %v3223_v17 = vadd.f32 %v3205_v55, %v1300_v37  ;;  %5336 = vrcp.f32 %v8655_v2  ;;  %v3355_v37 = vand.u32 2147483647, %v8598_v42  ;;  %v3373_v42 = vor.u32 1.1754944e-38, %v3372_v14 }
 0x5b6   : > { %vm3401_vm13 = vweird.f32 %v8651_v18 }
 0x5b7   : > { %v5329_v27 = vpop.eup %5328  ;;  %v4894_v9 = vmul.f32 -1.442695, %v3223_v17  ;;  %v3369_v17 = vsel %vm8700_vm3, %v8628_v35, %v3365_v1  ;;  %vm3356_vm8 = vcmp.eq.f32.partialorder %v3355_v37, 8.507059e+37 }
 0x5b8   : > { %v8668_v25 = vadd.f32 1.0, %v5329_v27  ;;  %v5331_v49 = vpop.eup %5330  ;;  %v3374_v0 = vsel %vm3371_vm10, %v3373_v42, %v3369_v17 }
 0x5b9   : > { %5338 = vpow2.f32 %v4894_v9  ;;  %v5333_v13 = vpop.eup %5332  ;;  %v3358_v9 = vor.u32 1.1754944e-38, %v3357_v21  ;;  %v3462_v56 = vmul.f32 %v5331_v49, %v3283_v45  ;;  %v3459_v14 = vmul.f32 %v3374_v0, %v8289_v46 }
 0x5ba   : > { %5340 = vrcp.f32 %v8668_v25  ;;  %v8708_v55 = vpop.eup %5334  ;;  %v3463_v50 = vmul.f32 %v5333_v13, %v3298_v7  ;;  %vm3431_vm7 = vweird.f32 %v8668_v25  ;;  %v3437_v60 = vand.u32 2147483648, %v8668_v25  ;;  %v8839_v7 = vld [vmem:[%s10243_s3 + $0x38] sm:$0xff] }
 0x5bb   : > { %v8722_v5 = vpop.eup %5336  ;;  %v3359_v1 = vsel %vm3356_vm8, %v3358_v9, %v3354_v41  ;;  %v3397_v15 = vmul.f32 %v8708_v55, %v8651_v18  ;;  %v3435_v41 = vand.u32 2147483647, %v8668_v25  ;;  %v3422_v0 = vand.u32 2147483648, %v8655_v2 }
 0x5bc   : > { %v3412_v23 = vmul.f32 %v8722_v5, %v8655_v2  ;;  %v3458_v58 = vmul.f32 %v3359_v1, %v8292_v53  ;;  %v8737_v51 = vadd.f32 %v3463_v50, %v3459_v14  ;;  %vm3417_vm6 = vweird.f32 %v8722_v5 }
 0x5bd   : > { %v3398_v37 = vsub.f32 1.0, %v3397_v15  ;;  %v3420_v53 = vand.u32 2147483647, %v8655_v2  ;;  %vm3402_vm14 = vweird.f32 %v8708_v55  ;;  %vm8770_vm3 = vmor %vm3416_vm15, %vm3417_vm6  ;;  %vm3436_vm9 = vcmp.eq.f32.partialorder %v3435_v41, 8.507059e+37 }
 0x5be   : > { %v3413_v39 = vsub.f32 1.0, %v3412_v23  ;;  %v8739_v13 = vadd.f32 %v3462_v56, %v3458_v58  ;;  %v3407_v15 = vand.u32 2147483648, %v8651_v18  ;;  %vm3403_vm10 = vmor %vm3401_vm13, %vm3402_vm14  ;;  %v8874_v23 = vld [vmem:[%s10243_s3 + $0x60] sm:$0xff] }
 0x5bf   : > { %v5339_v27 = vpop.eup %5338  ;;  %v3399_v17 = vmul.f32 %v8708_v55, %v3398_v37  ;;  %vm3421_vm8 = vcmp.eq.f32.partialorder %v3420_v53, 8.507059e+37  ;;  %v8804_v53 = vld [vmem:[%s10243_s3 + $0x10] sm:$0xff] }
 0x5c0   : > { %v8727_v57 = vpop.eup %5340  ;;  %v3395_v35 = vadd.f32 1.0, %v5339_v27  ;;  %v3414_v46 = vmul.f32 %v8722_v5, %v3413_v39 }
 0x5c1   : > { %v3427_v20 = vmul.f32 %v8727_v57, %v8668_v25  ;;  %vm3432_vm4 = vweird.f32 %v8727_v57 }
 0x5c2   : > { %5342 = vrcp.f32 %v3395_v35  ;;  %v3452_v42 = vand.u32 2147483648, %v3395_v35  ;;  %v3450_v9 = vand.u32 2147483647, %v3395_v35  ;;  %v3415_v45 = vadd.f32 %v8722_v5, %v3414_v46  ;;  %vm8755_vm12 = vmor %vm3431_vm7, %vm3432_vm4 }
 0x5c3   : > { %v3428_v21 = vsub.f32 1.0, %v3427_v20  ;;  %5344 = vtanh.f32 %v8737_v51  ;;  %vm3446_vm1 = vweird.f32 %v3395_v35  ;;  %v3400_v20 = vadd.f32 %v8708_v55, %v3399_v17 }
 0x5c4   : > { %5346 = vtanh.f32 %v8739_v13  ;;  %v3453_v14 = vor.u32 1.1754944e-38, %v3452_v42  ;;  %vm3451_vm5 = vcmp.eq.f32.partialorder %v3450_v9, 8.507059e+37  ;;  %v3419_v2 = vsel %vm8770_vm3, %v8722_v5, %v3415_v45  ;;  %v8825_v9 = vld [vmem:[%s10243_s3 + $0x28] sm:$0xff]  ;;  %v8832_v45 = vld [vmem:[%s10243_s3 + $0x30] sm:$0xff] }
 0x5c5   : > { %v3429_v22 = vmul.f32 %v8727_v57, %v3428_v21  ;;  %5348 = vtanh.f32 %v8574_v28 }
 0x5c6   : > { %5350 = vtanh.f32 %v8546_v19 }
 0x5c7   : > { %v3430_v34 = vadd.f32 %v8727_v57, %v3429_v22  ;;  %v3423_v22 = vor.u32 1.1754944e-38, %v3422_v0  ;;  %v8846_v0 = vld [vmem:[%s10243_s3 + $0x40] sm:$0xff] }
 0x5c8   : > { %v5343_v63 = vpop.eup %5342 }
 0x5c9   : > { %v3442_v49 = vmul.f32 %v5343_v63, %v3395_v35  ;;  %vm3447_vm11 = vweird.f32 %v5343_v63  ;;  %v5345_v1 = vpop.eup %5344  ;;  %v3434_v25 = vsel %vm8755_vm12, %v8727_v57, %v3430_v34  ;;  %v3438_v35 = vor.u32 1.1754944e-38, %v3437_v60  ;;  %v8811_v60 = vld [vmem:[%s10243_s3 + $0x18] sm:$0xff] }
 0x5ca   : > { %v5347_v56 = vpop.eup %5346  ;;  %vm3448_vm2 = vmor %vm3446_vm1, %vm3447_vm11  ;;  %v3405_v57 = vand.u32 2147483647, %v8651_v18  ;;  %v3424_v46 = vsel %vm3421_vm8, %v3423_v22, %v3419_v2  ;;  %v8790_v18 = vld [vmem:[%s10243_s3] sm:$0xff]  ;;  %v8903_v2 = vperm.slane %v8388_v12, 5 }
 0x5cb   : > { %v3443_v54 = vsub.f32 1.0, %v3442_v49  ;;  %v3439_v39 = vsel %vm3436_vm9, %v3438_v35, %v3434_v25  ;;  %v5349_v49 = vpop.eup %5348  ;;  %v8867_v25 = vld [vmem:[%s10243_s3 + $0x58] sm:$0xff] }
 0x5cc   : > { %v3474_v5 = vmul.f32 %v5347_v56, %v3439_v39  ;;  %vm3406_vm15 = vcmp.eq.f32.partialorder %v3405_v57, 8.507059e+37  ;;  %v3473_v17 = vmul.f32 %v5349_v49, %v3424_v46  ;;  %v5351_v42 = vpop.eup %5350  ;;  %v8888_v56 = vld [vmem:[%s10243_s3 + $0x70] sm:$0xff]  ;;  %v1319_v39 = vmul.f32 %v8903_v2, %v10791_v29 }
 0x5cd   : > { %v3444_v27 = vmul.f32 %v5343_v63, %v3443_v54  ;;  %v3408_v54 = vor.u32 1.1754944e-38, %v3407_v15  ;;  %v1320_v46 = vmul.f32 %v8903_v2, %v10795_v59 }
 0x5cf   : > { %v3445_v50 = vadd.f32 %v5343_v63, %v3444_v27  ;;  %v8818_v27 = vld [vmem:[%s10243_s3 + $0x20] sm:$0xff] }
 0x5d1   : > { %v3449_v21 = vsel %vm3448_vm2, %v5343_v63, %v3445_v50  ;;  %v3404_v63 = vsel %vm3403_vm10, %v8708_v55, %v3400_v20  ;;  %v8797_v55 = vld [vmem:[%s10243_s3 + $0x8] sm:$0xff]  ;;  %v8860_v50 = vld [vmem:[%s10243_s3 + $0x50] sm:$0xff] }
 0x5d2   : > { %v3454_v58 = vsel %vm3451_vm5, %v3453_v14, %v3449_v21  ;;  %v3409_v34 = vsel %vm3406_vm15, %v3408_v54, %v3404_v63  ;;  %v8881_v20 = vld [vmem:[%s10243_s3 + $0x68] sm:$0xff]  ;;  %v8895_v14 = vld [vmem:[%s10243_s3 + $0x78] sm:$0xff]  ;;  %v8900_v21 = vperm.slane %v8382_v62, 5 }
 0x5d3   : > { %v3475_v37 = vmul.f32 %v5345_v1, %v3454_v58  ;;  %v3472_v41 = vmul.f32 %v5351_v42, %v3409_v34  ;;  %v8853_v1 = vld [vmem:[%s10243_s3 + $0x48] sm:$0xff]  ;;  %10874 = vst [vmem:[#allocation76_spill] sm:$0xff] %v8895_v14  ;;  %v8908_v58 = vperm.slane %v8396_v40, 5  ;;  %v1323_v42 = vmul.f32 %v8903_v2, %v10798_v31 }
 0x5d4   : > { %v1336_v57 = vmul.f32 %v8900_v21, %v10790_v48  ;;  %v1337_v12 = vmul.f32 %v8900_v21, %v10793_v16  ;;  %v10885_v16 = vld [vmem:[#allocation66_spill] sm:$0xff] }
 0x5d5   : > { %3504 = vmatpush.msra.mxu1 %v3475_v37  ;;  %v1369_v22 = vmul.f32 %v8908_v58, %v10792_v47  ;;  %v1374_v31 = vmul.f32 %v8908_v58, %v10804_v24 }
 0x5d6   : > { %v1352_v37 = vadd.f32 %v1336_v57, %v1319_v39  ;;  %v1353_v54 = vadd.f32 %v1337_v12, %v1320_v46  ;;  %v1324_v12 = vmul.f32 %v8903_v2, %v10802_v32 }
 0x5d7   : > { %3505 = vmatpush.msra.mxu1 %v3474_v5  ;;  %v1340_v5 = vmul.f32 %v8900_v21, %v10796_v6 }
 0x5d8   : > { %v1385_v62 = vadd.f32 %v1369_v22, %v1352_v37 }
 0x5d9   : > { %3506 = vmatpush.msra.mxu1 %v3473_v17  ;;  %v1370_v17 = vmul.f32 %v8908_v58, %v10797_v36  ;;  %v1356_v22 = vadd.f32 %v1340_v5, %v1323_v42 }
 0x5da   : > { %v1401_v49 = vadd.f32 %v1385_v62, %v10794_v52  ;;  %v1341_v62 = vmul.f32 %v8900_v21, %v10801_v33 }
 0x5db   : > { %3507 = vmatpush.msra.mxu1 %v3472_v41  ;;  %v1373_v41 = vmul.f32 %v8908_v58, %v10799_v8  ;;  %v1386_v39 = vadd.f32 %v1370_v17, %v1353_v54 }
 0x5dc   : > { %4895 = vmatmul.msk.f32.vlgmr.msra.gmra.mxu1 %vm1698_vm0, %v8790_v18  ;;  %v1357_v54 = vadd.f32 %v1341_v62, %v1324_v12 }
 0x5dd   : > { %v1389_v37 = vadd.f32 %v1373_v41, %v1356_v22 }
 0x5de   : > { %v1390_v42 = vadd.f32 %v1374_v31, %v1357_v54 }
 0x5df   : > { %v1405_v46 = vadd.f32 %v1389_v37, %v10803_v26  ;;  %v10878_v26 = vld [vmem:[#allocation8_spill] sm:$0xff] }
 0x5e0   : > { %v1321_v32 = vmul.f32 %v8903_v2, %v10878_v26  ;;  %v10881_v26 = vld [vmem:[#allocation12_spill] sm:$0xff] }
 0x5e4   : > { %4896 = vmatmul.msk.f32.gmra.mxu1 %vm1698_vm0, %v8797_v55 }
 0x5ec   : > { %4897 = vmatmul.msk.f32.gmra.mxu1 %vm1698_vm0, %v8804_v53 }
 0x5f4   : > { %4898 = vmatmul.msk.f32.gmra.mxu1 %vm1698_vm0, %v8811_v60 }
 0x5fc   : > { %4899 = vmatmul.msk.f32.gmra.mxu1 %vm1698_vm0, %v8818_v27 }
 0x604   : > { %4900 = vmatmul.msk.f32.gmra.mxu1 %vm1698_vm0, %v8825_v9 }
 0x60c   : > { %4901 = vmatmul.msk.f32.gmra.mxu1 %vm1698_vm0, %v8832_v45 }
 0x614   : > { %4902 = vmatmul.msk.f32.gmra.mxu1 %vm1698_vm0, %v8839_v7 }
 0x61c   : > { %4903 = vmatmul.msk.f32.gmra.mxu1 %vm1698_vm0, %v8846_v0 }
 0x624   : > { %4904 = vmatmul.msk.f32.gmra.mxu1 %vm1698_vm0, %v8853_v1 }
 0x62c   : > { %4905 = vmatmul.msk.f32.gmra.mxu1 %vm1698_vm0, %v8860_v50 }
 0x634   : > { %4906 = vmatmul.msk.f32.gmra.mxu1 %vm1698_vm0, %v8867_v25 }
 0x63c   : > { %4907 = vmatmul.msk.f32.gmra.mxu1 %vm1698_vm0, %v8874_v23 }
 0x644   : > { %4908 = vmatmul.msk.f32.gmra.mxu1 %vm1698_vm0, %v8881_v20 }
 0x64c   : > { %4909 = vmatmul.msk.f32.gmra.mxu1 %vm1698_vm0, %v8888_v56 }
 0x654   : > { %4910 = vmatmul.msk.f32.gmra.mxu1 %vm1698_vm0, %v8895_v14 }
 0x659   : > { %v3509_v35 = vpop.f32.mrf.mxu1 }
 0x65a   : > { %v3557_v40 = vadd.f32 %v3509_v35, %v1401_v49  ;;  %v1402_v35 = vadd.f32 %v1386_v39, %v10800_v44  ;;  %v1406_v39 = vadd.f32 %v1390_v42, %v10805_v61  ;;  %v10875_v42 = vld [vmem:[#allocation18_spill] sm:$0xff] }
 0x65c   : > { %v4911_v57 = vmul.f32 -1.442695, %v3557_v40 }
 0x65e   : > { %5352 = vpow2.f32 %v4911_v57 }
 0x661   : > { %v3512_v15 = vpop.f32.mrf.mxu1 }
 0x662   : > { %v3558_v49 = vadd.f32 %v3512_v15, %v1402_v35 }
 0x664   : > { %v4912_v5 = vmul.f32 -1.442695, %v3558_v49  ;;  %v5353_v41 = vpop.eup %5352 }
 0x665   : > { %v8940_v22 = vadd.f32 1.0, %v5353_v41  ;;  %v1338_v41 = vmul.f32 %v8900_v21, %v10875_v42 }
 0x667   : > { %v1354_v44 = vadd.f32 %v1338_v41, %v1321_v32  ;;  %vm3594_vm12 = vweird.f32 %v8940_v22 }
 0x669   : > { %v8914_v63 = vpop.f32.mrf.mxu1 }
 0x671   : > { %v8923_v34 = vpop.f32.mrf.mxu1 }
 0x679   : > { %v3521_v8 = vpop.f32.mrf.mxu1 }
 0x67a   : > { %v3561_v40 = vadd.f32 %v3521_v8, %v1405_v46 }
 0x67c   : > { %v4915_v17 = vmul.f32 -1.442695, %v3561_v40 }
 0x67e   : > { %5354 = vpow2.f32 %v4915_v17  ;;  %v1344_v17 = vmul.f32 %v8900_v21, %v10806_v10 }
 0x67f   : > { %5356 = vpow2.f32 %v4912_v5 }
 0x680   : > { %5358 = vrcp.f32 %v8940_v22 }
 0x681   : > { %v3524_v57 = vpop.f32.mrf.mxu1 }
 0x682   : > { %v3562_v15 = vadd.f32 %v3524_v57, %v1406_v39 }
 0x684   : > { %v5355_v35 = vpop.eup %5354  ;;  %v4916_v37 = vmul.f32 -1.442695, %v3562_v15  ;;  %v10876_v15 = vld [vmem:[#allocation60_spill] sm:$0xff] }
 0x685   : > { %v8943_v24 = vadd.f32 1.0, %v5355_v35  ;;  %v5357_v8 = vpop.eup %5356  ;;  %v1327_v35 = vmul.f32 %v8903_v2, %v10876_v15 }
 0x686   : > { %5360 = vpow2.f32 %v4916_v37  ;;  %v8946_v31 = vadd.f32 1.0, %v5357_v8  ;;  %v8950_v12 = vpop.eup %5358  ;;  %v10877_v37 = vld [vmem:[#allocation71_spill] sm:$0xff] }
 0x687   : > { %5362 = vrcp.f32 %v8943_v24  ;;  %v3590_v5 = vmul.f32 %v8950_v12, %v8940_v22  ;;  %v1377_v8 = vmul.f32 %v8908_v58, %v10877_v37  ;;  %v1360_v33 = vadd.f32 %v1344_v17, %v1327_v35  ;;  %v10879_v37 = vld [vmem:[#allocation65_spill] sm:$0xff]  ;;  %v10882_v35 = vld [vmem:[#allocation11_spill] sm:$0xff] }
 0x688   : > { %5364 = vrcp.f32 %v8946_v31  ;;  %v1345_v6 = vmul.f32 %v8900_v21, %v10879_v37  ;;  %v1322_v17 = vmul.f32 %v8903_v2, %v10881_v26  ;;  %v1339_v32 = vmul.f32 %v8900_v21, %v10882_v35 }
 0x689   : > { %v8948_v62 = vpop.f32.mrf.mxu1  ;;  %v3591_v61 = vsub.f32 1.0, %v3590_v5  ;;  %v1393_v36 = vadd.f32 %v1377_v8, %v1360_v33  ;;  %v10880_v5 = vld [vmem:[#allocation16_spill] sm:$0xff]  ;;  %v3676_v48 = vand.u32 2147483648, %v8943_v24  ;;  %vm3670_vm4 = vweird.f32 %v8943_v24 }
 0x68a   : > { %v1371_v59 = vmul.f32 %v8908_v58, %v10880_v5  ;;  %v10884_v8 = vld [vmem:[#allocation56_spill] sm:$0xff]  ;;  %v1378_v5 = vmul.f32 %v8908_v58, %v10885_v16  ;;  %vm3595_vm7 = vweird.f32 %v8950_v12  ;;  %v3674_v16 = vand.u32 2147483647, %v8943_v24 }
 0x68b   : > { %v3592_v41 = vmul.f32 %v8950_v12, %v3591_v61  ;;  %v1409_v33 = vadd.f32 %v1393_v36, %v10816_v3  ;;  %v1328_v37 = vmul.f32 %v8903_v2, %v10884_v8  ;;  %vm9027_vm13 = vmor %vm3594_vm12, %vm3595_vm7  ;;  %vm3609_vm10 = vweird.f32 %v8946_v31 }
 0x68c   : > { %v5361_v49 = vpop.eup %5360  ;;  %v1387_v47 = vadd.f32 %v1371_v59, %v1354_v44  ;;  %v1355_v59 = vadd.f32 %v1339_v32, %v1322_v17  ;;  %v10889_v32 = vld [vmem:[#allocation17_spill] sm:$0xff]  ;;  %vm3675_vm14 = vcmp.eq.f32.partialorder %v3674_v16, 8.507059e+37 }
 0x68d   : > { %v8952_v46 = vpop.eup %5362  ;;  %v8955_v40 = vadd.f32 1.0, %v5361_v49  ;;  %v1361_v14 = vadd.f32 %v1345_v6, %v1328_v37  ;;  %v3593_v36 = vadd.f32 %v8950_v12, %v3592_v41  ;;  %v3598_v6 = vand.u32 2147483647, %v8940_v22 }
 0x68e   : > { %v3666_v54 = vmul.f32 %v8952_v46, %v8943_v24  ;;  %v8972_v49 = vpop.eup %5364  ;;  %vm3671_vm6 = vweird.f32 %v8952_v46  ;;  %v3677_v24 = vor.u32 1.1754944e-38, %v3676_v48  ;;  %v1342_v41 = vmul.f32 %v8900_v21, %v10889_v32  ;;  %v10895_v32 = vld [vmem:[#allocation69_spill] sm:$0xff] }
 0x68f   : > { %5366 = vrcp.f32 %v8955_v40  ;;  %v3605_v42 = vmul.f32 %v8972_v49, %v8946_v31  ;;  %vm9008_vm11 = vmor %vm3670_vm4, %vm3671_vm6  ;;  %v3597_v48 = vsel %vm9027_vm13, %v8950_v12, %v3593_v36  ;;  %vm3599_vm3 = vcmp.eq.f32.partialorder %v3598_v6, 8.507059e+37 }
 0x690   : > { %v3667_v39 = vsub.f32 1.0, %v3666_v54  ;;  %vm3610_vm2 = vweird.f32 %v8972_v49  ;;  %vm3685_vm9 = vweird.f32 %v8955_v40  ;;  %v3691_v16 = vand.u32 2147483648, %v8955_v40 }
 0x691   : > { %v8966_v57 = vpop.f32.mrf.mxu1  ;;  %v3606_v61 = vsub.f32 1.0, %v3605_v42  ;;  %v1394_v42 = vadd.f32 %v1378_v5, %v1361_v14  ;;  %vm9066_vm8 = vmor %vm3609_vm10, %vm3610_vm2 }
 0x692   : > { %v3668_v54 = vmul.f32 %v8952_v46, %v3667_v39  ;;  %v10883_v39 = vld [vmem:[#allocation10_spill] sm:$0xff] }
 0x693   : > { %v8994_v52 = vmul.f32 %v8908_v58, %v10883_v39 }
 0x694   : > { %v3669_v35 = vadd.f32 %v8952_v46, %v3668_v54  ;;  %v10888_v54 = vld [vmem:[#allocation9_spill] sm:$0xff] }
 0x695   : > { %v8976_v10 = vpop.eup %5366  ;;  %v1325_v17 = vmul.f32 %v8903_v2, %v10888_v54  ;;  %v1410_v54 = vadd.f32 %v1394_v42, %v10895_v32  ;;  %v3615_v32 = vand.u32 2147483648, %v8946_v31 }
 0x696   : > { %v3681_v15 = vmul.f32 %v8976_v10, %v8955_v40  ;;  %v3673_v37 = vsel %vm9008_vm11, %v8952_v46, %v3669_v35  ;;  %v3607_v46 = vmul.f32 %v8972_v49, %v3606_v61  ;;  %v10894_v35 = vld [vmem:[#allocation21_spill] sm:$0xff]  ;;  %vm3686_vm1 = vweird.f32 %v8976_v10 }
 0x697   : > { %vm9048_vm5 = vmor %vm3685_vm9, %vm3686_vm1 }
 0x698   : > { %v3682_v26 = vsub.f32 1.0, %v3681_v15  ;;  %v3600_v15 = vand.u32 2147483648, %v8940_v22  ;;  %v10893_v22 = vld [vmem:[#allocation14_spill] sm:$0xff]  ;;  %v3608_v42 = vadd.f32 %v8972_v49, %v3607_v46 }
 0x699   : > { %v3533_v29 = vpop.f32.mrf.mxu1  ;;  %v1343_v5 = vmul.f32 %v8900_v21, %v10893_v22 }
 0x69a   : > { %v3565_v39 = vadd.f32 %v3533_v29, %v1409_v33  ;;  %v3683_v29 = vmul.f32 %v8976_v10, %v3682_v26  ;;  %v10890_v33 = vld [vmem:[#allocation15_spill] sm:$0xff]  ;;  %v3601_v44 = vor.u32 1.1754944e-38, %v3600_v15 }
 0x69b   : > { %v1326_v14 = vmul.f32 %v8903_v2, %v10890_v33  ;;  %v3678_v33 = vsel %vm3675_vm14, %v3677_v24, %v3673_v37  ;;  %v3689_v37 = vand.u32 2147483647, %v8955_v40 }
 0x69c   : > { %5368 = vtanh.f32 %v3565_v39  ;;  %v1376_v39 = vmul.f32 %v8908_v58, %v10894_v35  ;;  %v3684_v22 = vadd.f32 %v8976_v10, %v3683_v29  ;;  %v3602_v12 = vsel %vm3599_vm3, %v3601_v44, %v3597_v48 }
 0x69d   : > { %v3805_v36 = vmul.f32 %v3678_v33, %v8546_v19  ;;  %v1375_v29 = vmul.f32 %v8908_v58, %v10831_v43  ;;  %v1359_v24 = vadd.f32 %v1343_v5, %v1326_v14  ;;  %v3613_v19 = vand.u32 2147483647, %v8946_v31 }
 0x69e   : > { %v3688_v40 = vsel %vm9048_vm5, %v8976_v10, %v3684_v22  ;;  %v3692_v33 = vor.u32 1.1754944e-38, %v3691_v16  ;;  %v1358_v5 = vadd.f32 %v1342_v41, %v1325_v17  ;;  %v3612_v31 = vsel %vm9066_vm8, %v8972_v49, %v3608_v42  ;;  %v10900_v22 = vld [vmem:[#allocation32_spill] sm:$0xff]  ;;  %v10901_v17 = vld [vmem:[#allocation25_spill] sm:$0xff] }
 0x69f   : > { %v1392_v46 = vadd.f32 %v1376_v39, %v1359_v24  ;;  %vm3690_vm15 = vcmp.eq.f32.partialorder %v3689_v37, 8.507059e+37  ;;  %v3616_v44 = vor.u32 1.1754944e-38, %v3615_v32  ;;  %vm3614_vm6 = vcmp.eq.f32.partialorder %v3613_v19, 8.507059e+37  ;;  %v10903_v19 = vld [vmem:[#allocation50_spill] sm:$0xff] }
 0x6a1   : > { %v3536_v8 = vpop.f32.mrf.mxu1  ;;  %v1408_v41 = vadd.f32 %v1392_v46, %v10901_v17  ;;  %v3617_v39 = vsel %vm3614_vm6, %v3616_v44, %v3612_v31  ;;  %v10906_v46 = vld [vmem:[#allocation46_spill] sm:$0xff]  ;;  %v10907_v44 = vld [vmem:[#allocation40_spill] sm:$0xff] }
 0x6a2   : > { %v5369_v26 = vpop.eup %5368  ;;  %v3566_v61 = vadd.f32 %v3536_v8, %v1410_v54  ;;  %v1403_v8 = vadd.f32 %v1387_v47, %v10832_v38  ;;  %v1388_v54 = vadd.f32 %v8994_v52, %v1355_v59  ;;  %v3693_v52 = vsel %vm3690_vm15, %v3692_v33, %v3688_v40  ;;  %v10905_v33 = vld [vmem:[#allocation47_spill] sm:$0xff] }
 0x6a3   : > { %v3809_v15 = vmul.f32 %v5369_v26, %v3602_v12  ;;  %v1391_v59 = vadd.f32 %v1375_v29, %v1358_v5  ;;  %v3806_v49 = vmul.f32 %v3693_v52, %v8574_v28  ;;  %v3564_v42 = vadd.f32 %v8966_v57, %v1408_v41  ;;  %v10904_v28 = vld [vmem:[#allocation43_spill] sm:$0xff] }
 0x6a4   : > { %5370 = vtanh.f32 %v3566_v61  ;;  %v3559_v10 = vadd.f32 %v8914_v63, %v1403_v8  ;;  %v1404_v47 = vadd.f32 %v1388_v54, %v10900_v22  ;;  %v10902_v61 = vld [vmem:[#allocation39_spill] sm:$0xff]  ;;  %v1331_v40 = vmul.f32 %v8903_v2, %v10903_v19  ;;  %v10923_v19 = vld [vmem:[#allocation48_spill] sm:$0xff] }
 0x6a5   : > { %v9055_v48 = vadd.f32 %v3809_v15, %v3805_v36  ;;  %v1407_v36 = vadd.f32 %v1391_v59, %v10902_v61  ;;  %v4918_v29 = vmul.f32 -1.442695, %v3564_v42  ;;  %v1348_v8 = vmul.f32 %v8900_v21, %v10904_v28  ;;  %v10908_v59 = vld [vmem:[#allocation54_spill] sm:$0xff]  ;;  %v10922_v28 = vld [vmem:[#allocation57_spill] sm:$0xff] }
 0x6a6   : > { %v3560_v12 = vadd.f32 %v8923_v34, %v1404_v47  ;;  %v4913_v63 = vmul.f32 -1.442695, %v3559_v10  ;;  %v1332_v14 = vmul.f32 %v8903_v2, %v10905_v33  ;;  %v1381_v31 = vmul.f32 %v8908_v58, %v10906_v46 }
 0x6a7   : > { %v3563_v32 = vadd.f32 %v8948_v62, %v1407_v36  ;;  %v1364_v54 = vadd.f32 %v1348_v8, %v1331_v40  ;;  %v1349_v52 = vmul.f32 %v8900_v21, %v10907_v44  ;;  %v10911_v40 = vld [vmem:[#allocation44_spill] sm:$0xff]  ;;  %v10921_v44 = vld [vmem:[#allocation41_spill] sm:$0xff] }
 0x6a8   : > { %v4914_v6 = vmul.f32 -1.442695, %v3560_v12  ;;  %5372 = vpow2.f32 %v4913_v63  ;;  %v1333_v8 = vmul.f32 %v8903_v2, %v10911_v40 }
 0x6a9   : > { %v9075_v26 = vpop.f32.mrf.mxu1  ;;  %v4917_v24 = vmul.f32 -1.442695, %v3563_v32  ;;  %v1365_v36 = vadd.f32 %v1349_v52, %v1332_v14 }
 0x6aa   : > { %v5371_v16 = vpop.eup %5370  ;;  %5374 = vpow2.f32 %v4914_v6 }
 0x6ab   : > { %v3810_v15 = vmul.f32 %v5371_v16, %v3617_v39  ;;  %5376 = vpow2.f32 %v4918_v29  ;;  %v1382_v16 = vmul.f32 %v8908_v58, %v10908_v59  ;;  %v1397_v39 = vadd.f32 %v1381_v31, %v1364_v54  ;;  %v10910_v29 = vld [vmem:[#allocation59_spill] sm:$0xff] }
 0x6ac   : > { %5378 = vpow2.f32 %v4917_v24  ;;  %v10913_v31 = vld [vmem:[#allocation51_spill] sm:$0xff] }
 0x6ad   : > { %v9083_v37 = vadd.f32 %v3810_v15, %v3806_v49  ;;  %v10909_v15 = vld [vmem:[#allocation61_spill] sm:$0xff]  ;;  %v1398_v32 = vadd.f32 %v1382_v16, %v1365_v36 }
 0x6ae   : > { %v5373_v57 = vpop.eup %5372  ;;  %v1413_v63 = vadd.f32 %v1397_v39, %v10909_v15  ;;  %v10915_v39 = vld [vmem:[#allocation58_spill] sm:$0xff]  ;;  %v10918_v15 = vld [vmem:[#allocation52_spill] sm:$0xff] }
 0x6af   : > { %v9093_v5 = vadd.f32 1.0, %v5373_v57  ;;  %v1414_v24 = vadd.f32 %v1398_v32, %v10910_v29  ;;  %v1329_v36 = vmul.f32 %v8903_v2, %v10915_v39 }
 0x6b0   : > { %v5375_v62 = vpop.eup %5374 }
 0x6b1   : > { %v9085_v34 = vpop.f32.mrf.mxu1  ;;  %v5377_v47 = vpop.eup %5376  ;;  %v9101_v41 = vadd.f32 1.0, %v5375_v62  ;;  %5380 = vrcp.f32 %v9093_v5  ;;  %v10912_v62 = vld [vmem:[#allocation37_spill] sm:$0xff]  ;;  %vm3624_vm4 = vweird.f32 %v9093_v5 }
 0x6b2   : > { %v5379_v12 = vpop.eup %5378  ;;  %v9104_v49 = vadd.f32 1.0, %v5377_v47  ;;  %v1350_v14 = vmul.f32 %v8900_v21, %v10912_v62  ;;  %v1383_v47 = vmul.f32 %v8908_v58, %v10913_v31  ;;  %v10917_v62 = vld [vmem:[#allocation62_spill] sm:$0xff] }
 0x6b3   : > { %v9107_v42 = vadd.f32 1.0, %v5379_v12  ;;  %5382 = vrcp.f32 %v9101_v41  ;;  %v1380_v29 = vmul.f32 %v8908_v58, %v10917_v62  ;;  %v1351_v62 = vmul.f32 %v8900_v21, %v10921_v44 }
 0x6b4   : > { %5384 = vrcp.f32 %v9104_v49  ;;  %v1366_v32 = vadd.f32 %v1350_v14, %v1333_v8  ;;  %v10920_v14 = vld [vmem:[#allocation42_spill] sm:$0xff]  ;;  %vm3639_vm11 = vweird.f32 %v9101_v41  ;;  %vm3715_vm3 = vweird.f32 %v9104_v49 }
 0x6b5   : > { %5386 = vrcp.f32 %v9107_v42  ;;  %vm3700_vm9 = vweird.f32 %v9107_v42 }
 0x6b6   : > { %v1399_v39 = vadd.f32 %v1383_v47, %v1366_v32 }
 0x6b7   : > { %v9119_v52 = vpop.eup %5380 }
 0x6b8   : > { %v3620_v31 = vmul.f32 %v9119_v52, %v9093_v5  ;;  %vm3625_vm7 = vweird.f32 %v9119_v52 }
 0x6b9   : > { %v3545_v10 = vpop.f32.mrf.mxu1  ;;  %v9125_v40 = vpop.eup %5382  ;;  %vm9188_vm1 = vmor %vm3624_vm4, %vm3625_vm7 }
 0x6ba   : > { %v3569_v6 = vadd.f32 %v3545_v10, %v1413_v63  ;;  %v10914_v10 = vld [vmem:[#allocation55_spill] sm:$0xff]  ;;  %v3635_v33 = vmul.f32 %v9125_v40, %v9101_v41  ;;  %vm3640_vm12 = vweird.f32 %v9125_v40 }
 0x6bb   : > { %v1330_v16 = vmul.f32 %v8903_v2, %v10914_v10  ;;  %v1346_v10 = vmul.f32 %v8900_v21, %v10918_v15  ;;  %vm9200_vm2 = vmor %vm3639_vm11, %vm3640_vm12 }
 0x6bc   : > { %v4919_v12 = vmul.f32 -1.442695, %v3569_v6  ;;  %v10919_v6 = vld [vmem:[#allocation64_spill] sm:$0xff]  ;;  %v3636_v61 = vsub.f32 1.0, %v3635_v33 }
 0x6bd   : > { %v1379_v59 = vmul.f32 %v8908_v58, %v10919_v6  ;;  %v1362_v15 = vadd.f32 %v1346_v10, %v1329_v36  ;;  %v1415_v6 = vadd.f32 %v1399_v39, %v10922_v28 }
 0x6be   : > { %5388 = vpow2.f32 %v4919_v12  ;;  %v3621_v12 = vsub.f32 1.0, %v3620_v31 }
 0x6c1   : > { %v3548_v57 = vpop.f32.mrf.mxu1 }
 0x6c2   : > { %v3570_v54 = vadd.f32 %v3548_v57, %v1414_v24  ;;  %v10916_v24 = vld [vmem:[#allocation49_spill] sm:$0xff] }
 0x6c3   : > { %v1347_v57 = vmul.f32 %v8900_v21, %v10916_v24  ;;  %v1334_v24 = vmul.f32 %v8903_v2, %v10920_v14 }
 0x6c4   : > { %v4920_v63 = vmul.f32 -1.442695, %v3570_v54  ;;  %v9137_v54 = vpop.eup %5384 }
 0x6c5   : > { %v1363_v8 = vadd.f32 %v1347_v57, %v1330_v16  ;;  %v9143_v46 = vpop.eup %5386  ;;  %v1384_v16 = vmul.f32 %v8908_v58, %v10923_v19  ;;  %v3711_v2 = vmul.f32 %v9137_v54, %v9104_v49  ;;  %v1395_v57 = vadd.f32 %v1379_v59, %v1362_v15 }
 0x6c6   : > { %5390 = vpow2.f32 %v4920_v63  ;;  %v3696_v44 = vmul.f32 %v9143_v46, %v9107_v42  ;;  %v1367_v14 = vadd.f32 %v1351_v62, %v1334_v24  ;;  %v5389_v39 = vpop.eup %5388  ;;  %v3622_v19 = vmul.f32 %v9119_v52, %v3621_v12 }
 0x6c7   : > { %v1396_v47 = vadd.f32 %v1380_v29, %v1363_v8  ;;  %v1411_v10 = vadd.f32 %v1395_v57, %v10859_v11  ;;  %v3712_v58 = vsub.f32 1.0, %v3711_v2  ;;  %v3637_v62 = vmul.f32 %v9125_v40, %v3636_v61 }
 0x6c8   : > { %v1400_v63 = vadd.f32 %v1384_v16, %v1367_v14  ;;  %v3697_v59 = vsub.f32 1.0, %v3696_v44  ;;  %v9160_v33 = vadd.f32 1.0, %v5389_v39  ;;  %v3628_v61 = vand.u32 2147483647, %v9093_v5 }
 0x6c9   : > { %v3551_v32 = vpop.f32.mrf.mxu1  ;;  %v1412_v29 = vadd.f32 %v1396_v47, %v10860_v30  ;;  %v3567_v31 = vadd.f32 %v9075_v26, %v1411_v10  ;;  %v3713_v47 = vmul.f32 %v9137_v54, %v3712_v58  ;;  %v3623_v26 = vadd.f32 %v9119_v52, %v3622_v19 }
 0x6ca   : > { %v3571_v21 = vadd.f32 %v3551_v32, %v1415_v6  ;;  %v1416_v24 = vadd.f32 %v1400_v63, %v10861_v4  ;;  %v3698_v44 = vmul.f32 %v9143_v46, %v3697_v59  ;;  %v3630_v16 = vand.u32 2147483648, %v9093_v5 }
 0x6cb   : > { %v3568_v15 = vadd.f32 %v9085_v34, %v1412_v29  ;;  %v3638_v12 = vadd.f32 %v9125_v40, %v3637_v62  ;;  %vm3716_vm13 = vweird.f32 %v9137_v54  ;;  %v3645_v57 = vand.u32 2147483648, %v9101_v41 }
 0x6cc   : > { %v4921_v36 = vmul.f32 -1.442695, %v3571_v21  ;;  %v5391_v8 = vpop.eup %5390  ;;  %v3714_v21 = vadd.f32 %v9137_v54, %v3713_v47  ;;  %vm3701_vm14 = vweird.f32 %v9143_v46  ;;  %v3721_v10 = vand.u32 2147483648, %v9104_v49  ;;  %vm9209_vm5 = vmor %vm3715_vm3, %vm3716_vm13 }
 0x6cd   : > { %v9164_v6 = vadd.f32 1.0, %v5391_v8  ;;  %v3699_v39 = vadd.f32 %v9143_v46, %v3698_v44  ;;  %v3706_v63 = vand.u32 2147483648, %v9107_v42  ;;  %v3643_v5 = vand.u32 2147483647, %v9101_v41  ;;  %vm9221_vm10 = vmor %vm3700_vm9, %vm3701_vm14 }
 0x6ce   : > { %5392 = vpow2.f32 %v4921_v36  ;;  %v3719_v58 = vand.u32 2147483647, %v9104_v49  ;;  %v3704_v62 = vand.u32 2147483647, %v9107_v42  ;;  %v3631_v49 = vor.u32 1.1754944e-38, %v3630_v16 }
 0x6cf   : > { %5394 = vtanh.f32 %v3567_v31  ;;  %v3718_v47 = vsel %vm9209_vm5, %v9137_v54, %v3714_v21  ;;  %v3722_v42 = vor.u32 1.1754944e-38, %v3721_v10  ;;  %vm3629_vm8 = vcmp.eq.f32.partialorder %v3628_v61, 8.507059e+37 }
 0x6d0   : > { %5396 = vtanh.f32 %v3568_v15  ;;  %v3627_v15 = vsel %vm9188_vm1, %v9119_v52, %v3623_v26  ;;  %v3703_v26 = vsel %vm9221_vm10, %v9143_v46, %v3699_v39  ;;  %vm3644_vm15 = vcmp.eq.f32.partialorder %v3643_v5, 8.507059e+37 }
 0x6d1   : > { %v3554_v14 = vpop.f32.mrf.mxu1  ;;  %5398 = vrcp.f32 %v9160_v33  ;;  %v3632_v16 = vsel %vm3629_vm8, %v3631_v49, %v3627_v15  ;;  %vm3720_vm6 = vcmp.eq.f32.partialorder %v3719_v58, 8.507059e+37  ;;  %vm3705_vm4 = vcmp.eq.f32.partialorder %v3704_v62, 8.507059e+37 }
 0x6d2   : > { %v3572_v32 = vadd.f32 %v3554_v14, %v1416_v24  ;;  %5400 = vrcp.f32 %v9164_v6  ;;  %v3642_v14 = vsel %vm9200_vm2, %v9125_v40, %v3638_v12  ;;  %v3723_v12 = vsel %vm3720_vm6, %v3722_v42, %v3718_v47 }
 0x6d3   : > { %v3808_v10 = vmul.f32 %v3723_v12, %v8737_v51  ;;  %vm3765_vm7 = vweird.f32 %v9164_v6  ;;  %vm3750_vm3 = vweird.f32 %v9160_v33 }
 0x6d4   : > { %v5393_v34 = vpop.eup %5392  ;;  %v4922_v2 = vmul.f32 -1.442695, %v3572_v32  ;;  %v3646_v32 = vor.u32 1.1754944e-38, %v3645_v57 }
 0x6d5   : > { %v9177_v19 = vadd.f32 1.0, %v5393_v34  ;;  %v5395_v29 = vpop.eup %5394  ;;  %v3707_v34 = vor.u32 1.1754944e-38, %v3706_v63 }
 0x6d6   : > { %5402 = vpow2.f32 %v4922_v2  ;;  %v5397_v31 = vpop.eup %5396  ;;  %v3647_v40 = vsel %vm3644_vm15, %v3646_v32, %v3642_v14  ;;  %v3811_v57 = vmul.f32 %v5395_v29, %v3632_v16 }
 0x6d7   : > { %5404 = vrcp.f32 %v9177_v19  ;;  %v9217_v24 = vpop.eup %5398  ;;  %v3708_v21 = vsel %vm3705_vm4, %v3707_v34, %v3703_v26  ;;  %v3812_v36 = vmul.f32 %v5397_v31, %v3647_v40  ;;  %vm3780_vm13 = vweird.f32 %v9177_v19 }
 0x6d8   : > { %v9231_v52 = vpop.eup %5400  ;;  %v3746_v63 = vmul.f32 %v9217_v24, %v9160_v33  ;;  %v3807_v8 = vmul.f32 %v3708_v21, %v8739_v13  ;;  %v3769_v13 = vand.u32 2147483647, %v9164_v6  ;;  %v3784_v42 = vand.u32 2147483647, %v9177_v19 }
 0x6d9   : > { %v3761_v46 = vmul.f32 %v9231_v52, %v9164_v6  ;;  %v9246_v5 = vadd.f32 %v3812_v36, %v3808_v10  ;;  %vm3766_vm11 = vweird.f32 %v9231_v52  ;;  %v3786_v26 = vand.u32 2147483648, %v9177_v19 }
 0x6da   : > { %v9248_v31 = vadd.f32 %v3811_v57, %v3807_v8  ;;  %v3747_v15 = vsub.f32 1.0, %v3746_v63  ;;  %v3771_v40 = vand.u32 2147483648, %v9164_v6  ;;  %vm3751_vm2 = vweird.f32 %v9217_v24  ;;  %vm9279_vm5 = vmor %vm3765_vm7, %vm3766_vm11 }
 0x6db   : > { %v3762_v58 = vsub.f32 1.0, %v3761_v46  ;;  %vm3785_vm8 = vcmp.eq.f32.partialorder %v3784_v42, 8.507059e+37  ;;  %v3756_v10 = vand.u32 2147483648, %v9160_v33  ;;  %vm3752_vm6 = vmor %vm3750_vm3, %vm3751_vm2  ;;  %vm3770_vm4 = vcmp.eq.f32.partialorder %v3769_v13, 8.507059e+37  ;;  %v10940_v42 = vld [vmem:[#allocation24_spill] sm:$0xff] }
 0x6dc   : > { %v5403_v44 = vpop.eup %5402  ;;  %v3748_v14 = vmul.f32 %v9217_v24, %v3747_v15 }
 0x6dd   : > { %v9236_v2 = vpop.eup %5404  ;;  %v3744_v54 = vadd.f32 1.0, %v5403_v44  ;;  %v3763_v51 = vmul.f32 %v9231_v52, %v3762_v58  ;;  %v3772_v58 = vor.u32 1.1754944e-38, %v3771_v40 }
 0x6de   : > { %v3776_v61 = vmul.f32 %v9236_v2, %v9177_v19  ;;  %vm3781_vm12 = vweird.f32 %v9236_v2 }
 0x6df   : > { %5406 = vrcp.f32 %v3744_v54  ;;  %v3801_v47 = vand.u32 2147483648, %v3744_v54  ;;  %v3799_v44 = vand.u32 2147483647, %v3744_v54  ;;  %v3764_v34 = vadd.f32 %v9231_v52, %v3763_v51  ;;  %vm9264_vm1 = vmor %vm3780_vm13, %vm3781_vm12 }
 0x6e0   : > { %v3777_v39 = vsub.f32 1.0, %v3776_v61  ;;  %5408 = vtanh.f32 %v9246_v5  ;;  %vm3795_vm9 = vweird.f32 %v3744_v54  ;;  %v3749_v61 = vadd.f32 %v9217_v24, %v3748_v14 }
 0x6e1   : > { %5410 = vtanh.f32 %v9248_v31  ;;  %v3802_v57 = vor.u32 1.1754944e-38, %v3801_v47  ;;  %vm3800_vm15 = vcmp.eq.f32.partialorder %v3799_v44, 8.507059e+37  ;;  %v3768_v6 = vsel %vm9279_vm5, %v9231_v52, %v3764_v34  ;;  %v10942_v34 = vld [vmem:[#allocation20_spill] sm:$0xff] }
 0x6e2   : > { %v3778_v59 = vmul.f32 %v9236_v2, %v3777_v39  ;;  %5412 = vtanh.f32 %v9083_v37  ;;  %v3753_v15 = vsel %vm3752_vm6, %v9217_v24, %v3749_v61  ;;  %v3757_v51 = vor.u32 1.1754944e-38, %v3756_v10  ;;  %v10944_v61 = vld [vmem:[#allocation22_spill] sm:$0xff]  ;;  %v10946_v10 = vld [vmem:[#allocation35_spill] sm:$0xff] }
 0x6e3   : > { %5414 = vtanh.f32 %v9055_v48 }
 0x6e4   : > { %v3779_v49 = vadd.f32 %v9236_v2, %v3778_v59 }
 0x6e5   : > { %v5407_v62 = vpop.eup %5406 }
 0x6e6   : > { %v3791_v41 = vmul.f32 %v5407_v62, %v3744_v54  ;;  %vm3796_vm14 = vweird.f32 %v5407_v62  ;;  %v5409_v12 = vpop.eup %5408  ;;  %v3783_v19 = vsel %vm9264_vm1, %v9236_v2, %v3779_v49  ;;  %v3787_v54 = vor.u32 1.1754944e-38, %v3786_v26 }
 0x6e7   : > { %v5411_v46 = vpop.eup %5410  ;;  %vm3797_vm10 = vmor %vm3795_vm9, %vm3796_vm14  ;;  %v3754_v2 = vand.u32 2147483647, %v9160_v33 }
 0x6e8   : > { %v3792_v29 = vsub.f32 1.0, %v3791_v41  ;;  %v3788_v8 = vsel %vm3785_vm8, %v3787_v54, %v3783_v19  ;;  %v3773_v41 = vsel %vm3770_vm4, %v3772_v58, %v3768_v6 }
 0x6e9   : > { %v3823_v52 = vmul.f32 %v5411_v46, %v3788_v8  ;;  %vm3755_vm7 = vcmp.eq.f32.partialorder %v3754_v2, 8.507059e+37  ;;  %v10947_v8 = vld [vmem:[#allocation38_spill] sm:$0xff] }
 0x6ea   : > { %v3793_v32 = vmul.f32 %v5407_v62, %v3792_v29  ;;  %v3758_v29 = vsel %vm3755_vm7, %v3757_v51, %v3753_v15  ;;  %v10948_v15 = vld [vmem:[#allocation23_spill] sm:$0xff] }
 0x6ec   : > { %v3794_v21 = vadd.f32 %v5407_v62, %v3793_v32  ;;  %v10941_v32 = vld [vmem:[#allocation34_spill] sm:$0xff] }
 0x6ee   : > { %v3798_v39 = vsel %vm3797_vm10, %v5407_v62, %v3794_v21  ;;  %v5413_v62 = vpop.eup %5412  ;;  %v10943_v21 = vld [vmem:[#allocation29_spill] sm:$0xff] }
 0x6ef   : > { %v3803_v63 = vsel %vm3800_vm15, %v3802_v57, %v3798_v39  ;;  %v3822_v49 = vmul.f32 %v5413_v62, %v3773_v41  ;;  %v5415_v14 = vpop.eup %5414  ;;  %v10945_v57 = vld [vmem:[#allocation19_spill] sm:$0xff]  ;;  %v10949_v41 = vld [vmem:[#allocation13_spill] sm:$0xff] }
 0x6f0   : > { %v3824_v59 = vmul.f32 %v5409_v12, %v3803_v63  ;;  %v3821_v47 = vmul.f32 %v5415_v14, %v3758_v29  ;;  %v10950_v29 = vld [vmem:[#allocation45_spill] sm:$0xff] }
 0x6f1   : > { %v10951_v14 = vld [vmem:[#allocation33_spill] sm:$0xff] }
 0x6f2   : > { %3853 = vmatpush.msrb.mxu2 %v3824_v59 }
 0x6f4   : > { %3854 = vmatpush.msrb.mxu2 %v3823_v52 }
 0x6f6   : > { %3855 = vmatpush.msrb.mxu2 %v3822_v49 }
 0x6f8   : > { %3856 = vmatpush.msrb.mxu2 %v3821_v47 }
 0x6f9   : > { %4923 = vmatmul.msk.f32.vlgmr.msrb.gmra.mxu2 %vm1698_vm0, %v8790_v18  ;;  %v10936_v18 = vld [vmem:[#allocation76_spill] sm:$0xff] }
 0x701   : > { %4924 = vmatmul.msk.f32.gmra.mxu2 %vm1698_vm0, %v8797_v55 }
 0x709   : > { %4925 = vmatmul.msk.f32.gmra.mxu2 %vm1698_vm0, %v8804_v53 }
 0x711   : > { %4926 = vmatmul.msk.f32.gmra.mxu2 %vm1698_vm0, %v8811_v60  ;;  %v9329_v60 = vld [vmem:[%s6151_s21 + $0x8] sm:$0xff] }
 0x719   : > { %4927 = vmatmul.msk.f32.gmra.mxu2 %vm1698_vm0, %v8818_v27  ;;  %v9332_v27 = vperm.slane %v9329_v60, 6 }
 0x71b   : > { %v1453_v26 = vmul.f32 %v9332_v27, %v10940_v42  ;;  %v1456_v19 = vmul.f32 %v9332_v27, %v10943_v21  ;;  %v1457_v62 = vmul.f32 %v9332_v27, %v10948_v15 }
 0x721   : > { %4928 = vmatmul.msk.f32.gmra.mxu2 %vm1698_vm0, %v8825_v9  ;;  %v9335_v9 = vld [vmem:[%s6151_s21] sm:$0xff] }
 0x729   : > { %4929 = vmatmul.msk.f32.gmra.mxu2 %vm1698_vm0, %v8832_v45  ;;  %v9338_v45 = vperm.slane %v9335_v9, 6 }
 0x72b   : > { %v1436_v16 = vmul.f32 %v9338_v45, %v10942_v34  ;;  %v1439_v54 = vmul.f32 %v9338_v45, %v10945_v57  ;;  %v1440_v51 = vmul.f32 %v9338_v45, %v10949_v41  ;;  %v10964_v41 = vld [vmem:[#allocation66_spill] sm:$0xff] }
 0x72d   : > { %v1469_v12 = vadd.f32 %v1453_v26, %v1436_v16  ;;  %v1472_v63 = vadd.f32 %v1456_v19, %v1439_v54  ;;  %v10952_v26 = vld [vmem:[#allocation31_spill] sm:$0xff] }
 0x731   : > { %4930 = vmatmul.msk.f32.gmra.mxu2 %vm1698_vm0, %v8839_v7  ;;  %v10937_v7 = vld [vmem:[#allocation30_spill] sm:$0xff] }
 0x739   : > { %4931 = vmatmul.msk.f32.gmra.mxu2 %vm1698_vm0, %v8846_v0  ;;  %v1452_v0 = vmul.f32 %v9332_v27, %v10937_v7 }
 0x741   : > { %4932 = vmatmul.msk.f32.gmra.mxu2 %vm1698_vm0, %v8853_v1  ;;  %v9343_v1 = vld [vmem:[%s6151_s21 + $0x10] sm:$0xff] }
 0x749   : > { %4933 = vmatmul.msk.f32.gmra.mxu2 %vm1698_vm0, %v8860_v50  ;;  %v9346_v50 = vperm.slane %v9343_v1, 6 }
 0x74b   : > { %v1486_v46 = vmul.f32 %v9346_v50, %v10944_v61  ;;  %v1489_v39 = vmul.f32 %v9346_v50, %v10946_v10  ;;  %v1490_v47 = vmul.f32 %v9346_v50, %v10951_v14 }
 0x74d   : > { %v1502_v2 = vadd.f32 %v1486_v46, %v1469_v12  ;;  %v1505_v59 = vadd.f32 %v1489_v39, %v1472_v63 }
 0x74f   : > { %v1518_v58 = vadd.f32 %v1502_v2, %v10947_v8  ;;  %v1521_v49 = vadd.f32 %v1505_v59, %v10950_v29 }
 0x751   : > { %4934 = vmatmul.msk.f32.gmra.mxu2 %vm1698_vm0, %v8867_v25  ;;  %v10938_v25 = vld [vmem:[#allocation26_spill] sm:$0xff] }
 0x759   : > { %4935 = vmatmul.msk.f32.gmra.mxu2 %vm1698_vm0, %v8874_v23  ;;  %v1435_v23 = vmul.f32 %v9338_v45, %v10938_v25 }
 0x75b   : > { %v1468_v33 = vadd.f32 %v1452_v0, %v1435_v23  ;;  %v1473_v0 = vadd.f32 %v1457_v62, %v1440_v51 }
 0x761   : > { %4936 = vmatmul.msk.f32.gmra.mxu2 %vm1698_vm0, %v8881_v20  ;;  %v10939_v20 = vld [vmem:[#allocation36_spill] sm:$0xff] }
 0x769   : > { %4937 = vmatmul.msk.f32.gmra.mxu2 %vm1698_vm0, %v8888_v56  ;;  %v1485_v56 = vmul.f32 %v9346_v50, %v10939_v20 }
 0x76b   : > { %v1501_v13 = vadd.f32 %v1485_v56, %v1468_v33  ;;  %v1506_v33 = vadd.f32 %v1490_v47, %v1473_v0  ;;  %v10954_v47 = vld [vmem:[#allocation18_spill] sm:$0xff] }
 0x76d   : > { %v1517_v44 = vadd.f32 %v1501_v13, %v10941_v32 }
 0x771   : > { %4938 = vmatmul.msk.f32.gmra.mxu2 %vm1698_vm0, %v10936_v18 }
 0x77c   : > { %v3858_v55 = vpop.f32.mrf.mxu2 }
 0x77d   : > { %v3906_v40 = vadd.f32 %v3858_v55, %v1517_v44  ;;  %v1522_v44 = vadd.f32 %v1506_v33, %v10952_v26  ;;  %v10956_v33 = vld [vmem:[#allocation71_spill] sm:$0xff] }
 0x77f   : > { %v4939_v6 = vmul.f32 -1.442695, %v3906_v40 }
 0x781   : > { %5416 = vpow2.f32 %v4939_v6 }
 0x784   : > { %v3861_v53 = vpop.f32.mrf.mxu2 }
 0x785   : > { %v3907_v52 = vadd.f32 %v3861_v53, %v1518_v58 }
 0x787   : > { %v4940_v23 = vmul.f32 -1.442695, %v3907_v52  ;;  %v5417_v13 = vpop.eup %5416  ;;  %v10953_v52 = vld [vmem:[#allocation67_spill] sm:$0xff] }
 0x788   : > { %v9378_v16 = vadd.f32 1.0, %v5417_v13  ;;  %v1493_v13 = vmul.f32 %v9346_v50, %v10956_v33  ;;  %v10958_v33 = vld [vmem:[#allocation65_spill] sm:$0xff] }
 0x789   : > { %v1461_v26 = vmul.f32 %v9332_v27, %v10958_v33 }
 0x78a   : > { %vm3943_vm1 = vweird.f32 %v9378_v16 }
 0x78c   : > { %v9352_v24 = vpop.f32.mrf.mxu2 }
 0x794   : > { %v9361_v36 = vpop.f32.mrf.mxu2 }
 0x79c   : > { %v3870_v18 = vpop.f32.mrf.mxu2 }
 0x79d   : > { %v3910_v55 = vadd.f32 %v3870_v18, %v1521_v49  ;;  %v1460_v49 = vmul.f32 %v9332_v27, %v10953_v52  ;;  %v1454_v18 = vmul.f32 %v9332_v27, %v10954_v47 }
 0x79f   : > { %v4943_v56 = vmul.f32 -1.442695, %v3910_v55 }
 0x7a1   : > { %5418 = vpow2.f32 %v4943_v56 }
 0x7a2   : > { %5420 = vpow2.f32 %v4940_v23  ;;  %v10955_v23 = vld [vmem:[#allocation60_spill] sm:$0xff] }
 0x7a3   : > { %5422 = vrcp.f32 %v9378_v16  ;;  %v1443_v56 = vmul.f32 %v9338_v45, %v10955_v23 }
 0x7a4   : > { %v3873_v40 = vpop.f32.mrf.mxu2 }
 0x7a5   : > { %v3911_v53 = vadd.f32 %v3873_v40, %v1522_v44 }
 0x7a7   : > { %v5419_v12 = vpop.eup %5418  ;;  %v4944_v19 = vmul.f32 -1.442695, %v3911_v53  ;;  %v10957_v53 = vld [vmem:[#allocation8_spill] sm:$0xff] }
 0x7a8   : > { %v9381_v46 = vadd.f32 1.0, %v5419_v12  ;;  %v5421_v54 = vpop.eup %5420  ;;  %v1437_v12 = vmul.f32 %v9338_v45, %v10957_v53  ;;  %v10960_v53 = vld [vmem:[#allocation12_spill] sm:$0xff] }
 0x7a9   : > { %5424 = vpow2.f32 %v4944_v19  ;;  %v9384_v39 = vadd.f32 1.0, %v5421_v54  ;;  %v9388_v2 = vpop.eup %5422  ;;  %v1476_v19 = vadd.f32 %v1460_v49, %v1443_v56  ;;  %v1438_v49 = vmul.f32 %v9338_v45, %v10960_v53  ;;  %v10961_v56 = vld [vmem:[#allocation11_spill] sm:$0xff] }
 0x7aa   : > { %5426 = vrcp.f32 %v9381_v46  ;;  %v3939_v51 = vmul.f32 %v9388_v2, %v9378_v16  ;;  %v4025_v10 = vand.u32 2147483648, %v9381_v46  ;;  %vm4019_vm12 = vweird.f32 %v9381_v46 }
 0x7ab   : > { %5428 = vrcp.f32 %v9384_v39  ;;  %v1509_v52 = vadd.f32 %v1493_v13, %v1476_v19  ;;  %v10963_v19 = vld [vmem:[#allocation56_spill] sm:$0xff]  ;;  %vm3944_vm13 = vweird.f32 %v9388_v2  ;;  %vm3958_vm6 = vweird.f32 %v9384_v39 }
 0x7ac   : > { %v9386_v6 = vpop.f32.mrf.mxu2  ;;  %v3940_v40 = vsub.f32 1.0, %v3939_v51  ;;  %v10959_v51 = vld [vmem:[#allocation16_spill] sm:$0xff]  ;;  %v1444_v33 = vmul.f32 %v9338_v45, %v10963_v19  ;;  %vm9465_vm3 = vmor %vm3943_vm1, %vm3944_vm13 }
 0x7ad   : > { %v1487_v14 = vmul.f32 %v9346_v50, %v10959_v51  ;;  %v1525_v13 = vadd.f32 %v1509_v52, %v10816_v3  ;;  %v1494_v51 = vmul.f32 %v9346_v50, %v10964_v41  ;;  %v4023_v41 = vand.u32 2147483647, %v9381_v46 }
 0x7ae   : > { %v1477_v57 = vadd.f32 %v1461_v26, %v1444_v33  ;;  %v3947_v26 = vand.u32 2147483647, %v9378_v16 }
 0x7af   : > { %v5425_v63 = vpop.eup %5424  ;;  %vm4024_vm2 = vcmp.eq.f32.partialorder %v4023_v41, 8.507059e+37 }
 0x7b0   : > { %v9390_v58 = vpop.eup %5426  ;;  %v9393_v59 = vadd.f32 1.0, %v5425_v63  ;;  %v1470_v63 = vadd.f32 %v1454_v18, %v1437_v12  ;;  %v1455_v18 = vmul.f32 %v9332_v27, %v10961_v56  ;;  %v10962_v12 = vld [vmem:[#allocation10_spill] sm:$0xff]  ;;  %vm3948_vm5 = vcmp.eq.f32.partialorder %v3947_v26, 8.507059e+37 }
 0x7b1   : > { %v4015_v62 = vmul.f32 %v9390_v58, %v9381_v46  ;;  %v9410_v44 = vpop.eup %5428  ;;  %v9432_v29 = vmul.f32 %v9346_v50, %v10962_v12  ;;  %vm4020_vm11 = vweird.f32 %v9390_v58  ;;  %v4026_v46 = vor.u32 1.1754944e-38, %v4025_v10 }
 0x7b2   : > { %5430 = vrcp.f32 %v9393_v59  ;;  %v3954_v47 = vmul.f32 %v9410_v44, %v9384_v39  ;;  %v1503_v15 = vadd.f32 %v1487_v14, %v1470_v63  ;;  %v1471_v14 = vadd.f32 %v1455_v18, %v1438_v49  ;;  %vm9446_vm14 = vmor %vm4019_vm12, %vm4020_vm11  ;;  %v10968_v18 = vld [vmem:[#allocation17_spill] sm:$0xff] }
 0x7b3   : > { %v4016_v55 = vsub.f32 1.0, %v4015_v62  ;;  %vm3959_vm10 = vweird.f32 %v9410_v44  ;;  %vm4034_vm8 = vweird.f32 %v9393_v59  ;;  %v4040_v41 = vand.u32 2147483648, %v9393_v59 }
 0x7b4   : > { %v9404_v0 = vpop.f32.mrf.mxu2  ;;  %vm9504_vm4 = vmor %vm3958_vm6, %vm3959_vm10 }
 0x7b5   : > { %v4017_v62 = vmul.f32 %v9390_v58, %v4016_v55  ;;  %v3941_v55 = vmul.f32 %v9388_v2, %v3940_v40  ;;  %v3955_v40 = vsub.f32 1.0, %v3954_v47  ;;  %v1510_v47 = vadd.f32 %v1494_v51, %v1477_v57 }
 0x7b7   : > { %v4018_v56 = vadd.f32 %v9390_v58, %v4017_v62  ;;  %v3942_v52 = vadd.f32 %v9388_v2, %v3941_v55  ;;  %v10967_v62 = vld [vmem:[#allocation9_spill] sm:$0xff]  ;;  %v1458_v55 = vmul.f32 %v9332_v27, %v10968_v18 }
 0x7b8   : > { %v9414_v54 = vpop.eup %5430  ;;  %v1441_v49 = vmul.f32 %v9338_v45, %v10967_v62 }
 0x7b9   : > { %v4030_v23 = vmul.f32 %v9414_v54, %v9393_v59  ;;  %v4022_v33 = vsel %vm9446_vm14, %v9390_v58, %v4018_v56  ;;  %v3946_v10 = vsel %vm9465_vm3, %v9388_v2, %v3942_v52  ;;  %v3956_v58 = vmul.f32 %v9410_v44, %v3955_v40 }
 0x7ba   : > { %v1492_v56 = vmul.f32 %v9346_v50, %v10894_v35  ;;  %v4027_v63 = vsel %vm4024_vm2, %v4026_v46, %v4022_v33  ;;  %vm4035_vm9 = vweird.f32 %v9414_v54  ;;  %v4038_v33 = vand.u32 2147483647, %v9393_v59 }
 0x7bb   : > { %v4031_v53 = vsub.f32 1.0, %v4030_v23  ;;  %v3949_v23 = vand.u32 2147483648, %v9378_v16  ;;  %v10972_v16 = vld [vmem:[#allocation14_spill] sm:$0xff]  ;;  %v4154_v52 = vmul.f32 %v4027_v63, %v9055_v48  ;;  %vm9486_vm15 = vmor %vm4034_vm8, %vm4035_vm9  ;;  %v3964_v35 = vand.u32 2147483648, %v9384_v39 }
 0x7bc   : > { %v3882_v8 = vpop.f32.mrf.mxu2  ;;  %v1459_v51 = vmul.f32 %v9332_v27, %v10972_v16  ;;  %v3962_v48 = vand.u32 2147483647, %v9384_v39  ;;  %vm4039_vm7 = vcmp.eq.f32.partialorder %v4038_v33, 8.507059e+37 }
 0x7bd   : > { %v3914_v12 = vadd.f32 %v3882_v8, %v1525_v13  ;;  %v4032_v8 = vmul.f32 %v9414_v54, %v4031_v53  ;;  %v10969_v13 = vld [vmem:[#allocation15_spill] sm:$0xff] }
 0x7be   : > { %v1442_v57 = vmul.f32 %v9338_v45, %v10969_v13  ;;  %v10973_v13 = vld [vmem:[#allocation69_spill] sm:$0xff]  ;;  %vm3963_vm11 = vcmp.eq.f32.partialorder %v3962_v48, 8.507059e+37 }
 0x7bf   : > { %5432 = vtanh.f32 %v3914_v12  ;;  %v3950_v12 = vor.u32 1.1754944e-38, %v3949_v23  ;;  %v1526_v18 = vadd.f32 %v1510_v47, %v10973_v13  ;;  %v4033_v16 = vadd.f32 %v9414_v54, %v4032_v8 }
 0x7c0   : > { %v3957_v47 = vadd.f32 %v9410_v44, %v3956_v58  ;;  %v1491_v8 = vmul.f32 %v9346_v50, %v10831_v43  ;;  %v1475_v46 = vadd.f32 %v1459_v51, %v1442_v57  ;;  %v4041_v58 = vor.u32 1.1754944e-38, %v4040_v41  ;;  %v10982_v57 = vld [vmem:[#allocation46_spill] sm:$0xff] }
 0x7c1   : > { %v3951_v2 = vsel %vm3948_vm5, %v3950_v12, %v3946_v10  ;;  %v4037_v59 = vsel %vm9486_vm15, %v9414_v54, %v4033_v16  ;;  %v1474_v51 = vadd.f32 %v1458_v55, %v1441_v49  ;;  %v3965_v16 = vor.u32 1.1754944e-38, %v3964_v35 }
 0x7c2   : > { %v1508_v12 = vadd.f32 %v1492_v56, %v1475_v46  ;;  %v3961_v39 = vsel %vm9504_vm4, %v9410_v44, %v3957_v47  ;;  %v10978_v56 = vld [vmem:[#allocation39_spill] sm:$0xff] }
 0x7c3   : > { %v3966_v55 = vsel %vm3963_vm11, %v3965_v16, %v3961_v39  ;;  %v10984_v16 = vld [vmem:[#allocation54_spill] sm:$0xff] }
 0x7c4   : > { %v3885_v62 = vpop.f32.mrf.mxu2  ;;  %v1524_v49 = vadd.f32 %v1508_v12, %v10901_v17 }
 0x7c5   : > { %v5433_v53 = vpop.eup %5432  ;;  %v3915_v40 = vadd.f32 %v3885_v62, %v1526_v18  ;;  %v1519_v62 = vadd.f32 %v1503_v15, %v10832_v38  ;;  %v1504_v18 = vadd.f32 %v9432_v29, %v1471_v14  ;;  %v4042_v29 = vsel %vm4039_vm7, %v4041_v58, %v4037_v59 }
 0x7c6   : > { %v4158_v23 = vmul.f32 %v5433_v53, %v3951_v2  ;;  %v1507_v14 = vadd.f32 %v1491_v8, %v1474_v51  ;;  %v4155_v44 = vmul.f32 %v4042_v29, %v9083_v37  ;;  %v10979_v8 = vld [vmem:[#allocation50_spill] sm:$0xff]  ;;  %v10980_v37 = vld [vmem:[#allocation43_spill] sm:$0xff]  ;;  %v1497_v51 = vmul.f32 %v9346_v50, %v10982_v57  ;;  %v10998_v57 = vld [vmem:[#allocation48_spill] sm:$0xff] }
 0x7c7   : > { %5434 = vtanh.f32 %v3915_v40  ;;  %v3908_v54 = vadd.f32 %v9352_v24, %v1519_v62  ;;  %v1520_v15 = vadd.f32 %v1504_v18, %v10900_v22  ;;  %v1447_v46 = vmul.f32 %v9338_v45, %v10979_v8  ;;  %v10981_v62 = vld [vmem:[#allocation47_spill] sm:$0xff] }
 0x7c8   : > { %v9493_v10 = vadd.f32 %v4158_v23, %v4154_v52  ;;  %v1523_v2 = vadd.f32 %v1507_v14, %v10978_v56  ;;  %v3913_v52 = vadd.f32 %v9404_v0, %v1524_v49  ;;  %v1464_v48 = vmul.f32 %v9332_v27, %v10980_v37 }
 0x7c9   : > { %v3909_v41 = vadd.f32 %v9361_v36, %v1520_v15  ;;  %v4941_v24 = vmul.f32 -1.442695, %v3908_v54  ;;  %v1448_v18 = vmul.f32 %v9338_v45, %v10981_v62  ;;  %v10983_v54 = vld [vmem:[#allocation40_spill] sm:$0xff]  ;;  %v1498_v29 = vmul.f32 %v9346_v50, %v10984_v16 }
 0x7ca   : > { %v3912_v35 = vadd.f32 %v9386_v6, %v1523_v2  ;;  %v4946_v33 = vmul.f32 -1.442695, %v3913_v52  ;;  %v1480_v59 = vadd.f32 %v1464_v48, %v1447_v46  ;;  %v1465_v15 = vmul.f32 %v9332_v27, %v10983_v54  ;;  %v10985_v2 = vld [vmem:[#allocation61_spill] sm:$0xff] }
 0x7cb   : > { %v4942_v47 = vmul.f32 -1.442695, %v3909_v41  ;;  %5436 = vpow2.f32 %v4941_v24 }
 0x7cc   : > { %v9513_v63 = vpop.f32.mrf.mxu2  ;;  %v4945_v26 = vmul.f32 -1.442695, %v3912_v35  ;;  %v1513_v41 = vadd.f32 %v1497_v51, %v1480_v59  ;;  %v1481_v49 = vadd.f32 %v1465_v15, %v1448_v18  ;;  %v10986_v35 = vld [vmem:[#allocation59_spill] sm:$0xff] }
 0x7cd   : > { %v5435_v53 = vpop.eup %5434  ;;  %5438 = vpow2.f32 %v4942_v47 }
 0x7ce   : > { %v4159_v40 = vmul.f32 %v5435_v53, %v3966_v55  ;;  %5440 = vpow2.f32 %v4946_v33  ;;  %v1514_v24 = vadd.f32 %v1498_v29, %v1481_v49  ;;  %v10987_v33 = vld [vmem:[#allocation44_spill] sm:$0xff]  ;;  %v10991_v29 = vld [vmem:[#allocation58_spill] sm:$0xff] }
 0x7cf   : > { %5442 = vpow2.f32 %v4945_v26  ;;  %v1449_v26 = vmul.f32 %v9338_v45, %v10987_v33  ;;  %v10994_v33 = vld [vmem:[#allocation52_spill] sm:$0xff] }
 0x7d0   : > { %v9521_v23 = vadd.f32 %v4159_v40, %v4155_v44  ;;  %v1529_v44 = vadd.f32 %v1513_v41, %v10985_v2  ;;  %v1530_v47 = vadd.f32 %v1514_v24, %v10986_v35  ;;  %v10992_v24 = vld [vmem:[#allocation49_spill] sm:$0xff] }
 0x7d1   : > { %v5437_v0 = vpop.eup %5436  ;;  %v10997_v2 = vld [vmem:[#allocation41_spill] sm:$0xff] }
 0x7d2   : > { %v9531_v58 = vadd.f32 1.0, %v5437_v0  ;;  %v10988_v0 = vld [vmem:[#allocation37_spill] sm:$0xff] }
 0x7d3   : > { %v5439_v6 = vpop.eup %5438  ;;  %v1466_v59 = vmul.f32 %v9332_v27, %v10988_v0 }
 0x7d4   : > { %v9523_v36 = vpop.f32.mrf.mxu2  ;;  %v5441_v39 = vpop.eup %5440  ;;  %v9539_v53 = vadd.f32 1.0, %v5439_v6  ;;  %5444 = vrcp.f32 %v9531_v58  ;;  %v10989_v6 = vld [vmem:[#allocation51_spill] sm:$0xff]  ;;  %vm3973_vm12 = vweird.f32 %v9531_v58 }
 0x7d5   : > { %v5443_v14 = vpop.eup %5442  ;;  %v9542_v55 = vadd.f32 1.0, %v5441_v39  ;;  %v1499_v18 = vmul.f32 %v9346_v50, %v10989_v6  ;;  %v1482_v49 = vadd.f32 %v1466_v59, %v1449_v26  ;;  %v10996_v59 = vld [vmem:[#allocation42_spill] sm:$0xff] }
 0x7d6   : > { %v9545_v40 = vadd.f32 1.0, %v5443_v14  ;;  %5446 = vrcp.f32 %v9539_v53  ;;  %v1445_v14 = vmul.f32 %v9338_v45, %v10991_v29  ;;  %vm3988_vm14 = vweird.f32 %v9539_v53 }
 0x7d7   : > { %5448 = vrcp.f32 %v9542_v55  ;;  %v1515_v29 = vadd.f32 %v1499_v18, %v1482_v49  ;;  %vm4064_vm5 = vweird.f32 %v9542_v55 }
 0x7d8   : > { %5450 = vrcp.f32 %v9545_v40  ;;  %vm4049_vm8 = vweird.f32 %v9545_v40 }
 0x7da   : > { %v9557_v51 = vpop.eup %5444 }
 0x7db   : > { %v3969_v6 = vmul.f32 %v9557_v51, %v9531_v58  ;;  %vm3974_vm13 = vweird.f32 %v9557_v51 }
 0x7dc   : > { %v3894_v12 = vpop.f32.mrf.mxu2  ;;  %vm9626_vm9 = vmor %vm3973_vm12, %vm3974_vm13 }
 0x7dd   : > { %v3918_v52 = vadd.f32 %v3894_v12, %v1529_v44  ;;  %v10990_v12 = vld [vmem:[#allocation55_spill] sm:$0xff]  ;;  %v9563_v44 = vpop.eup %5446 }
 0x7de   : > { %v1446_v39 = vmul.f32 %v9338_v45, %v10990_v12  ;;  %v1462_v12 = vmul.f32 %v9332_v27, %v10994_v33  ;;  %v3984_v54 = vmul.f32 %v9563_v44, %v9539_v53  ;;  %vm3989_vm1 = vweird.f32 %v9563_v44 }
 0x7df   : > { %v4947_v15 = vmul.f32 -1.442695, %v3918_v52  ;;  %v10995_v52 = vld [vmem:[#allocation64_spill] sm:$0xff]  ;;  %vm9638_vm10 = vmor %vm3988_vm14, %vm3989_vm1 }
 0x7e0   : > { %v1495_v35 = vmul.f32 %v9346_v50, %v10995_v52  ;;  %v1478_v33 = vadd.f32 %v1462_v12, %v1445_v14  ;;  %v1531_v52 = vadd.f32 %v1515_v29, %v10922_v28  ;;  %v3985_v62 = vsub.f32 1.0, %v3984_v54 }
 0x7e1   : > { %5452 = vpow2.f32 %v4947_v15  ;;  %v3970_v15 = vsub.f32 1.0, %v3969_v6 }
 0x7e4   : > { %v3897_v46 = vpop.f32.mrf.mxu2 }
 0x7e5   : > { %v3919_v48 = vadd.f32 %v3897_v46, %v1530_v47  ;;  %v1463_v47 = vmul.f32 %v9332_v27, %v10992_v24  ;;  %v10993_v46 = vld [vmem:[#allocation62_spill] sm:$0xff]  ;;  %v1450_v24 = vmul.f32 %v9338_v45, %v10996_v59 }
 0x7e6   : > { %v1496_v0 = vmul.f32 %v9346_v50, %v10993_v46  ;;  %v1467_v46 = vmul.f32 %v9332_v27, %v10997_v2 }
 0x7e7   : > { %v4948_v41 = vmul.f32 -1.442695, %v3919_v48  ;;  %v9575_v48 = vpop.eup %5448  ;;  %v1479_v26 = vadd.f32 %v1463_v47, %v1446_v39  ;;  %v1500_v39 = vmul.f32 %v9346_v50, %v10998_v57  ;;  %v1511_v47 = vadd.f32 %v1495_v35, %v1478_v33 }
 0x7e8   : > { %v9581_v16 = vpop.eup %5450  ;;  %v4060_v45 = vmul.f32 %v9575_v48, %v9542_v55  ;;  %v1483_v59 = vadd.f32 %v1467_v46, %v1450_v24  ;;  %v3971_v57 = vmul.f32 %v9557_v51, %v3970_v15  ;;  %v3986_v24 = vmul.f32 %v9563_v44, %v3985_v62 }
 0x7e9   : > { %5454 = vpow2.f32 %v4948_v41  ;;  %v1512_v18 = vadd.f32 %v1496_v0, %v1479_v26  ;;  %v4045_v2 = vmul.f32 %v9581_v16, %v9545_v40  ;;  %v1527_v12 = vadd.f32 %v1511_v47, %v10859_v11  ;;  %v5453_v29 = vpop.eup %5452 }
 0x7ea   : > { %v1516_v41 = vadd.f32 %v1500_v39, %v1483_v59  ;;  %v4061_v50 = vsub.f32 1.0, %v4060_v45  ;;  %v9598_v54 = vadd.f32 1.0, %v5453_v29  ;;  %v3979_v39 = vand.u32 2147483648, %v9531_v58 }
 0x7eb   : > { %v1528_v0 = vadd.f32 %v1512_v18, %v10860_v30  ;;  %v3916_v6 = vadd.f32 %v9513_v63, %v1527_v12  ;;  %v4046_v35 = vsub.f32 1.0, %v4045_v2  ;;  %v3972_v63 = vadd.f32 %v9557_v51, %v3971_v57 }
 0x7ec   : > { %v3900_v49 = vpop.f32.mrf.mxu2  ;;  %v1532_v46 = vadd.f32 %v1516_v41, %v10861_v4  ;;  %v4062_v18 = vmul.f32 %v9575_v48, %v4061_v50  ;;  %v3987_v15 = vadd.f32 %v9563_v44, %v3986_v24  ;;  %vm4065_vm3 = vweird.f32 %v9575_v48 }
 0x7ed   : > { %v3920_v27 = vadd.f32 %v3900_v49, %v1531_v52  ;;  %v3917_v33 = vadd.f32 %v9523_v36, %v1528_v0  ;;  %v4047_v2 = vmul.f32 %v9581_v16, %v4046_v35  ;;  %v3977_v36 = vand.u32 2147483647, %v9531_v58  ;;  %vm9647_vm15 = vmor %vm4064_vm5, %vm4065_vm3 }
 0x7ee   : > { %v3994_v47 = vand.u32 2147483648, %v9539_v53  ;;  %vm4050_vm2 = vweird.f32 %v9581_v16  ;;  %v4070_v12 = vand.u32 2147483648, %v9542_v55  ;;  %v4055_v41 = vand.u32 2147483648, %v9545_v40 }
 0x7ef   : > { %v4949_v14 = vmul.f32 -1.442695, %v3920_v27  ;;  %v5455_v26 = vpop.eup %5454  ;;  %v4063_v27 = vadd.f32 %v9575_v48, %v4062_v18  ;;  %v4048_v29 = vadd.f32 %v9581_v16, %v4047_v2  ;;  %v3992_v58 = vand.u32 2147483647, %v9539_v53  ;;  %vm9659_vm6 = vmor %vm4049_vm8, %vm4050_vm2 }
 0x7f0   : > { %v9602_v52 = vadd.f32 1.0, %v5455_v26  ;;  %v4068_v50 = vand.u32 2147483647, %v9542_v55  ;;  %v4053_v24 = vand.u32 2147483647, %v9545_v40  ;;  %v3980_v55 = vor.u32 1.1754944e-38, %v3979_v39 }
 0x7f1   : > { %5456 = vpow2.f32 %v4949_v14  ;;  %v4067_v18 = vsel %vm9647_vm15, %v9575_v48, %v4063_v27  ;;  %v4071_v40 = vor.u32 1.1754944e-38, %v4070_v12  ;;  %vm3978_vm4 = vcmp.eq.f32.partialorder %v3977_v36, 8.507059e+37 }
 0x7f2   : > { %5458 = vtanh.f32 %v3916_v6  ;;  %vm3993_vm7 = vcmp.eq.f32.partialorder %v3992_v58, 8.507059e+37  ;;  %vm4069_vm11 = vcmp.eq.f32.partialorder %v4068_v50, 8.507059e+37  ;;  %vm4054_vm12 = vcmp.eq.f32.partialorder %v4053_v24, 8.507059e+37 }
 0x7f3   : > { %5460 = vtanh.f32 %v3917_v33  ;;  %v3976_v33 = vsel %vm9626_vm9, %v9557_v51, %v3972_v63  ;;  %v4052_v63 = vsel %vm9659_vm6, %v9581_v16, %v4048_v29  ;;  %vm4114_vm13 = vweird.f32 %v9602_v52 }
 0x7f4   : > { %v3903_v59 = vpop.f32.mrf.mxu2  ;;  %5462 = vrcp.f32 %v9598_v54  ;;  %v3981_v39 = vsel %vm3978_vm4, %v3980_v55, %v3976_v33  ;;  %vm4099_vm5 = vweird.f32 %v9598_v54 }
 0x7f5   : > { %v3921_v49 = vadd.f32 %v3903_v59, %v1532_v46  ;;  %5464 = vrcp.f32 %v9602_v52  ;;  %v3991_v59 = vsel %vm9638_vm10, %v9563_v44, %v3987_v15  ;;  %v4072_v15 = vsel %vm4069_vm11, %v4071_v40, %v4067_v18 }
 0x7f6   : > { %v4157_v12 = vmul.f32 %v4072_v15, %v9246_v5 }
 0x7f7   : > { %v5457_v62 = vpop.eup %5456  ;;  %v4950_v45 = vmul.f32 -1.442695, %v3921_v49  ;;  %v3995_v49 = vor.u32 1.1754944e-38, %v3994_v47 }
 0x7f8   : > { %v9615_v57 = vadd.f32 1.0, %v5457_v62  ;;  %v5459_v0 = vpop.eup %5458  ;;  %v4056_v62 = vor.u32 1.1754944e-38, %v4055_v41 }
 0x7f9   : > { %5466 = vpow2.f32 %v4950_v45  ;;  %v5461_v6 = vpop.eup %5460  ;;  %v3996_v44 = vsel %vm3993_vm7, %v3995_v49, %v3991_v59  ;;  %v4160_v47 = vmul.f32 %v5459_v0, %v3981_v39  ;;  %v5609_v39 = vld [vmem:[%s10243_s3 + $0x40] sm:$0xff] }
 0x7fa   : > { %5468 = vrcp.f32 %v9615_v57  ;;  %v9655_v46 = vpop.eup %5462  ;;  %v4057_v27 = vsel %vm4054_vm12, %v4056_v62, %v4052_v63  ;;  %v4161_v14 = vmul.f32 %v5461_v6, %v3996_v44  ;;  %vm4129_vm3 = vweird.f32 %v9615_v57 }
 0x7fb   : > { %v9669_v51 = vpop.eup %5464  ;;  %v4095_v41 = vmul.f32 %v9655_v46, %v9598_v54  ;;  %v4156_v26 = vmul.f32 %v4057_v27, %v9248_v31  ;;  %v4118_v31 = vand.u32 2147483647, %v9602_v52  ;;  %v4133_v40 = vand.u32 2147483647, %v9615_v57 }
 0x7fc   : > { %v4110_v16 = vmul.f32 %v9669_v51, %v9602_v52  ;;  %v9684_v58 = vadd.f32 %v4161_v14, %v4157_v12  ;;  %vm4115_vm14 = vweird.f32 %v9669_v51  ;;  %v4135_v63 = vand.u32 2147483648, %v9615_v57  ;;  %v5614_v14 = vld [vmem:[%s10243_s3 + $0x68] sm:$0xff] }
 0x7fd   : > { %v9686_v6 = vadd.f32 %v4160_v47, %v4156_v26  ;;  %v4096_v33 = vsub.f32 1.0, %v4095_v41  ;;  %v4120_v44 = vand.u32 2147483648, %v9602_v52  ;;  %vm4100_vm10 = vweird.f32 %v9655_v46  ;;  %vm9717_vm15 = vmor %vm4114_vm13, %vm4115_vm14 }
 0x7fe   : > { %v4111_v50 = vsub.f32 1.0, %v4110_v16  ;;  %vm4134_vm4 = vcmp.eq.f32.partialorder %v4133_v40, 8.507059e+37  ;;  %v4105_v12 = vand.u32 2147483648, %v9598_v54  ;;  %vm4101_vm11 = vmor %vm4099_vm5, %vm4100_vm10  ;;  %vm4119_vm12 = vcmp.eq.f32.partialorder %v4118_v31, 8.507059e+37  ;;  %v5603_v31 = vld [vmem:[%s10243_s3 + $0x10] sm:$0xff]  ;;  %v5604_v40 = vld [vmem:[%s10243_s3 + $0x18] sm:$0xff] }
 0x7ff   : > { %v5467_v2 = vpop.eup %5466  ;;  %v4097_v59 = vmul.f32 %v9655_v46, %v4096_v33 }
 0x800   : > { %v9674_v45 = vpop.eup %5468  ;;  %v4093_v48 = vadd.f32 1.0, %v5467_v2  ;;  %v4112_v5 = vmul.f32 %v9669_v51, %v4111_v50  ;;  %v4121_v50 = vor.u32 1.1754944e-38, %v4120_v44  ;;  %v5610_v44 = vld [vmem:[%s10243_s3 + $0x48] sm:$0xff] }
 0x801   : > { %v4125_v36 = vmul.f32 %v9674_v45, %v9615_v57  ;;  %vm4130_vm1 = vweird.f32 %v9674_v45 }
 0x802   : > { %5470 = vrcp.f32 %v4093_v48  ;;  %v4150_v18 = vand.u32 2147483648, %v4093_v48  ;;  %v4148_v2 = vand.u32 2147483647, %v4093_v48  ;;  %v4113_v62 = vadd.f32 %v9669_v51, %v4112_v5  ;;  %vm9702_vm9 = vmor %vm4129_vm3, %vm4130_vm1 }
 0x803   : > { %v4126_v29 = vsub.f32 1.0, %v4125_v36  ;;  %5472 = vtanh.f32 %v9684_v58  ;;  %vm4144_vm8 = vweird.f32 %v4093_v48  ;;  %v4098_v36 = vadd.f32 %v9655_v46, %v4097_v59 }
 0x804   : > { %5474 = vtanh.f32 %v9686_v6  ;;  %v4151_v47 = vor.u32 1.1754944e-38, %v4150_v18  ;;  %vm4149_vm7 = vcmp.eq.f32.partialorder %v4148_v2, 8.507059e+37  ;;  %v4117_v52 = vsel %vm9717_vm15, %v9669_v51, %v4113_v62  ;;  %v5607_v2 = vld [vmem:[%s10243_s3 + $0x30] sm:$0xff]  ;;  %v5608_v62 = vld [vmem:[%s10243_s3 + $0x38] sm:$0xff] }
 0x805   : > { %v4127_v35 = vmul.f32 %v9674_v45, %v4126_v29  ;;  %5476 = vtanh.f32 %v9521_v23  ;;  %v4102_v33 = vsel %vm4101_vm11, %v9655_v46, %v4098_v36  ;;  %v4106_v5 = vor.u32 1.1754944e-38, %v4105_v12  ;;  %v5602_v46 = vld [vmem:[%s10243_s3 + $0x8] sm:$0xff]  ;;  %v5615_v36 = vld [vmem:[%s10243_s3 + $0x70] sm:$0xff] }
 0x806   : > { %5478 = vtanh.f32 %v9493_v10  ;;  %v9799_v12 = vperm.slane %v9329_v60, 7 }
 0x807   : > { %v4128_v55 = vadd.f32 %v9674_v45, %v4127_v35 }
 0x808   : > { %v5471_v24 = vpop.eup %5470 }
 0x809   : > { %v4140_v53 = vmul.f32 %v5471_v24, %v4093_v48  ;;  %vm4145_vm2 = vweird.f32 %v5471_v24  ;;  %v5473_v15 = vpop.eup %5472  ;;  %v4132_v57 = vsel %vm9702_vm9, %v9674_v45, %v4128_v55  ;;  %v4136_v48 = vor.u32 1.1754944e-38, %v4135_v63  ;;  %v5605_v63 = vld [vmem:[%s10243_s3 + $0x20] sm:$0xff] }
 0x80a   : > { %v5475_v16 = vpop.eup %5474  ;;  %vm4146_vm6 = vmor %vm4144_vm8, %vm4145_vm2  ;;  %v4103_v45 = vand.u32 2147483647, %v9598_v54  ;;  %v5601_v54 = vld [vmem:[%s10243_s3] sm:$0xff] }
 0x80b   : > { %v4141_v0 = vsub.f32 1.0, %v4140_v53  ;;  %v4137_v26 = vsel %vm4134_vm4, %v4136_v48, %v4132_v57  ;;  %v4122_v53 = vsel %vm4119_vm12, %v4121_v50, %v4117_v52  ;;  %v5613_v57 = vld [vmem:[%s10243_s3 + $0x60] sm:$0xff]  ;;  %v1568_v52 = vmul.f32 %v9799_v12, %v10937_v7 }
 0x80c   : > { %v4172_v51 = vmul.f32 %v5475_v16, %v4137_v26  ;;  %vm4104_vm13 = vcmp.eq.f32.partialorder %v4103_v45, 8.507059e+37  ;;  %v5616_v16 = vld [vmem:[%s10243_s3 + $0x78] sm:$0xff]  ;;  %v9807_v45 = vperm.slane %v9343_v1, 7 }
 0x80d   : > { %v4142_v49 = vmul.f32 %v5471_v24, %v4141_v0  ;;  %v4107_v0 = vsel %vm4104_vm13, %v4106_v5, %v4102_v33  ;;  %v11011_v5 = vld [vmem:[#allocation19_spill] sm:$0xff] }
 0x80e   : > { %v1601_v26 = vmul.f32 %v9807_v45, %v10939_v20  ;;  %v1602_v20 = vmul.f32 %v9807_v45, %v10944_v61 }
 0x80f   : > { %v4143_v27 = vadd.f32 %v5471_v24, %v4142_v49  ;;  %v5606_v49 = vld [vmem:[%s10243_s3 + $0x28] sm:$0xff] }
 0x811   : > { %v4147_v29 = vsel %vm4146_vm6, %v5471_v24, %v4143_v27  ;;  %v5477_v24 = vpop.eup %5476  ;;  %v5612_v27 = vld [vmem:[%s10243_s3 + $0x58] sm:$0xff] }
 0x812   : > { %v4152_v41 = vsel %vm4149_vm7, %v4151_v47, %v4147_v29  ;;  %v4171_v55 = vmul.f32 %v5477_v24, %v4122_v53  ;;  %v5479_v59 = vpop.eup %5478  ;;  %v9802_v29 = vperm.slane %v9335_v9, 7  ;;  %v1569_v9 = vmul.f32 %v9799_v12, %v10940_v42 }
 0x813   : > { %v4173_v35 = vmul.f32 %v5473_v15, %v4152_v41  ;;  %v4170_v18 = vmul.f32 %v5479_v59, %v4107_v0  ;;  %v5611_v15 = vld [vmem:[%s10243_s3 + $0x50] sm:$0xff] }
 0x814   : > { %v1551_v41 = vmul.f32 %v9802_v29, %v10938_v25  ;;  %v1552_v7 = vmul.f32 %v9802_v29, %v10942_v34  ;;  %v1572_v25 = vmul.f32 %v9799_v12, %v10943_v21  ;;  %v11012_v0 = vld [vmem:[#allocation35_spill] sm:$0xff]  ;;  %v11013_v34 = vld [vmem:[#allocation38_spill] sm:$0xff] }
 0x815   : > { %4202 = vmatpush.msrb.mxu3 %v4173_v35  ;;  %v1605_v42 = vmul.f32 %v9807_v45, %v11012_v0  ;;  %v11019_v0 = vld [vmem:[#allocation67_spill] sm:$0xff] }
 0x816   : > { %v1584_v50 = vadd.f32 %v1568_v52, %v1551_v41  ;;  %v1585_v24 = vadd.f32 %v1569_v9, %v1552_v7 }
 0x817   : > { %4203 = vmatpush.msrb.mxu3 %v4172_v51  ;;  %v1555_v51 = vmul.f32 %v9802_v29, %v11011_v5 }
 0x818   : > { %v1617_v60 = vadd.f32 %v1601_v26, %v1584_v50 }
 0x819   : > { %4204 = vmatpush.msrb.mxu3 %v4171_v55  ;;  %v1618_v55 = vadd.f32 %v1602_v20, %v1585_v24  ;;  %v1588_v59 = vadd.f32 %v1572_v25, %v1555_v51 }
 0x81a   : > { %v1633_v33 = vadd.f32 %v1617_v60, %v10941_v32 }
 0x81b   : > { %4205 = vmatpush.msrb.mxu3 %v4170_v18  ;;  %v1634_v18 = vadd.f32 %v1618_v55, %v11013_v34 }
 0x81c   : > { %4951 = vmatmul.msk.f32.vlgmr.msrb.gmra.mxu3 %vm1698_vm0, %v5601_v54  ;;  %v1621_v54 = vadd.f32 %v1605_v42, %v1588_v59  ;;  %v1576_v42 = vmul.f32 %v9799_v12, %v11019_v0  ;;  %v11029_v0 = vld [vmem:[#allocation66_spill] sm:$0xff] }
 0x824   : > { %4952 = vmatmul.msk.f32.gmra.mxu3 %vm1698_vm0, %v5602_v46  ;;  %v11014_v46 = vld [vmem:[#allocation23_spill] sm:$0xff] }
 0x825   : > { %v1573_v21 = vmul.f32 %v9799_v12, %v11014_v46  ;;  %v11022_v46 = vld [vmem:[#allocation71_spill] sm:$0xff] }
 0x82c   : > { %4953 = vmatmul.msk.f32.gmra.mxu3 %vm1698_vm0, %v5603_v31  ;;  %v11015_v31 = vld [vmem:[#allocation13_spill] sm:$0xff] }
 0x834   : > { %4954 = vmatmul.msk.f32.gmra.mxu3 %vm1698_vm0, %v5604_v40  ;;  %v1556_v40 = vmul.f32 %v9802_v29, %v11015_v31 }
 0x83c   : > { %4955 = vmatmul.msk.f32.gmra.mxu3 %vm1698_vm0, %v5605_v63  ;;  %v11016_v63 = vld [vmem:[#allocation45_spill] sm:$0xff] }
 0x844   : > { %4956 = vmatmul.msk.f32.gmra.mxu3 %vm1698_vm0, %v5606_v49  ;;  %v1637_v49 = vadd.f32 %v1621_v54, %v11016_v63 }
 0x84c   : > { %4957 = vmatmul.msk.f32.gmra.mxu3 %vm1698_vm0, %v5607_v2  ;;  %v11017_v2 = vld [vmem:[#allocation33_spill] sm:$0xff] }
 0x854   : > { %4958 = vmatmul.msk.f32.gmra.mxu3 %vm1698_vm0, %v5608_v62  ;;  %v1606_v62 = vmul.f32 %v9807_v45, %v11017_v2 }
 0x85c   : > { %4959 = vmatmul.msk.f32.gmra.mxu3 %vm1698_vm0, %v5609_v39 }
 0x864   : > { %4960 = vmatmul.msk.f32.gmra.mxu3 %vm1698_vm0, %v5610_v44 }
 0x86c   : > { %4961 = vmatmul.msk.f32.gmra.mxu3 %vm1698_vm0, %v5611_v15  ;;  %v1589_v15 = vadd.f32 %v1573_v21, %v1556_v40  ;;  %v1609_v21 = vmul.f32 %v9807_v45, %v11022_v46 }
 0x874   : > { %4962 = vmatmul.msk.f32.gmra.mxu3 %vm1698_vm0, %v5612_v27 }
 0x87c   : > { %4963 = vmatmul.msk.f32.gmra.mxu3 %vm1698_vm0, %v5613_v57 }
 0x884   : > { %4964 = vmatmul.msk.f32.gmra.mxu3 %vm1698_vm0, %v5614_v14  ;;  %v1622_v14 = vadd.f32 %v1606_v62, %v1589_v15 }
 0x88c   : > { %4965 = vmatmul.msk.f32.gmra.mxu3 %vm1698_vm0, %v5615_v36 }
 0x894   : > { %4966 = vmatmul.msk.f32.gmra.mxu3 %vm1698_vm0, %v5616_v16  ;;  %v11018_v16 = vld [vmem:[#allocation31_spill] sm:$0xff] }
 0x89f   : > { %v4207_v47 = vpop.f32.mrf.mxu3 }
 0x8a0   : > { %v4255_v1 = vadd.f32 %v4207_v47, %v1633_v33  ;;  %v1638_v47 = vadd.f32 %v1622_v14, %v11018_v16 }
 0x8a2   : > { %v4967_v32 = vmul.f32 -1.442695, %v4255_v1 }
 0x8a4   : > { %5480 = vpow2.f32 %v4967_v32  ;;  %v11020_v32 = vld [vmem:[#allocation18_spill] sm:$0xff] }
 0x8a5   : > { %v1570_v55 = vmul.f32 %v9799_v12, %v11020_v32 }
 0x8a7   : > { %v4210_v48 = vpop.f32.mrf.mxu3 }
 0x8a8   : > { %v4256_v61 = vadd.f32 %v4210_v48, %v1634_v18  ;;  %v11021_v18 = vld [vmem:[#allocation60_spill] sm:$0xff] }
 0x8a9   : > { %v1559_v54 = vmul.f32 %v9802_v29, %v11021_v18 }
 0x8aa   : > { %v4968_v27 = vmul.f32 -1.442695, %v4256_v61  ;;  %v5481_v36 = vpop.eup %5480  ;;  %v11023_v61 = vld [vmem:[#allocation8_spill] sm:$0xff] }
 0x8ab   : > { %v9839_v52 = vadd.f32 1.0, %v5481_v36  ;;  %v1553_v63 = vmul.f32 %v9802_v29, %v11023_v61  ;;  %v11025_v36 = vld [vmem:[#allocation16_spill] sm:$0xff] }
 0x8ac   : > { %v1603_v16 = vmul.f32 %v9807_v45, %v11025_v36 }
 0x8ad   : > { %v1586_v62 = vadd.f32 %v1570_v55, %v1553_v63  ;;  %vm4292_vm9 = vweird.f32 %v9839_v52 }
 0x8af   : > { %v9813_v35 = vpop.f32.mrf.mxu3  ;;  %v1619_v32 = vadd.f32 %v1603_v16, %v1586_v62  ;;  %v11034_v16 = vld [vmem:[#allocation15_spill] sm:$0xff] }
 0x8b7   : > { %v9822_v53 = vpop.f32.mrf.mxu3 }
 0x8bf   : > { %v4219_v39 = vpop.f32.mrf.mxu3 }
 0x8c0   : > { %v4259_v44 = vadd.f32 %v4219_v39, %v1637_v49  ;;  %v1592_v49 = vadd.f32 %v1576_v42, %v1559_v54  ;;  %v1610_v42 = vmul.f32 %v9807_v45, %v11029_v0 }
 0x8c2   : > { %v4971_v57 = vmul.f32 -1.442695, %v4259_v44 }
 0x8c4   : > { %5482 = vpow2.f32 %v4971_v57  ;;  %v11024_v57 = vld [vmem:[#allocation65_spill] sm:$0xff] }
 0x8c5   : > { %5484 = vpow2.f32 %v4968_v27  ;;  %v1625_v27 = vadd.f32 %v1609_v21, %v1592_v49  ;;  %v1577_v14 = vmul.f32 %v9799_v12, %v11024_v57  ;;  %v4298_v49 = vand.u32 2147483648, %v9839_v52 }
 0x8c6   : > { %5486 = vrcp.f32 %v9839_v52 }
 0x8c7   : > { %v4222_v41 = vpop.f32.mrf.mxu3 }
 0x8c8   : > { %v4260_v48 = vadd.f32 %v4222_v41, %v1638_v47  ;;  %v11026_v47 = vld [vmem:[#allocation12_spill] sm:$0xff] }
 0x8c9   : > { %v1554_v41 = vmul.f32 %v9802_v29, %v11026_v47  ;;  %v1558_v47 = vmul.f32 %v9802_v29, %v11034_v16 }
 0x8ca   : > { %v5483_v26 = vpop.eup %5482  ;;  %v4972_v50 = vmul.f32 -1.442695, %v4260_v48  ;;  %v11027_v48 = vld [vmem:[#allocation11_spill] sm:$0xff] }
 0x8cb   : > { %v9842_v60 = vadd.f32 1.0, %v5483_v26  ;;  %v5485_v9 = vpop.eup %5484  ;;  %v1571_v26 = vmul.f32 %v9799_v12, %v11027_v48 }
 0x8cc   : > { %5488 = vpow2.f32 %v4972_v50  ;;  %v9845_v33 = vadd.f32 1.0, %v5485_v9  ;;  %v9849_v1 = vpop.eup %5486  ;;  %v11028_v9 = vld [vmem:[#allocation10_spill] sm:$0xff] }
 0x8cd   : > { %5490 = vrcp.f32 %v9842_v60  ;;  %v4288_v51 = vmul.f32 %v9849_v1, %v9839_v52  ;;  %v4374_v46 = vand.u32 2147483648, %v9842_v60  ;;  %vm4368_vm1 = vweird.f32 %v9842_v60 }
 0x8ce   : > { %5492 = vrcp.f32 %v9845_v33  ;;  %vm4293_vm3 = vweird.f32 %v9849_v1  ;;  %v1587_v61 = vadd.f32 %v1571_v26, %v1554_v41  ;;  %v11037_v26 = vld [vmem:[#allocation14_spill] sm:$0xff]  ;;  %vm4307_vm11 = vweird.f32 %v9845_v33 }
 0x8cf   : > { %v9847_v7 = vpop.f32.mrf.mxu3  ;;  %v4289_v40 = vsub.f32 1.0, %v4288_v51  ;;  %v1560_v51 = vmul.f32 %v9802_v29, %v10963_v19  ;;  %v4372_v19 = vand.u32 2147483647, %v9842_v60  ;;  %vm9926_vm5 = vmor %vm4292_vm9, %vm4293_vm3 }
 0x8d1   : > { %v4290_v50 = vmul.f32 %v9849_v1, %v4289_v40  ;;  %v1593_v40 = vadd.f32 %v1577_v14, %v1560_v51  ;;  %v11033_v14 = vld [vmem:[#allocation17_spill] sm:$0xff]  ;;  %vm4373_vm10 = vcmp.eq.f32.partialorder %v4372_v19, 8.507059e+37  ;;  %v4313_v19 = vand.u32 2147483648, %v9845_v33 }
 0x8d2   : > { %v5489_v24 = vpop.eup %5488  ;;  %v1574_v36 = vmul.f32 %v9799_v12, %v11033_v14 }
 0x8d3   : > { %v9851_v25 = vpop.eup %5490  ;;  %v9854_v20 = vadd.f32 1.0, %v5489_v24  ;;  %v9893_v24 = vmul.f32 %v9807_v45, %v11028_v9  ;;  %v1626_v62 = vadd.f32 %v1610_v42, %v1593_v40  ;;  %v4299_v9 = vor.u32 1.1754944e-38, %v4298_v49  ;;  %v11040_v40 = vld [vmem:[#allocation21_spill] sm:$0xff] }
 0x8d4   : > { %v4364_v5 = vmul.f32 %v9851_v25, %v9842_v60  ;;  %v9871_v31 = vpop.eup %5492  ;;  %vm4369_vm14 = vweird.f32 %v9851_v25  ;;  %v4375_v60 = vor.u32 1.1754944e-38, %v4374_v46 }
 0x8d5   : > { %5494 = vrcp.f32 %v9854_v20  ;;  %v4303_v44 = vmul.f32 %v9871_v31, %v9845_v33  ;;  %vm9907_vm2 = vmor %vm4368_vm1, %vm4369_vm14  ;;  %v1642_v51 = vadd.f32 %v1626_v62, %v10973_v13  ;;  %vm4308_vm6 = vweird.f32 %v9871_v31 }
 0x8d6   : > { %v4365_v59 = vsub.f32 1.0, %v4364_v5  ;;  %v1641_v5 = vadd.f32 %v1625_v27, %v10816_v3  ;;  %v4291_v3 = vadd.f32 %v9849_v1, %v4290_v50  ;;  %v11032_v27 = vld [vmem:[#allocation9_spill] sm:$0xff]  ;;  %v1575_v50 = vmul.f32 %v9799_v12, %v11037_v26  ;;  %vm9964_vm12 = vmor %vm4307_vm11, %vm4308_vm6 }
 0x8d7   : > { %v9865_v34 = vpop.f32.mrf.mxu3  ;;  %v4304_v54 = vsub.f32 1.0, %v4303_v44  ;;  %v4296_v44 = vand.u32 2147483647, %v9839_v52  ;;  %v1557_v57 = vmul.f32 %v9802_v29, %v11032_v27  ;;  %v1635_v52 = vadd.f32 %v1619_v32, %v10832_v38 }
 0x8d8   : > { %v4366_v39 = vmul.f32 %v9851_v25, %v4365_v59  ;;  %vm4383_vm4 = vweird.f32 %v9854_v20  ;;  %v4314_v27 = vor.u32 1.1754944e-38, %v4313_v19 }
 0x8d9   : > { %v4305_v48 = vmul.f32 %v9871_v31, %v4304_v54  ;;  %vm4297_vm15 = vcmp.eq.f32.partialorder %v4296_v44, 8.507059e+37  ;;  %v4387_v54 = vand.u32 2147483647, %v9854_v20  ;;  %v1590_v62 = vadd.f32 %v1574_v36, %v1557_v57 }
 0x8da   : > { %v4367_v18 = vadd.f32 %v9851_v25, %v4366_v39  ;;  %v4257_v44 = vadd.f32 %v9813_v35, %v1635_v52 }
 0x8db   : > { %v9875_v2 = vpop.eup %5494  ;;  %v4306_v13 = vadd.f32 %v9871_v31, %v4305_v48  ;;  %vm4388_vm13 = vcmp.eq.f32.partialorder %v4387_v54, 8.507059e+37 }
 0x8dc   : > { %v4379_v15 = vmul.f32 %v9875_v2, %v9854_v20  ;;  %vm4384_vm8 = vweird.f32 %v9875_v2 }
 0x8dd   : > { %vm9946_vm7 = vmor %vm4383_vm4, %vm4384_vm8 }
 0x8de   : > { %v4380_v55 = vsub.f32 1.0, %v4379_v15  ;;  %v4371_v15 = vsel %vm9907_vm2, %v9851_v25, %v4367_v18  ;;  %v4295_v25 = vsel %vm9926_vm5, %v9849_v1, %v4291_v3  ;;  %v4389_v1 = vand.u32 2147483648, %v9854_v20 }
 0x8df   : > { %v4231_v59 = vpop.f32.mrf.mxu3  ;;  %v4300_v32 = vsel %vm4297_vm15, %v4299_v9, %v4295_v25  ;;  %v1608_v3 = vmul.f32 %v9807_v45, %v11040_v40  ;;  %v11047_v40 = vld [vmem:[#allocation61_spill] sm:$0xff] }
 0x8e0   : > { %v4263_v21 = vadd.f32 %v4231_v59, %v1641_v5  ;;  %v4381_v39 = vmul.f32 %v9875_v2, %v4380_v55  ;;  %v4376_v5 = vsel %vm4373_vm10, %v4375_v60, %v4371_v15  ;;  %v4390_v49 = vor.u32 1.1754944e-38, %v4389_v1 }
 0x8e1   : > { %v4503_v59 = vmul.f32 %v4376_v5, %v9493_v10  ;;  %v4311_v10 = vand.u32 2147483647, %v9845_v33  ;;  %v1620_v15 = vadd.f32 %v9893_v24, %v1587_v61  ;;  %v4310_v33 = vsel %vm9964_vm12, %v9871_v31, %v4306_v13  ;;  %v11043_v5 = vld [vmem:[#allocation47_spill] sm:$0xff] }
 0x8e2   : > { %5496 = vtanh.f32 %v4263_v21  ;;  %v4382_v38 = vadd.f32 %v9875_v2, %v4381_v39  ;;  %v1607_v21 = vmul.f32 %v9807_v45, %v10831_v43  ;;  %v1591_v39 = vadd.f32 %v1575_v50, %v1558_v47 }
 0x8e3   : > { %v1636_v14 = vadd.f32 %v1620_v15, %v10900_v22  ;;  %vm4312_vm14 = vcmp.eq.f32.partialorder %v4311_v10, 8.507059e+37  ;;  %v4969_v61 = vmul.f32 -1.442695, %v4257_v44 }
 0x8e4   : > { %v4386_v20 = vsel %vm9946_vm7, %v9875_v2, %v4382_v38  ;;  %v1623_v60 = vadd.f32 %v1607_v21, %v1590_v62  ;;  %v1624_v2 = vadd.f32 %v1608_v3, %v1591_v39  ;;  %v4315_v24 = vsel %vm4312_vm14, %v4314_v27, %v4310_v33  ;;  %v11044_v38 = vld [vmem:[#allocation46_spill] sm:$0xff]  ;;  %v11049_v39 = vld [vmem:[#allocation44_spill] sm:$0xff]  ;;  %v11051_v27 = vld [vmem:[#allocation51_spill] sm:$0xff] }
 0x8e5   : > { %v4391_v57 = vsel %vm4388_vm13, %v4390_v49, %v4386_v20  ;;  %v4258_v41 = vadd.f32 %v9822_v53, %v1636_v14  ;;  %v11048_v49 = vld [vmem:[#allocation59_spill] sm:$0xff]  ;;  %v1565_v43 = vmul.f32 %v9802_v29, %v11049_v39 }
 0x8e6   : > { %v1639_v47 = vadd.f32 %v1623_v60, %v10978_v56  ;;  %v1640_v35 = vadd.f32 %v1624_v2, %v10901_v17  ;;  %v4504_v31 = vmul.f32 %v4391_v57, %v9521_v23  ;;  %v1563_v17 = vmul.f32 %v9802_v29, %v10979_v8  ;;  %v11050_v60 = vld [vmem:[#allocation37_spill] sm:$0xff]  ;;  %v11052_v14 = vld [vmem:[#allocation55_spill] sm:$0xff] }
 0x8e7   : > { %v4234_v0 = vpop.f32.mrf.mxu3  ;;  %v4970_v26 = vmul.f32 -1.442695, %v4258_v41  ;;  %v1580_v23 = vmul.f32 %v9799_v12, %v10980_v37  ;;  %v1582_v2 = vmul.f32 %v9799_v12, %v11050_v60  ;;  %v1615_v57 = vmul.f32 %v9807_v45, %v11051_v27 }
 0x8e8   : > { %v5497_v42 = vpop.eup %5496  ;;  %v4264_v55 = vadd.f32 %v4234_v0, %v1642_v51  ;;  %v4261_v25 = vadd.f32 %v9847_v7, %v1639_v47  ;;  %v4262_v48 = vadd.f32 %v9865_v34, %v1640_v35  ;;  %v1564_v51 = vmul.f32 %v9802_v29, %v11043_v5  ;;  %v11053_v35 = vld [vmem:[#allocation58_spill] sm:$0xff] }
 0x8e9   : > { %v4507_v18 = vmul.f32 %v5497_v42, %v4300_v32  ;;  %v1596_v7 = vadd.f32 %v1580_v23, %v1563_v17  ;;  %v1613_v42 = vmul.f32 %v9807_v45, %v11044_v38  ;;  %v1598_v41 = vadd.f32 %v1582_v2, %v1565_v43 }
 0x8ea   : > { %5498 = vtanh.f32 %v4264_v55  ;;  %v4973_v50 = vmul.f32 -1.442695, %v4261_v25  ;;  %v4974_v9 = vmul.f32 -1.442695, %v4262_v48  ;;  %v11045_v55 = vld [vmem:[#allocation40_spill] sm:$0xff]  ;;  %v11055_v48 = vld [vmem:[#allocation62_spill] sm:$0xff] }
 0x8eb   : > { %v9955_v63 = vadd.f32 %v4507_v18, %v4503_v59  ;;  %5500 = vpow2.f32 %v4969_v61  ;;  %v1581_v8 = vmul.f32 %v9799_v12, %v11045_v55  ;;  %v11046_v59 = vld [vmem:[#allocation54_spill] sm:$0xff]  ;;  %v1629_v37 = vadd.f32 %v1613_v42, %v1596_v7  ;;  %v11059_v42 = vld [vmem:[#allocation41_spill] sm:$0xff] }
 0x8ec   : > { %5502 = vpow2.f32 %v4970_v26  ;;  %v1614_v18 = vmul.f32 %v9807_v45, %v11046_v59  ;;  %v1612_v26 = vmul.f32 %v9807_v45, %v11055_v48  ;;  %v1631_v7 = vadd.f32 %v1615_v57, %v1598_v41 }
 0x8ed   : > { %5504 = vpow2.f32 %v4973_v50  ;;  %v1597_v46 = vadd.f32 %v1581_v8, %v1564_v51  ;;  %v1645_v3 = vadd.f32 %v1629_v37, %v11047_v40  ;;  %v11060_v37 = vld [vmem:[#allocation48_spill] sm:$0xff] }
 0x8ee   : > { %5506 = vpow2.f32 %v4974_v9  ;;  %v11056_v9 = vld [vmem:[#allocation52_spill] sm:$0xff]  ;;  %v1647_v8 = vadd.f32 %v1631_v7, %v10922_v28 }
 0x8ef   : > { %v9974_v36 = vpop.f32.mrf.mxu3  ;;  %v1630_v10 = vadd.f32 %v1614_v18, %v1597_v46  ;;  %v1578_v17 = vmul.f32 %v9799_v12, %v11056_v9  ;;  %v1616_v46 = vmul.f32 %v9807_v45, %v11060_v37 }
 0x8f0   : > { %v5499_v16 = vpop.eup %5498 }
 0x8f1   : > { %v4508_v52 = vmul.f32 %v5499_v16, %v4315_v24  ;;  %v5501_v53 = vpop.eup %5500  ;;  %v1646_v62 = vadd.f32 %v1630_v10, %v11048_v49  ;;  %v1562_v16 = vmul.f32 %v9802_v29, %v11052_v14  ;;  %v1561_v24 = vmul.f32 %v9802_v29, %v11053_v35 }
 0x8f2   : > { %v9990_v34 = vadd.f32 1.0, %v5501_v53  ;;  %v5503_v0 = vpop.eup %5502  ;;  %v11057_v53 = vld [vmem:[#allocation64_spill] sm:$0xff] }
 0x8f3   : > { %v9982_v22 = vadd.f32 %v4508_v52, %v4504_v31  ;;  %v5505_v32 = vpop.eup %5504  ;;  %v10001_v54 = vadd.f32 1.0, %v5503_v0  ;;  %v11054_v52 = vld [vmem:[#allocation49_spill] sm:$0xff]  ;;  %v1611_v23 = vmul.f32 %v9807_v45, %v11057_v53  ;;  %v11058_v0 = vld [vmem:[#allocation42_spill] sm:$0xff]  ;;  %v1594_v55 = vadd.f32 %v1578_v17, %v1561_v24 }
 0x8f4   : > { %v5507_v13 = vpop.eup %5506  ;;  %5508 = vrcp.f32 %v9990_v34  ;;  %v10003_v21 = vadd.f32 1.0, %v5505_v32  ;;  %v1579_v25 = vmul.f32 %v9799_v12, %v11054_v52  ;;  %v1566_v38 = vmul.f32 %v9802_v29, %v11058_v0 }
 0x8f5   : > { %v10006_v19 = vadd.f32 1.0, %v5507_v13  ;;  %5510 = vrcp.f32 %v10001_v54  ;;  %vm4322_vm1 = vweird.f32 %v9990_v34  ;;  %vm4337_vm2 = vweird.f32 %v10001_v54 }
 0x8f6   : > { %5512 = vrcp.f32 %v10003_v21  ;;  %v1595_v51 = vadd.f32 %v1579_v25, %v1562_v16  ;;  %v4404_v41 = vand.u32 2147483648, %v10003_v21  ;;  %v4343_v17 = vand.u32 2147483648, %v10001_v54 }
 0x8f7   : > { %v9984_v56 = vpop.f32.mrf.mxu3  ;;  %5514 = vrcp.f32 %v10006_v19  ;;  %vm4398_vm15 = vweird.f32 %v10003_v21  ;;  %v4419_v7 = vand.u32 2147483648, %v10006_v19  ;;  %v4341_v0 = vand.u32 2147483647, %v10001_v54 }
 0x8f8   : > { %v1628_v18 = vadd.f32 %v1612_v26, %v1595_v51  ;;  %v4402_v51 = vand.u32 2147483647, %v10003_v21  ;;  %vm4413_vm7 = vweird.f32 %v10006_v19 }
 0x8f9   : > { %vm4342_vm14 = vcmp.eq.f32.partialorder %v4341_v0, 8.507059e+37 }
 0x8fa   : > { %v10013_v15 = vpop.eup %5508  ;;  %v1644_v45 = vadd.f32 %v1628_v18, %v10860_v30  ;;  %vm4403_vm13 = vcmp.eq.f32.partialorder %v4402_v51, 8.507059e+37 }
 0x8fb   : > { %v4318_v31 = vmul.f32 %v10013_v15, %v9990_v34  ;;  %v10030_v50 = vpop.eup %5510  ;;  %vm4323_vm3 = vweird.f32 %v10013_v15 }
 0x8fc   : > { %v10036_v5 = vpop.eup %5512  ;;  %v4333_v40 = vmul.f32 %v10030_v50, %v10001_v54  ;;  %v4266_v57 = vadd.f32 %v9984_v56, %v1644_v45  ;;  %v4326_v56 = vand.u32 2147483647, %v9990_v34  ;;  %vm4338_vm9 = vweird.f32 %v10030_v50  ;;  %vm10086_vm8 = vmor %vm4322_vm1, %vm4323_vm3 }
 0x8fd   : > { %v10042_v32 = vpop.eup %5514  ;;  %v4319_v59 = vsub.f32 1.0, %v4318_v31  ;;  %v4394_v29 = vmul.f32 %v10036_v5, %v10003_v21  ;;  %v4328_v31 = vand.u32 2147483648, %v9990_v34  ;;  %vm4399_vm5 = vweird.f32 %v10036_v5  ;;  %vm10100_vm6 = vmor %vm4337_vm2, %vm4338_vm9 }
 0x8fe   : > { %v4409_v10 = vmul.f32 %v10042_v32, %v10006_v19  ;;  %vm4414_vm10 = vweird.f32 %v10042_v32  ;;  %vm10107_vm4 = vmor %vm4398_vm15, %vm4399_vm5  ;;  %vm4327_vm12 = vcmp.eq.f32.partialorder %v4326_v56, 8.507059e+37 }
 0x8ff   : > { %v4243_v1 = vpop.f32.mrf.mxu3  ;;  %v4320_v39 = vmul.f32 %v10013_v15, %v4319_v59  ;;  %v4395_v60 = vsub.f32 1.0, %v4394_v29  ;;  %vm10120_vm11 = vmor %vm4413_vm7, %vm4414_vm10 }
 0x900   : > { %v4267_v20 = vadd.f32 %v4243_v1, %v1645_v3  ;;  %v1583_v1 = vmul.f32 %v9799_v12, %v11059_v42  ;;  %v1627_v3 = vadd.f32 %v1611_v23, %v1594_v55  ;;  %v4410_v27 = vsub.f32 1.0, %v4409_v10 }
 0x901   : > { %v4321_v16 = vadd.f32 %v10013_v15, %v4320_v39  ;;  %v4396_v35 = vmul.f32 %v10036_v5, %v4395_v60 }
 0x902   : > { %v4975_v47 = vmul.f32 -1.442695, %v4267_v20  ;;  %v1599_v20 = vadd.f32 %v1583_v1, %v1566_v38  ;;  %v1643_v28 = vadd.f32 %v1627_v3, %v10859_v11  ;;  %v4417_v1 = vand.u32 2147483647, %v10006_v19 }
 0x903   : > { %v4397_v48 = vadd.f32 %v10036_v5, %v4396_v35  ;;  %v4325_v21 = vsel %vm10086_vm8, %v10013_v15, %v4321_v16  ;;  %v4405_v19 = vor.u32 1.1754944e-38, %v4404_v41 }
 0x904   : > { %5516 = vpow2.f32 %v4975_v47  ;;  %v1632_v43 = vadd.f32 %v1616_v46, %v1599_v20  ;;  %v4265_v2 = vadd.f32 %v9974_v36, %v1643_v28  ;;  %vm4418_vm1 = vcmp.eq.f32.partialorder %v4417_v1, 8.507059e+37 }
 0x905   : > { %v4401_v59 = vsel %vm10107_vm4, %v10036_v5, %v4397_v48 }
 0x906   : > { %v1648_v11 = vadd.f32 %v1632_v43, %v10861_v4  ;;  %v4406_v5 = vsel %vm4403_vm13, %v4405_v19, %v4401_v59 }
 0x907   : > { %v4246_v44 = vpop.f32.mrf.mxu3 }
 0x908   : > { %v4268_v33 = vadd.f32 %v4246_v44, %v1646_v62 }
 0x90a   : > { %v4976_v61 = vmul.f32 -1.442695, %v4268_v33  ;;  %v5517_v62 = vpop.eup %5516  ;;  %v4334_v33 = vsub.f32 1.0, %v4333_v40  ;;  %v4420_v40 = vor.u32 1.1754944e-38, %v4419_v7 }
 0x90b   : > { %v10058_v14 = vadd.f32 1.0, %v5517_v62  ;;  %v4505_v62 = vmul.f32 %v4406_v5, %v9686_v6 }
 0x90c   : > { %5518 = vpow2.f32 %v4976_v61  ;;  %v4335_v36 = vmul.f32 %v10030_v50, %v4334_v33  ;;  %v4411_v61 = vmul.f32 %v10042_v32, %v4410_v27 }
 0x90d   : > { %vm4448_vm15 = vweird.f32 %v10058_v14  ;;  %v4454_v51 = vand.u32 2147483648, %v10058_v14  ;;  %v4452_v0 = vand.u32 2147483647, %v10058_v14 }
 0x90e   : > { %v4336_v26 = vadd.f32 %v10030_v50, %v4335_v36  ;;  %v4412_v53 = vadd.f32 %v10042_v32, %v4411_v61 }
 0x90f   : > { %v4249_v13 = vpop.f32.mrf.mxu3  ;;  %v4455_v59 = vor.u32 1.1754944e-38, %v4454_v51 }
 0x910   : > { %v4269_v12 = vadd.f32 %v4249_v13, %v1647_v8  ;;  %v4329_v8 = vor.u32 1.1754944e-38, %v4328_v31  ;;  %v4340_v18 = vsel %vm10100_vm6, %v10030_v50, %v4336_v26  ;;  %v4344_v13 = vor.u32 1.1754944e-38, %v4343_v17 }
 0x911   : > { %v4416_v37 = vsel %vm10120_vm11, %v10042_v32, %v4412_v53 }
 0x912   : > { %v4977_v49 = vmul.f32 -1.442695, %v4269_v12  ;;  %v5519_v44 = vpop.eup %5518  ;;  %v4330_v29 = vsel %vm4327_vm12, %v4329_v8, %v4325_v21  ;;  %v4345_v12 = vsel %vm4342_vm14, %v4344_v13, %v4340_v18  ;;  %v4421_v20 = vsel %vm4418_vm1, %v4420_v40, %v4416_v37  ;;  %v4525_v37 = vld [vmem:[%s10244_s4 + $0x10] sm:$0xff] }
 0x913   : > { %v10063_v47 = vadd.f32 1.0, %v5519_v44  ;;  %v4506_v43 = vmul.f32 %v4421_v20, %v9684_v58 }
 0x914   : > { %5520 = vpow2.f32 %v4977_v49 }
 0x915   : > { %5522 = vtanh.f32 %v4265_v2  ;;  %vm4463_vm3 = vweird.f32 %v10063_v47  ;;  %v4467_v31 = vand.u32 2147483647, %v10063_v47 }
 0x916   : > { %5524 = vtanh.f32 %v4266_v57 }
 0x917   : > { %v4252_v30 = vpop.f32.mrf.mxu3  ;;  %5526 = vrcp.f32 %v10058_v14  ;;  %vm4468_vm1 = vcmp.eq.f32.partialorder %v4467_v31, 8.507059e+37 }
 0x918   : > { %v4270_v24 = vadd.f32 %v4252_v30, %v1648_v11  ;;  %5528 = vrcp.f32 %v10063_v47 }
 0x91a   : > { %v5521_v4 = vpop.eup %5520  ;;  %v4978_v52 = vmul.f32 -1.442695, %v4270_v24 }
 0x91b   : > { %v10076_v25 = vadd.f32 1.0, %v5521_v4  ;;  %v5523_v23 = vpop.eup %5522 }
 0x91c   : > { %5530 = vpow2.f32 %v4978_v52  ;;  %v5525_v38 = vpop.eup %5524  ;;  %v4509_v10 = vmul.f32 %v5523_v23, %v4330_v29  ;;  %v4469_v52 = vand.u32 2147483648, %v10063_v47  ;;  %v4534_v29 = vpop.permute.xlu1 %4533 }
 0x91d   : > { %5532 = vrcp.f32 %v10076_v25  ;;  %v10116_v55 = vpop.eup %5526  ;;  %v4510_v32 = vmul.f32 %v5525_v38, %v4345_v12  ;;  %vm4478_vm5 = vweird.f32 %v10076_v25  ;;  %v4484_v36 = vand.u32 2147483648, %v10076_v25  ;;  %v4544_v12 = vpop.permute.xlu0 %4543 }
 0x91e   : > { %v10130_v15 = vpop.eup %5528  ;;  %v4444_v39 = vmul.f32 %v10116_v55, %v10058_v14  ;;  %v4513_v44 = vadd.f32 %v4509_v10, %v4505_v62  ;;  %vm4449_vm6 = vweird.f32 %v10116_v55  ;;  %v4470_v21 = vor.u32 1.1754944e-38, %v4469_v52  ;;  %v4523_v14 = vld [vmem:[%s10244_s4] sm:$0xff] }
 0x91f   : > { %v4459_v28 = vmul.f32 %v10130_v15, %v10063_v47  ;;  %v4514_v60 = vadd.f32 %v4510_v32, %v4506_v43  ;;  %vm4464_vm2 = vweird.f32 %v10130_v15  ;;  %v4485_v7 = vor.u32 1.1754944e-38, %v4484_v36  ;;  %vm4450_vm14 = vmor %vm4448_vm15, %vm4449_vm6 }
 0x920   : > { %v4445_v27 = vsub.f32 1.0, %v4444_v39  ;;  %vm10172_vm7 = vmor %vm4463_vm3, %vm4464_vm2  ;;  %vm4453_vm3 = vcmp.eq.f32.partialorder %v4452_v0, 8.507059e+37 }
 0x921   : > { %v4460_v33 = vsub.f32 1.0, %v4459_v28 }
 0x922   : > { %v5531_v46 = vpop.eup %5530  ;;  %v4446_v30 = vmul.f32 %v10116_v55, %v4445_v27 }
 0x923   : > { %v10135_v3 = vpop.eup %5532  ;;  %v4442_v50 = vadd.f32 1.0, %v5531_v46  ;;  %v4461_v16 = vmul.f32 %v10130_v15, %v4460_v33  ;;  %v4526_v46 = vld [vmem:[%s10244_s4 + $0x18] sm:$0xff] }
 0x924   : > { %v4474_v49 = vmul.f32 %v10135_v3, %v10076_v25  ;;  %vm4479_vm9 = vweird.f32 %v10135_v3  ;;  %v4447_v17 = vadd.f32 %v10116_v55, %v4446_v30 }
 0x925   : > { %5534 = vrcp.f32 %v4442_v50  ;;  %v4499_v35 = vand.u32 2147483648, %v4442_v50  ;;  %v4497_v61 = vand.u32 2147483647, %v4442_v50  ;;  %v4462_v56 = vadd.f32 %v10130_v15, %v4461_v16  ;;  %vm10157_vm8 = vmor %vm4478_vm5, %vm4479_vm9  ;;  %v4608_v43 = vpop.permute.xlu0 %4607 }
 0x926   : > { %v4475_v45 = vsub.f32 1.0, %v4474_v49  ;;  %5536 = vtanh.f32 %v9982_v22  ;;  %v4482_v22 = vand.u32 2147483647, %v10076_v25  ;;  %vm4493_vm4 = vweird.f32 %v4442_v50 }
 0x927   : > { %5538 = vtanh.f32 %v4513_v44  ;;  %v4500_v23 = vor.u32 1.1754944e-38, %v4499_v35  ;;  %vm4498_vm13 = vcmp.eq.f32.partialorder %v4497_v61, 8.507059e+37  ;;  %v4466_v47 = vsel %vm10172_vm7, %v10130_v15, %v4462_v56 }
 0x928   : > { %v4476_v2 = vmul.f32 %v10135_v3, %v4475_v45  ;;  %5540 = vtanh.f32 %v4514_v60  ;;  %vm4483_vm12 = vcmp.eq.f32.partialorder %v4482_v22, 8.507059e+37  ;;  %v4451_v54 = vsel %vm4450_vm14, %v10116_v55, %v4447_v17  ;;  %v4524_v55 = vld [vmem:[%s10244_s4 + $0x8] sm:$0xff] }
 0x929   : > { %5542 = vtanh.f32 %v9955_v63  ;;  %v4471_v8 = vsel %vm4468_vm1, %v4470_v21, %v4466_v47  ;;  %v4456_v15 = vsel %vm4453_vm3, %v4455_v59, %v4451_v54 }
 0x92a   : > { %v4477_v58 = vadd.f32 %v10135_v3, %v4476_v2 }
 0x92b   : > { %v5535_v57 = vpop.eup %5534 }
 0x92c   : > { %v4489_v11 = vmul.f32 %v5535_v57, %v4442_v50  ;;  %vm4494_vm10 = vweird.f32 %v5535_v57  ;;  %v5537_v4 = vpop.eup %5536  ;;  %v4481_v26 = vsel %vm10157_vm8, %v10135_v3, %v4477_v58  ;;  %v4539_v3 = vpop.permute.xlu2 %4538 }
 0x92d   : > { %v5539_v48 = vpop.eup %5538  ;;  %vm4495_vm11 = vmor %vm4493_vm4, %vm4494_vm10  ;;  %v4486_v42 = vsel %vm4483_vm12, %v4485_v7, %v4481_v26  ;;  %v4520_v63 = vmul.f32 %v5537_v4, %v4471_v8  ;;  %v4549_v50 = vpop.permute.xlu1 %4548 }
 0x92e   : > { %v4490_v6 = vsub.f32 1.0, %v4489_v11  ;;  %v5541_v53 = vpop.eup %5540  ;;  %v4521_v18 = vmul.f32 %v5539_v48, %v4486_v42  ;;  %v4637_v56 = vpop.permute.xlu0 %4636 }
 0x92f   : > { %v5543_v19 = vpop.eup %5542  ;;  %v4639_v41 = vperm.slane %v4637_v56, 0 }
 0x930   : > { %v4491_v24 = vmul.f32 %v5535_v57, %v4490_v6  ;;  %v4519_v13 = vmul.f32 %v5543_v19, %v4456_v15 }
 0x932   : > { %v4492_v25 = vadd.f32 %v5535_v57, %v4491_v24 }
 0x934   : > { %v4496_v34 = vsel %vm4495_vm11, %v5535_v57, %v4492_v25  ;;  %v4603_v32 = vpop.permute.xlu2 %4602 }
 0x935   : > { %v4501_v38 = vsel %vm4498_vm13, %v4500_v23, %v4496_v34  ;;  %v4613_v33 = vpop.permute.xlu1 %4612 }
 0x936   : > { %v4522_v1 = vmul.f32 %v5541_v53, %v4501_v38 }
 0x938   : > { %4575 = vmatpush.msra.mxu0 %v4522_v1 }
 0x93a   : > { %4576 = vmatpush.msra.mxu0 %v4521_v18 }
 0x93c   : > { %4577 = vmatpush.msra.mxu0 %v4520_v63  ;;  %v4618_v6 = vpop.permute.xlu2 %4617 }
 0x93e   : > { %4578 = vmatpush.msra.mxu0 %v4519_v13 }
 0x93f   : > { %4979 = vmatmul.msk.f32.vlgmr.msra.gmra.mxu0 %vm1698_vm0, %v4523_v14 }
 0x947   : > { %4980 = vmatmul.msk.f32.gmra.mxu0 %vm1698_vm0, %v4524_v55 }
 0x94f   : > { %4981 = vmatmul.msk.f32.gmra.mxu0 %vm1698_vm0, %v4525_v37 }
 0x957   : > { %4982 = vmatmul.msk.f32.gmra.mxu0 %vm1698_vm0, %v4526_v46 }
 0x9bc   : > { %v4580_v40 = vpop.f32.mrf.mxu0 }
 0x9bd   : > { %v4581_v28 = vadd.f32 %v4580_v40, %v4534_v29 }
 0x9bf   : > { %v4592_v39 = vmax.f32 %v4581_v28, 0.0 }
 0x9c1   : > { %v4620_v2 = vmul.f32 %v4603_v32, %v4592_v39 }
 0x9c4   : > { %v4583_v5 = vpop.f32.mrf.mxu0 }
 0x9c5   : > { %v4584_v10 = vadd.f32 %v4583_v5, %v4539_v3 }
 0x9c7   : > { %v4593_v62 = vmax.f32 %v4584_v10, 0.0 }
 0x9c9   : > { %v4621_v44 = vmul.f32 %v4608_v43, %v4593_v62 }
 0x9cb   : > { %v4624_v11 = vadd.f32 %v4621_v44, %v4620_v2 }
 0x9cc   : > { %v4586_v20 = vpop.f32.mrf.mxu0 }
 0x9cd   : > { %v4587_v49 = vadd.f32 %v4586_v20, %v4544_v12 }
 0x9cf   : > { %v4594_v45 = vmax.f32 %v4587_v49, 0.0 }
 0x9d1   : > { %v4622_v27 = vmul.f32 %v4613_v33, %v4594_v45 }
 0x9d3   : > { %v4625_v58 = vadd.f32 %v4624_v11, %v4622_v27 }
 0x9d4   : > { %v4589_v60 = vpop.f32.mrf.mxu0 }
 0x9d5   : > { %v4590_v57 = vadd.f32 %v4589_v60, %v4549_v50 }
 0x9d7   : > { %v4595_v16 = vmax.f32 %v4590_v57, 0.0 }
 0x9d9   : > { %v4623_v30 = vmul.f32 %v4618_v6, %v4595_v16 }
 0x9db   : > { %v4626_v35 = vadd.f32 %v4625_v58, %v4623_v30 }
 0x9dd   : > { %v4627_v22 = vrot.slane %v4626_v35, 4 }
 0x9df   : > { %v4628_v36 = vadd.f32 %v4627_v22, %v4626_v35 }
 0x9e1   : > { %v4629_v24 = vrot.slane %v4628_v36, 2 }
 0x9e3   : > { %v4630_v61 = vadd.f32 %v4629_v24, %v4628_v36 }
 0x9e5   : > { %v4631_v4 = vrot.slane %v4630_v61, 1 }
 0x9e7   : > { %v4632_v31 = vadd.f32 %v4631_v4, %v4630_v61 }
 0x9e9   : > { %v4640_v52 = vadd.f32 %v4639_v41, %v4632_v31 }
 0x9eb   : > { %4641 = vst [vmem:[%s347_s25] sm:$0x1] %v4640_v52 }
 0x9ec   : > { %5644 = shalt.err (!%p5641_p5)
}
 0x9ed   : > { %4988 = dma.vmem_to_hbm [thread:$0]  (%p5769_p6), %s4654_s26, 16, %s4656_s27, %s4643_s28  }
 0x9ee PF: > { %s4667_s11 = sand.u32 1, %s5667_s29   ;;  %p4991_p7 = pnand %p4718_p9, %p5773_p8 }
 0x9ef   : > { %s4668_s22 = scalar_lea.sflag [#allocation6], %s4667_s11 }
 0x9f0   : > { %p4992_p10 = pneg %p4991_p7 }
 0x9f2   : > { %5662 = dma.done.wait (%p4992_p10), %s4668_s22, 16  }
 0x9f3   : > { %5664 = vsyncadd (%p4992_p10), %s4668_s22, 4294967280  ;;  %p20_p11 = scmp.ge.s32.totalorder %s5754_s12, 4   ;;  %s11073_s29 = smov %s5671_s30 }
 0x9f4   : > { %s11074_s30 = smov %s5675_s9  ;;  %s11075_s9 = smov %s5767_s15 }
 0x9f5   : > { %s11076_s10 = smov %s5754_s12  ;;  %22 = sbr.rel (!%p20_p11) target bundleno = 6 (0x6), region = 141 }
 0x9fa   :  { %4673 = vsyncpa [#allocation6], 1 }
 0x9fb   :  { %4675 = vsyncpa [#allocation6 + $0x1], 1 }

</bundles_post_ra>
